<compile_context>
chip_gen: v7x
topology: tpu7x:2x2x1
jax: 0.10.0
libtpu: 0.0.40
codegen_flags: <defaults>
</compile_context>

<pallas_src>
import functools
import math

import jax
import jax.numpy as jnp
from jax.experimental import pallas as pl
from jax.experimental.pallas import tpu as pltpu


# ----------------------------- Pallas kernel -------------------------------

def _matmul_bias_act_kernel(x_ref, w_ref, b_ref, o_ref, *, apply_relu):
    """One-shot (tm, K) @ (K, N) matmul with fused bias add + optional ReLU.

    Full contraction dim per call (no K grid axis); bf16 operands, f32
    accumulation, f32 epilogue, cast to o_ref.dtype on store.
    """
    x = x_ref[...].astype(jnp.bfloat16)
    w = w_ref[...].astype(jnp.bfloat16)
    acc = jnp.dot(x, w, preferred_element_type=jnp.float32)
    acc = acc + b_ref[...]                       # (1, N) f32 bias broadcast
    if apply_relu:
        acc = jnp.maximum(acc, 0.0)
    o_ref[...] = acc.astype(o_ref.dtype)


def matmul_bias_act(x, w, b, *, apply_relu=True, out_dtype=jnp.bfloat16, tm=256):
    """y = (relu)(x @ w + b).

    x: (M, K) f32/bf16, w: (K, N) bf16 (pre-transposed), b: (1, N) f32.
    Grid tiles only M; K and N are taken whole (K <= 1024, N <= 1024 here).
    """
    M, K = x.shape
    K2, N = w.shape
    assert K == K2 and b.shape == (1, N)

    # Small M -> single full-M block (block dim == full dim is always legal);
    # large M -> tm rows per step (tm is a multiple of 8), boundary block is
    # handled by Pallas masking.
    tm_eff = M if M <= tm else tm
    grid = (pl.cdiv(M, tm_eff),)

    return pl.pallas_call(
        functools.partial(_matmul_bias_act_kernel, apply_relu=apply_relu),
        out_shape=jax.ShapeDtypeStruct((M, N), out_dtype),
        grid_spec=pltpu.PrefetchScalarGridSpec(
            num_scalar_prefetch=0,
            grid=grid,
            in_specs=[
                pl.BlockSpec((tm_eff, K), lambda i: (i, 0)),
                pl.BlockSpec((K, N), lambda i: (0, 0)),   # weight resident
                pl.BlockSpec((1, N), lambda i: (0, 0)),   # bias resident
            ],
            out_specs=pl.BlockSpec((tm_eff, N), lambda i: (i, 0)),
        ),
        compiler_params=pltpu.CompilerParams(
            dimension_semantics=("parallel",)),
    )(x, w, b)


# --------------------------- conv / pool wrappers ---------------------------

def _im2col(x, kh, kw, stride, padding):
    """NHWC im2col -> (N, Ho, Wo, kh*kw*C), patch order (dy, dx, c)."""
    N, H, W, C = x.shape
    Ho = (H + 2 * padding - kh) // stride + 1
    Wo = (W + 2 * padding - kw) // stride + 1
    xp = jnp.pad(x, ((0, 0), (padding, padding), (padding, padding), (0, 0)))
    cols = []
    for dy in range(kh):
        for dx in range(kw):
            cols.append(xp[:,
                           dy:dy + stride * (Ho - 1) + 1:stride,
                           dx:dx + stride * (Wo - 1) + 1:stride, :])
    return jnp.concatenate(cols, axis=-1), Ho, Wo


def conv_im2col(x, w_mat, b, *, kh, kw, stride, padding, relu=True,
                out_dtype=jnp.bfloat16):
    """General conv via im2col + single Pallas matmul. w_mat: (kh*kw*Cin, Cout)."""
    N = x.shape[0]
    patches, Ho, Wo = _im2col(x, kh, kw, stride, padding)
    y = matmul_bias_act(patches.reshape(N * Ho * Wo, -1), w_mat, b,
                        apply_relu=relu, out_dtype=out_dtype)
    return y.reshape(N, Ho, Wo, -1)


def fire_module(x, p):
    """Fire: squeeze 1x1 + fused (expand1x1 | expand3x3) single matmul."""
    N, H, W, C = x.shape
    s = matmul_bias_act(x.reshape(N * H * W, C), p['squeeze_w'], p['squeeze_b'])
    s = s.reshape(N, H, W, -1)
    patches, Ho, Wo = _im2col(s, 3, 3, 1, 1)          # same spatial size
    out = matmul_bias_act(patches.reshape(N * Ho * Wo, -1),
                          p['expand_w'], p['expand_b'])
    return out.reshape(N, Ho, Wo, -1)                 # channels = [e1 | e3]


def maxpool_2x2_s2_p1_ceil(x):
    """PyTorch MaxPool2d(kernel=2, stride=2, padding=1, ceil_mode=True), NHWC."""
    N, H, W, C = x.shape

    def out_size(L):
        o = math.ceil((L + 2 * 1 - 2) / 2) + 1
        if (o - 1) * 2 >= L + 1:                      # ceil-mode fixup
            o -= 1
        return o

    Ho, Wo = out_size(H), out_size(W)
    neg = jnp.finfo(x.dtype).min
    pad_h_r = max(2 * Ho - (H + 1), 0)
    pad_w_r = max(2 * Wo - (W + 1), 0)
    xp = jnp.pad(x, ((0, 0), (1, pad_h_r), (1, pad_w_r), (0, 0)),
                 constant_values=neg)
    a = xp[:, 0:2 * Ho:2, 0:2 * Wo:2, :]
    b = xp[:, 0:2 * Ho:2, 1:2 * Wo:2, :]
    c = xp[:, 1:2 * Ho:2, 0:2 * Wo:2, :]
    d = xp[:, 1:2 * Ho:2, 1:2 * Wo:2, :]
    return jnp.maximum(jnp.maximum(a, b), jnp.maximum(c, d))


def maxpool_k1_s2_ceil(x):
    """MaxPool2d(kernel=1, stride=2, ceil_mode=True) == strided subsample."""
    return x[:, ::2, ::2, :]


# ------------------------ parameters (raw + prepared) ------------------------

def _init_conv(key, cout, cin, kh, kw):
    k1, k2 = jax.random.split(key)
    fan_in = cin * kh * kw
    bound = 1.0 / math.sqrt(fan_in)
    w = jax.random.uniform(k1, (cout, cin, kh, kw), jnp.float32, -bound, bound)
    b = jax.random.uniform(k2, (cout,), jnp.float32, -bound, bound)
    return w, b


def _init_fire(key, inplanes, squeeze_planes, e1_planes, e3_planes):
    ks, k1, k3 = jax.random.split(key, 3)
    sw, sb = _init_conv(ks, squeeze_planes, inplanes, 1, 1)
    e1w, e1b = _init_conv(k1, e1_planes, squeeze_planes, 1, 1)
    e3w, e3b = _init_conv(k3, e3_planes, squeeze_planes, 3, 3)
    return dict(squeeze_w=sw, squeeze_b=sb,
                e1_w=e1w, e1_b=e1b, e3_w=e3w, e3_b=e3b)


FIRE_CFG = [(96, 16, 64, 64), (128, 16, 64, 64), (128, 32, 128, 128),
            (256, 32, 128, 128), (256, 48, 192, 192), (384, 48, 192, 192),
            (384, 64, 256, 256), (512, 80, 512, 512)]


def init_squeezenet_params(key):
    """Raw PyTorch-layout parameters (as nn.Conv2d would hold them)."""
    keys = jax.random.split(key, 9)
    params = {'conv1_w': None, 'conv1_b': None}
    params['conv1_w'], params['conv1_b'] = _init_conv(keys[0], 96, 3, 7, 7)
    for i, cfg in enumerate(FIRE_CFG):
        params[f'fire{i + 2}'] = _init_fire(keys[i + 1], *cfg)
    return params


def prepare_params(raw):
    """One-time weight preprocessing: (K, N) bf16 matmul weights, (1, N) f32
    biases, and fused expand1x1+expand3x3 weights per fire module."""
    def conv_to_mat(w):                       # (Cout,Cin,kh,kw) -> (kh*kw*Cin,Cout)
        cout, cin, kh, kw = w.shape
        return jnp.transpose(w, (2, 3, 1, 0)).reshape(kh * kw * cin, cout)

    def pack_bias(b):
        return b.reshape(1, -1).astype(jnp.float32)

    prep = {
        'conv1_w': conv_to_mat(raw['conv1_w']).astype(jnp.bfloat16),
        'conv1_b': pack_bias(raw['conv1_b']),
    }
    for i in range(2, 10):
        p = raw[f'fire{i}']
        cs = p['squeeze_w'].shape[0]
        ce1 = p['e1_w'].shape[0]
        # 3x3 branch as (9*Cs, Ce3) in (dy, dx, c) row order.
        w3 = conv_to_mat(p['e3_w'])
        # 1x1 branch placed on the centre-tap rows (dy=1, dx=1 -> patch idx 4).
        w1_center = p['e1_w'].reshape(ce1, cs).T                       # (Cs, Ce1)
        w1_full = jnp.zeros((9 * cs, ce1), jnp.float32)
        w1_full = w1_full.at[4 * cs:5 * cs, :].set(w1_center)
        expand_w = jnp.concatenate([w1_full, w3], axis=1).astype(jnp.bfloat16)
        expand_b = jnp.concatenate([p['e1_b'], p['e3_b']]).reshape(1, -1)
        prep[f'fire{i}'] = dict(
            squeeze_w=conv_to_mat(p['squeeze_w']).astype(jnp.bfloat16),
            squeeze_b=pack_bias(p['squeeze_b']),
            expand_w=expand_w,
            expand_b=expand_b.astype(jnp.float32),
        )
    return prep


# ------------------------------ SqueezeNet ----------------------------------

def squeezenet_forward(prep, x_nchw):
    """Backbone forward; returns the 4 feature maps as NCHW f32 (torch order)."""
    x = jnp.transpose(x_nchw, (0, 2, 3, 1))          # NCHW -> NHWC
    outputs = []
    x = conv_im2col(x, prep['conv1_w'], prep['conv1_b'],
                    kh=7, kw=7, stride=2, padding=2)         # conv1 + relu1
    x = maxpool_2x2_s2_p1_ceil(x)                             # maxpool1
    x = fire_module(x, prep['fire2'])
    x = fire_module(x, prep['fire3'])
    outputs.append(x)
    x = fire_module(x, prep['fire4'])
    x = maxpool_k1_s2_ceil(x)                                 # maxpool2
    x = fire_module(x, prep['fire5'])
    outputs.append(x)
    x = fire_module(x, prep['fire6'])
    x = fire_module(x, prep['fire7'])
    x = maxpool_k1_s2_ceil(x)                                 # maxpool2
    x = fire_module(x, prep['fire8'])
    outputs.append(x)
    x = maxpool_k1_s2_ceil(x)                                 # maxpool2
    x = fire_module(x, prep['fire9'])
    outputs.append(x)
    return tuple(jnp.transpose(o, (0, 3, 1, 2)).astype(jnp.float32)
                 for o in outputs)


def model_forward(prep, x_nchw):
    """`Model.forward` equivalent for the concretely defined part."""
    feats = squeezenet_forward(prep, x_nchw)
    # TODO(synk): RepPAN neck and Efficient Decoupled Detect head require the
    # external YOLOv6 config (channels_list / num_repeats / reg_max) which is
    # not provided; return the backbone feature maps.
    return feats


# ---------------------------------- main ------------------------------------

if __name__ == "__main__":
    key = jax.random.PRNGKey(0)
    x = jax.random.normal(key, (2, 3, 64, 64), jnp.float32)   # NCHW, like torch

    raw_params = init_squeezenet_params(jax.random.PRNGKey(42))
    prep_params = prepare_params(raw_params)                   # one-time prep

    outs = jax.jit(model_forward)(prep_params, x)
    outs = jax.block_until_ready(outs)

    expected = [(2, 128, 16, 16), (2, 256, 8, 8), (2, 512, 4, 4), (2, 1024, 2, 2)]
    got = [tuple(int(d) for d in o.shape) for o in outs]
    assert got == expected, f"shape mismatch: {got} vs {expected}"
    assert all(o.dtype == jnp.float32 for o in outs)
    assert all(bool(jnp.isfinite(o).all()) for o in outs)
    print("KERNEL_OK")
</pallas_src>

<mosaic_0001>
module attributes {stable_mosaic.version = 11 : i64} {
  func.func @_matmul_bias_act_kernel(%arg0: i32, %arg1: memref<256x147xf32, #tpu.memory_space<vmem>>, %arg2: memref<147x96xbf16, #tpu.memory_space<vmem>>, %arg3: memref<1x96xf32, #tpu.memory_space<vmem>>, %arg4: memref<256x96xbf16, #tpu.memory_space<vmem>>) attributes {dimension_semantics = [#tpu.dimension_semantics<parallel>], iteration_bounds = array<i64: 8>, scalar_prefetch = 0 : i64, scratch_operands = 0 : i64, tpu.core_type = #tpu.core_type<tc>, window_params = [{transform_indices = @transform_0, window_bounds = array<i64: 256, 147>}, {pipeline_mode = #tpu.pipeline_mode<synchronous>, transform_indices = @transform_1, window_bounds = array<i64: 147, 96>}, {pipeline_mode = #tpu.pipeline_mode<synchronous>, transform_indices = @transform_2, window_bounds = array<i64: 1, 96>}, {transform_indices = @transform_3, window_bounds = array<i64: 256, 96>}]} {
    %c0 = arith.constant 0 : index
    %c0_0 = arith.constant 0 : index
    %0 = vector.load %arg1[%c0, %c0_0] : memref<256x147xf32, #tpu.memory_space<vmem>>, vector<256x147xf32>
    %1 = arith.truncf %0 : vector<256x147xf32> to vector<256x147xbf16>
    %c0_1 = arith.constant 0 : index
    %c0_2 = arith.constant 0 : index
    %2 = vector.load %arg2[%c0_1, %c0_2] : memref<147x96xbf16, #tpu.memory_space<vmem>>, vector<147x96xbf16>
    %cst = arith.constant dense<0.000000e+00> : vector<256x96xf32>
    %3 = tpu.matmul %1, %2, %cst {dimension_numbers = #tpu.dot_dimension_numbers<[1], [0], [0], [1], [0, 0, 1, 1], [], []>} : vector<256x147xbf16>, vector<147x96xbf16>, vector<256x96xf32> -> vector<256x96xf32>
    %c0_3 = arith.constant 0 : index
    %c0_4 = arith.constant 0 : index
    %4 = vector.load %arg3[%c0_3, %c0_4] : memref<1x96xf32, #tpu.memory_space<vmem>>, vector<1x96xf32>
    %5 = vector.broadcast %4 : vector<1x96xf32> to vector<256x96xf32>
    %6 = arith.addf %3, %5 : vector<256x96xf32>
    %cst_5 = arith.constant 0.000000e+00 : f32
    %7 = vector.broadcast %cst_5 : f32 to vector<256x96xf32>
    %8 = arith.maximumf %6, %7 : vector<256x96xf32>
    %9 = arith.truncf %8 : vector<256x96xf32> to vector<256x96xbf16>
    %c0_6 = arith.constant 0 : index
    %c0_7 = arith.constant 0 : index
    %10 = vector.load %arg4[%c0_6, %c0_7] : memref<256x96xbf16, #tpu.memory_space<vmem>>, vector<256x96xbf16>
    tpu.vector_store %arg4[%c0_6, %c0_7], %9 {strides = array<i32>} : memref<256x96xbf16, #tpu.memory_space<vmem>>, vector<256x96xbf16>,
    return
  }
  func.func @transform_0(%arg0: i32) -> (i32, i32) {
    %c0_i32 = arith.constant 0 : i32
    %c0_i32_0 = arith.constant 0 : i32
    return %arg0, %c0_i32 : i32, i32
  }
  func.func @transform_1(%arg0: i32) -> (i32, i32) {
    %c0_i32 = arith.constant 0 : i32
    %c0_i32_0 = arith.constant 0 : i32
    %c0_i32_1 = arith.constant 0 : i32
    return %c0_i32, %c0_i32_0 : i32, i32
  }
  func.func @transform_2(%arg0: i32) -> (i32, i32) {
    %c0_i32 = arith.constant 0 : i32
    %c0_i32_0 = arith.constant 0 : i32
    %c0_i32_1 = arith.constant 0 : i32
    return %c0_i32, %c0_i32_0 : i32, i32
  }
  func.func @transform_3(%arg0: i32) -> (i32, i32) {
    %c0_i32 = arith.constant 0 : i32
    %c0_i32_0 = arith.constant 0 : i32
    return %arg0, %c0_i32 : i32, i32
  }
}

module attributes {stable_mosaic.version = 11 : i64} {
  func.func @_matmul_bias_act_kernel(%arg0: i32, %arg1: memref<256x96xbf16, #tpu.memory_space<vmem>>, %arg2: memref<96x16xbf16, #tpu.memory_space<vmem>>, %arg3: memref<1x16xf32, #tpu.memory_space<vmem>>, %arg4: memref<256x16xbf16, #tpu.memory_space<vmem>>) attributes {dimension_semantics = [#tpu.dimension_semantics<parallel>], iteration_bounds = array<i64: 2>, scalar_prefetch = 0 : i64, scratch_operands = 0 : i64, tpu.core_type = #tpu.core_type<tc>, window_params = [{transform_indices = @transform_0, window_bounds = array<i64: 256, 96>}, {pipeline_mode = #tpu.pipeline_mode<synchronous>, transform_indices = @transform_1, window_bounds = array<i64: 96, 16>}, {pipeline_mode = #tpu.pipeline_mode<synchronous>, transform_indices = @transform_2, window_bounds = array<i64: 1, 16>}, {transform_indices = @transform_3, window_bounds = array<i64: 256, 16>}]} {
    %c0 = arith.constant 0 : index
    %c0_0 = arith.constant 0 : index
    %0 = vector.load %arg1[%c0, %c0_0] : memref<256x96xbf16, #tpu.memory_space<vmem>>, vector<256x96xbf16>
    %c0_1 = arith.constant 0 : index
    %c0_2 = arith.constant 0 : index
    %1 = vector.load %arg2[%c0_1, %c0_2] : memref<96x16xbf16, #tpu.memory_space<vmem>>, vector<96x16xbf16>
    %cst = arith.constant dense<0.000000e+00> : vector<256x16xf32>
    %2 = tpu.matmul %0, %1, %cst {dimension_numbers = #tpu.dot_dimension_numbers<[1], [0], [0], [1], [0, 0, 1, 1], [], []>} : vector<256x96xbf16>, vector<96x16xbf16>, vector<256x16xf32> -> vector<256x16xf32>
    %c0_3 = arith.constant 0 : index
    %c0_4 = arith.constant 0 : index
    %3 = vector.load %arg3[%c0_3, %c0_4] : memref<1x16xf32, #tpu.memory_space<vmem>>, vector<1x16xf32>
    %4 = vector.broadcast %3 : vector<1x16xf32> to vector<256x16xf32>
    %5 = arith.addf %2, %4 : vector<256x16xf32>
    %cst_5 = arith.constant 0.000000e+00 : f32
    %6 = vector.broadcast %cst_5 : f32 to vector<256x16xf32>
    %7 = arith.maximumf %5, %6 : vector<256x16xf32>
    %8 = arith.truncf %7 : vector<256x16xf32> to vector<256x16xbf16>
    %c0_6 = arith.constant 0 : index
    %c0_7 = arith.constant 0 : index
    %9 = vector.load %arg4[%c0_6, %c0_7] : memref<256x16xbf16, #tpu.memory_space<vmem>>, vector<256x16xbf16>
    tpu.vector_store %arg4[%c0_6, %c0_7], %8 {strides = array<i32>} : memref<256x16xbf16, #tpu.memory_space<vmem>>, vector<256x16xbf16>,
    return
  }
  func.func @transform_0(%arg0: i32) -> (i32, i32) {
    %c0_i32 = arith.constant 0 : i32
    %c0_i32_0 = arith.constant 0 : i32
    return %arg0, %c0_i32 : i32, i32
  }
  func.func @transform_1(%arg0: i32) -> (i32, i32) {
    %c0_i32 = arith.constant 0 : i32
    %c0_i32_0 = arith.constant 0 : i32
    %c0_i32_1 = arith.constant 0 : i32
    return %c0_i32, %c0_i32_0 : i32, i32
  }
  func.func @transform_2(%arg0: i32) -> (i32, i32) {
    %c0_i32 = arith.constant 0 : i32
    %c0_i32_0 = arith.constant 0 : i32
    %c0_i32_1 = arith.constant 0 : i32
    return %c0_i32, %c0_i32_0 : i32, i32
  }
  func.func @transform_3(%arg0: i32) -> (i32, i32) {
    %c0_i32 = arith.constant 0 : i32
    %c0_i32_0 = arith.constant 0 : i32
    return %arg0, %c0_i32 : i32, i32
  }
}

module attributes {stable_mosaic.version = 11 : i64} {
  func.func @_matmul_bias_act_kernel(%arg0: i32, %arg1: memref<256x144xbf16, #tpu.memory_space<vmem>>, %arg2: memref<144x128xbf16, #tpu.memory_space<vmem>>, %arg3: memref<1x128xf32, #tpu.memory_space<vmem>>, %arg4: memref<256x128xbf16, #tpu.memory_space<vmem>>) attributes {dimension_semantics = [#tpu.dimension_semantics<parallel>], iteration_bounds = array<i64: 2>, scalar_prefetch = 0 : i64, scratch_operands = 0 : i64, tpu.core_type = #tpu.core_type<tc>, window_params = [{transform_indices = @transform_0, window_bounds = array<i64: 256, 144>}, {pipeline_mode = #tpu.pipeline_mode<synchronous>, transform_indices = @transform_1, window_bounds = array<i64: 144, 128>}, {pipeline_mode = #tpu.pipeline_mode<synchronous>, transform_indices = @transform_2, window_bounds = array<i64: 1, 128>}, {transform_indices = @transform_3, window_bounds = array<i64: 256, 128>}]} {
    %c0 = arith.constant 0 : index
    %c0_0 = arith.constant 0 : index
    %0 = vector.load %arg1[%c0, %c0_0] : memref<256x144xbf16, #tpu.memory_space<vmem>>, vector<256x144xbf16>
    %c0_1 = arith.constant 0 : index
    %c0_2 = arith.constant 0 : index
    %1 = vector.load %arg2[%c0_1, %c0_2] : memref<144x128xbf16, #tpu.memory_space<vmem>>, vector<144x128xbf16>
    %cst = arith.constant dense<0.000000e+00> : vector<256x128xf32>
    %2 = tpu.matmul %0, %1, %cst {dimension_numbers = #tpu.dot_dimension_numbers<[1], [0], [0], [1], [0, 0, 1, 1], [], []>} : vector<256x144xbf16>, vector<144x128xbf16>, vector<256x128xf32> -> vector<256x128xf32>
    %c0_3 = arith.constant 0 : index
    %c0_4 = arith.constant 0 : index
    %3 = vector.load %arg3[%c0_3, %c0_4] : memref<1x128xf32, #tpu.memory_space<vmem>>, vector<1x128xf32>
    %4 = vector.broadcast %3 : vector<1x128xf32> to vector<256x128xf32>
    %5 = arith.addf %2, %4 : vector<256x128xf32>
    %cst_5 = arith.constant 0.000000e+00 : f32
    %6 = vector.broadcast %cst_5 : f32 to vector<256x128xf32>
    %7 = arith.maximumf %5, %6 : vector<256x128xf32>
    %8 = arith.truncf %7 : vector<256x128xf32> to vector<256x128xbf16>
    %c0_6 = arith.constant 0 : index
    %c0_7 = arith.constant 0 : index
    %9 = vector.load %arg4[%c0_6, %c0_7] : memref<256x128xbf16, #tpu.memory_space<vmem>>, vector<256x128xbf16>
    tpu.vector_store %arg4[%c0_6, %c0_7], %8 {strides = array<i32>} : memref<256x128xbf16, #tpu.memory_space<vmem>>, vector<256x128xbf16>,
    return
  }
  func.func @transform_0(%arg0: i32) -> (i32, i32) {
    %c0_i32 = arith.constant 0 : i32
    %c0_i32_0 = arith.constant 0 : i32
    return %arg0, %c0_i32 : i32, i32
  }
  func.func @transform_1(%arg0: i32) -> (i32, i32) {
    %c0_i32 = arith.constant 0 : i32
    %c0_i32_0 = arith.constant 0 : i32
    %c0_i32_1 = arith.constant 0 : i32
    return %c0_i32, %c0_i32_0 : i32, i32
  }
  func.func @transform_2(%arg0: i32) -> (i32, i32) {
    %c0_i32 = arith.constant 0 : i32
    %c0_i32_0 = arith.constant 0 : i32
    %c0_i32_1 = arith.constant 0 : i32
    return %c0_i32, %c0_i32_0 : i32, i32
  }
  func.func @transform_3(%arg0: i32) -> (i32, i32) {
    %c0_i32 = arith.constant 0 : i32
    %c0_i32_0 = arith.constant 0 : i32
    return %arg0, %c0_i32 : i32, i32
  }
}

module attributes {stable_mosaic.version = 11 : i64} {
  func.func @_matmul_bias_act_kernel(%arg0: i32, %arg1: memref<256x128xbf16, #tpu.memory_space<vmem>>, %arg2: memref<128x16xbf16, #tpu.memory_space<vmem>>, %arg3: memref<1x16xf32, #tpu.memory_space<vmem>>, %arg4: memref<256x16xbf16, #tpu.memory_space<vmem>>) attributes {dimension_semantics = [#tpu.dimension_semantics<parallel>], iteration_bounds = array<i64: 2>, scalar_prefetch = 0 : i64, scratch_operands = 0 : i64, tpu.core_type = #tpu.core_type<tc>, window_params = [{transform_indices = @transform_0, window_bounds = array<i64: 256, 128>}, {pipeline_mode = #tpu.pipeline_mode<synchronous>, transform_indices = @transform_1, window_bounds = array<i64: 128, 16>}, {pipeline_mode = #tpu.pipeline_mode<synchronous>, transform_indices = @transform_2, window_bounds = array<i64: 1, 16>}, {transform_indices = @transform_3, window_bounds = array<i64: 256, 16>}]} {
    %c0 = arith.constant 0 : index
    %c0_0 = arith.constant 0 : index
    %0 = vector.load %arg1[%c0, %c0_0] : memref<256x128xbf16, #tpu.memory_space<vmem>>, vector<256x128xbf16>
    %c0_1 = arith.constant 0 : index
    %c0_2 = arith.constant 0 : index
    %1 = vector.load %arg2[%c0_1, %c0_2] : memref<128x16xbf16, #tpu.memory_space<vmem>>, vector<128x16xbf16>
    %cst = arith.constant dense<0.000000e+00> : vector<256x16xf32>
    %2 = tpu.matmul %0, %1, %cst {dimension_numbers = #tpu.dot_dimension_numbers<[1], [0], [0], [1], [0, 0, 1, 1], [], []>} : vector<256x128xbf16>, vector<128x16xbf16>, vector<256x16xf32> -> vector<256x16xf32>
    %c0_3 = arith.constant 0 : index
    %c0_4 = arith.constant 0 : index
    %3 = vector.load %arg3[%c0_3, %c0_4] : memref<1x16xf32, #tpu.memory_space<vmem>>, vector<1x16xf32>
    %4 = vector.broadcast %3 : vector<1x16xf32> to vector<256x16xf32>
    %5 = arith.addf %2, %4 : vector<256x16xf32>
    %cst_5 = arith.constant 0.000000e+00 : f32
    %6 = vector.broadcast %cst_5 : f32 to vector<256x16xf32>
    %7 = arith.maximumf %5, %6 : vector<256x16xf32>
    %8 = arith.truncf %7 : vector<256x16xf32> to vector<256x16xbf16>
    %c0_6 = arith.constant 0 : index
    %c0_7 = arith.constant 0 : index
    %9 = vector.load %arg4[%c0_6, %c0_7] : memref<256x16xbf16, #tpu.memory_space<vmem>>, vector<256x16xbf16>
    tpu.vector_store %arg4[%c0_6, %c0_7], %8 {strides = array<i32>} : memref<256x16xbf16, #tpu.memory_space<vmem>>, vector<256x16xbf16>,
    return
  }
  func.func @transform_0(%arg0: i32) -> (i32, i32) {
    %c0_i32 = arith.constant 0 : i32
    %c0_i32_0 = arith.constant 0 : i32
    return %arg0, %c0_i32 : i32, i32
  }
  func.func @transform_1(%arg0: i32) -> (i32, i32) {
    %c0_i32 = arith.constant 0 : i32
    %c0_i32_0 = arith.constant 0 : i32
    %c0_i32_1 = arith.constant 0 : i32
    return %c0_i32, %c0_i32_0 : i32, i32
  }
  func.func @transform_2(%arg0: i32) -> (i32, i32) {
    %c0_i32 = arith.constant 0 : i32
    %c0_i32_0 = arith.constant 0 : i32
    %c0_i32_1 = arith.constant 0 : i32
    return %c0_i32, %c0_i32_0 : i32, i32
  }
  func.func @transform_3(%arg0: i32) -> (i32, i32) {
    %c0_i32 = arith.constant 0 : i32
    %c0_i32_0 = arith.constant 0 : i32
    return %arg0, %c0_i32 : i32, i32
  }
}

module attributes {stable_mosaic.version = 11 : i64} {
  func.func @_matmul_bias_act_kernel(%arg0: i32, %arg1: memref<256x128xbf16, #tpu.memory_space<vmem>>, %arg2: memref<128x32xbf16, #tpu.memory_space<vmem>>, %arg3: memref<1x32xf32, #tpu.memory_space<vmem>>, %arg4: memref<256x32xbf16, #tpu.memory_space<vmem>>) attributes {dimension_semantics = [#tpu.dimension_semantics<parallel>], iteration_bounds = array<i64: 2>, scalar_prefetch = 0 : i64, scratch_operands = 0 : i64, tpu.core_type = #tpu.core_type<tc>, window_params = [{transform_indices = @transform_0, window_bounds = array<i64: 256, 128>}, {pipeline_mode = #tpu.pipeline_mode<synchronous>, transform_indices = @transform_1, window_bounds = array<i64: 128, 32>}, {pipeline_mode = #tpu.pipeline_mode<synchronous>, transform_indices = @transform_2, window_bounds = array<i64: 1, 32>}, {transform_indices = @transform_3, window_bounds = array<i64: 256, 32>}]} {
    %c0 = arith.constant 0 : index
    %c0_0 = arith.constant 0 : index
    %0 = vector.load %arg1[%c0, %c0_0] : memref<256x128xbf16, #tpu.memory_space<vmem>>, vector<256x128xbf16>
    %c0_1 = arith.constant 0 : index
    %c0_2 = arith.constant 0 : index
    %1 = vector.load %arg2[%c0_1, %c0_2] : memref<128x32xbf16, #tpu.memory_space<vmem>>, vector<128x32xbf16>
    %cst = arith.constant dense<0.000000e+00> : vector<256x32xf32>
    %2 = tpu.matmul %0, %1, %cst {dimension_numbers = #tpu.dot_dimension_numbers<[1], [0], [0], [1], [0, 0, 1, 1], [], []>} : vector<256x128xbf16>, vector<128x32xbf16>, vector<256x32xf32> -> vector<256x32xf32>
    %c0_3 = arith.constant 0 : index
    %c0_4 = arith.constant 0 : index
    %3 = vector.load %arg3[%c0_3, %c0_4] : memref<1x32xf32, #tpu.memory_space<vmem>>, vector<1x32xf32>
    %4 = vector.broadcast %3 : vector<1x32xf32> to vector<256x32xf32>
    %5 = arith.addf %2, %4 : vector<256x32xf32>
    %cst_5 = arith.constant 0.000000e+00 : f32
    %6 = vector.broadcast %cst_5 : f32 to vector<256x32xf32>
    %7 = arith.maximumf %5, %6 : vector<256x32xf32>
    %8 = arith.truncf %7 : vector<256x32xf32> to vector<256x32xbf16>
    %c0_6 = arith.constant 0 : index
    %c0_7 = arith.constant 0 : index
    %9 = vector.load %arg4[%c0_6, %c0_7] : memref<256x32xbf16, #tpu.memory_space<vmem>>, vector<256x32xbf16>
    tpu.vector_store %arg4[%c0_6, %c0_7], %8 {strides = array<i32>} : memref<256x32xbf16, #tpu.memory_space<vmem>>, vector<256x32xbf16>,
    return
  }
  func.func @transform_0(%arg0: i32) -> (i32, i32) {
    %c0_i32 = arith.constant 0 : i32
    %c0_i32_0 = arith.constant 0 : i32
    return %arg0, %c0_i32 : i32, i32
  }
  func.func @transform_1(%arg0: i32) -> (i32, i32) {
    %c0_i32 = arith.constant 0 : i32
    %c0_i32_0 = arith.constant 0 : i32
    %c0_i32_1 = arith.constant 0 : i32
    return %c0_i32, %c0_i32_0 : i32, i32
  }
  func.func @transform_2(%arg0: i32) -> (i32, i32) {
    %c0_i32 = arith.constant 0 : i32
    %c0_i32_0 = arith.constant 0 : i32
    %c0_i32_1 = arith.constant 0 : i32
    return %c0_i32, %c0_i32_0 : i32, i32
  }
  func.func @transform_3(%arg0: i32) -> (i32, i32) {
    %c0_i32 = arith.constant 0 : i32
    %c0_i32_0 = arith.constant 0 : i32
    return %arg0, %c0_i32 : i32, i32
  }
}

module attributes {stable_mosaic.version = 11 : i64} {
  func.func @_matmul_bias_act_kernel(%arg0: i32, %arg1: memref<256x288xbf16, #tpu.memory_space<vmem>>, %arg2: memref<288x256xbf16, #tpu.memory_space<vmem>>, %arg3: memref<1x256xf32, #tpu.memory_space<vmem>>, %arg4: memref<256x256xbf16, #tpu.memory_space<vmem>>) attributes {dimension_semantics = [#tpu.dimension_semantics<parallel>], iteration_bounds = array<i64: 2>, scalar_prefetch = 0 : i64, scratch_operands = 0 : i64, tpu.core_type = #tpu.core_type<tc>, window_params = [{transform_indices = @transform_0, window_bounds = array<i64: 256, 288>}, {pipeline_mode = #tpu.pipeline_mode<synchronous>, transform_indices = @transform_1, window_bounds = array<i64: 288, 256>}, {pipeline_mode = #tpu.pipeline_mode<synchronous>, transform_indices = @transform_2, window_bounds = array<i64: 1, 256>}, {transform_indices = @transform_3, window_bounds = array<i64: 256, 256>}]} {
    %c0 = arith.constant 0 : index
    %c0_0 = arith.constant 0 : index
    %0 = vector.load %arg1[%c0, %c0_0] : memref<256x288xbf16, #tpu.memory_space<vmem>>, vector<256x288xbf16>
    %c0_1 = arith.constant 0 : index
    %c0_2 = arith.constant 0 : index
    %1 = vector.load %arg2[%c0_1, %c0_2] : memref<288x256xbf16, #tpu.memory_space<vmem>>, vector<288x256xbf16>
    %cst = arith.constant dense<0.000000e+00> : vector<256x256xf32>
    %2 = tpu.matmul %0, %1, %cst {dimension_numbers = #tpu.dot_dimension_numbers<[1], [0], [0], [1], [0, 0, 1, 1], [], []>} : vector<256x288xbf16>, vector<288x256xbf16>, vector<256x256xf32> -> vector<256x256xf32>
    %c0_3 = arith.constant 0 : index
    %c0_4 = arith.constant 0 : index
    %3 = vector.load %arg3[%c0_3, %c0_4] : memref<1x256xf32, #tpu.memory_space<vmem>>, vector<1x256xf32>
    %4 = vector.broadcast %3 : vector<1x256xf32> to vector<256x256xf32>
    %5 = arith.addf %2, %4 : vector<256x256xf32>
    %cst_5 = arith.constant 0.000000e+00 : f32
    %6 = vector.broadcast %cst_5 : f32 to vector<256x256xf32>
    %7 = arith.maximumf %5, %6 : vector<256x256xf32>
    %8 = arith.truncf %7 : vector<256x256xf32> to vector<256x256xbf16>
    %c0_6 = arith.constant 0 : index
    %c0_7 = arith.constant 0 : index
    %9 = vector.load %arg4[%c0_6, %c0_7] : memref<256x256xbf16, #tpu.memory_space<vmem>>, vector<256x256xbf16>
    tpu.vector_store %arg4[%c0_6, %c0_7], %8 {strides = array<i32>} : memref<256x256xbf16, #tpu.memory_space<vmem>>, vector<256x256xbf16>,
    return
  }
  func.func @transform_0(%arg0: i32) -> (i32, i32) {
    %c0_i32 = arith.constant 0 : i32
    %c0_i32_0 = arith.constant 0 : i32
    return %arg0, %c0_i32 : i32, i32
  }
  func.func @transform_1(%arg0: i32) -> (i32, i32) {
    %c0_i32 = arith.constant 0 : i32
    %c0_i32_0 = arith.constant 0 : i32
    %c0_i32_1 = arith.constant 0 : i32
    return %c0_i32, %c0_i32_0 : i32, i32
  }
  func.func @transform_2(%arg0: i32) -> (i32, i32) {
    %c0_i32 = arith.constant 0 : i32
    %c0_i32_0 = arith.constant 0 : i32
    %c0_i32_1 = arith.constant 0 : i32
    return %c0_i32, %c0_i32_0 : i32, i32
  }
  func.func @transform_3(%arg0: i32) -> (i32, i32) {
    %c0_i32 = arith.constant 0 : i32
    %c0_i32_0 = arith.constant 0 : i32
    return %arg0, %c0_i32 : i32, i32
  }
}

module attributes {stable_mosaic.version = 11 : i64} {
  func.func @_matmul_bias_act_kernel(%arg0: i32, %arg1: memref<128x256xbf16, #tpu.memory_space<vmem>>, %arg2: memref<256x32xbf16, #tpu.memory_space<vmem>>, %arg3: memref<1x32xf32, #tpu.memory_space<vmem>>, %arg4: memref<128x32xbf16, #tpu.memory_space<vmem>>) attributes {dimension_semantics = [#tpu.dimension_semantics<parallel>], iteration_bounds = array<i64: 1>, scalar_prefetch = 0 : i64, scratch_operands = 0 : i64, tpu.core_type = #tpu.core_type<tc>, window_params = [{transform_indices = @transform_0, window_bounds = array<i64: 128, 256>}, {pipeline_mode = #tpu.pipeline_mode<synchronous>, transform_indices = @transform_1, window_bounds = array<i64: 256, 32>}, {pipeline_mode = #tpu.pipeline_mode<synchronous>, transform_indices = @transform_2, window_bounds = array<i64: 1, 32>}, {transform_indices = @transform_3, window_bounds = array<i64: 128, 32>}]} {
    %c0 = arith.constant 0 : index
    %c0_0 = arith.constant 0 : index
    %0 = vector.load %arg1[%c0, %c0_0] : memref<128x256xbf16, #tpu.memory_space<vmem>>, vector<128x256xbf16>
    %c0_1 = arith.constant 0 : index
    %c0_2 = arith.constant 0 : index
    %1 = vector.load %arg2[%c0_1, %c0_2] : memref<256x32xbf16, #tpu.memory_space<vmem>>, vector<256x32xbf16>
    %cst = arith.constant dense<0.000000e+00> : vector<128x32xf32>
    %2 = tpu.matmul %0, %1, %cst {dimension_numbers = #tpu.dot_dimension_numbers<[1], [0], [0], [1], [0, 0, 1, 1], [], []>} : vector<128x256xbf16>, vector<256x32xbf16>, vector<128x32xf32> -> vector<128x32xf32>
    %c0_3 = arith.constant 0 : index
    %c0_4 = arith.constant 0 : index
    %3 = vector.load %arg3[%c0_3, %c0_4] : memref<1x32xf32, #tpu.memory_space<vmem>>, vector<1x32xf32>
    %4 = vector.broadcast %3 : vector<1x32xf32> to vector<128x32xf32>
    %5 = arith.addf %2, %4 : vector<128x32xf32>
    %cst_5 = arith.constant 0.000000e+00 : f32
    %6 = vector.broadcast %cst_5 : f32 to vector<128x32xf32>
    %7 = arith.maximumf %5, %6 : vector<128x32xf32>
    %8 = arith.truncf %7 : vector<128x32xf32> to vector<128x32xbf16>
    %c0_6 = arith.constant 0 : index
    %c0_7 = arith.constant 0 : index
    %9 = vector.load %arg4[%c0_6, %c0_7] : memref<128x32xbf16, #tpu.memory_space<vmem>>, vector<128x32xbf16>
    tpu.vector_store %arg4[%c0_6, %c0_7], %8 {strides = array<i32>} : memref<128x32xbf16, #tpu.memory_space<vmem>>, vector<128x32xbf16>,
    return
  }
  func.func @transform_0(%arg0: i32) -> (i32, i32) {
    %c0_i32 = arith.constant 0 : i32
    %c0_i32_0 = arith.constant 0 : i32
    return %arg0, %c0_i32 : i32, i32
  }
  func.func @transform_1(%arg0: i32) -> (i32, i32) {
    %c0_i32 = arith.constant 0 : i32
    %c0_i32_0 = arith.constant 0 : i32
    %c0_i32_1 = arith.constant 0 : i32
    return %c0_i32, %c0_i32_0 : i32, i32
  }
  func.func @transform_2(%arg0: i32) -> (i32, i32) {
    %c0_i32 = arith.constant 0 : i32
    %c0_i32_0 = arith.constant 0 : i32
    %c0_i32_1 = arith.constant 0 : i32
    return %c0_i32, %c0_i32_0 : i32, i32
  }
  func.func @transform_3(%arg0: i32) -> (i32, i32) {
    %c0_i32 = arith.constant 0 : i32
    %c0_i32_0 = arith.constant 0 : i32
    return %arg0, %c0_i32 : i32, i32
  }
}

module attributes {stable_mosaic.version = 11 : i64} {
  func.func @_matmul_bias_act_kernel(%arg0: i32, %arg1: memref<128x288xbf16, #tpu.memory_space<vmem>>, %arg2: memref<288x256xbf16, #tpu.memory_space<vmem>>, %arg3: memref<1x256xf32, #tpu.memory_space<vmem>>, %arg4: memref<128x256xbf16, #tpu.memory_space<vmem>>) attributes {dimension_semantics = [#tpu.dimension_semantics<parallel>], iteration_bounds = array<i64: 1>, scalar_prefetch = 0 : i64, scratch_operands = 0 : i64, tpu.core_type = #tpu.core_type<tc>, window_params = [{transform_indices = @transform_0, window_bounds = array<i64: 128, 288>}, {pipeline_mode = #tpu.pipeline_mode<synchronous>, transform_indices = @transform_1, window_bounds = array<i64: 288, 256>}, {pipeline_mode = #tpu.pipeline_mode<synchronous>, transform_indices = @transform_2, window_bounds = array<i64: 1, 256>}, {transform_indices = @transform_3, window_bounds = array<i64: 128, 256>}]} {
    %c0 = arith.constant 0 : index
    %c0_0 = arith.constant 0 : index
    %0 = vector.load %arg1[%c0, %c0_0] : memref<128x288xbf16, #tpu.memory_space<vmem>>, vector<128x288xbf16>
    %c0_1 = arith.constant 0 : index
    %c0_2 = arith.constant 0 : index
    %1 = vector.load %arg2[%c0_1, %c0_2] : memref<288x256xbf16, #tpu.memory_space<vmem>>, vector<288x256xbf16>
    %cst = arith.constant dense<0.000000e+00> : vector<128x256xf32>
    %2 = tpu.matmul %0, %1, %cst {dimension_numbers = #tpu.dot_dimension_numbers<[1], [0], [0], [1], [0, 0, 1, 1], [], []>} : vector<128x288xbf16>, vector<288x256xbf16>, vector<128x256xf32> -> vector<128x256xf32>
    %c0_3 = arith.constant 0 : index
    %c0_4 = arith.constant 0 : index
    %3 = vector.load %arg3[%c0_3, %c0_4] : memref<1x256xf32, #tpu.memory_space<vmem>>, vector<1x256xf32>
    %4 = vector.broadcast %3 : vector<1x256xf32> to vector<128x256xf32>
    %5 = arith.addf %2, %4 : vector<128x256xf32>
    %cst_5 = arith.constant 0.000000e+00 : f32
    %6 = vector.broadcast %cst_5 : f32 to vector<128x256xf32>
    %7 = arith.maximumf %5, %6 : vector<128x256xf32>
    %8 = arith.truncf %7 : vector<128x256xf32> to vector<128x256xbf16>
    %c0_6 = arith.constant 0 : index
    %c0_7 = arith.constant 0 : index
    %9 = vector.load %arg4[%c0_6, %c0_7] : memref<128x256xbf16, #tpu.memory_space<vmem>>, vector<128x256xbf16>
    tpu.vector_store %arg4[%c0_6, %c0_7], %8 {strides = array<i32>} : memref<128x256xbf16, #tpu.memory_space<vmem>>, vector<128x256xbf16>,
    return
  }
  func.func @transform_0(%arg0: i32) -> (i32, i32) {
    %c0_i32 = arith.constant 0 : i32
    %c0_i32_0 = arith.constant 0 : i32
    return %arg0, %c0_i32 : i32, i32
  }
  func.func @transform_1(%arg0: i32) -> (i32, i32) {
    %c0_i32 = arith.constant 0 : i32
    %c0_i32_0 = arith.constant 0 : i32
    %c0_i32_1 = arith.constant 0 : i32
    return %c0_i32, %c0_i32_0 : i32, i32
  }
  func.func @transform_2(%arg0: i32) -> (i32, i32) {
    %c0_i32 = arith.constant 0 : i32
    %c0_i32_0 = arith.constant 0 : i32
    %c0_i32_1 = arith.constant 0 : i32
    return %c0_i32, %c0_i32_0 : i32, i32
  }
  func.func @transform_3(%arg0: i32) -> (i32, i32) {
    %c0_i32 = arith.constant 0 : i32
    %c0_i32_0 = arith.constant 0 : i32
    return %arg0, %c0_i32 : i32, i32
  }
}

module attributes {stable_mosaic.version = 11 : i64} {
  func.func @_matmul_bias_act_kernel(%arg0: i32, %arg1: memref<128x256xbf16, #tpu.memory_space<vmem>>, %arg2: memref<256x48xbf16, #tpu.memory_space<vmem>>, %arg3: memref<1x48xf32, #tpu.memory_space<vmem>>, %arg4: memref<128x48xbf16, #tpu.memory_space<vmem>>) attributes {dimension_semantics = [#tpu.dimension_semantics<parallel>], iteration_bounds = array<i64: 1>, scalar_prefetch = 0 : i64, scratch_operands = 0 : i64, tpu.core_type = #tpu.core_type<tc>, window_params = [{transform_indices = @transform_0, window_bounds = array<i64: 128, 256>}, {pipeline_mode = #tpu.pipeline_mode<synchronous>, transform_indices = @transform_1, window_bounds = array<i64: 256, 48>}, {pipeline_mode = #tpu.pipeline_mode<synchronous>, transform_indices = @transform_2, window_bounds = array<i64: 1, 48>}, {transform_indices = @transform_3, window_bounds = array<i64: 128, 48>}]} {
    %c0 = arith.constant 0 : index
    %c0_0 = arith.constant 0 : index
    %0 = vector.load %arg1[%c0, %c0_0] : memref<128x256xbf16, #tpu.memory_space<vmem>>, vector<128x256xbf16>
    %c0_1 = arith.constant 0 : index
    %c0_2 = arith.constant 0 : index
    %1 = vector.load %arg2[%c0_1, %c0_2] : memref<256x48xbf16, #tpu.memory_space<vmem>>, vector<256x48xbf16>
    %cst = arith.constant dense<0.000000e+00> : vector<128x48xf32>
    %2 = tpu.matmul %0, %1, %cst {dimension_numbers = #tpu.dot_dimension_numbers<[1], [0], [0], [1], [0, 0, 1, 1], [], []>} : vector<128x256xbf16>, vector<256x48xbf16>, vector<128x48xf32> -> vector<128x48xf32>
    %c0_3 = arith.constant 0 : index
    %c0_4 = arith.constant 0 : index
    %3 = vector.load %arg3[%c0_3, %c0_4] : memref<1x48xf32, #tpu.memory_space<vmem>>, vector<1x48xf32>
    %4 = vector.broadcast %3 : vector<1x48xf32> to vector<128x48xf32>
    %5 = arith.addf %2, %4 : vector<128x48xf32>
    %cst_5 = arith.constant 0.000000e+00 : f32
    %6 = vector.broadcast %cst_5 : f32 to vector<128x48xf32>
    %7 = arith.maximumf %5, %6 : vector<128x48xf32>
    %8 = arith.truncf %7 : vector<128x48xf32> to vector<128x48xbf16>
    %c0_6 = arith.constant 0 : index
    %c0_7 = arith.constant 0 : index
    %9 = vector.load %arg4[%c0_6, %c0_7] : memref<128x48xbf16, #tpu.memory_space<vmem>>, vector<128x48xbf16>
    tpu.vector_store %arg4[%c0_6, %c0_7], %8 {strides = array<i32>} : memref<128x48xbf16, #tpu.memory_space<vmem>>, vector<128x48xbf16>,
    return
  }
  func.func @transform_0(%arg0: i32) -> (i32, i32) {
    %c0_i32 = arith.constant 0 : i32
    %c0_i32_0 = arith.constant 0 : i32
    return %arg0, %c0_i32 : i32, i32
  }
  func.func @transform_1(%arg0: i32) -> (i32, i32) {
    %c0_i32 = arith.constant 0 : i32
    %c0_i32_0 = arith.constant 0 : i32
    %c0_i32_1 = arith.constant 0 : i32
    return %c0_i32, %c0_i32_0 : i32, i32
  }
  func.func @transform_2(%arg0: i32) -> (i32, i32) {
    %c0_i32 = arith.constant 0 : i32
    %c0_i32_0 = arith.constant 0 : i32
    %c0_i32_1 = arith.constant 0 : i32
    return %c0_i32, %c0_i32_0 : i32, i32
  }
  func.func @transform_3(%arg0: i32) -> (i32, i32) {
    %c0_i32 = arith.constant 0 : i32
    %c0_i32_0 = arith.constant 0 : i32
    return %arg0, %c0_i32 : i32, i32
  }
}

module attributes {stable_mosaic.version = 11 : i64} {
  func.func @_matmul_bias_act_kernel(%arg0: i32, %arg1: memref<128x432xbf16, #tpu.memory_space<vmem>>, %arg2: memref<432x384xbf16, #tpu.memory_space<vmem>>, %arg3: memref<1x384xf32, #tpu.memory_space<vmem>>, %arg4: memref<128x384xbf16, #tpu.memory_space<vmem>>) attributes {dimension_semantics = [#tpu.dimension_semantics<parallel>], iteration_bounds = array<i64: 1>, scalar_prefetch = 0 : i64, scratch_operands = 0 : i64, tpu.core_type = #tpu.core_type<tc>, window_params = [{transform_indices = @transform_0, window_bounds = array<i64: 128, 432>}, {pipeline_mode = #tpu.pipeline_mode<synchronous>, transform_indices = @transform_1, window_bounds = array<i64: 432, 384>}, {pipeline_mode = #tpu.pipeline_mode<synchronous>, transform_indices = @transform_2, window_bounds = array<i64: 1, 384>}, {transform_indices = @transform_3, window_bounds = array<i64: 128, 384>}]} {
    %c0 = arith.constant 0 : index
    %c0_0 = arith.constant 0 : index
    %0 = vector.load %arg1[%c0, %c0_0] : memref<128x432xbf16, #tpu.memory_space<vmem>>, vector<128x432xbf16>
    %c0_1 = arith.constant 0 : index
    %c0_2 = arith.constant 0 : index
    %1 = vector.load %arg2[%c0_1, %c0_2] : memref<432x384xbf16, #tpu.memory_space<vmem>>, vector<432x384xbf16>
    %cst = arith.constant dense<0.000000e+00> : vector<128x384xf32>
    %2 = tpu.matmul %0, %1, %cst {dimension_numbers = #tpu.dot_dimension_numbers<[1], [0], [0], [1], [0, 0, 1, 1], [], []>} : vector<128x432xbf16>, vector<432x384xbf16>, vector<128x384xf32> -> vector<128x384xf32>
    %c0_3 = arith.constant 0 : index
    %c0_4 = arith.constant 0 : index
    %3 = vector.load %arg3[%c0_3, %c0_4] : memref<1x384xf32, #tpu.memory_space<vmem>>, vector<1x384xf32>
    %4 = vector.broadcast %3 : vector<1x384xf32> to vector<128x384xf32>
    %5 = arith.addf %2, %4 : vector<128x384xf32>
    %cst_5 = arith.constant 0.000000e+00 : f32
    %6 = vector.broadcast %cst_5 : f32 to vector<128x384xf32>
    %7 = arith.maximumf %5, %6 : vector<128x384xf32>
    %8 = arith.truncf %7 : vector<128x384xf32> to vector<128x384xbf16>
    %c0_6 = arith.constant 0 : index
    %c0_7 = arith.constant 0 : index
    %9 = vector.load %arg4[%c0_6, %c0_7] : memref<128x384xbf16, #tpu.memory_space<vmem>>, vector<128x384xbf16>
    tpu.vector_store %arg4[%c0_6, %c0_7], %8 {strides = array<i32>} : memref<128x384xbf16, #tpu.memory_space<vmem>>, vector<128x384xbf16>,
    return
  }
  func.func @transform_0(%arg0: i32) -> (i32, i32) {
    %c0_i32 = arith.constant 0 : i32
    %c0_i32_0 = arith.constant 0 : i32
    return %arg0, %c0_i32 : i32, i32
  }
  func.func @transform_1(%arg0: i32) -> (i32, i32) {
    %c0_i32 = arith.constant 0 : i32
    %c0_i32_0 = arith.constant 0 : i32
    %c0_i32_1 = arith.constant 0 : i32
    return %c0_i32, %c0_i32_0 : i32, i32
  }
  func.func @transform_2(%arg0: i32) -> (i32, i32) {
    %c0_i32 = arith.constant 0 : i32
    %c0_i32_0 = arith.constant 0 : i32
    %c0_i32_1 = arith.constant 0 : i32
    return %c0_i32, %c0_i32_0 : i32, i32
  }
  func.func @transform_3(%arg0: i32) -> (i32, i32) {
    %c0_i32 = arith.constant 0 : i32
    %c0_i32_0 = arith.constant 0 : i32
    return %arg0, %c0_i32 : i32, i32
  }
}

module attributes {stable_mosaic.version = 11 : i64} {
  func.func @_matmul_bias_act_kernel(%arg0: i32, %arg1: memref<128x384xbf16, #tpu.memory_space<vmem>>, %arg2: memref<384x48xbf16, #tpu.memory_space<vmem>>, %arg3: memref<1x48xf32, #tpu.memory_space<vmem>>, %arg4: memref<128x48xbf16, #tpu.memory_space<vmem>>) attributes {dimension_semantics = [#tpu.dimension_semantics<parallel>], iteration_bounds = array<i64: 1>, scalar_prefetch = 0 : i64, scratch_operands = 0 : i64, tpu.core_type = #tpu.core_type<tc>, window_params = [{transform_indices = @transform_0, window_bounds = array<i64: 128, 384>}, {pipeline_mode = #tpu.pipeline_mode<synchronous>, transform_indices = @transform_1, window_bounds = array<i64: 384, 48>}, {pipeline_mode = #tpu.pipeline_mode<synchronous>, transform_indices = @transform_2, window_bounds = array<i64: 1, 48>}, {transform_indices = @transform_3, window_bounds = array<i64: 128, 48>}]} {
    %c0 = arith.constant 0 : index
    %c0_0 = arith.constant 0 : index
    %0 = vector.load %arg1[%c0, %c0_0] : memref<128x384xbf16, #tpu.memory_space<vmem>>, vector<128x384xbf16>
    %c0_1 = arith.constant 0 : index
    %c0_2 = arith.constant 0 : index
    %1 = vector.load %arg2[%c0_1, %c0_2] : memref<384x48xbf16, #tpu.memory_space<vmem>>, vector<384x48xbf16>
    %cst = arith.constant dense<0.000000e+00> : vector<128x48xf32>
    %2 = tpu.matmul %0, %1, %cst {dimension_numbers = #tpu.dot_dimension_numbers<[1], [0], [0], [1], [0, 0, 1, 1], [], []>} : vector<128x384xbf16>, vector<384x48xbf16>, vector<128x48xf32> -> vector<128x48xf32>
    %c0_3 = arith.constant 0 : index
    %c0_4 = arith.constant 0 : index
    %3 = vector.load %arg3[%c0_3, %c0_4] : memref<1x48xf32, #tpu.memory_space<vmem>>, vector<1x48xf32>
    %4 = vector.broadcast %3 : vector<1x48xf32> to vector<128x48xf32>
    %5 = arith.addf %2, %4 : vector<128x48xf32>
    %cst_5 = arith.constant 0.000000e+00 : f32
    %6 = vector.broadcast %cst_5 : f32 to vector<128x48xf32>
    %7 = arith.maximumf %5, %6 : vector<128x48xf32>
    %8 = arith.truncf %7 : vector<128x48xf32> to vector<128x48xbf16>
    %c0_6 = arith.constant 0 : index
    %c0_7 = arith.constant 0 : index
    %9 = vector.load %arg4[%c0_6, %c0_7] : memref<128x48xbf16, #tpu.memory_space<vmem>>, vector<128x48xbf16>
    tpu.vector_store %arg4[%c0_6, %c0_7], %8 {strides = array<i32>} : memref<128x48xbf16, #tpu.memory_space<vmem>>, vector<128x48xbf16>,
    return
  }
  func.func @transform_0(%arg0: i32) -> (i32, i32) {
    %c0_i32 = arith.constant 0 : i32
    %c0_i32_0 = arith.constant 0 : i32
    return %arg0, %c0_i32 : i32, i32
  }
  func.func @transform_1(%arg0: i32) -> (i32, i32) {
    %c0_i32 = arith.constant 0 : i32
    %c0_i32_0 = arith.constant 0 : i32
    %c0_i32_1 = arith.constant 0 : i32
    return %c0_i32, %c0_i32_0 : i32, i32
  }
  func.func @transform_2(%arg0: i32) -> (i32, i32) {
    %c0_i32 = arith.constant 0 : i32
    %c0_i32_0 = arith.constant 0 : i32
    %c0_i32_1 = arith.constant 0 : i32
    return %c0_i32, %c0_i32_0 : i32, i32
  }
  func.func @transform_3(%arg0: i32) -> (i32, i32) {
    %c0_i32 = arith.constant 0 : i32
    %c0_i32_0 = arith.constant 0 : i32
    return %arg0, %c0_i32 : i32, i32
  }
}

module attributes {stable_mosaic.version = 11 : i64} {
  func.func @_matmul_bias_act_kernel(%arg0: i32, %arg1: memref<32x384xbf16, #tpu.memory_space<vmem>>, %arg2: memref<384x64xbf16, #tpu.memory_space<vmem>>, %arg3: memref<1x64xf32, #tpu.memory_space<vmem>>, %arg4: memref<32x64xbf16, #tpu.memory_space<vmem>>) attributes {dimension_semantics = [#tpu.dimension_semantics<parallel>], iteration_bounds = array<i64: 1>, scalar_prefetch = 0 : i64, scratch_operands = 0 : i64, tpu.core_type = #tpu.core_type<tc>, window_params = [{transform_indices = @transform_0, window_bounds = array<i64: 32, 384>}, {pipeline_mode = #tpu.pipeline_mode<synchronous>, transform_indices = @transform_1, window_bounds = array<i64: 384, 64>}, {pipeline_mode = #tpu.pipeline_mode<synchronous>, transform_indices = @transform_2, window_bounds = array<i64: 1, 64>}, {transform_indices = @transform_3, window_bounds = array<i64: 32, 64>}]} {
    %c0 = arith.constant 0 : index
    %c0_0 = arith.constant 0 : index
    %0 = vector.load %arg1[%c0, %c0_0] : memref<32x384xbf16, #tpu.memory_space<vmem>>, vector<32x384xbf16>
    %c0_1 = arith.constant 0 : index
    %c0_2 = arith.constant 0 : index
    %1 = vector.load %arg2[%c0_1, %c0_2] : memref<384x64xbf16, #tpu.memory_space<vmem>>, vector<384x64xbf16>
    %cst = arith.constant dense<0.000000e+00> : vector<32x64xf32>
    %2 = tpu.matmul %0, %1, %cst {dimension_numbers = #tpu.dot_dimension_numbers<[1], [0], [0], [1], [0, 0, 1, 1], [], []>} : vector<32x384xbf16>, vector<384x64xbf16>, vector<32x64xf32> -> vector<32x64xf32>
    %c0_3 = arith.constant 0 : index
    %c0_4 = arith.constant 0 : index
    %3 = vector.load %arg3[%c0_3, %c0_4] : memref<1x64xf32, #tpu.memory_space<vmem>>, vector<1x64xf32>
    %4 = vector.broadcast %3 : vector<1x64xf32> to vector<32x64xf32>
    %5 = arith.addf %2, %4 : vector<32x64xf32>
    %cst_5 = arith.constant 0.000000e+00 : f32
    %6 = vector.broadcast %cst_5 : f32 to vector<32x64xf32>
    %7 = arith.maximumf %5, %6 : vector<32x64xf32>
    %8 = arith.truncf %7 : vector<32x64xf32> to vector<32x64xbf16>
    %c0_6 = arith.constant 0 : index
    %c0_7 = arith.constant 0 : index
    %9 = vector.load %arg4[%c0_6, %c0_7] : memref<32x64xbf16, #tpu.memory_space<vmem>>, vector<32x64xbf16>
    tpu.vector_store %arg4[%c0_6, %c0_7], %8 {strides = array<i32>} : memref<32x64xbf16, #tpu.memory_space<vmem>>, vector<32x64xbf16>,
    return
  }
  func.func @transform_0(%arg0: i32) -> (i32, i32) {
    %c0_i32 = arith.constant 0 : i32
    %c0_i32_0 = arith.constant 0 : i32
    return %arg0, %c0_i32 : i32, i32
  }
  func.func @transform_1(%arg0: i32) -> (i32, i32) {
    %c0_i32 = arith.constant 0 : i32
    %c0_i32_0 = arith.constant 0 : i32
    %c0_i32_1 = arith.constant 0 : i32
    return %c0_i32, %c0_i32_0 : i32, i32
  }
  func.func @transform_2(%arg0: i32) -> (i32, i32) {
    %c0_i32 = arith.constant 0 : i32
    %c0_i32_0 = arith.constant 0 : i32
    %c0_i32_1 = arith.constant 0 : i32
    return %c0_i32, %c0_i32_0 : i32, i32
  }
  func.func @transform_3(%arg0: i32) -> (i32, i32) {
    %c0_i32 = arith.constant 0 : i32
    %c0_i32_0 = arith.constant 0 : i32
    return %arg0, %c0_i32 : i32, i32
  }
}

module attributes {stable_mosaic.version = 11 : i64} {
  func.func @_matmul_bias_act_kernel(%arg0: i32, %arg1: memref<32x576xbf16, #tpu.memory_space<vmem>>, %arg2: memref<576x512xbf16, #tpu.memory_space<vmem>>, %arg3: memref<1x512xf32, #tpu.memory_space<vmem>>, %arg4: memref<32x512xbf16, #tpu.memory_space<vmem>>) attributes {dimension_semantics = [#tpu.dimension_semantics<parallel>], iteration_bounds = array<i64: 1>, scalar_prefetch = 0 : i64, scratch_operands = 0 : i64, tpu.core_type = #tpu.core_type<tc>, window_params = [{transform_indices = @transform_0, window_bounds = array<i64: 32, 576>}, {pipeline_mode = #tpu.pipeline_mode<synchronous>, transform_indices = @transform_1, window_bounds = array<i64: 576, 512>}, {pipeline_mode = #tpu.pipeline_mode<synchronous>, transform_indices = @transform_2, window_bounds = array<i64: 1, 512>}, {transform_indices = @transform_3, window_bounds = array<i64: 32, 512>}]} {
    %c0 = arith.constant 0 : index
    %c0_0 = arith.constant 0 : index
    %0 = vector.load %arg1[%c0, %c0_0] : memref<32x576xbf16, #tpu.memory_space<vmem>>, vector<32x576xbf16>
    %c0_1 = arith.constant 0 : index
    %c0_2 = arith.constant 0 : index
    %1 = vector.load %arg2[%c0_1, %c0_2] : memref<576x512xbf16, #tpu.memory_space<vmem>>, vector<576x512xbf16>
    %cst = arith.constant dense<0.000000e+00> : vector<32x512xf32>
    %2 = tpu.matmul %0, %1, %cst {dimension_numbers = #tpu.dot_dimension_numbers<[1], [0], [0], [1], [0, 0, 1, 1], [], []>} : vector<32x576xbf16>, vector<576x512xbf16>, vector<32x512xf32> -> vector<32x512xf32>
    %c0_3 = arith.constant 0 : index
    %c0_4 = arith.constant 0 : index
    %3 = vector.load %arg3[%c0_3, %c0_4] : memref<1x512xf32, #tpu.memory_space<vmem>>, vector<1x512xf32>
    %4 = vector.broadcast %3 : vector<1x512xf32> to vector<32x512xf32>
    %5 = arith.addf %2, %4 : vector<32x512xf32>
    %cst_5 = arith.constant 0.000000e+00 : f32
    %6 = vector.broadcast %cst_5 : f32 to vector<32x512xf32>
    %7 = arith.maximumf %5, %6 : vector<32x512xf32>
    %8 = arith.truncf %7 : vector<32x512xf32> to vector<32x512xbf16>
    %c0_6 = arith.constant 0 : index
    %c0_7 = arith.constant 0 : index
    %9 = vector.load %arg4[%c0_6, %c0_7] : memref<32x512xbf16, #tpu.memory_space<vmem>>, vector<32x512xbf16>
    tpu.vector_store %arg4[%c0_6, %c0_7], %8 {strides = array<i32>} : memref<32x512xbf16, #tpu.memory_space<vmem>>, vector<32x512xbf16>,
    return
  }
  func.func @transform_0(%arg0: i32) -> (i32, i32) {
    %c0_i32 = arith.constant 0 : i32
    %c0_i32_0 = arith.constant 0 : i32
    return %arg0, %c0_i32 : i32, i32
  }
  func.func @transform_1(%arg0: i32) -> (i32, i32) {
    %c0_i32 = arith.constant 0 : i32
    %c0_i32_0 = arith.constant 0 : i32
    %c0_i32_1 = arith.constant 0 : i32
    return %c0_i32, %c0_i32_0 : i32, i32
  }
  func.func @transform_2(%arg0: i32) -> (i32, i32) {
    %c0_i32 = arith.constant 0 : i32
    %c0_i32_0 = arith.constant 0 : i32
    %c0_i32_1 = arith.constant 0 : i32
    return %c0_i32, %c0_i32_0 : i32, i32
  }
  func.func @transform_3(%arg0: i32) -> (i32, i32) {
    %c0_i32 = arith.constant 0 : i32
    %c0_i32_0 = arith.constant 0 : i32
    return %arg0, %c0_i32 : i32, i32
  }
}

module attributes {stable_mosaic.version = 11 : i64} {
  func.func @_matmul_bias_act_kernel(%arg0: i32, %arg1: memref<8x512xbf16, #tpu.memory_space<vmem>>, %arg2: memref<512x80xbf16, #tpu.memory_space<vmem>>, %arg3: memref<1x80xf32, #tpu.memory_space<vmem>>, %arg4: memref<8x80xbf16, #tpu.memory_space<vmem>>) attributes {dimension_semantics = [#tpu.dimension_semantics<parallel>], iteration_bounds = array<i64: 1>, scalar_prefetch = 0 : i64, scratch_operands = 0 : i64, tpu.core_type = #tpu.core_type<tc>, window_params = [{transform_indices = @transform_0, window_bounds = array<i64: 8, 512>}, {pipeline_mode = #tpu.pipeline_mode<synchronous>, transform_indices = @transform_1, window_bounds = array<i64: 512, 80>}, {pipeline_mode = #tpu.pipeline_mode<synchronous>, transform_indices = @transform_2, window_bounds = array<i64: 1, 80>}, {transform_indices = @transform_3, window_bounds = array<i64: 8, 80>}]} {
    %c0 = arith.constant 0 : index
    %c0_0 = arith.constant 0 : index
    %0 = vector.load %arg1[%c0, %c0_0] : memref<8x512xbf16, #tpu.memory_space<vmem>>, vector<8x512xbf16>
    %c0_1 = arith.constant 0 : index
    %c0_2 = arith.constant 0 : index
    %1 = vector.load %arg2[%c0_1, %c0_2] : memref<512x80xbf16, #tpu.memory_space<vmem>>, vector<512x80xbf16>
    %cst = arith.constant dense<0.000000e+00> : vector<8x80xf32>
    %2 = tpu.matmul %0, %1, %cst {dimension_numbers = #tpu.dot_dimension_numbers<[1], [0], [0], [1], [0, 0, 1, 1], [], []>} : vector<8x512xbf16>, vector<512x80xbf16>, vector<8x80xf32> -> vector<8x80xf32>
    %c0_3 = arith.constant 0 : index
    %c0_4 = arith.constant 0 : index
    %3 = vector.load %arg3[%c0_3, %c0_4] : memref<1x80xf32, #tpu.memory_space<vmem>>, vector<1x80xf32>
    %4 = vector.broadcast %3 : vector<1x80xf32> to vector<8x80xf32>
    %5 = arith.addf %2, %4 : vector<8x80xf32>
    %cst_5 = arith.constant 0.000000e+00 : f32
    %6 = vector.broadcast %cst_5 : f32 to vector<8x80xf32>
    %7 = arith.maximumf %5, %6 : vector<8x80xf32>
    %8 = arith.truncf %7 : vector<8x80xf32> to vector<8x80xbf16>
    %c0_6 = arith.constant 0 : index
    %c0_7 = arith.constant 0 : index
    %9 = vector.load %arg4[%c0_6, %c0_7] : memref<8x80xbf16, #tpu.memory_space<vmem>>, vector<8x80xbf16>
    tpu.vector_store %arg4[%c0_6, %c0_7], %8 {strides = array<i32>} : memref<8x80xbf16, #tpu.memory_space<vmem>>, vector<8x80xbf16>,
    return
  }
  func.func @transform_0(%arg0: i32) -> (i32, i32) {
    %c0_i32 = arith.constant 0 : i32
    %c0_i32_0 = arith.constant 0 : i32
    return %arg0, %c0_i32 : i32, i32
  }
  func.func @transform_1(%arg0: i32) -> (i32, i32) {
    %c0_i32 = arith.constant 0 : i32
    %c0_i32_0 = arith.constant 0 : i32
    %c0_i32_1 = arith.constant 0 : i32
    return %c0_i32, %c0_i32_0 : i32, i32
  }
  func.func @transform_2(%arg0: i32) -> (i32, i32) {
    %c0_i32 = arith.constant 0 : i32
    %c0_i32_0 = arith.constant 0 : i32
    %c0_i32_1 = arith.constant 0 : i32
    return %c0_i32, %c0_i32_0 : i32, i32
  }
  func.func @transform_3(%arg0: i32) -> (i32, i32) {
    %c0_i32 = arith.constant 0 : i32
    %c0_i32_0 = arith.constant 0 : i32
    return %arg0, %c0_i32 : i32, i32
  }
}

module attributes {stable_mosaic.version = 11 : i64} {
  func.func @_matmul_bias_act_kernel(%arg0: i32, %arg1: memref<8x720xbf16, #tpu.memory_space<vmem>>, %arg2: memref<720x1024xbf16, #tpu.memory_space<vmem>>, %arg3: memref<1x1024xf32, #tpu.memory_space<vmem>>, %arg4: memref<8x1024xbf16, #tpu.memory_space<vmem>>) attributes {dimension_semantics = [#tpu.dimension_semantics<parallel>], iteration_bounds = array<i64: 1>, scalar_prefetch = 0 : i64, scratch_operands = 0 : i64, tpu.core_type = #tpu.core_type<tc>, window_params = [{transform_indices = @transform_0, window_bounds = array<i64: 8, 720>}, {pipeline_mode = #tpu.pipeline_mode<synchronous>, transform_indices = @transform_1, window_bounds = array<i64: 720, 1024>}, {pipeline_mode = #tpu.pipeline_mode<synchronous>, transform_indices = @transform_2, window_bounds = array<i64: 1, 1024>}, {transform_indices = @transform_3, window_bounds = array<i64: 8, 1024>}]} {
    %c0 = arith.constant 0 : index
    %c0_0 = arith.constant 0 : index
    %0 = vector.load %arg1[%c0, %c0_0] : memref<8x720xbf16, #tpu.memory_space<vmem>>, vector<8x720xbf16>
    %c0_1 = arith.constant 0 : index
    %c0_2 = arith.constant 0 : index
    %1 = vector.load %arg2[%c0_1, %c0_2] : memref<720x1024xbf16, #tpu.memory_space<vmem>>, vector<720x1024xbf16>
    %cst = arith.constant dense<0.000000e+00> : vector<8x1024xf32>
    %2 = tpu.matmul %0, %1, %cst {dimension_numbers = #tpu.dot_dimension_numbers<[1], [0], [0], [1], [0, 0, 1, 1], [], []>} : vector<8x720xbf16>, vector<720x1024xbf16>, vector<8x1024xf32> -> vector<8x1024xf32>
    %c0_3 = arith.constant 0 : index
    %c0_4 = arith.constant 0 : index
    %3 = vector.load %arg3[%c0_3, %c0_4] : memref<1x1024xf32, #tpu.memory_space<vmem>>, vector<1x1024xf32>
    %4 = vector.broadcast %3 : vector<1x1024xf32> to vector<8x1024xf32>
    %5 = arith.addf %2, %4 : vector<8x1024xf32>
    %cst_5 = arith.constant 0.000000e+00 : f32
    %6 = vector.broadcast %cst_5 : f32 to vector<8x1024xf32>
    %7 = arith.maximumf %5, %6 : vector<8x1024xf32>
    %8 = arith.truncf %7 : vector<8x1024xf32> to vector<8x1024xbf16>
    %c0_6 = arith.constant 0 : index
    %c0_7 = arith.constant 0 : index
    %9 = vector.load %arg4[%c0_6, %c0_7] : memref<8x1024xbf16, #tpu.memory_space<vmem>>, vector<8x1024xbf16>
    tpu.vector_store %arg4[%c0_6, %c0_7], %8 {strides = array<i32>} : memref<8x1024xbf16, #tpu.memory_space<vmem>>, vector<8x1024xbf16>,
    return
  }
  func.func @transform_0(%arg0: i32) -> (i32, i32) {
    %c0_i32 = arith.constant 0 : i32
    %c0_i32_0 = arith.constant 0 : i32
    return %arg0, %c0_i32 : i32, i32
  }
  func.func @transform_1(%arg0: i32) -> (i32, i32) {
    %c0_i32 = arith.constant 0 : i32
    %c0_i32_0 = arith.constant 0 : i32
    %c0_i32_1 = arith.constant 0 : i32
    return %c0_i32, %c0_i32_0 : i32, i32
  }
  func.func @transform_2(%arg0: i32) -> (i32, i32) {
    %c0_i32 = arith.constant 0 : i32
    %c0_i32_0 = arith.constant 0 : i32
    %c0_i32_1 = arith.constant 0 : i32
    return %c0_i32, %c0_i32_0 : i32, i32
  }
  func.func @transform_3(%arg0: i32) -> (i32, i32) {
    %c0_i32 = arith.constant 0 : i32
    %c0_i32_0 = arith.constant 0 : i32
    return %arg0, %c0_i32 : i32, i32
  }
}

</mosaic_0001>

<bundles_post_ra>
// kernel: model_forward.17
= control target key start
LH: loop header
LB: loop body
LE: loop exit
PB: predicated region body
PF: predicated region fallthrough
CT: control target
= control target key end

     0   :  { %s1478_s12 = smov 0   ;;  %s1480_s13 = smov 0   ;;  %s1886_s0 = inlined_call_operand.vmem [shape: f32[1922,147], index: 0, kind: input, shape index: {}]   ;;  %s1887_s1 = inlined_call_operand.vmem [shape: bf16[147,96], index: 1, kind: input, shape index: {}]   ;;  %s1888_s2 = inlined_call_operand.vmem [shape: f32[1,96], index: 2, kind: input, shape index: {}]   ;;  %s1889_s3 = inlined_call_operand.vmem [shape: bf16[1922,96], index: 3, kind: output, shape index: {}]  }
   0x1   :  { %s1482_s14 = smov 0  }
   0x2 LB: > { %s1491_s15 = sadd.s32 4294967295, %s1422_s14   ;;  %s1493_s16 = sadd.s32 1, %s1422_s14   ;;  %s1422_s14 = sphi %s1482_s14, %s1896_s14   ;;  %s1418_s13 = sphi %s1480_s13, %s1895_s13   ;;  %s1414_s12 = sphi %s1478_s12, %s1894_s12  }
   0x3   : > { %s85_s17 = ssub.s32 %s1422_s14, %s1493_s16  ;;  %s88_s18 = sadd.s32 1, %s1418_s13 }
   0x4   : > { %p86_p0 = scmp.eq.s32.totalorder %s85_s17, 0  ;;  %p98_p1 = scmp.ne.s32.totalorder %s1418_s13, %s1414_s12 }
   0x5   : > { %p99_p2 = scmp.eq.s32.totalorder %s1491_s15, 7  ;;  %p1131_p3 = scmp.ge.s32.totalorder %s1422_s14, 1 }
   0x6   : > { %s1501_s19 = scalar_select %p86_p0, %s1418_s13, %s88_s18  }
   0x7   : > { %p1503_p4 = por %p99_p2, %p98_p1  ;;  %p149_p5 = scmp.lt.s32.totalorder %s1422_s14, 9 }
   0x9   : > { %p150_p6 = pnand %p1131_p3, %p149_p5 }
   0xa   : > { %v1358_v0 = vld [vmem:[%s1887_s1] sm:$0xff] (!%p150_p6)   ;;  %v1456_v1 = vmov (!%p150_p6), 0   ;;  %v1359_v2 = vld [vmem:[%s1887_s1 + $0x8] sm:$0xff] (!%p150_p6)   ;;  %v1360_v3 = vld [vmem:[%s1887_s1 + $0x10] sm:$0xff] (!%p150_p6)   ;;  %s1521_s27 = sshll.u32 (!%p150_p6), %s1491_s15, 5  ;;  %vm380_vm0 = vcmask (!%p150_p6), 154624  }
   0xb   : > { %153 = sbr.rel (%p150_p6) target bundleno = 398 (0x18e), region = 32  ;;  %436 = vmatprep.subr.bf16.mxu0 (!%p150_p6), %v1456_v1  ;;  %1248 = vmatprep.subr.bf16.mxu1 (!%p150_p6), %v1456_v1  ;;  %p184_p7 = scmp.lt.s32.totalorder (!%p150_p6), %s1521_s27, 240  ;;  %v1361_v4 = vld [vmem:[%s1887_s1 + $0x18] sm:$0xff] (!%p150_p6)   ;;  %v1362_v8 = vld [vmem:[%s1887_s1 + $0x20] sm:$0xff] (!%p150_p6)   ;;  %v1363_v12 = vld [vmem:[%s1887_s1 + $0x28] sm:$0xff] (!%p150_p6)   ;;  %vm429_vm1 = vcmask (!%p150_p6), 1040384  }
   0xc   : > { %437 = vmatpush1.bf16.msra.mxu0 (!%p150_p6), %v1358_v0  ;;  %1258 = vmatpush1.bf16.msra.mxu1 (!%p150_p6), %v1358_v0  ;;  %v1364_v13 = vld [vmem:[%s1887_s1 + $0x30] sm:$0xff] (!%p150_p6)   ;;  %v1365_v14 = vld [vmem:[%s1887_s1 + $0x38] sm:$0xff] (!%p150_p6)   ;;  %vm430_vm2 = vcmask (!%p150_p6), 1041408   ;;  %v1457_v15 = vmov (!%p150_p6), 65535   ;;  %v1366_v17 = vld [vmem:[%s1887_s1 + $0x40] sm:$0xff] (!%p150_p6)   ;;  %s175_s26 = sand.u32 (!%p150_p6), 1, %s1414_s12  }
   0xd   : > { %438 = vmatprep.subr.bf16.mxu0 (!%p150_p6), %v1456_v1  ;;  %1249 = vmatprep.subr.bf16.mxu1 (!%p150_p6), %v1456_v1  ;;  %v431_v16 = vsel (!%p150_p6), %vm429_vm1, 4294967295, %v1457_v15  ;;  %v1367_v18 = vld [vmem:[%s1887_s1 + $0x48] ss:$0 sps:$4 sm:$0x33] (!%p150_p6)   ;;  %s1132_s30 = sshll.u32 (!%p150_p6), %s175_s26, 7  ;;  %vm757_vm3 = vcmask (!%p150_p6), 781312  }
   0xe   : > { %v432_v19 = vsel (!%p150_p6), %vm430_vm2, %v431_v16, 0  ;;  %s1657_s12 = scalar_lea.vmem (!%p150_p6), [#allocation2], %s1132_s30  }
   0xf   : > { %v434_v22 = vand.u32 (!%p150_p6), %v1367_v18, %v432_v19 }
  0x10   : > { %439 = vmatpush1.bf16.msra.mxu0 (!%p150_p6), %v1359_v2  ;;  %1259 = vmatpush1.bf16.msra.mxu1 (!%p150_p6), %v1359_v2 }
  0x11   : > { %440 = vmatprep.subr.bf16.mxu0 (!%p150_p6), %v1456_v1  ;;  %1250 = vmatprep.subr.bf16.mxu1 (!%p150_p6), %v1456_v1 }
  0x12   : > { %s185_s28 = scalar_select %p184_p7, %s1521_s27, 240 }
  0x13   : > { %s1245_s5 = sshll.u32 (%p1503_p4), %s1491_s15, 7 }
  0x14   : > { %441 = vmatpush1.bf16.msra.mxu0 %v1360_v3  ;;  %1260 = vmatpush1.bf16.msra.mxu1 %v1360_v3  ;;  %s1212_s4 = sshll.u32 %s185_s28, 4  ;;  %s1758_s8 = scalar_lea.vmem (%p1503_p4), %s1889_s3, %s1245_s5  }
  0x15   : > { %442 = vmatprep.subr.bf16.mxu0 %v1456_v1  ;;  %1251 = vmatprep.subr.bf16.mxu1 %v1456_v1  ;;  %s1535_s7 = scalar_lea.vmem %s1886_s0, %s1212_s4  ;;  %s798_s4 = ssub.s32 (%p1503_p4), 241, %s1521_s27 }
  0x16   : > { %v202_v5 = vld [vmem:[%s1535_s7 + $0x8] sm:$0xff]  ;;  %v204_v6 = vld [vmem:[%s1535_s7 + $0x18] sm:$0xff]  ;;  %v201_v20 = vld [vmem:[%s1535_s7] sm:$0xff]  ;;  %p799_p8 = scmp.lt.s32.totalorder (%p1503_p4), %s798_s4, 32 }
  0x17   : > { %v234_v7 = vld [vmem:[%s1535_s7 + $0x108] sm:$0xff]  ;;  %v266_v9 = vpack.c.bf16 %v204_v6, %v202_v5  ;;  %v236_v10 = vld [vmem:[%s1535_s7 + $0x118] sm:$0xff]  ;;  %v203_v21 = vld [vmem:[%s1535_s7 + $0x10] sm:$0xff] }
  0x18   : > { %443 = vmatpush1.bf16.msra.mxu0 %v1361_v4  ;;  %1261 = vmatpush1.bf16.msra.mxu1 %v1361_v4  ;;  %v282_v11 = vpack.c.bf16 %v236_v10, %v234_v7  ;;  %v233_v23 = vld [vmem:[%s1535_s7 + $0x100] sm:$0xff]  ;;  %v235_v24 = vld [vmem:[%s1535_s7 + $0x110] sm:$0xff]  ;;  %v206_v25 = vld [vmem:[%s1535_s7 + $0x28] sm:$0xff]  ;;  %v265_v29 = vpack.c.bf16 %v203_v21, %v201_v20 }
  0x19   : > { %444 = vmatprep.subr.bf16.mxu0 %v1456_v1  ;;  %1252 = vmatprep.subr.bf16.mxu1 %v1456_v1  ;;  %v208_v26 = vld [vmem:[%s1535_s7 + $0x38] sm:$0xff]  ;;  %v238_v27 = vld [vmem:[%s1535_s7 + $0x128] sm:$0xff]  ;;  %v281_v30 = vpack.c.bf16 %v235_v24, %v233_v23  ;;  %v205_v33 = vld [vmem:[%s1535_s7 + $0x20] sm:$0xff] }
  0x1a   : > { %1147 = vmatprep.mubr.msk.bf16.mxu0 %vm380_vm0, %v266_v9  ;;  %1155 = vmatprep.mubr.msk.bf16.mxu1 %vm380_vm0, %v282_v11  ;;  %v240_v28 = vld [vmem:[%s1535_s7 + $0x138] sm:$0xff]  ;;  %v268_v31 = vpack.c.bf16 %v208_v26, %v206_v25  ;;  %v207_v34 = vld [vmem:[%s1535_s7 + $0x30] sm:$0xff]  ;;  %v237_v35 = vld [vmem:[%s1535_s7 + $0x120] sm:$0xff] }
  0x1b   : > { %v284_v32 = vpack.c.bf16 %v240_v28, %v238_v27  ;;  %v239_v36 = vld [vmem:[%s1535_s7 + $0x130] sm:$0xff]  ;;  %v210_v37 = vld [vmem:[%s1535_s7 + $0x48] sm:$0xff]  ;;  %v212_v38 = vld [vmem:[%s1535_s7 + $0x58] sm:$0xff]  ;;  %v267_v41 = vpack.c.bf16 %v207_v34, %v205_v33 }
  0x1c   : > { %445 = vmatpush1.bf16.msra.mxu0 %v1362_v8  ;;  %1262 = vmatpush1.bf16.msra.mxu1 %v1362_v8  ;;  %v242_v39 = vld [vmem:[%s1535_s7 + $0x148] sm:$0xff]  ;;  %v244_v40 = vld [vmem:[%s1535_s7 + $0x158] sm:$0xff]  ;;  %v283_v42 = vpack.c.bf16 %v239_v36, %v237_v35  ;;  %v270_v43 = vpack.c.bf16 %v212_v38, %v210_v37  ;;  %v209_v45 = vld [vmem:[%s1535_s7 + $0x40] sm:$0xff] }
  0x1d   : > { %446 = vmatprep.subr.bf16.mxu0 %v1456_v1  ;;  %1253 = vmatprep.subr.bf16.mxu1 %v1456_v1  ;;  %v286_v44 = vpack.c.bf16 %v244_v40, %v242_v39  ;;  %v211_v46 = vld [vmem:[%s1535_s7 + $0x50] sm:$0xff]  ;;  %v241_v47 = vld [vmem:[%s1535_s7 + $0x140] sm:$0xff]  ;;  %v214_v49 = vld [vmem:[%s1535_s7 + $0x68] sm:$0xff] }
  0x1e   : > { %v243_v48 = vld [vmem:[%s1535_s7 + $0x150] sm:$0xff]  ;;  %v216_v50 = vld [vmem:[%s1535_s7 + $0x78] sm:$0xff]  ;;  %v246_v51 = vld [vmem:[%s1535_s7 + $0x168] sm:$0xff]  ;;  %v269_v53 = vpack.c.bf16 %v211_v46, %v209_v45 }
  0x1f   : > { %v248_v52 = vld [vmem:[%s1535_s7 + $0x178] sm:$0xff]  ;;  %v285_v54 = vpack.c.bf16 %v243_v48, %v241_v47  ;;  %v272_v55 = vpack.c.bf16 %v216_v50, %v214_v49  ;;  %v213_v57 = vld [vmem:[%s1535_s7 + $0x60] sm:$0xff]  ;;  %v215_v58 = vld [vmem:[%s1535_s7 + $0x70] sm:$0xff] }
  0x20   : > { %447 = vmatpush1.bf16.msra.mxu0 %v1363_v12  ;;  %1263 = vmatpush1.bf16.msra.mxu1 %v1363_v12  ;;  %v288_v56 = vpack.c.bf16 %v248_v52, %v246_v51  ;;  %v245_v59 = vld [vmem:[%s1535_s7 + $0x160] sm:$0xff]  ;;  %v247_v60 = vld [vmem:[%s1535_s7 + $0x170] sm:$0xff]  ;;  %v218_v61 = vld [vmem:[%s1535_s7 + $0x88] sm:$0xff] }
  0x21   : > { %448 = vmatprep.subr.bf16.mxu0 %v1456_v1  ;;  %1254 = vmatprep.subr.bf16.mxu1 %v1456_v1  ;;  %v220_v62 = vld [vmem:[%s1535_s7 + $0x98] sm:$0xff]  ;;  %v250_v63 = vld [vmem:[%s1535_s7 + $0x188] sm:$0xff]  ;;  %v287_v2 = vpack.c.bf16 %v247_v60, %v245_v59  ;;  %v217_v5 = vld [vmem:[%s1535_s7 + $0x80] sm:$0xff] }
  0x22   : > { %v252_v0 = vld [vmem:[%s1535_s7 + $0x198] sm:$0xff]  ;;  %v274_v3 = vpack.c.bf16 %v220_v62, %v218_v61  ;;  %v219_v6 = vld [vmem:[%s1535_s7 + $0x90] sm:$0xff]  ;;  %v249_v7 = vld [vmem:[%s1535_s7 + $0x180] sm:$0xff] }
  0x23   : > { %v290_v4 = vpack.c.bf16 %v252_v0, %v250_v63  ;;  %v251_v8 = vld [vmem:[%s1535_s7 + $0x190] sm:$0xff]  ;;  %v222_v9 = vld [vmem:[%s1535_s7 + $0xa8] sm:$0xff]  ;;  %v224_v10 = vld [vmem:[%s1535_s7 + $0xb8] sm:$0xff] }
  0x24   : > { %449 = vmatpush1.bf16.msra.mxu0 %v1364_v13  ;;  %1264 = vmatpush1.bf16.msra.mxu1 %v1364_v13  ;;  %v254_v11 = vld [vmem:[%s1535_s7 + $0x1a8] sm:$0xff]  ;;  %v256_v12 = vld [vmem:[%s1535_s7 + $0x1b8] sm:$0xff]  ;;  %v273_v13 = vpack.c.bf16 %v219_v6, %v217_v5  ;;  %v276_v15 = vpack.c.bf16 %v224_v10, %v222_v9  ;;  %v223_v18 = vld [vmem:[%s1535_s7 + $0xb0] sm:$0xff] }
  0x25   : > { %450 = vmatprep.subr.bf16.mxu0 %v1456_v1  ;;  %1255 = vmatprep.subr.bf16.mxu1 %v1456_v1  ;;  %v292_v16 = vpack.c.bf16 %v256_v12, %v254_v11  ;;  %v253_v19 = vld [vmem:[%s1535_s7 + $0x1a0] sm:$0xff]  ;;  %v255_v20 = vld [vmem:[%s1535_s7 + $0x1b0] sm:$0xff]  ;;  %v226_v21 = vld [vmem:[%s1535_s7 + $0xc8] sm:$0xff] }
  0x26   : > { %v258_v23 = vld [vmem:[%s1535_s7 + $0x1c8] sm:$0xff]  ;;  %v260_v24 = vld [vmem:[%s1535_s7 + $0x1d8] sm:$0xff]  ;;  %v291_v26 = vpack.c.bf16 %v255_v20, %v253_v19  ;;  %v1651_v47 = vld [vmem:[%s1888_s2] ss:$0 sm:$0xff] }
  0x27   : > { %v294_v28 = vpack.c.bf16 %v260_v24, %v258_v23  ;;  %v230_v33 = vld [vmem:[%s1535_s7 + $0xe8] sm:$0xff]  ;;  %v232_v34 = vld [vmem:[%s1535_s7 + $0xf8] sm:$0xff] }
  0x28   : > { %451 = vmatpush1.bf16.msra.mxu0 %v1365_v14  ;;  %1265 = vmatpush1.bf16.msra.mxu1 %v1365_v14  ;;  %v289_v14 = vpack.c.bf16 %v251_v8, %v249_v7  ;;  %v262_v35 = vld [vmem:[%s1535_s7 + $0x1e8] sm:$0xff]  ;;  %v264_v36 = vld [vmem:[%s1535_s7 + $0x1f8] sm:$0xff]  ;;  %v280_v39 = vpack.c.bf16 %v232_v34, %v230_v33 }
  0x29   : > { %452 = vmatprep.subr.bf16.mxu0 %v1456_v1  ;;  %1256 = vmatprep.subr.bf16.mxu1 %v1456_v1  ;;  %v296_v40 = vpack.c.bf16 %v264_v36, %v262_v35 }
  0x2c   : > { %453 = vmatpush1.bf16.msra.mxu0 %v1366_v17  ;;  %1266 = vmatpush1.bf16.msra.mxu1 %v1366_v17  ;;  %v221_v17 = vld [vmem:[%s1535_s7 + $0xa0] sm:$0xff] }
  0x2d   : > { %454 = vmatprep.subr.bf16.mxu0 %v1456_v1  ;;  %1257 = vmatprep.subr.bf16.mxu1 %v1456_v1  ;;  %v271_v1 = vpack.c.bf16 %v215_v58, %v213_v57  ;;  %v275_v25 = vpack.c.bf16 %v223_v18, %v221_v17 }
  0x30   : > { %455 = vmatpush1.bf16.msra.mxu0 %v434_v22  ;;  %1267 = vmatpush1.bf16.msra.mxu1 %v434_v22  ;;  %v228_v22 = vld [vmem:[%s1535_s7 + $0xd8] sm:$0xff] }
  0x31   : > { %v278_v27 = vpack.c.bf16 %v228_v22, %v226_v21 }
  0x33   : > { %469 = vmatmul.mubr.bf16.vlgmr.msra.gmra.mrb[0].mxu0 %v265_v29  ;;  %533 = vmatmul.mubr.bf16.vlgmr.msra.gmra.mrb[0].mxu1 %v281_v30  ;;  %v225_v29 = vld [vmem:[%s1535_s7 + $0xc0] sm:$0xff]  ;;  %v227_v30 = vld [vmem:[%s1535_s7 + $0xd0] sm:$0xff] }
  0x34   : > { %1148 = vmatprep.mubr.msk.bf16.mxu0 %vm380_vm0, %v268_v31  ;;  %1156 = vmatprep.mubr.msk.bf16.mxu1 %vm380_vm0, %v284_v32  ;;  %v257_v31 = vld [vmem:[%s1535_s7 + $0x1c0] sm:$0xff]  ;;  %v259_v32 = vld [vmem:[%s1535_s7 + $0x1d0] sm:$0xff]  ;;  %v277_v37 = vpack.c.bf16 %v227_v30, %v225_v29 }
  0x35   : > { %v293_v38 = vpack.c.bf16 %v259_v32, %v257_v31 }
  0x3b   : > { %477 = vmatmul.mubr.bf16.gmra.mrb[4].mxu0 %v267_v41  ;;  %541 = vmatmul.mubr.bf16.gmra.mrb[4].mxu1 %v283_v42  ;;  %v229_v41 = vld [vmem:[%s1535_s7 + $0xe0] sm:$0xff]  ;;  %v231_v42 = vld [vmem:[%s1535_s7 + $0xf0] sm:$0xff] }
  0x3c   : > { %1149 = vmatprep.mubr.msk.bf16.mxu0 %vm380_vm0, %v270_v43  ;;  %1157 = vmatprep.mubr.msk.bf16.mxu1 %vm380_vm0, %v286_v44  ;;  %v261_v43 = vld [vmem:[%s1535_s7 + $0x1e0] sm:$0xff]  ;;  %v263_v44 = vld [vmem:[%s1535_s7 + $0x1f0] sm:$0xff]  ;;  %v279_v45 = vpack.c.bf16 %v231_v42, %v229_v41 }
  0x3d   : > { %v295_v46 = vpack.c.bf16 %v263_v44, %v261_v43 }
  0x43   : > { %485 = vmatmul.mubr.bf16.gmra.mrb[8].mxu0 %v269_v53  ;;  %549 = vmatmul.mubr.bf16.gmra.mrb[8].mxu1 %v285_v54 }
  0x44   : > { %1150 = vmatprep.mubr.msk.bf16.mxu0 %vm380_vm0, %v272_v55  ;;  %1158 = vmatprep.mubr.msk.bf16.mxu1 %vm380_vm0, %v288_v56 }
  0x4b   : > { %493 = vmatmul.mubr.bf16.gmra.mrb[12].mxu0 %v271_v1  ;;  %557 = vmatmul.mubr.bf16.gmra.mrb[12].mxu1 %v287_v2 }
  0x4c   : > { %1151 = vmatprep.mubr.msk.bf16.mxu0 %vm380_vm0, %v274_v3  ;;  %1159 = vmatprep.mubr.msk.bf16.mxu1 %vm380_vm0, %v290_v4 }
  0x53   : > { %501 = vmatmul.mubr.bf16.gmra.mrb[16].mxu0 %v273_v13  ;;  %565 = vmatmul.mubr.bf16.gmra.mrb[16].mxu1 %v289_v14 }
  0x54   : > { %1152 = vmatprep.mubr.msk.bf16.mxu0 %vm380_vm0, %v276_v15  ;;  %1160 = vmatprep.mubr.msk.bf16.mxu1 %vm380_vm0, %v292_v16 }
  0x5b   : > { %509 = vmatmul.mubr.bf16.gmra.mrb[20].mxu0 %v275_v25  ;;  %573 = vmatmul.mubr.bf16.gmra.mrb[20].mxu1 %v291_v26 }
  0x5c   : > { %1153 = vmatprep.mubr.msk.bf16.mxu0 %vm380_vm0, %v278_v27  ;;  %1161 = vmatprep.mubr.msk.bf16.mxu1 %vm380_vm0, %v294_v28 }
  0x63   : > { %517 = vmatmul.mubr.bf16.gmra.mrb[24].mxu0 %v277_v37  ;;  %581 = vmatmul.mubr.bf16.gmra.mrb[24].mxu1 %v293_v38 }
  0x64   : > { %1154 = vmatprep.mubr.msk.bf16.mxu0 %vm380_vm0, %v280_v39  ;;  %1162 = vmatprep.mubr.msk.bf16.mxu1 %vm380_vm0, %v296_v40 }
  0x6b   : > { %525 = vmatmul.mubr.bf16.gmra.mrb[28].mxu0 %v279_v45  ;;  %589 = vmatmul.mubr.bf16.gmra.mrb[28].mxu1 %v295_v46 }
 0x106   : > { %v470_v48 = vpop.f32.mrb[0].mxu0  ;;  %v534_v49 = vpop.f32.mrb[0].mxu1 }
 0x107   : > { %v471_v50 = vadd.f32 %v1651_v47, %v470_v48  ;;  %v535_v51 = vadd.f32 %v1651_v47, %v534_v49  ;;  %v472_v52 = vpop.f32.mrb[1].mxu0  ;;  %v536_v53 = vpop.f32.mrb[1].mxu1 }
 0x108   : > { %v473_v54 = vpop.f32.mrb[2].mxu0  ;;  %v537_v55 = vpop.f32.mrb[2].mxu1 }
 0x109   : > { %v597_v56 = vmax.f32 %v471_v50, 0.0  ;;  %v613_v57 = vmax.f32 %v535_v51, 0.0  ;;  %v474_v58 = vadd.f32 %v1651_v47, %v473_v54  ;;  %v538_v59 = vadd.f32 %v1651_v47, %v537_v55  ;;  %v475_v60 = vpop.f32.mrb[3].mxu0  ;;  %v539_v61 = vpop.f32.mrb[3].mxu1 }
 0x10b   : > { %v1213_v62 = vpack.c.bf16 %v597_v56, %v597_v56  ;;  %v1229_v63 = vpack.c.bf16 %v613_v57, %v613_v57  ;;  %v598_v0 = vmax.f32 %v474_v58, 0.0  ;;  %v614_v1 = vmax.f32 %v538_v59, 0.0 }
 0x10d   : > { %758 = vst.msk [vmem:[%s1657_s12] sm:$0xf] %vm757_vm3, %v1213_v62  ;;  %774 = vst.msk [vmem:[%s1657_s12 + $0x40] sm:$0xf] %vm757_vm3, %v1229_v63  ;;  %v1214_v2 = vpack.c.bf16 %v598_v0, %v598_v0  ;;  %v1230_v3 = vpack.c.bf16 %v614_v1, %v614_v1 }
 0x10e   : > { %v478_v4 = vpop.f32.mrb[4].mxu0  ;;  %v542_v5 = vpop.f32.mrb[4].mxu1 }
 0x10f   : > { %759 = vst.msk [vmem:[%s1657_s12 + $0x4] sm:$0xf] %vm757_vm3, %v1214_v2  ;;  %775 = vst.msk [vmem:[%s1657_s12 + $0x44] sm:$0xf] %vm757_vm3, %v1230_v3  ;;  %v479_v6 = vadd.f32 %v1651_v47, %v478_v4  ;;  %v543_v7 = vadd.f32 %v1651_v47, %v542_v5  ;;  %v480_v8 = vpop.f32.mrb[5].mxu0  ;;  %v544_v9 = vpop.f32.mrb[5].mxu1 }
 0x110   : > { %v481_v10 = vpop.f32.mrb[6].mxu0  ;;  %v545_v11 = vpop.f32.mrb[6].mxu1 }
 0x111   : > { %v599_v12 = vmax.f32 %v479_v6, 0.0  ;;  %v615_v13 = vmax.f32 %v543_v7, 0.0  ;;  %v482_v14 = vadd.f32 %v1651_v47, %v481_v10  ;;  %v546_v15 = vadd.f32 %v1651_v47, %v545_v11  ;;  %v483_v16 = vpop.f32.mrb[7].mxu0  ;;  %v547_v17 = vpop.f32.mrb[7].mxu1 }
 0x113   : > { %v1215_v18 = vpack.c.bf16 %v599_v12, %v599_v12  ;;  %v1231_v19 = vpack.c.bf16 %v615_v13, %v615_v13  ;;  %v600_v20 = vmax.f32 %v482_v14, 0.0  ;;  %v616_v21 = vmax.f32 %v546_v15, 0.0 }
 0x115   : > { %760 = vst.msk [vmem:[%s1657_s12 + $0x8] sm:$0xf] %vm757_vm3, %v1215_v18  ;;  %776 = vst.msk [vmem:[%s1657_s12 + $0x48] sm:$0xf] %vm757_vm3, %v1231_v19  ;;  %v1216_v22 = vpack.c.bf16 %v600_v20, %v600_v20  ;;  %v1232_v23 = vpack.c.bf16 %v616_v21, %v616_v21 }
 0x116   : > { %v486_v24 = vpop.f32.mrb[8].mxu0  ;;  %v550_v25 = vpop.f32.mrb[8].mxu1 }
 0x117   : > { %761 = vst.msk [vmem:[%s1657_s12 + $0xc] sm:$0xf] %vm757_vm3, %v1216_v22  ;;  %777 = vst.msk [vmem:[%s1657_s12 + $0x4c] sm:$0xf] %vm757_vm3, %v1232_v23  ;;  %v487_v26 = vadd.f32 %v1651_v47, %v486_v24  ;;  %v551_v27 = vadd.f32 %v1651_v47, %v550_v25  ;;  %v488_v28 = vpop.f32.mrb[9].mxu0  ;;  %v552_v29 = vpop.f32.mrb[9].mxu1 }
 0x118   : > { %v489_v30 = vpop.f32.mrb[10].mxu0  ;;  %v553_v31 = vpop.f32.mrb[10].mxu1 }
 0x119   : > { %v601_v32 = vmax.f32 %v487_v26, 0.0  ;;  %v617_v33 = vmax.f32 %v551_v27, 0.0  ;;  %v490_v34 = vadd.f32 %v1651_v47, %v489_v30  ;;  %v554_v35 = vadd.f32 %v1651_v47, %v553_v31  ;;  %v491_v36 = vpop.f32.mrb[11].mxu0  ;;  %v555_v37 = vpop.f32.mrb[11].mxu1 }
 0x11b   : > { %v1217_v38 = vpack.c.bf16 %v601_v32, %v601_v32  ;;  %v1233_v39 = vpack.c.bf16 %v617_v33, %v617_v33  ;;  %v602_v40 = vmax.f32 %v490_v34, 0.0  ;;  %v618_v41 = vmax.f32 %v554_v35, 0.0 }
 0x11d   : > { %762 = vst.msk [vmem:[%s1657_s12 + $0x10] sm:$0xf] %vm757_vm3, %v1217_v38  ;;  %778 = vst.msk [vmem:[%s1657_s12 + $0x50] sm:$0xf] %vm757_vm3, %v1233_v39  ;;  %v1218_v42 = vpack.c.bf16 %v602_v40, %v602_v40  ;;  %v1234_v43 = vpack.c.bf16 %v618_v41, %v618_v41 }
 0x11e   : > { %v494_v44 = vpop.f32.mrb[12].mxu0  ;;  %v558_v45 = vpop.f32.mrb[12].mxu1 }
 0x11f   : > { %763 = vst.msk [vmem:[%s1657_s12 + $0x14] sm:$0xf] %vm757_vm3, %v1218_v42  ;;  %779 = vst.msk [vmem:[%s1657_s12 + $0x54] sm:$0xf] %vm757_vm3, %v1234_v43  ;;  %v495_v46 = vadd.f32 %v1651_v47, %v494_v44  ;;  %v559_v48 = vadd.f32 %v1651_v47, %v558_v45  ;;  %v496_v49 = vpop.f32.mrb[13].mxu0  ;;  %v560_v50 = vpop.f32.mrb[13].mxu1 }
 0x120   : > { %v497_v51 = vpop.f32.mrb[14].mxu0  ;;  %v561_v52 = vpop.f32.mrb[14].mxu1 }
 0x121   : > { %v603_v53 = vmax.f32 %v495_v46, 0.0  ;;  %v619_v54 = vmax.f32 %v559_v48, 0.0  ;;  %v498_v55 = vadd.f32 %v1651_v47, %v497_v51  ;;  %v562_v56 = vadd.f32 %v1651_v47, %v561_v52  ;;  %v499_v57 = vpop.f32.mrb[15].mxu0  ;;  %v563_v58 = vpop.f32.mrb[15].mxu1 }
 0x123   : > { %v1219_v59 = vpack.c.bf16 %v603_v53, %v603_v53  ;;  %v1235_v60 = vpack.c.bf16 %v619_v54, %v619_v54  ;;  %v604_v61 = vmax.f32 %v498_v55, 0.0  ;;  %v620_v62 = vmax.f32 %v562_v56, 0.0 }
 0x125   : > { %764 = vst.msk [vmem:[%s1657_s12 + $0x18] sm:$0xf] %vm757_vm3, %v1219_v59  ;;  %780 = vst.msk [vmem:[%s1657_s12 + $0x58] sm:$0xf] %vm757_vm3, %v1235_v60  ;;  %v1220_v63 = vpack.c.bf16 %v604_v61, %v604_v61  ;;  %v1236_v0 = vpack.c.bf16 %v620_v62, %v620_v62 }
 0x126   : > { %v502_v1 = vpop.f32.mrb[16].mxu0  ;;  %v566_v2 = vpop.f32.mrb[16].mxu1 }
 0x127   : > { %765 = vst.msk [vmem:[%s1657_s12 + $0x1c] sm:$0xf] %vm757_vm3, %v1220_v63  ;;  %781 = vst.msk [vmem:[%s1657_s12 + $0x5c] sm:$0xf] %vm757_vm3, %v1236_v0  ;;  %v503_v3 = vadd.f32 %v1651_v47, %v502_v1  ;;  %v567_v4 = vadd.f32 %v1651_v47, %v566_v2  ;;  %v504_v5 = vpop.f32.mrb[17].mxu0  ;;  %v568_v6 = vpop.f32.mrb[17].mxu1 }
 0x128   : > { %v505_v7 = vpop.f32.mrb[18].mxu0  ;;  %v569_v8 = vpop.f32.mrb[18].mxu1 }
 0x129   : > { %v605_v9 = vmax.f32 %v503_v3, 0.0  ;;  %v621_v10 = vmax.f32 %v567_v4, 0.0  ;;  %v506_v11 = vadd.f32 %v1651_v47, %v505_v7  ;;  %v570_v12 = vadd.f32 %v1651_v47, %v569_v8  ;;  %v507_v13 = vpop.f32.mrb[19].mxu0  ;;  %v571_v14 = vpop.f32.mrb[19].mxu1 }
 0x12b   : > { %v1221_v15 = vpack.c.bf16 %v605_v9, %v605_v9  ;;  %v1237_v16 = vpack.c.bf16 %v621_v10, %v621_v10  ;;  %v606_v17 = vmax.f32 %v506_v11, 0.0  ;;  %v622_v18 = vmax.f32 %v570_v12, 0.0 }
 0x12d   : > { %766 = vst.msk [vmem:[%s1657_s12 + $0x20] sm:$0xf] %vm757_vm3, %v1221_v15  ;;  %782 = vst.msk [vmem:[%s1657_s12 + $0x60] sm:$0xf] %vm757_vm3, %v1237_v16  ;;  %v1222_v19 = vpack.c.bf16 %v606_v17, %v606_v17  ;;  %v1238_v20 = vpack.c.bf16 %v622_v18, %v622_v18 }
 0x12e   : > { %v510_v21 = vpop.f32.mrb[20].mxu0  ;;  %v574_v22 = vpop.f32.mrb[20].mxu1 }
 0x12f   : > { %767 = vst.msk [vmem:[%s1657_s12 + $0x24] sm:$0xf] %vm757_vm3, %v1222_v19  ;;  %783 = vst.msk [vmem:[%s1657_s12 + $0x64] sm:$0xf] %vm757_vm3, %v1238_v20  ;;  %v511_v23 = vadd.f32 %v1651_v47, %v510_v21  ;;  %v575_v24 = vadd.f32 %v1651_v47, %v574_v22  ;;  %v512_v25 = vpop.f32.mrb[21].mxu0  ;;  %v576_v26 = vpop.f32.mrb[21].mxu1 }
 0x130   : > { %v513_v27 = vpop.f32.mrb[22].mxu0  ;;  %v577_v28 = vpop.f32.mrb[22].mxu1 }
 0x131   : > { %v607_v29 = vmax.f32 %v511_v23, 0.0  ;;  %v623_v30 = vmax.f32 %v575_v24, 0.0  ;;  %v514_v31 = vadd.f32 %v1651_v47, %v513_v27  ;;  %v578_v32 = vadd.f32 %v1651_v47, %v577_v28  ;;  %v515_v33 = vpop.f32.mrb[23].mxu0  ;;  %v579_v34 = vpop.f32.mrb[23].mxu1 }
 0x133   : > { %v1223_v35 = vpack.c.bf16 %v607_v29, %v607_v29  ;;  %v1239_v36 = vpack.c.bf16 %v623_v30, %v623_v30  ;;  %v608_v37 = vmax.f32 %v514_v31, 0.0  ;;  %v624_v38 = vmax.f32 %v578_v32, 0.0 }
 0x135   : > { %768 = vst.msk [vmem:[%s1657_s12 + $0x28] sm:$0xf] %vm757_vm3, %v1223_v35  ;;  %784 = vst.msk [vmem:[%s1657_s12 + $0x68] sm:$0xf] %vm757_vm3, %v1239_v36  ;;  %v1224_v39 = vpack.c.bf16 %v608_v37, %v608_v37  ;;  %v1240_v40 = vpack.c.bf16 %v624_v38, %v624_v38 }
 0x136   : > { %v518_v41 = vpop.f32.mrb[24].mxu0  ;;  %v582_v42 = vpop.f32.mrb[24].mxu1 }
 0x137   : > { %769 = vst.msk [vmem:[%s1657_s12 + $0x2c] sm:$0xf] %vm757_vm3, %v1224_v39  ;;  %785 = vst.msk [vmem:[%s1657_s12 + $0x6c] sm:$0xf] %vm757_vm3, %v1240_v40  ;;  %v519_v43 = vadd.f32 %v1651_v47, %v518_v41  ;;  %v583_v44 = vadd.f32 %v1651_v47, %v582_v42  ;;  %v520_v45 = vpop.f32.mrb[25].mxu0  ;;  %v584_v46 = vpop.f32.mrb[25].mxu1 }
 0x138   : > { %v521_v48 = vpop.f32.mrb[26].mxu0  ;;  %v585_v49 = vpop.f32.mrb[26].mxu1 }
 0x139   : > { %v609_v50 = vmax.f32 %v519_v43, 0.0  ;;  %v625_v51 = vmax.f32 %v583_v44, 0.0  ;;  %v522_v52 = vadd.f32 %v1651_v47, %v521_v48  ;;  %v586_v53 = vadd.f32 %v1651_v47, %v585_v49  ;;  %v523_v54 = vpop.f32.mrb[27].mxu0  ;;  %v587_v55 = vpop.f32.mrb[27].mxu1 }
 0x13b   : > { %v1225_v56 = vpack.c.bf16 %v609_v50, %v609_v50  ;;  %v1241_v57 = vpack.c.bf16 %v625_v51, %v625_v51  ;;  %v610_v58 = vmax.f32 %v522_v52, 0.0  ;;  %v626_v59 = vmax.f32 %v586_v53, 0.0 }
 0x13d   : > { %770 = vst.msk [vmem:[%s1657_s12 + $0x30] sm:$0xf] %vm757_vm3, %v1225_v56  ;;  %786 = vst.msk [vmem:[%s1657_s12 + $0x70] sm:$0xf] %vm757_vm3, %v1241_v57  ;;  %v1226_v60 = vpack.c.bf16 %v610_v58, %v610_v58  ;;  %v1242_v61 = vpack.c.bf16 %v626_v59, %v626_v59 }
 0x13e   : > { %v526_v62 = vpop.f32.mrb[28].mxu0  ;;  %v590_v63 = vpop.f32.mrb[28].mxu1 }
 0x13f   : > { %771 = vst.msk [vmem:[%s1657_s12 + $0x34] sm:$0xf] %vm757_vm3, %v1226_v60  ;;  %787 = vst.msk [vmem:[%s1657_s12 + $0x74] sm:$0xf] %vm757_vm3, %v1242_v61  ;;  %v527_v0 = vadd.f32 %v1651_v47, %v526_v62  ;;  %v591_v1 = vadd.f32 %v1651_v47, %v590_v63  ;;  %v528_v2 = vpop.f32.mrb[29].mxu0  ;;  %v592_v3 = vpop.f32.mrb[29].mxu1 }
 0x140   : > { %v529_v4 = vpop.f32.mrb[30].mxu0  ;;  %v593_v5 = vpop.f32.mrb[30].mxu1 }
 0x141   : > { %v611_v6 = vmax.f32 %v527_v0, 0.0  ;;  %v627_v7 = vmax.f32 %v591_v1, 0.0  ;;  %v530_v8 = vadd.f32 %v1651_v47, %v529_v4  ;;  %v594_v9 = vadd.f32 %v1651_v47, %v593_v5  ;;  %v531_v10 = vpop.f32.mrb[31].mxu0  ;;  %v595_v11 = vpop.f32.mrb[31].mxu1  ;;  %796 = sbr.rel (!%p1503_p4) target bundleno = 398 (0x18e), region = 36 }
 0x143   : > { %v1227_v12 = vpack.c.bf16 %v611_v6, %v611_v6  ;;  %v1243_v13 = vpack.c.bf16 %v627_v7, %v627_v7  ;;  %v612_v14 = vmax.f32 %v530_v8, 0.0  ;;  %v628_v15 = vmax.f32 %v594_v9, 0.0 }
 0x145   : > { %772 = vst.msk [vmem:[%s1657_s12 + $0x38] sm:$0xf] %vm757_vm3, %v1227_v12  ;;  %788 = vst.msk [vmem:[%s1657_s12 + $0x78] sm:$0xf] %vm757_vm3, %v1243_v13  ;;  %v1228_v16 = vpack.c.bf16 %v612_v14, %v612_v14  ;;  %v1244_v17 = vpack.c.bf16 %v628_v15, %v628_v15 }
 0x147   : > { %773 = vst.msk [vmem:[%s1657_s12 + $0x3c] sm:$0xf] %vm757_vm3, %v1228_v16  ;;  %789 = vst.msk [vmem:[%s1657_s12 + $0x7c] sm:$0xf] %vm757_vm3, %v1244_v17 }
 0x148   : > { %s1898_s4 = smov (!%p799_p8, %s798_s4), 32 }
 0x149   : > { %s1197_s9 = sshll.u32 %s1898_s4, 6 }
 0x14a   : > { %p1200_p9 = scmp.eq.s32.totalorder %s1197_s9, 0 }
 0x14b   : > { %s1764_s10 = sshrl.u32 (!%p1200_p9), %s1898_s4, 5 }
 0x14c   : > { %807 = sbr.rel (%p1200_p9) target bundleno = 398 (0x18e), region = 40  ;;  %p1201_p10 = scmp.le.s32.totalorder (!%p1200_p9), %s1764_s10, 0 }
 0x153   : > { %1084 = sbr.rel (%p1201_p10) target bundleno = 377 (0x179), region = 112  ;;  %s1891_s15 = smov (!%p1201_p10), %s1758_s8 }
 0x154   : > { %s1892_s20 = smov (!%p1201_p10), %s1657_s12  ;;  %s1773_s27 = smov (!%p1201_p10), 0  }
 0x155   : > { %s1775_s11 = smov (!%p1201_p10), 0  }
 0x15a LB: >> { %v823_v47 = vld [vmem:[%s1430_s20] sm:$0xf]  ;;  %v825_v18 = vld [vmem:[%s1430_s20 + $0x4] sm:$0xf]  ;;  %v827_v19 = vld [vmem:[%s1430_s20 + $0x8] sm:$0xf]  ;;  %s1438_s11 = sphi %s1775_s11, %s817_s11   ;;  %s1434_s27 = sphi %s1773_s27, %s1893_s27   ;;  %s1430_s20 = sphi %s1892_s20, %s892_s20   ;;  %s1426_s15 = sphi %s1891_s15, %s893_s15  }
 0x15b   : >> { %824 = vst [vmem:[%s1426_s15] sm:$0xf] %v823_v47  ;;  %826 = vst [vmem:[%s1426_s15 + $0x4] sm:$0xf] %v825_v18  ;;  %v829_v20 = vld [vmem:[%s1430_s20 + $0xc] sm:$0xf]  ;;  %s887_s14 = sadd.s32 1, %s1434_s27 }
 0x15c   : >> { %828 = vst [vmem:[%s1426_s15 + $0x8] sm:$0xf] %v827_v19  ;;  %v831_v21 = vld [vmem:[%s1430_s20 + $0x10] sm:$0xf]  ;;  %v833_v22 = vld [vmem:[%s1430_s20 + $0x14] sm:$0xf]  ;;  %p888_p11 = scmp.ge.s32.totalorder %s887_s14, %s1764_s10 }
 0x15d   : >> { %830 = vst [vmem:[%s1426_s15 + $0xc] sm:$0xf] %v829_v20  ;;  %832 = vst [vmem:[%s1426_s15 + $0x10] sm:$0xf] %v831_v21  ;;  %v835_v23 = vld [vmem:[%s1430_s20 + $0x18] sm:$0xf] }
 0x15e   : >> { %834 = vst [vmem:[%s1426_s15 + $0x14] sm:$0xf] %v833_v22  ;;  %v837_v24 = vld [vmem:[%s1430_s20 + $0x1c] sm:$0xf]  ;;  %v839_v25 = vld [vmem:[%s1430_s20 + $0x20] sm:$0xf] }
 0x15f   : >> { %836 = vst [vmem:[%s1426_s15 + $0x18] sm:$0xf] %v835_v23  ;;  %838 = vst [vmem:[%s1426_s15 + $0x1c] sm:$0xf] %v837_v24  ;;  %v841_v26 = vld [vmem:[%s1430_s20 + $0x24] sm:$0xf] }
 0x160   : >> { %840 = vst [vmem:[%s1426_s15 + $0x20] sm:$0xf] %v839_v25  ;;  %v843_v27 = vld [vmem:[%s1430_s20 + $0x28] sm:$0xf]  ;;  %v845_v28 = vld [vmem:[%s1430_s20 + $0x2c] sm:$0xf] }
 0x161   : >> { %842 = vst [vmem:[%s1426_s15 + $0x24] sm:$0xf] %v841_v26  ;;  %844 = vst [vmem:[%s1426_s15 + $0x28] sm:$0xf] %v843_v27  ;;  %v847_v29 = vld [vmem:[%s1430_s20 + $0x30] sm:$0xf] }
 0x162   : >> { %846 = vst [vmem:[%s1426_s15 + $0x2c] sm:$0xf] %v845_v28  ;;  %v849_v30 = vld [vmem:[%s1430_s20 + $0x34] sm:$0xf]  ;;  %v851_v31 = vld [vmem:[%s1430_s20 + $0x38] sm:$0xf] }
 0x163   : >> { %848 = vst [vmem:[%s1426_s15 + $0x30] sm:$0xf] %v847_v29  ;;  %850 = vst [vmem:[%s1426_s15 + $0x34] sm:$0xf] %v849_v30  ;;  %v853_v32 = vld [vmem:[%s1430_s20 + $0x3c] sm:$0xf] }
 0x164   : >> { %852 = vst [vmem:[%s1426_s15 + $0x38] sm:$0xf] %v851_v31  ;;  %v855_v33 = vld [vmem:[%s1430_s20 + $0x40] sm:$0xf]  ;;  %v857_v34 = vld [vmem:[%s1430_s20 + $0x44] sm:$0xf] }
 0x165   : >> { %854 = vst [vmem:[%s1426_s15 + $0x3c] sm:$0xf] %v853_v32  ;;  %856 = vst [vmem:[%s1426_s15 + $0x40] sm:$0xf] %v855_v33  ;;  %v859_v35 = vld [vmem:[%s1430_s20 + $0x48] sm:$0xf] }
 0x166   : >> { %858 = vst [vmem:[%s1426_s15 + $0x44] sm:$0xf] %v857_v34  ;;  %v861_v36 = vld [vmem:[%s1430_s20 + $0x4c] sm:$0xf]  ;;  %v863_v37 = vld [vmem:[%s1430_s20 + $0x50] sm:$0xf] }
 0x167   : >> { %860 = vst [vmem:[%s1426_s15 + $0x48] sm:$0xf] %v859_v35  ;;  %862 = vst [vmem:[%s1426_s15 + $0x4c] sm:$0xf] %v861_v36  ;;  %v865_v38 = vld [vmem:[%s1430_s20 + $0x54] sm:$0xf] }
 0x168   : >> { %864 = vst [vmem:[%s1426_s15 + $0x50] sm:$0xf] %v863_v37  ;;  %v867_v39 = vld [vmem:[%s1430_s20 + $0x58] sm:$0xf]  ;;  %v869_v40 = vld [vmem:[%s1430_s20 + $0x5c] sm:$0xf] }
 0x169   : >> { %866 = vst [vmem:[%s1426_s15 + $0x54] sm:$0xf] %v865_v38  ;;  %868 = vst [vmem:[%s1426_s15 + $0x58] sm:$0xf] %v867_v39  ;;  %v871_v41 = vld [vmem:[%s1430_s20 + $0x60] sm:$0xf] }
 0x16a   : >> { %870 = vst [vmem:[%s1426_s15 + $0x5c] sm:$0xf] %v869_v40  ;;  %v873_v42 = vld [vmem:[%s1430_s20 + $0x64] sm:$0xf]  ;;  %v875_v43 = vld [vmem:[%s1430_s20 + $0x68] sm:$0xf] }
 0x16b   : >> { %872 = vst [vmem:[%s1426_s15 + $0x60] sm:$0xf] %v871_v41  ;;  %874 = vst [vmem:[%s1426_s15 + $0x64] sm:$0xf] %v873_v42  ;;  %v877_v44 = vld [vmem:[%s1430_s20 + $0x6c] sm:$0xf] }
 0x16c   : >> { %876 = vst [vmem:[%s1426_s15 + $0x68] sm:$0xf] %v875_v43  ;;  %v879_v45 = vld [vmem:[%s1430_s20 + $0x70] sm:$0xf]  ;;  %v881_v46 = vld [vmem:[%s1430_s20 + $0x74] sm:$0xf] }
 0x16d   : >> { %878 = vst [vmem:[%s1426_s15 + $0x6c] sm:$0xf] %v877_v44  ;;  %880 = vst [vmem:[%s1426_s15 + $0x70] sm:$0xf] %v879_v45  ;;  %v883_v48 = vld [vmem:[%s1430_s20 + $0x78] sm:$0xf] }
 0x16e   : >> { %882 = vst [vmem:[%s1426_s15 + $0x74] sm:$0xf] %v881_v46  ;;  %v885_v49 = vld [vmem:[%s1430_s20 + $0x7c] sm:$0xf]  ;;  %884 = vst [vmem:[%s1426_s15 + $0x78] sm:$0xf] %v883_v48 }
 0x16f   : >> { %886 = vst [vmem:[%s1426_s15 + $0x7c] sm:$0xf] %v885_v49  ;;  %s1900_s14 = smov (%p888_p11, %s887_s14), 0  ;;  %s817_s11 = sadd.s32 1, %s1438_s11  }
 0x170   : >> { %s1202_s17 = sshll.u32 %s1900_s14, 7  ;;  %p816_p12 = scmp.ge.s32.totalorder %s817_s11, %s1764_s10 }
 0x171   : >> { %s892_s20 = scalar_lea.vmem %s1657_s12, %s1202_s17 [#allocation2]   ;;  %s893_s15 = scalar_lea.vmem %s1758_s8, %s1202_s17  }
 0x172   : >> { %s1893_s27 = smov %s1900_s14  ;;  %819 = sbr.rel (!%p816_p12) target bundleno = 346 (0x15a), region = 118 }
 0x179 PF: > { %s1868_s18 = sand.u32 31, %s1898_s4   ;;  %s1246_s21 = sshll.u32 %s1764_s10, 7 }
 0x17a   : > { %s898_s22 = scalar_lea.vmem %s1657_s12, %s1246_s21 [#allocation2]   ;;  %s900_s23 = scalar_lea.vmem %s1758_s8, %s1246_s21  }
 0x17b   : > { %p1207_p13 = scmp.le.s32.totalorder %s1868_s18, 0 }
 0x17c   : > { %s1440_s24 = smov (!%p1207_p13), %s900_s23   ;;  %s1444_s25 = smov (!%p1207_p13), %s898_s22  }
 0x17d   : > { %1098 = sbr.rel (%p1207_p13) target bundleno = 398 (0x18e), region = 123  ;;  %s1448_s26 = smov (!%p1207_p13), 0  }
 0x17e   : > { %s1452_s28 = smov (!%p1207_p13), 0  }
 0x184 LB: >> { %v910_v50 = vld [vmem:[%s1446_s25] sm:$0xf]  ;;  %s912_s29 = sadd.s32 1, %s1450_s26  ;;  %s904_s28 = sadd.s32 1, %s1454_s28   ;;  %s1454_s28 = sphi %s1452_s28, %s904_s28   ;;  %s1450_s26 = sphi %s1448_s26, %s1449_s26   ;;  %s1446_s25 = sphi %s1444_s25, %s917_s25   ;;  %s1442_s24 = sphi %s1440_s24, %s918_s24  }
 0x185   : >> { %911 = vst [vmem:[%s1442_s24] sm:$0xf] %v910_v50  ;;  %p913_p0 = scmp.ge.s32.totalorder %s912_s29, %s1868_s18  ;;  %p903_p1 = scmp.ge.s32.totalorder %s904_s28, %s1868_s18 }
 0x187   : >> { %s1902_s29 = smov (%p913_p0, %s912_s29), 0  ;;  %906 = sbr.rel (!%p903_p1) target bundleno = 388 (0x184), region = 129 }
 0x188   : >> { %s1208_s30 = sshll.u32 %s1902_s29, 2  ;;  %s1449_s26 = smov %s1902_s29  }
 0x189   : >> { %s917_s25 = scalar_lea.vmem %s898_s22, %s1208_s30 [#allocation2]   ;;  %s918_s24 = scalar_lea.vmem %s900_s23, %s1208_s30  }
 0x18e PF: > { %p10_p2 = scmp.ge.s32.totalorder %s1493_s16, 10   ;;  %s1894_s12 = smov %s1418_s13 }
 0x18f   : > { %s1895_s13 = smov %s1501_s19  ;;  %s1896_s14 = smov %s1493_s16 }
 0x190   :  { %12 = sbr.rel (!%p10_p2) target bundleno = 2 (0x2), region = 140 }

// kernel: model_forward.18
= control target key start
LH: loop header
LB: loop body
LE: loop exit
PB: predicated region body
PF: predicated region fallthrough
CT: control target
= control target key end

     0   :  { %s1051_s12 = smov 0   ;;  %s1230_s0 = inlined_call_operand.vmem [shape: bf16[512,96], index: 0, kind: input, shape index: {}]   ;;  %s1231_s1 = inlined_call_operand.vmem [shape: bf16[96,16], index: 1, kind: input, shape index: {}]   ;;  %s1232_s2 = inlined_call_operand.vmem [shape: f32[1,16], index: 2, kind: input, shape index: {}]   ;;  %s1233_s3 = inlined_call_operand.vmem [shape: bf16[512,16], index: 3, kind: output, shape index: {}]  }
   0x1 LB: > { %s801_s13 = sadd.s32 4294967295, %s1029_s12   ;;  %p805_p0 = scmp.ge.s32.totalorder %s1029_s12, 1  ;;  %s1029_s12 = sphi %s1051_s12, %s13_s12  }
   0x2   : > { %p138_p1 = scmp.lt.s32.totalorder %s1029_s12, 3 }
   0x4   : > { %p139_p2 = pnand %p805_p0, %p138_p1 }
   0x5   : > { %v1001_v0 = vld [vmem:[%s1231_s1] sm:$0xff] (!%p139_p2)   ;;  %s806_s16 = sshll.u32 (!%p139_p2), %s801_s13, 5  ;;  %v1002_v1 = vld [vmem:[%s1231_s1 + $0x8] sm:$0xff] (!%p139_p2)   ;;  %v1003_v2 = vld [vmem:[%s1231_s1 + $0x10] sm:$0xff] (!%p139_p2)   ;;  %vm342_vm0 = vcmask (!%p139_p2), 785408   ;;  %vm712_vm1 = vcmask (!%p139_p2), 125952  }
   0x6   : > { %142 = sbr.rel (%p139_p2) target bundleno = 276 (0x114), region = 32  ;;  %p163_p3 = scmp.lt.s32.totalorder (!%p139_p2), %s806_s16, 63  ;;  %937 = vmatprep.subr.bf16.mxu0 (!%p139_p2), %v1001_v0  ;;  %981 = vmatprep.subr.bf16.mxu1 (!%p139_p2), %v1001_v0  ;;  %v1004_v3 = vld [vmem:[%s1231_s1 + $0x18] sm:$0xff] (!%p139_p2)   ;;  %v1005_v6 = vld [vmem:[%s1231_s1 + $0x20] sm:$0xff] (!%p139_p2)   ;;  %v1006_v7 = vld [vmem:[%s1231_s1 + $0x28] sm:$0xff] (!%p139_p2)  }
   0x7   : > { %938 = vmatpush3.bf16.msra.mxu0 (!%p139_p2), %v1001_v0  ;;  %987 = vmatpush3.bf16.msra.mxu1 (!%p139_p2), %v1001_v0  ;;  %v1122_v22 = vld [vmem:[%s1232_s2] ss:$0 sm:$0xff] (!%p139_p2) }
   0x8   : > { %939 = vmatprep.subr.bf16.mxu0 (!%p139_p2), %v1002_v1  ;;  %982 = vmatprep.subr.bf16.mxu1 (!%p139_p2), %v1002_v1 }
   0xb   : > { %940 = vmatpush3.bf16.msra.mxu0 (!%p139_p2), %v1002_v1  ;;  %988 = vmatpush3.bf16.msra.mxu1 (!%p139_p2), %v1002_v1 }
   0xc   : > { %941 = vmatprep.subr.bf16.mxu0 (!%p139_p2), %v1003_v2  ;;  %983 = vmatprep.subr.bf16.mxu1 (!%p139_p2), %v1003_v2 }
   0xd   : > { %s1235_s16 = smov (!%p163_p3, %s806_s16), 63 }
   0xe   : > { %s807_s21 = sshll.u32 %s1235_s16, 2 }
   0xf   : > { %s1079_s26 = scalar_lea.vmem %s1230_s0, %s807_s21  ;;  %942 = vmatpush3.bf16.msra.mxu0 %v1003_v2  ;;  %989 = vmatpush3.bf16.msra.mxu1 %v1003_v2  ;;  %s1135_s8 = scalar_lea.vmem %s1233_s3, %s807_s21 }
  0x10   : > { %v1007_v4 = vld [vmem:[%s1079_s26] sm:$0xff]   ;;  %943 = vmatprep.subr.bf16.mxu0 %v1004_v3  ;;  %984 = vmatprep.subr.bf16.mxu1 %v1004_v3  ;;  %v1009_v8 = vld [vmem:[%s1079_s26 + $0x8] sm:$0xff]   ;;  %v1011_v10 = vld [vmem:[%s1079_s26 + $0x10] sm:$0xff]  }
  0x11   : > { %v1008_v5 = vld [vmem:[%s1079_s26 + $0x40] sm:$0xff]   ;;  %949 = vmatprep.mubr.msk.bf16.mxu0 %vm342_vm0, %v1007_v4  ;;  %v1010_v9 = vld [vmem:[%s1079_s26 + $0x48] sm:$0xff]   ;;  %v1012_v11 = vld [vmem:[%s1079_s26 + $0x50] sm:$0xff]  }
  0x12   : > { %965 = vmatprep.mubr.msk.bf16.mxu1 %vm342_vm0, %v1008_v5  ;;  %v1013_v12 = vld [vmem:[%s1079_s26 + $0x18] sm:$0xff]   ;;  %v1015_v14 = vld [vmem:[%s1079_s26 + $0x20] sm:$0xff]   ;;  %v1017_v16 = vld [vmem:[%s1079_s26 + $0x28] sm:$0xff]  }
  0x13   : > { %944 = vmatpush3.bf16.msra.mxu0 %v1004_v3  ;;  %990 = vmatpush3.bf16.msra.mxu1 %v1004_v3  ;;  %v1014_v13 = vld [vmem:[%s1079_s26 + $0x58] sm:$0xff]   ;;  %v1016_v15 = vld [vmem:[%s1079_s26 + $0x60] sm:$0xff]   ;;  %v1018_v17 = vld [vmem:[%s1079_s26 + $0x68] sm:$0xff]  }
  0x14   : > { %945 = vmatprep.subr.bf16.mxu0 %v1005_v6  ;;  %985 = vmatprep.subr.bf16.mxu1 %v1005_v6  ;;  %v1019_v18 = vld [vmem:[%s1079_s26 + $0x30] sm:$0xff]   ;;  %v1021_v20 = vld [vmem:[%s1079_s26 + $0x38] sm:$0xff]  }
  0x15   : > { %v1020_v19 = vld [vmem:[%s1079_s26 + $0x70] sm:$0xff]   ;;  %v1022_v21 = vld [vmem:[%s1079_s26 + $0x78] sm:$0xff]  }
  0x17   : > { %946 = vmatpush3.bf16.msra.mxu0 %v1005_v6  ;;  %991 = vmatpush3.bf16.msra.mxu1 %v1005_v6 }
  0x18   : > { %947 = vmatprep.subr.bf16.mxu0 %v1006_v7  ;;  %986 = vmatprep.subr.bf16.mxu1 %v1006_v7 }
  0x1b   : > { %948 = vmatpush3.bf16.msra.mxu0 %v1006_v7  ;;  %992 = vmatpush3.bf16.msra.mxu1 %v1006_v7 }
  0x1e   : > { %950 = vmatmul.mubr.msk.bf16.vlgmr.msra.gmra.mrb[0].mxu0 %vm342_vm0, %v1009_v8  ;;  %966 = vmatmul.mubr.msk.bf16.vlgmr.msra.gmra.mrb[0].mxu1 %vm342_vm0, %v1010_v9 }
  0x1f   : > { %953 = vmatprep.mubr.msk.bf16.mxu0 %vm342_vm0, %v1011_v10  ;;  %969 = vmatprep.mubr.msk.bf16.mxu1 %vm342_vm0, %v1012_v11 }
  0x26   : > { %954 = vmatmul.mubr.msk.bf16.gmra.mrb[4].mxu0 %vm342_vm0, %v1013_v12  ;;  %970 = vmatmul.mubr.msk.bf16.gmra.mrb[4].mxu1 %vm342_vm0, %v1014_v13 }
  0x27   : > { %957 = vmatprep.mubr.msk.bf16.mxu0 %vm342_vm0, %v1015_v14  ;;  %973 = vmatprep.mubr.msk.bf16.mxu1 %vm342_vm0, %v1016_v15 }
  0x2e   : > { %958 = vmatmul.mubr.msk.bf16.gmra.mrb[8].mxu0 %vm342_vm0, %v1017_v16  ;;  %974 = vmatmul.mubr.msk.bf16.gmra.mrb[8].mxu1 %vm342_vm0, %v1018_v17 }
  0x2f   : > { %961 = vmatprep.mubr.msk.bf16.mxu0 %vm342_vm0, %v1019_v18  ;;  %977 = vmatprep.mubr.msk.bf16.mxu1 %vm342_vm0, %v1020_v19 }
  0x36   : > { %962 = vmatmul.mubr.msk.bf16.gmra.mrb[12].mxu0 %vm342_vm0, %v1021_v20  ;;  %978 = vmatmul.mubr.msk.bf16.gmra.mrb[12].mxu1 %vm342_vm0, %v1022_v21 }
  0xf1   : > { %v951_v23 = vpop.f32.mrb[0].mxu0  ;;  %v967_v24 = vpop.f32.mrb[0].mxu1 }
  0xf2   : > { %v434_v25 = vadd.f32 %v951_v23, %v1122_v22  ;;  %v498_v26 = vadd.f32 %v967_v24, %v1122_v22  ;;  %v425_v27 = vpop.f32.mrb[1].mxu0  ;;  %v489_v28 = vpop.f32.mrb[1].mxu1 }
  0xf3   : > { %v426_v29 = vadd.f32 %v1122_v22, %v425_v27  ;;  %v490_v30 = vadd.f32 %v1122_v22, %v489_v28  ;;  %v952_v31 = vpop.f32.mrb[2].mxu0  ;;  %v968_v32 = vpop.f32.mrb[2].mxu1 }
  0xf4   : > { %v554_v33 = vmax.f32 %v434_v25, 0.0  ;;  %v570_v34 = vmax.f32 %v498_v26, 0.0  ;;  %v437_v35 = vadd.f32 %v952_v31, %v1122_v22  ;;  %v501_v36 = vadd.f32 %v968_v32, %v1122_v22  ;;  %v428_v37 = vpop.f32.mrb[3].mxu0  ;;  %v492_v38 = vpop.f32.mrb[3].mxu1 }
  0xf5   : > { %v552_v39 = vmax.f32 %v426_v29, 0.0  ;;  %v568_v40 = vmax.f32 %v490_v30, 0.0  ;;  %v429_v41 = vadd.f32 %v1122_v22, %v428_v37  ;;  %v493_v42 = vadd.f32 %v1122_v22, %v492_v38 }
  0xf6   : > { %v885_v43 = vpack.c.bf16 %v554_v33, %v554_v33  ;;  %v901_v44 = vpack.c.bf16 %v570_v34, %v570_v34  ;;  %v555_v45 = vmax.f32 %v437_v35, 0.0  ;;  %v571_v46 = vmax.f32 %v501_v36, 0.0 }
  0xf7   : > { %v883_v47 = vpack.c.bf16 %v552_v39, %v552_v39  ;;  %v899_v48 = vpack.c.bf16 %v568_v40, %v568_v40  ;;  %v553_v49 = vmax.f32 %v429_v41, 0.0  ;;  %v569_v50 = vmax.f32 %v493_v42, 0.0 }
  0xf8   : > { %715 = vst.msk [vmem:[%s1135_s8 + $0x8] sm:$0xf] %vm712_vm1, %v885_v43  ;;  %731 = vst.msk [vmem:[%s1135_s8 + $0x48] sm:$0xf] %vm712_vm1, %v901_v44  ;;  %v886_v51 = vpack.c.bf16 %v555_v45, %v555_v45  ;;  %v902_v52 = vpack.c.bf16 %v571_v46, %v571_v46 }
  0xf9   : > { %713 = vst.msk [vmem:[%s1135_s8] sm:$0xf] %vm712_vm1, %v883_v47  ;;  %729 = vst.msk [vmem:[%s1135_s8 + $0x40] sm:$0xf] %vm712_vm1, %v899_v48  ;;  %v884_v53 = vpack.c.bf16 %v553_v49, %v553_v49  ;;  %v900_v54 = vpack.c.bf16 %v569_v50, %v569_v50  ;;  %v955_v55 = vpop.f32.mrb[4].mxu0  ;;  %v971_v56 = vpop.f32.mrb[4].mxu1 }
  0xfa   : > { %716 = vst.msk [vmem:[%s1135_s8 + $0xc] sm:$0xf] %vm712_vm1, %v886_v51  ;;  %732 = vst.msk [vmem:[%s1135_s8 + $0x4c] sm:$0xf] %vm712_vm1, %v902_v52  ;;  %v450_v57 = vadd.f32 %v955_v55, %v1122_v22  ;;  %v514_v58 = vadd.f32 %v971_v56, %v1122_v22  ;;  %v441_v59 = vpop.f32.mrb[5].mxu0  ;;  %v505_v60 = vpop.f32.mrb[5].mxu1 }
  0xfb   : > { %714 = vst.msk [vmem:[%s1135_s8 + $0x4] sm:$0xf] %vm712_vm1, %v884_v53  ;;  %730 = vst.msk [vmem:[%s1135_s8 + $0x44] sm:$0xf] %vm712_vm1, %v900_v54  ;;  %v442_v61 = vadd.f32 %v1122_v22, %v441_v59  ;;  %v506_v62 = vadd.f32 %v1122_v22, %v505_v60  ;;  %v956_v63 = vpop.f32.mrb[6].mxu0  ;;  %v972_v0 = vpop.f32.mrb[6].mxu1 }
  0xfc   : > { %v558_v1 = vmax.f32 %v450_v57, 0.0  ;;  %v574_v2 = vmax.f32 %v514_v58, 0.0  ;;  %v453_v3 = vadd.f32 %v956_v63, %v1122_v22  ;;  %v517_v4 = vadd.f32 %v972_v0, %v1122_v22  ;;  %v444_v5 = vpop.f32.mrb[7].mxu0  ;;  %v508_v6 = vpop.f32.mrb[7].mxu1 }
  0xfd   : > { %v556_v7 = vmax.f32 %v442_v61, 0.0  ;;  %v572_v8 = vmax.f32 %v506_v62, 0.0  ;;  %v445_v9 = vadd.f32 %v1122_v22, %v444_v5  ;;  %v509_v10 = vadd.f32 %v1122_v22, %v508_v6 }
  0xfe   : > { %v889_v11 = vpack.c.bf16 %v558_v1, %v558_v1  ;;  %v905_v12 = vpack.c.bf16 %v574_v2, %v574_v2  ;;  %v559_v13 = vmax.f32 %v453_v3, 0.0  ;;  %v575_v14 = vmax.f32 %v517_v4, 0.0 }
  0xff   : > { %v887_v15 = vpack.c.bf16 %v556_v7, %v556_v7  ;;  %v903_v16 = vpack.c.bf16 %v572_v8, %v572_v8  ;;  %v557_v17 = vmax.f32 %v445_v9, 0.0  ;;  %v573_v18 = vmax.f32 %v509_v10, 0.0 }
 0x100   : > { %719 = vst.msk [vmem:[%s1135_s8 + $0x18] sm:$0xf] %vm712_vm1, %v889_v11  ;;  %735 = vst.msk [vmem:[%s1135_s8 + $0x58] sm:$0xf] %vm712_vm1, %v905_v12  ;;  %v890_v19 = vpack.c.bf16 %v559_v13, %v559_v13  ;;  %v906_v20 = vpack.c.bf16 %v575_v14, %v575_v14 }
 0x101   : > { %717 = vst.msk [vmem:[%s1135_s8 + $0x10] sm:$0xf] %vm712_vm1, %v887_v15  ;;  %733 = vst.msk [vmem:[%s1135_s8 + $0x50] sm:$0xf] %vm712_vm1, %v903_v16  ;;  %v888_v21 = vpack.c.bf16 %v557_v17, %v557_v17  ;;  %v904_v23 = vpack.c.bf16 %v573_v18, %v573_v18  ;;  %v959_v24 = vpop.f32.mrb[8].mxu0  ;;  %v975_v25 = vpop.f32.mrb[8].mxu1 }
 0x102   : > { %720 = vst.msk [vmem:[%s1135_s8 + $0x1c] sm:$0xf] %vm712_vm1, %v890_v19  ;;  %736 = vst.msk [vmem:[%s1135_s8 + $0x5c] sm:$0xf] %vm712_vm1, %v906_v20  ;;  %v466_v26 = vadd.f32 %v959_v24, %v1122_v22  ;;  %v530_v27 = vadd.f32 %v975_v25, %v1122_v22  ;;  %v457_v28 = vpop.f32.mrb[9].mxu0  ;;  %v521_v29 = vpop.f32.mrb[9].mxu1 }
 0x103   : > { %718 = vst.msk [vmem:[%s1135_s8 + $0x14] sm:$0xf] %vm712_vm1, %v888_v21  ;;  %734 = vst.msk [vmem:[%s1135_s8 + $0x54] sm:$0xf] %vm712_vm1, %v904_v23  ;;  %v458_v30 = vadd.f32 %v1122_v22, %v457_v28  ;;  %v522_v31 = vadd.f32 %v1122_v22, %v521_v29  ;;  %v960_v32 = vpop.f32.mrb[10].mxu0  ;;  %v976_v33 = vpop.f32.mrb[10].mxu1 }
 0x104   : > { %v562_v34 = vmax.f32 %v466_v26, 0.0  ;;  %v578_v35 = vmax.f32 %v530_v27, 0.0  ;;  %v469_v36 = vadd.f32 %v960_v32, %v1122_v22  ;;  %v533_v37 = vadd.f32 %v976_v33, %v1122_v22  ;;  %v460_v38 = vpop.f32.mrb[11].mxu0  ;;  %v524_v39 = vpop.f32.mrb[11].mxu1 }
 0x105   : > { %v560_v40 = vmax.f32 %v458_v30, 0.0  ;;  %v576_v41 = vmax.f32 %v522_v31, 0.0  ;;  %v461_v42 = vadd.f32 %v1122_v22, %v460_v38  ;;  %v525_v43 = vadd.f32 %v1122_v22, %v524_v39 }
 0x106   : > { %v893_v44 = vpack.c.bf16 %v562_v34, %v562_v34  ;;  %v909_v45 = vpack.c.bf16 %v578_v35, %v578_v35  ;;  %v563_v46 = vmax.f32 %v469_v36, 0.0  ;;  %v579_v47 = vmax.f32 %v533_v37, 0.0 }
 0x107   : > { %v891_v48 = vpack.c.bf16 %v560_v40, %v560_v40  ;;  %v907_v49 = vpack.c.bf16 %v576_v41, %v576_v41  ;;  %v561_v50 = vmax.f32 %v461_v42, 0.0  ;;  %v577_v51 = vmax.f32 %v525_v43, 0.0 }
 0x108   : > { %723 = vst.msk [vmem:[%s1135_s8 + $0x28] sm:$0xf] %vm712_vm1, %v893_v44  ;;  %739 = vst.msk [vmem:[%s1135_s8 + $0x68] sm:$0xf] %vm712_vm1, %v909_v45  ;;  %v894_v52 = vpack.c.bf16 %v563_v46, %v563_v46  ;;  %v910_v53 = vpack.c.bf16 %v579_v47, %v579_v47 }
 0x109   : > { %721 = vst.msk [vmem:[%s1135_s8 + $0x20] sm:$0xf] %vm712_vm1, %v891_v48  ;;  %737 = vst.msk [vmem:[%s1135_s8 + $0x60] sm:$0xf] %vm712_vm1, %v907_v49  ;;  %v892_v54 = vpack.c.bf16 %v561_v50, %v561_v50  ;;  %v908_v55 = vpack.c.bf16 %v577_v51, %v577_v51  ;;  %v963_v56 = vpop.f32.mrb[12].mxu0  ;;  %v979_v57 = vpop.f32.mrb[12].mxu1 }
 0x10a   : > { %724 = vst.msk [vmem:[%s1135_s8 + $0x2c] sm:$0xf] %vm712_vm1, %v894_v52  ;;  %740 = vst.msk [vmem:[%s1135_s8 + $0x6c] sm:$0xf] %vm712_vm1, %v910_v53  ;;  %v482_v58 = vadd.f32 %v963_v56, %v1122_v22  ;;  %v546_v59 = vadd.f32 %v979_v57, %v1122_v22  ;;  %v473_v60 = vpop.f32.mrb[13].mxu0  ;;  %v537_v61 = vpop.f32.mrb[13].mxu1 }
 0x10b   : > { %722 = vst.msk [vmem:[%s1135_s8 + $0x24] sm:$0xf] %vm712_vm1, %v892_v54  ;;  %738 = vst.msk [vmem:[%s1135_s8 + $0x64] sm:$0xf] %vm712_vm1, %v908_v55  ;;  %v474_v62 = vadd.f32 %v1122_v22, %v473_v60  ;;  %v538_v63 = vadd.f32 %v1122_v22, %v537_v61  ;;  %v964_v0 = vpop.f32.mrb[14].mxu0  ;;  %v980_v1 = vpop.f32.mrb[14].mxu1 }
 0x10c   : > { %v566_v2 = vmax.f32 %v482_v58, 0.0  ;;  %v582_v3 = vmax.f32 %v546_v59, 0.0  ;;  %v485_v4 = vadd.f32 %v964_v0, %v1122_v22  ;;  %v549_v5 = vadd.f32 %v980_v1, %v1122_v22  ;;  %v476_v6 = vpop.f32.mrb[15].mxu0  ;;  %v540_v7 = vpop.f32.mrb[15].mxu1 }
 0x10d   : > { %v564_v8 = vmax.f32 %v474_v62, 0.0  ;;  %v580_v9 = vmax.f32 %v538_v63, 0.0  ;;  %v477_v10 = vadd.f32 %v1122_v22, %v476_v6  ;;  %v541_v11 = vadd.f32 %v1122_v22, %v540_v7 }
 0x10e   : > { %v897_v12 = vpack.c.bf16 %v566_v2, %v566_v2  ;;  %v913_v13 = vpack.c.bf16 %v582_v3, %v582_v3  ;;  %v567_v14 = vmax.f32 %v485_v4, 0.0  ;;  %v583_v15 = vmax.f32 %v549_v5, 0.0 }
 0x10f   : > { %v895_v16 = vpack.c.bf16 %v564_v8, %v564_v8  ;;  %v911_v17 = vpack.c.bf16 %v580_v9, %v580_v9  ;;  %v565_v18 = vmax.f32 %v477_v10, 0.0  ;;  %v581_v19 = vmax.f32 %v541_v11, 0.0 }
 0x110   : > { %727 = vst.msk [vmem:[%s1135_s8 + $0x38] sm:$0xf] %vm712_vm1, %v897_v12  ;;  %743 = vst.msk [vmem:[%s1135_s8 + $0x78] sm:$0xf] %vm712_vm1, %v913_v13  ;;  %v898_v20 = vpack.c.bf16 %v567_v14, %v567_v14  ;;  %v914_v21 = vpack.c.bf16 %v583_v15, %v583_v15 }
 0x111   : > { %725 = vst.msk [vmem:[%s1135_s8 + $0x30] sm:$0xf] %vm712_vm1, %v895_v16  ;;  %741 = vst.msk [vmem:[%s1135_s8 + $0x70] sm:$0xf] %vm712_vm1, %v911_v17  ;;  %v896_v22 = vpack.c.bf16 %v565_v18, %v565_v18  ;;  %v912_v23 = vpack.c.bf16 %v581_v19, %v581_v19 }
 0x112   : > { %728 = vst.msk [vmem:[%s1135_s8 + $0x3c] sm:$0xf] %vm712_vm1, %v898_v20  ;;  %744 = vst.msk [vmem:[%s1135_s8 + $0x7c] sm:$0xf] %vm712_vm1, %v914_v21 }
 0x113   : > { %726 = vst.msk [vmem:[%s1135_s8 + $0x34] sm:$0xf] %vm712_vm1, %v896_v22  ;;  %742 = vst.msk [vmem:[%s1135_s8 + $0x74] sm:$0xf] %vm712_vm1, %v912_v23 }
 0x114 PF: > { %s13_s12 = sadd.s32 1, %s1029_s12  }
 0x115   : > { %p10_p4 = scmp.ge.s32.totalorder %s13_s12, 4  }
 0x117   :  { %12 = sbr.rel (!%p10_p4) target bundleno = 1 (0x1), region = 62 }

// kernel: model_forward.19
= control target key start
LH: loop header
LB: loop body
LE: loop exit
PB: predicated region body
PF: predicated region fallthrough
CT: control target
= control target key end

     0   :  { %s1234_s12 = smov 0   ;;  %s1387_s0 = inlined_call_operand.vmem [shape: bf16[512,144], index: 0, kind: input, shape index: {}]   ;;  %s1388_s1 = inlined_call_operand.vmem [shape: bf16[144,128], index: 1, kind: input, shape index: {}]   ;;  %s1389_s2 = inlined_call_operand.vmem [shape: f32[1,128], index: 2, kind: input, shape index: {}]   ;;  %s1390_s3 = inlined_call_operand.vmem [shape: bf16[512,128], index: 3, kind: output, shape index: {}]  }
   0x1 LB: > { %s891_s13 = sadd.s32 4294967295, %s1211_s12   ;;  %p895_p0 = scmp.ge.s32.totalorder %s1211_s12, 1  ;;  %s1211_s12 = sphi %s1234_s12, %s13_s12  }
   0x2   : > { %p139_p1 = scmp.lt.s32.totalorder %s1211_s12, 3 }
   0x4   : > { %p140_p2 = pnand %p895_p0, %p139_p1 }
   0x5   : > { %v1148_v0 = vld [vmem:[%s1388_s1] sm:$0xff] (!%p140_p2)   ;;  %v1213_v1 = vmov (!%p140_p2), 0   ;;  %s896_s16 = sshll.u32 (!%p140_p2), %s891_s13, 5  ;;  %v1149_v2 = vld [vmem:[%s1388_s1 + $0x8] sm:$0xff] (!%p140_p2)   ;;  %v1150_v3 = vld [vmem:[%s1388_s1 + $0x10] sm:$0xff] (!%p140_p2)   ;;  %vm433_vm0 = vcmask (!%p140_p2), 130048  }
   0x6   : > { %143 = sbr.rel (%p140_p2) target bundleno = 319 (0x13f), region = 32  ;;  %482 = vmatprep.subr.bf16.mxu0 (!%p140_p2), %v1213_v1  ;;  %1121 = vmatprep.subr.bf16.mxu1 (!%p140_p2), %v1213_v1  ;;  %p165_p3 = scmp.lt.s32.totalorder (!%p140_p2), %s896_s16, 63  ;;  %v1151_v4 = vld [vmem:[%s1388_s1 + $0x18] sm:$0xff] (!%p140_p2)   ;;  %v1152_v7 = vld [vmem:[%s1388_s1 + $0x20] sm:$0xff] (!%p140_p2)   ;;  %v1153_v8 = vld [vmem:[%s1388_s1 + $0x28] sm:$0xff] (!%p140_p2)  }
   0x7   : > { %483 = vmatpush1.bf16.msra.mxu0 (!%p140_p2), %v1148_v0  ;;  %1130 = vmatpush1.bf16.msra.mxu1 (!%p140_p2), %v1148_v0  ;;  %v1154_v9 = vld [vmem:[%s1388_s1 + $0x30] sm:$0xff] (!%p140_p2)   ;;  %v1155_v10 = vld [vmem:[%s1388_s1 + $0x38] sm:$0xff] (!%p140_p2)   ;;  %v1156_v11 = vld [vmem:[%s1388_s1 + $0x40] sm:$0xff] (!%p140_p2)  }
   0x8   : > { %484 = vmatprep.subr.bf16.mxu0 (!%p140_p2), %v1213_v1  ;;  %1122 = vmatprep.subr.bf16.mxu1 (!%p140_p2), %v1213_v1  ;;  %v1328_v42 = vld [vmem:[%s1389_s2] ss:$0 sm:$0xff] (!%p140_p2) }
   0xb   : > { %485 = vmatpush1.bf16.msra.mxu0 (!%p140_p2), %v1149_v2  ;;  %1131 = vmatpush1.bf16.msra.mxu1 (!%p140_p2), %v1149_v2 }
   0xc   : > { %486 = vmatprep.subr.bf16.mxu0 (!%p140_p2), %v1213_v1  ;;  %1123 = vmatprep.subr.bf16.mxu1 (!%p140_p2), %v1213_v1 }
   0xd   : > { %s1392_s16 = smov (!%p165_p3, %s896_s16), 63 }
   0xe   : > { %s993_s21 = sshll.u32 %s1392_s16, 3  ;;  %s900_s13 = sshll.u32 %s1392_s16, 2 }
   0xf   : > { %s1257_s24 = scalar_lea.vmem %s1387_s0, %s993_s21  ;;  %487 = vmatpush1.bf16.msra.mxu0 %v1150_v3  ;;  %1132 = vmatpush1.bf16.msra.mxu1 %v1150_v3  ;;  %s1338_s17 = scalar_lea.vmem %s1390_s3, %s900_s13 }
  0x10   : > { %v1159_v5 = vld [vmem:[%s1257_s24 + $0x4] ss:$8 sps:$4 sm:$0xff]   ;;  %488 = vmatprep.subr.bf16.mxu0 %v1213_v1  ;;  %1124 = vmatprep.subr.bf16.mxu1 %v1213_v1  ;;  %v1157_v12 = vld [vmem:[%s1257_s24] ss:$8 sps:$4 sm:$0xff]   ;;  %v1163_v14 = vld [vmem:[%s1257_s24 + $0x14] ss:$8 sps:$4 sm:$0xff]  }
  0x11   : > { %v1162_v6 = vld [vmem:[%s1257_s24 + $0x84] ss:$8 sps:$4 sm:$0xff]   ;;  %943 = vmatprep.mubr.msk.bf16.mxu0 %vm433_vm0, %v1159_v5  ;;  %v1160_v13 = vld [vmem:[%s1257_s24 + $0x80] ss:$8 sps:$4 sm:$0xff]   ;;  %v1165_v15 = vld [vmem:[%s1257_s24 + $0x94] ss:$8 sps:$4 sm:$0xff]  }
  0x12   : > { %951 = vmatprep.mubr.msk.bf16.mxu1 %vm433_vm0, %v1162_v6  ;;  %v1167_v16 = vld [vmem:[%s1257_s24 + $0x10] ss:$8 sps:$4 sm:$0xff]   ;;  %v1169_v18 = vld [vmem:[%s1257_s24 + $0x24] ss:$8 sps:$4 sm:$0xff]   ;;  %v1173_v20 = vld [vmem:[%s1257_s24 + $0x20] ss:$8 sps:$4 sm:$0xff]  }
  0x13   : > { %489 = vmatpush1.bf16.msra.mxu0 %v1151_v4  ;;  %1133 = vmatpush1.bf16.msra.mxu1 %v1151_v4  ;;  %v1168_v17 = vld [vmem:[%s1257_s24 + $0x90] ss:$8 sps:$4 sm:$0xff]   ;;  %v1171_v19 = vld [vmem:[%s1257_s24 + $0xa4] ss:$8 sps:$4 sm:$0xff]   ;;  %v1174_v21 = vld [vmem:[%s1257_s24 + $0xa0] ss:$8 sps:$4 sm:$0xff]  }
  0x14   : > { %490 = vmatprep.subr.bf16.mxu0 %v1213_v1  ;;  %1125 = vmatprep.subr.bf16.mxu1 %v1213_v1  ;;  %v1175_v22 = vld [vmem:[%s1257_s24 + $0x34] ss:$8 sps:$4 sm:$0xff]   ;;  %v1179_v24 = vld [vmem:[%s1257_s24 + $0x30] ss:$8 sps:$4 sm:$0xff]   ;;  %v1181_v26 = vld [vmem:[%s1257_s24 + $0x44] ss:$8 sps:$4 sm:$0xff]  }
  0x15   : > { %v1177_v23 = vld [vmem:[%s1257_s24 + $0xb4] ss:$8 sps:$4 sm:$0xff]   ;;  %v1180_v25 = vld [vmem:[%s1257_s24 + $0xb0] ss:$8 sps:$4 sm:$0xff]   ;;  %v1183_v27 = vld [vmem:[%s1257_s24 + $0xc4] ss:$8 sps:$4 sm:$0xff]  }
  0x16   : > { %v1185_v28 = vld [vmem:[%s1257_s24 + $0x40] ss:$8 sps:$4 sm:$0xff]   ;;  %v1187_v30 = vld [vmem:[%s1257_s24 + $0x54] ss:$8 sps:$4 sm:$0xff]   ;;  %v1191_v32 = vld [vmem:[%s1257_s24 + $0x50] ss:$8 sps:$4 sm:$0xff]  }
  0x17   : > { %491 = vmatpush1.bf16.msra.mxu0 %v1152_v7  ;;  %1134 = vmatpush1.bf16.msra.mxu1 %v1152_v7  ;;  %v1186_v29 = vld [vmem:[%s1257_s24 + $0xc0] ss:$8 sps:$4 sm:$0xff]   ;;  %v1189_v31 = vld [vmem:[%s1257_s24 + $0xd4] ss:$8 sps:$4 sm:$0xff]   ;;  %v1192_v33 = vld [vmem:[%s1257_s24 + $0xd0] ss:$8 sps:$4 sm:$0xff]  }
  0x18   : > { %492 = vmatprep.subr.bf16.mxu0 %v1213_v1  ;;  %1126 = vmatprep.subr.bf16.mxu1 %v1213_v1  ;;  %v1193_v34 = vld [vmem:[%s1257_s24 + $0x64] ss:$8 sps:$4 sm:$0xff]   ;;  %v1197_v36 = vld [vmem:[%s1257_s24 + $0x60] ss:$8 sps:$4 sm:$0xff]   ;;  %v1199_v38 = vld [vmem:[%s1257_s24 + $0x74] ss:$8 sps:$4 sm:$0xff]  }
  0x19   : > { %v1195_v35 = vld [vmem:[%s1257_s24 + $0xe4] ss:$8 sps:$4 sm:$0xff]   ;;  %v1198_v37 = vld [vmem:[%s1257_s24 + $0xe0] ss:$8 sps:$4 sm:$0xff]   ;;  %v1201_v39 = vld [vmem:[%s1257_s24 + $0xf4] ss:$8 sps:$4 sm:$0xff]  }
  0x1a   : > { %v1203_v40 = vld [vmem:[%s1257_s24 + $0x70] ss:$8 sps:$4 sm:$0xff]  }
  0x1b   : > { %493 = vmatpush1.bf16.msra.mxu0 %v1153_v8  ;;  %1135 = vmatpush1.bf16.msra.mxu1 %v1153_v8  ;;  %v1204_v41 = vld [vmem:[%s1257_s24 + $0xf0] ss:$8 sps:$4 sm:$0xff]  }
  0x1c   : > { %494 = vmatprep.subr.bf16.mxu0 %v1213_v1  ;;  %1127 = vmatprep.subr.bf16.mxu1 %v1213_v1 }
  0x1f   : > { %495 = vmatpush1.bf16.msra.mxu0 %v1154_v9  ;;  %1136 = vmatpush1.bf16.msra.mxu1 %v1154_v9 }
  0x20   : > { %496 = vmatprep.subr.bf16.mxu0 %v1213_v1  ;;  %1128 = vmatprep.subr.bf16.mxu1 %v1213_v1 }
  0x23   : > { %497 = vmatpush1.bf16.msra.mxu0 %v1155_v10  ;;  %1137 = vmatpush1.bf16.msra.mxu1 %v1155_v10 }
  0x24   : > { %498 = vmatprep.subr.bf16.mxu0 %v1213_v1  ;;  %1129 = vmatprep.subr.bf16.mxu1 %v1213_v1 }
  0x27   : > { %499 = vmatpush1.bf16.msra.mxu0 %v1156_v11  ;;  %1138 = vmatpush1.bf16.msra.mxu1 %v1156_v11 }
  0x2a   : > { %515 = vmatmul.mubr.bf16.vlgmr.msra.gmra.mrb[0].mxu0 %v1157_v12  ;;  %579 = vmatmul.mubr.bf16.vlgmr.msra.gmra.mrb[0].mxu1 %v1160_v13 }
  0x2b   : > { %944 = vmatprep.mubr.msk.bf16.mxu0 %vm433_vm0, %v1163_v14  ;;  %952 = vmatprep.mubr.msk.bf16.mxu1 %vm433_vm0, %v1165_v15 }
  0x32   : > { %523 = vmatmul.mubr.bf16.gmra.mrb[4].mxu0 %v1167_v16  ;;  %587 = vmatmul.mubr.bf16.gmra.mrb[4].mxu1 %v1168_v17 }
  0x33   : > { %945 = vmatprep.mubr.msk.bf16.mxu0 %vm433_vm0, %v1169_v18  ;;  %953 = vmatprep.mubr.msk.bf16.mxu1 %vm433_vm0, %v1171_v19 }
  0x3a   : > { %531 = vmatmul.mubr.bf16.gmra.mrb[8].mxu0 %v1173_v20  ;;  %595 = vmatmul.mubr.bf16.gmra.mrb[8].mxu1 %v1174_v21 }
  0x3b   : > { %946 = vmatprep.mubr.msk.bf16.mxu0 %vm433_vm0, %v1175_v22  ;;  %954 = vmatprep.mubr.msk.bf16.mxu1 %vm433_vm0, %v1177_v23 }
  0x42   : > { %539 = vmatmul.mubr.bf16.gmra.mrb[12].mxu0 %v1179_v24  ;;  %603 = vmatmul.mubr.bf16.gmra.mrb[12].mxu1 %v1180_v25 }
  0x43   : > { %947 = vmatprep.mubr.msk.bf16.mxu0 %vm433_vm0, %v1181_v26  ;;  %955 = vmatprep.mubr.msk.bf16.mxu1 %vm433_vm0, %v1183_v27 }
  0x4a   : > { %547 = vmatmul.mubr.bf16.gmra.mrb[16].mxu0 %v1185_v28  ;;  %611 = vmatmul.mubr.bf16.gmra.mrb[16].mxu1 %v1186_v29 }
  0x4b   : > { %948 = vmatprep.mubr.msk.bf16.mxu0 %vm433_vm0, %v1187_v30  ;;  %956 = vmatprep.mubr.msk.bf16.mxu1 %vm433_vm0, %v1189_v31 }
  0x52   : > { %555 = vmatmul.mubr.bf16.gmra.mrb[20].mxu0 %v1191_v32  ;;  %619 = vmatmul.mubr.bf16.gmra.mrb[20].mxu1 %v1192_v33 }
  0x53   : > { %949 = vmatprep.mubr.msk.bf16.mxu0 %vm433_vm0, %v1193_v34  ;;  %957 = vmatprep.mubr.msk.bf16.mxu1 %vm433_vm0, %v1195_v35 }
  0x5a   : > { %563 = vmatmul.mubr.bf16.gmra.mrb[24].mxu0 %v1197_v36  ;;  %627 = vmatmul.mubr.bf16.gmra.mrb[24].mxu1 %v1198_v37 }
  0x5b   : > { %950 = vmatprep.mubr.msk.bf16.mxu0 %vm433_vm0, %v1199_v38  ;;  %958 = vmatprep.mubr.msk.bf16.mxu1 %vm433_vm0, %v1201_v39 }
  0x62   : > { %571 = vmatmul.mubr.bf16.gmra.mrb[28].mxu0 %v1203_v40  ;;  %635 = vmatmul.mubr.bf16.gmra.mrb[28].mxu1 %v1204_v41 }
  0xfd   : > { %v516_v43 = vpop.f32.mrb[0].mxu0  ;;  %v580_v44 = vpop.f32.mrb[0].mxu1 }
  0xfe   : > { %v517_v45 = vadd.f32 %v1328_v42, %v516_v43  ;;  %v581_v46 = vadd.f32 %v1328_v42, %v580_v44  ;;  %v518_v47 = vpop.f32.mrb[1].mxu0  ;;  %v582_v48 = vpop.f32.mrb[1].mxu1 }
  0xff   : > { %v519_v49 = vpop.f32.mrb[2].mxu0  ;;  %v583_v50 = vpop.f32.mrb[2].mxu1 }
 0x100   : > { %v520_v51 = vadd.f32 %v1328_v42, %v519_v49  ;;  %v584_v52 = vadd.f32 %v1328_v42, %v583_v50  ;;  %v521_v53 = vpop.f32.mrb[3].mxu0  ;;  %v585_v54 = vpop.f32.mrb[3].mxu1  ;;  %v643_v55 = vmax.f32 %v517_v45, 0.0  ;;  %v659_v56 = vmax.f32 %v581_v46, 0.0 }
 0x102   : > { %v644_v57 = vmax.f32 %v520_v51, 0.0  ;;  %v660_v58 = vmax.f32 %v584_v52, 0.0 }
 0x104   : > { %v1029_v59 = vpack.c.bf16 %v644_v57, %v643_v55  ;;  %v1069_v60 = vpack.c.bf16 %v660_v58, %v659_v56 }
 0x105   : > { %v524_v61 = vpop.f32.mrb[4].mxu0  ;;  %v588_v62 = vpop.f32.mrb[4].mxu1 }
 0x106   : > { %1030 = vst [vmem:[%s1338_s17] sm:$0xff] %v1029_v59   ;;  %1113 = vst [vmem:[%s1338_s17 + $0x40] sm:$0xff] %v1069_v60   ;;  %v525_v63 = vadd.f32 %v1328_v42, %v524_v61  ;;  %v589_v0 = vadd.f32 %v1328_v42, %v588_v62  ;;  %v526_v1 = vpop.f32.mrb[5].mxu0  ;;  %v590_v2 = vpop.f32.mrb[5].mxu1 }
 0x107   : > { %v527_v3 = vpop.f32.mrb[6].mxu0  ;;  %v591_v4 = vpop.f32.mrb[6].mxu1 }
 0x108   : > { %v528_v5 = vadd.f32 %v1328_v42, %v527_v3  ;;  %v592_v6 = vadd.f32 %v1328_v42, %v591_v4  ;;  %v529_v7 = vpop.f32.mrb[7].mxu0  ;;  %v593_v8 = vpop.f32.mrb[7].mxu1  ;;  %v645_v9 = vmax.f32 %v525_v63, 0.0  ;;  %v661_v10 = vmax.f32 %v589_v0, 0.0 }
 0x10a   : > { %v646_v11 = vmax.f32 %v528_v5, 0.0  ;;  %v662_v12 = vmax.f32 %v592_v6, 0.0 }
 0x10c   : > { %v1034_v13 = vpack.c.bf16 %v646_v11, %v645_v9  ;;  %v1074_v14 = vpack.c.bf16 %v662_v12, %v661_v10 }
 0x10d   : > { %v532_v15 = vpop.f32.mrb[8].mxu0  ;;  %v596_v16 = vpop.f32.mrb[8].mxu1 }
 0x10e   : > { %1106 = vst [vmem:[%s1338_s17 + $0x8] sm:$0xff] %v1034_v13   ;;  %1114 = vst [vmem:[%s1338_s17 + $0x48] sm:$0xff] %v1074_v14   ;;  %v533_v17 = vadd.f32 %v1328_v42, %v532_v15  ;;  %v597_v18 = vadd.f32 %v1328_v42, %v596_v16  ;;  %v534_v19 = vpop.f32.mrb[9].mxu0  ;;  %v598_v20 = vpop.f32.mrb[9].mxu1 }
 0x10f   : > { %v535_v21 = vpop.f32.mrb[10].mxu0  ;;  %v599_v22 = vpop.f32.mrb[10].mxu1 }
 0x110   : > { %v536_v23 = vadd.f32 %v1328_v42, %v535_v21  ;;  %v600_v24 = vadd.f32 %v1328_v42, %v599_v22  ;;  %v537_v25 = vpop.f32.mrb[11].mxu0  ;;  %v601_v26 = vpop.f32.mrb[11].mxu1  ;;  %v647_v27 = vmax.f32 %v533_v17, 0.0  ;;  %v663_v28 = vmax.f32 %v597_v18, 0.0 }
 0x112   : > { %v648_v29 = vmax.f32 %v536_v23, 0.0  ;;  %v664_v30 = vmax.f32 %v600_v24, 0.0 }
 0x114   : > { %v1039_v31 = vpack.c.bf16 %v648_v29, %v647_v27  ;;  %v1079_v32 = vpack.c.bf16 %v664_v30, %v663_v28 }
 0x115   : > { %v540_v33 = vpop.f32.mrb[12].mxu0  ;;  %v604_v34 = vpop.f32.mrb[12].mxu1 }
 0x116   : > { %1107 = vst [vmem:[%s1338_s17 + $0x10] sm:$0xff] %v1039_v31   ;;  %1115 = vst [vmem:[%s1338_s17 + $0x50] sm:$0xff] %v1079_v32   ;;  %v541_v35 = vadd.f32 %v1328_v42, %v540_v33  ;;  %v605_v36 = vadd.f32 %v1328_v42, %v604_v34  ;;  %v542_v37 = vpop.f32.mrb[13].mxu0  ;;  %v606_v38 = vpop.f32.mrb[13].mxu1 }
 0x117   : > { %v543_v39 = vpop.f32.mrb[14].mxu0  ;;  %v607_v40 = vpop.f32.mrb[14].mxu1 }
 0x118   : > { %v544_v41 = vadd.f32 %v1328_v42, %v543_v39  ;;  %v608_v43 = vadd.f32 %v1328_v42, %v607_v40  ;;  %v545_v44 = vpop.f32.mrb[15].mxu0  ;;  %v609_v45 = vpop.f32.mrb[15].mxu1  ;;  %v649_v46 = vmax.f32 %v541_v35, 0.0  ;;  %v665_v47 = vmax.f32 %v605_v36, 0.0 }
 0x11a   : > { %v650_v48 = vmax.f32 %v544_v41, 0.0  ;;  %v666_v49 = vmax.f32 %v608_v43, 0.0 }
 0x11c   : > { %v1044_v50 = vpack.c.bf16 %v650_v48, %v649_v46  ;;  %v1084_v51 = vpack.c.bf16 %v666_v49, %v665_v47 }
 0x11d   : > { %v548_v52 = vpop.f32.mrb[16].mxu0  ;;  %v612_v53 = vpop.f32.mrb[16].mxu1 }
 0x11e   : > { %1108 = vst [vmem:[%s1338_s17 + $0x18] sm:$0xff] %v1044_v50   ;;  %1116 = vst [vmem:[%s1338_s17 + $0x58] sm:$0xff] %v1084_v51   ;;  %v549_v54 = vadd.f32 %v1328_v42, %v548_v52  ;;  %v613_v55 = vadd.f32 %v1328_v42, %v612_v53  ;;  %v550_v56 = vpop.f32.mrb[17].mxu0  ;;  %v614_v57 = vpop.f32.mrb[17].mxu1 }
 0x11f   : > { %v551_v58 = vpop.f32.mrb[18].mxu0  ;;  %v615_v59 = vpop.f32.mrb[18].mxu1 }
 0x120   : > { %v552_v60 = vadd.f32 %v1328_v42, %v551_v58  ;;  %v616_v61 = vadd.f32 %v1328_v42, %v615_v59  ;;  %v553_v62 = vpop.f32.mrb[19].mxu0  ;;  %v617_v63 = vpop.f32.mrb[19].mxu1  ;;  %v651_v0 = vmax.f32 %v549_v54, 0.0  ;;  %v667_v1 = vmax.f32 %v613_v55, 0.0 }
 0x122   : > { %v652_v2 = vmax.f32 %v552_v60, 0.0  ;;  %v668_v3 = vmax.f32 %v616_v61, 0.0 }
 0x124   : > { %v1049_v4 = vpack.c.bf16 %v652_v2, %v651_v0  ;;  %v1089_v5 = vpack.c.bf16 %v668_v3, %v667_v1 }
 0x125   : > { %v556_v6 = vpop.f32.mrb[20].mxu0  ;;  %v620_v7 = vpop.f32.mrb[20].mxu1 }
 0x126   : > { %1109 = vst [vmem:[%s1338_s17 + $0x20] sm:$0xff] %v1049_v4   ;;  %1117 = vst [vmem:[%s1338_s17 + $0x60] sm:$0xff] %v1089_v5   ;;  %v557_v8 = vadd.f32 %v1328_v42, %v556_v6  ;;  %v621_v9 = vadd.f32 %v1328_v42, %v620_v7  ;;  %v558_v10 = vpop.f32.mrb[21].mxu0  ;;  %v622_v11 = vpop.f32.mrb[21].mxu1 }
 0x127   : > { %v559_v12 = vpop.f32.mrb[22].mxu0  ;;  %v623_v13 = vpop.f32.mrb[22].mxu1 }
 0x128   : > { %v560_v14 = vadd.f32 %v1328_v42, %v559_v12  ;;  %v624_v15 = vadd.f32 %v1328_v42, %v623_v13  ;;  %v561_v16 = vpop.f32.mrb[23].mxu0  ;;  %v625_v17 = vpop.f32.mrb[23].mxu1  ;;  %v653_v18 = vmax.f32 %v557_v8, 0.0  ;;  %v669_v19 = vmax.f32 %v621_v9, 0.0 }
 0x12a   : > { %v654_v20 = vmax.f32 %v560_v14, 0.0  ;;  %v670_v21 = vmax.f32 %v624_v15, 0.0 }
 0x12c   : > { %v1054_v22 = vpack.c.bf16 %v654_v20, %v653_v18  ;;  %v1094_v23 = vpack.c.bf16 %v670_v21, %v669_v19 }
 0x12d   : > { %v564_v24 = vpop.f32.mrb[24].mxu0  ;;  %v628_v25 = vpop.f32.mrb[24].mxu1 }
 0x12e   : > { %1110 = vst [vmem:[%s1338_s17 + $0x28] sm:$0xff] %v1054_v22   ;;  %1118 = vst [vmem:[%s1338_s17 + $0x68] sm:$0xff] %v1094_v23   ;;  %v565_v26 = vadd.f32 %v1328_v42, %v564_v24  ;;  %v629_v27 = vadd.f32 %v1328_v42, %v628_v25  ;;  %v566_v28 = vpop.f32.mrb[25].mxu0  ;;  %v630_v29 = vpop.f32.mrb[25].mxu1 }
 0x12f   : > { %v567_v30 = vpop.f32.mrb[26].mxu0  ;;  %v631_v31 = vpop.f32.mrb[26].mxu1 }
 0x130   : > { %v568_v32 = vadd.f32 %v1328_v42, %v567_v30  ;;  %v632_v33 = vadd.f32 %v1328_v42, %v631_v31  ;;  %v569_v34 = vpop.f32.mrb[27].mxu0  ;;  %v633_v35 = vpop.f32.mrb[27].mxu1  ;;  %v655_v36 = vmax.f32 %v565_v26, 0.0  ;;  %v671_v37 = vmax.f32 %v629_v27, 0.0 }
 0x132   : > { %v656_v38 = vmax.f32 %v568_v32, 0.0  ;;  %v672_v39 = vmax.f32 %v632_v33, 0.0 }
 0x134   : > { %v1059_v40 = vpack.c.bf16 %v656_v38, %v655_v36  ;;  %v1099_v41 = vpack.c.bf16 %v672_v39, %v671_v37 }
 0x135   : > { %v572_v43 = vpop.f32.mrb[28].mxu0  ;;  %v636_v44 = vpop.f32.mrb[28].mxu1 }
 0x136   : > { %1111 = vst [vmem:[%s1338_s17 + $0x30] sm:$0xff] %v1059_v40   ;;  %1119 = vst [vmem:[%s1338_s17 + $0x70] sm:$0xff] %v1099_v41   ;;  %v573_v45 = vadd.f32 %v1328_v42, %v572_v43  ;;  %v637_v46 = vadd.f32 %v1328_v42, %v636_v44  ;;  %v574_v47 = vpop.f32.mrb[29].mxu0  ;;  %v638_v48 = vpop.f32.mrb[29].mxu1 }
 0x137   : > { %v575_v49 = vpop.f32.mrb[30].mxu0  ;;  %v639_v50 = vpop.f32.mrb[30].mxu1 }
 0x138   : > { %v576_v51 = vadd.f32 %v1328_v42, %v575_v49  ;;  %v640_v52 = vadd.f32 %v1328_v42, %v639_v50  ;;  %v577_v53 = vpop.f32.mrb[31].mxu0  ;;  %v641_v54 = vpop.f32.mrb[31].mxu1  ;;  %v657_v55 = vmax.f32 %v573_v45, 0.0  ;;  %v673_v56 = vmax.f32 %v637_v46, 0.0 }
 0x13a   : > { %v658_v57 = vmax.f32 %v576_v51, 0.0  ;;  %v674_v58 = vmax.f32 %v640_v52, 0.0 }
 0x13c   : > { %v1064_v59 = vpack.c.bf16 %v658_v57, %v657_v55  ;;  %v1104_v60 = vpack.c.bf16 %v674_v58, %v673_v56 }
 0x13e   : > { %1112 = vst [vmem:[%s1338_s17 + $0x38] sm:$0xff] %v1064_v59   ;;  %1120 = vst [vmem:[%s1338_s17 + $0x78] sm:$0xff] %v1104_v60  }
 0x13f PF: > { %s13_s12 = sadd.s32 1, %s1211_s12  }
 0x140   : > { %p10_p4 = scmp.ge.s32.totalorder %s13_s12, 4  }
 0x142   :  { %12 = sbr.rel (!%p10_p4) target bundleno = 1 (0x1), region = 62 }

// kernel: model_forward.20
= control target key start
LH: loop header
LB: loop body
LE: loop exit
PB: predicated region body
PF: predicated region fallthrough
CT: control target
= control target key end

     0   :  { %s1032_s12 = smov 0   ;;  %s1201_s0 = inlined_call_operand.vmem [shape: bf16[512,128], index: 0, kind: input, shape index: {}]   ;;  %s1202_s1 = inlined_call_operand.vmem [shape: bf16[128,16], index: 1, kind: input, shape index: {}]   ;;  %s1203_s2 = inlined_call_operand.vmem [shape: f32[1,16], index: 2, kind: input, shape index: {}]   ;;  %s1204_s3 = inlined_call_operand.vmem [shape: bf16[512,16], index: 3, kind: output, shape index: {}]  }
   0x1 LB: > { %s784_s13 = sadd.s32 4294967295, %s1010_s12   ;;  %p788_p0 = scmp.ge.s32.totalorder %s1010_s12, 1  ;;  %s1010_s12 = sphi %s1032_s12, %s13_s12  }
   0x2   : > { %p138_p1 = scmp.lt.s32.totalorder %s1010_s12, 3 }
   0x4   : > { %p139_p2 = pnand %p788_p0, %p138_p1 }
   0x5   : > { %v980_v0 = vld [vmem:[%s1202_s1] sm:$0xff] (!%p139_p2)   ;;  %s789_s16 = sshll.u32 (!%p139_p2), %s784_s13, 5  ;;  %v981_v1 = vld [vmem:[%s1202_s1 + $0x8] sm:$0xff] (!%p139_p2)   ;;  %v982_v2 = vld [vmem:[%s1202_s1 + $0x10] sm:$0xff] (!%p139_p2)   ;;  %vm695_vm0 = vcmask (!%p139_p2), 125952  }
   0x6   : > { %142 = sbr.rel (%p139_p2) target bundleno = 284 (0x11c), region = 32  ;;  %p163_p3 = scmp.lt.s32.totalorder (!%p139_p2), %s789_s16, 63  ;;  %908 = vmatprep.subr.bf16.mxu0 (!%p139_p2), %v980_v0  ;;  %956 = vmatprep.subr.bf16.mxu1 (!%p139_p2), %v980_v0  ;;  %v983_v3 = vld [vmem:[%s1202_s1 + $0x18] sm:$0xff] (!%p139_p2)   ;;  %v984_v6 = vld [vmem:[%s1202_s1 + $0x20] sm:$0xff] (!%p139_p2)   ;;  %v985_v7 = vld [vmem:[%s1202_s1 + $0x28] sm:$0xff] (!%p139_p2)  }
   0x7   : > { %909 = vmatpush3.bf16.msra.mxu0 (!%p139_p2), %v980_v0  ;;  %964 = vmatpush3.bf16.msra.mxu1 (!%p139_p2), %v980_v0  ;;  %v986_v8 = vld [vmem:[%s1202_s1 + $0x30] sm:$0xff] (!%p139_p2)   ;;  %v987_v9 = vld [vmem:[%s1202_s1 + $0x38] sm:$0xff] (!%p139_p2)   ;;  %v1093_v24 = vld [vmem:[%s1203_s2] ss:$0 sm:$0xff] (!%p139_p2) }
   0x8   : > { %910 = vmatprep.subr.bf16.mxu0 (!%p139_p2), %v981_v1  ;;  %957 = vmatprep.subr.bf16.mxu1 (!%p139_p2), %v981_v1 }
   0xb   : > { %911 = vmatpush3.bf16.msra.mxu0 (!%p139_p2), %v981_v1  ;;  %965 = vmatpush3.bf16.msra.mxu1 (!%p139_p2), %v981_v1 }
   0xc   : > { %912 = vmatprep.subr.bf16.mxu0 (!%p139_p2), %v982_v2  ;;  %958 = vmatprep.subr.bf16.mxu1 (!%p139_p2), %v982_v2 }
   0xd   : > { %s1206_s16 = smov (!%p163_p3, %s789_s16), 63 }
   0xe   : > { %s790_s21 = sshll.u32 %s1206_s16, 2 }
   0xf   : > { %s1057_s24 = scalar_lea.vmem %s1201_s0, %s790_s21  ;;  %913 = vmatpush3.bf16.msra.mxu0 %v982_v2  ;;  %966 = vmatpush3.bf16.msra.mxu1 %v982_v2  ;;  %s1106_s13 = scalar_lea.vmem %s1204_s3, %s790_s21 }
  0x10   : > { %v988_v4 = vld [vmem:[%s1057_s24] sm:$0xff]   ;;  %914 = vmatprep.subr.bf16.mxu0 %v983_v3  ;;  %959 = vmatprep.subr.bf16.mxu1 %v983_v3  ;;  %v990_v10 = vld [vmem:[%s1057_s24 + $0x8] sm:$0xff]   ;;  %v992_v12 = vld [vmem:[%s1057_s24 + $0x10] sm:$0xff]  }
  0x11   : > { %v989_v5 = vld [vmem:[%s1057_s24 + $0x40] sm:$0xff]   ;;  %924 = vmatprep.mubr.bf16.mxu0 %v988_v4  ;;  %v991_v11 = vld [vmem:[%s1057_s24 + $0x48] sm:$0xff]   ;;  %v993_v13 = vld [vmem:[%s1057_s24 + $0x50] sm:$0xff]  }
  0x12   : > { %940 = vmatprep.mubr.bf16.mxu1 %v989_v5  ;;  %v994_v14 = vld [vmem:[%s1057_s24 + $0x18] sm:$0xff]   ;;  %v996_v16 = vld [vmem:[%s1057_s24 + $0x20] sm:$0xff]   ;;  %v998_v18 = vld [vmem:[%s1057_s24 + $0x28] sm:$0xff]  }
  0x13   : > { %915 = vmatpush3.bf16.msra.mxu0 %v983_v3  ;;  %967 = vmatpush3.bf16.msra.mxu1 %v983_v3  ;;  %v995_v15 = vld [vmem:[%s1057_s24 + $0x58] sm:$0xff]   ;;  %v997_v17 = vld [vmem:[%s1057_s24 + $0x60] sm:$0xff]   ;;  %v999_v19 = vld [vmem:[%s1057_s24 + $0x68] sm:$0xff]  }
  0x14   : > { %916 = vmatprep.subr.bf16.mxu0 %v984_v6  ;;  %960 = vmatprep.subr.bf16.mxu1 %v984_v6  ;;  %v1000_v20 = vld [vmem:[%s1057_s24 + $0x30] sm:$0xff]   ;;  %v1002_v22 = vld [vmem:[%s1057_s24 + $0x38] sm:$0xff]  }
  0x15   : > { %v1001_v21 = vld [vmem:[%s1057_s24 + $0x70] sm:$0xff]   ;;  %v1003_v23 = vld [vmem:[%s1057_s24 + $0x78] sm:$0xff]  }
  0x17   : > { %917 = vmatpush3.bf16.msra.mxu0 %v984_v6  ;;  %968 = vmatpush3.bf16.msra.mxu1 %v984_v6 }
  0x18   : > { %918 = vmatprep.subr.bf16.mxu0 %v985_v7  ;;  %961 = vmatprep.subr.bf16.mxu1 %v985_v7 }
  0x1b   : > { %919 = vmatpush3.bf16.msra.mxu0 %v985_v7  ;;  %969 = vmatpush3.bf16.msra.mxu1 %v985_v7 }
  0x1c   : > { %920 = vmatprep.subr.bf16.mxu0 %v986_v8  ;;  %962 = vmatprep.subr.bf16.mxu1 %v986_v8 }
  0x1f   : > { %921 = vmatpush3.bf16.msra.mxu0 %v986_v8  ;;  %970 = vmatpush3.bf16.msra.mxu1 %v986_v8 }
  0x20   : > { %922 = vmatprep.subr.bf16.mxu0 %v987_v9  ;;  %963 = vmatprep.subr.bf16.mxu1 %v987_v9 }
  0x23   : > { %923 = vmatpush3.bf16.msra.mxu0 %v987_v9  ;;  %971 = vmatpush3.bf16.msra.mxu1 %v987_v9 }
  0x26   : > { %925 = vmatmul.mubr.bf16.vlgmr.msra.gmra.mrb[0].mxu0 %v990_v10  ;;  %941 = vmatmul.mubr.bf16.vlgmr.msra.gmra.mrb[0].mxu1 %v991_v11 }
  0x27   : > { %928 = vmatprep.mubr.bf16.mxu0 %v992_v12  ;;  %944 = vmatprep.mubr.bf16.mxu1 %v993_v13 }
  0x2e   : > { %929 = vmatmul.mubr.bf16.gmra.mrb[4].mxu0 %v994_v14  ;;  %945 = vmatmul.mubr.bf16.gmra.mrb[4].mxu1 %v995_v15 }
  0x2f   : > { %932 = vmatprep.mubr.bf16.mxu0 %v996_v16  ;;  %948 = vmatprep.mubr.bf16.mxu1 %v997_v17 }
  0x36   : > { %933 = vmatmul.mubr.bf16.gmra.mrb[8].mxu0 %v998_v18  ;;  %949 = vmatmul.mubr.bf16.gmra.mrb[8].mxu1 %v999_v19 }
  0x37   : > { %936 = vmatprep.mubr.bf16.mxu0 %v1000_v20  ;;  %952 = vmatprep.mubr.bf16.mxu1 %v1001_v21 }
  0x3e   : > { %937 = vmatmul.mubr.bf16.gmra.mrb[12].mxu0 %v1002_v22  ;;  %953 = vmatmul.mubr.bf16.gmra.mrb[12].mxu1 %v1003_v23 }
  0xf9   : > { %v926_v25 = vpop.f32.mrb[0].mxu0  ;;  %v942_v26 = vpop.f32.mrb[0].mxu1 }
  0xfa   : > { %v417_v27 = vadd.f32 %v926_v25, %v1093_v24  ;;  %v481_v28 = vadd.f32 %v942_v26, %v1093_v24  ;;  %v408_v29 = vpop.f32.mrb[1].mxu0  ;;  %v472_v30 = vpop.f32.mrb[1].mxu1 }
  0xfb   : > { %v409_v31 = vadd.f32 %v1093_v24, %v408_v29  ;;  %v473_v32 = vadd.f32 %v1093_v24, %v472_v30  ;;  %v927_v33 = vpop.f32.mrb[2].mxu0  ;;  %v943_v34 = vpop.f32.mrb[2].mxu1 }
  0xfc   : > { %v537_v35 = vmax.f32 %v417_v27, 0.0  ;;  %v553_v36 = vmax.f32 %v481_v28, 0.0  ;;  %v420_v37 = vadd.f32 %v927_v33, %v1093_v24  ;;  %v484_v38 = vadd.f32 %v943_v34, %v1093_v24  ;;  %v411_v39 = vpop.f32.mrb[3].mxu0  ;;  %v475_v40 = vpop.f32.mrb[3].mxu1 }
  0xfd   : > { %v535_v41 = vmax.f32 %v409_v31, 0.0  ;;  %v551_v42 = vmax.f32 %v473_v32, 0.0  ;;  %v412_v43 = vadd.f32 %v1093_v24, %v411_v39  ;;  %v476_v44 = vadd.f32 %v1093_v24, %v475_v40 }
  0xfe   : > { %v854_v45 = vpack.c.bf16 %v537_v35, %v537_v35  ;;  %v870_v46 = vpack.c.bf16 %v553_v36, %v553_v36  ;;  %v538_v47 = vmax.f32 %v420_v37, 0.0  ;;  %v554_v48 = vmax.f32 %v484_v38, 0.0 }
  0xff   : > { %v852_v49 = vpack.c.bf16 %v535_v41, %v535_v41  ;;  %v868_v50 = vpack.c.bf16 %v551_v42, %v551_v42  ;;  %v536_v51 = vmax.f32 %v412_v43, 0.0  ;;  %v552_v52 = vmax.f32 %v476_v44, 0.0 }
 0x100   : > { %698 = vst.msk [vmem:[%s1106_s13 + $0x8] sm:$0xf] %vm695_vm0, %v854_v45  ;;  %714 = vst.msk [vmem:[%s1106_s13 + $0x48] sm:$0xf] %vm695_vm0, %v870_v46  ;;  %v855_v53 = vpack.c.bf16 %v538_v47, %v538_v47  ;;  %v871_v54 = vpack.c.bf16 %v554_v48, %v554_v48 }
 0x101   : > { %696 = vst.msk [vmem:[%s1106_s13] sm:$0xf] %vm695_vm0, %v852_v49  ;;  %712 = vst.msk [vmem:[%s1106_s13 + $0x40] sm:$0xf] %vm695_vm0, %v868_v50  ;;  %v853_v55 = vpack.c.bf16 %v536_v51, %v536_v51  ;;  %v869_v56 = vpack.c.bf16 %v552_v52, %v552_v52  ;;  %v930_v57 = vpop.f32.mrb[4].mxu0  ;;  %v946_v58 = vpop.f32.mrb[4].mxu1 }
 0x102   : > { %699 = vst.msk [vmem:[%s1106_s13 + $0xc] sm:$0xf] %vm695_vm0, %v855_v53  ;;  %715 = vst.msk [vmem:[%s1106_s13 + $0x4c] sm:$0xf] %vm695_vm0, %v871_v54  ;;  %v433_v59 = vadd.f32 %v930_v57, %v1093_v24  ;;  %v497_v60 = vadd.f32 %v946_v58, %v1093_v24  ;;  %v424_v61 = vpop.f32.mrb[5].mxu0  ;;  %v488_v62 = vpop.f32.mrb[5].mxu1 }
 0x103   : > { %697 = vst.msk [vmem:[%s1106_s13 + $0x4] sm:$0xf] %vm695_vm0, %v853_v55  ;;  %713 = vst.msk [vmem:[%s1106_s13 + $0x44] sm:$0xf] %vm695_vm0, %v869_v56  ;;  %v425_v63 = vadd.f32 %v1093_v24, %v424_v61  ;;  %v489_v0 = vadd.f32 %v1093_v24, %v488_v62  ;;  %v931_v1 = vpop.f32.mrb[6].mxu0  ;;  %v947_v2 = vpop.f32.mrb[6].mxu1 }
 0x104   : > { %v541_v3 = vmax.f32 %v433_v59, 0.0  ;;  %v557_v4 = vmax.f32 %v497_v60, 0.0  ;;  %v436_v5 = vadd.f32 %v931_v1, %v1093_v24  ;;  %v500_v6 = vadd.f32 %v947_v2, %v1093_v24  ;;  %v427_v7 = vpop.f32.mrb[7].mxu0  ;;  %v491_v8 = vpop.f32.mrb[7].mxu1 }
 0x105   : > { %v539_v9 = vmax.f32 %v425_v63, 0.0  ;;  %v555_v10 = vmax.f32 %v489_v0, 0.0  ;;  %v428_v11 = vadd.f32 %v1093_v24, %v427_v7  ;;  %v492_v12 = vadd.f32 %v1093_v24, %v491_v8 }
 0x106   : > { %v858_v13 = vpack.c.bf16 %v541_v3, %v541_v3  ;;  %v874_v14 = vpack.c.bf16 %v557_v4, %v557_v4  ;;  %v542_v15 = vmax.f32 %v436_v5, 0.0  ;;  %v558_v16 = vmax.f32 %v500_v6, 0.0 }
 0x107   : > { %v856_v17 = vpack.c.bf16 %v539_v9, %v539_v9  ;;  %v872_v18 = vpack.c.bf16 %v555_v10, %v555_v10  ;;  %v540_v19 = vmax.f32 %v428_v11, 0.0  ;;  %v556_v20 = vmax.f32 %v492_v12, 0.0 }
 0x108   : > { %702 = vst.msk [vmem:[%s1106_s13 + $0x18] sm:$0xf] %vm695_vm0, %v858_v13  ;;  %718 = vst.msk [vmem:[%s1106_s13 + $0x58] sm:$0xf] %vm695_vm0, %v874_v14  ;;  %v859_v21 = vpack.c.bf16 %v542_v15, %v542_v15  ;;  %v875_v22 = vpack.c.bf16 %v558_v16, %v558_v16 }
 0x109   : > { %700 = vst.msk [vmem:[%s1106_s13 + $0x10] sm:$0xf] %vm695_vm0, %v856_v17  ;;  %716 = vst.msk [vmem:[%s1106_s13 + $0x50] sm:$0xf] %vm695_vm0, %v872_v18  ;;  %v857_v23 = vpack.c.bf16 %v540_v19, %v540_v19  ;;  %v873_v25 = vpack.c.bf16 %v556_v20, %v556_v20  ;;  %v934_v26 = vpop.f32.mrb[8].mxu0  ;;  %v950_v27 = vpop.f32.mrb[8].mxu1 }
 0x10a   : > { %703 = vst.msk [vmem:[%s1106_s13 + $0x1c] sm:$0xf] %vm695_vm0, %v859_v21  ;;  %719 = vst.msk [vmem:[%s1106_s13 + $0x5c] sm:$0xf] %vm695_vm0, %v875_v22  ;;  %v449_v28 = vadd.f32 %v934_v26, %v1093_v24  ;;  %v513_v29 = vadd.f32 %v950_v27, %v1093_v24  ;;  %v440_v30 = vpop.f32.mrb[9].mxu0  ;;  %v504_v31 = vpop.f32.mrb[9].mxu1 }
 0x10b   : > { %701 = vst.msk [vmem:[%s1106_s13 + $0x14] sm:$0xf] %vm695_vm0, %v857_v23  ;;  %717 = vst.msk [vmem:[%s1106_s13 + $0x54] sm:$0xf] %vm695_vm0, %v873_v25  ;;  %v441_v32 = vadd.f32 %v1093_v24, %v440_v30  ;;  %v505_v33 = vadd.f32 %v1093_v24, %v504_v31  ;;  %v935_v34 = vpop.f32.mrb[10].mxu0  ;;  %v951_v35 = vpop.f32.mrb[10].mxu1 }
 0x10c   : > { %v545_v36 = vmax.f32 %v449_v28, 0.0  ;;  %v561_v37 = vmax.f32 %v513_v29, 0.0  ;;  %v452_v38 = vadd.f32 %v935_v34, %v1093_v24  ;;  %v516_v39 = vadd.f32 %v951_v35, %v1093_v24  ;;  %v443_v40 = vpop.f32.mrb[11].mxu0  ;;  %v507_v41 = vpop.f32.mrb[11].mxu1 }
 0x10d   : > { %v543_v42 = vmax.f32 %v441_v32, 0.0  ;;  %v559_v43 = vmax.f32 %v505_v33, 0.0  ;;  %v444_v44 = vadd.f32 %v1093_v24, %v443_v40  ;;  %v508_v45 = vadd.f32 %v1093_v24, %v507_v41 }
 0x10e   : > { %v862_v46 = vpack.c.bf16 %v545_v36, %v545_v36  ;;  %v878_v47 = vpack.c.bf16 %v561_v37, %v561_v37  ;;  %v546_v48 = vmax.f32 %v452_v38, 0.0  ;;  %v562_v49 = vmax.f32 %v516_v39, 0.0 }
 0x10f   : > { %v860_v50 = vpack.c.bf16 %v543_v42, %v543_v42  ;;  %v876_v51 = vpack.c.bf16 %v559_v43, %v559_v43  ;;  %v544_v52 = vmax.f32 %v444_v44, 0.0  ;;  %v560_v53 = vmax.f32 %v508_v45, 0.0 }
 0x110   : > { %706 = vst.msk [vmem:[%s1106_s13 + $0x28] sm:$0xf] %vm695_vm0, %v862_v46  ;;  %722 = vst.msk [vmem:[%s1106_s13 + $0x68] sm:$0xf] %vm695_vm0, %v878_v47  ;;  %v863_v54 = vpack.c.bf16 %v546_v48, %v546_v48  ;;  %v879_v55 = vpack.c.bf16 %v562_v49, %v562_v49 }
 0x111   : > { %704 = vst.msk [vmem:[%s1106_s13 + $0x20] sm:$0xf] %vm695_vm0, %v860_v50  ;;  %720 = vst.msk [vmem:[%s1106_s13 + $0x60] sm:$0xf] %vm695_vm0, %v876_v51  ;;  %v861_v56 = vpack.c.bf16 %v544_v52, %v544_v52  ;;  %v877_v57 = vpack.c.bf16 %v560_v53, %v560_v53  ;;  %v938_v58 = vpop.f32.mrb[12].mxu0  ;;  %v954_v59 = vpop.f32.mrb[12].mxu1 }
 0x112   : > { %707 = vst.msk [vmem:[%s1106_s13 + $0x2c] sm:$0xf] %vm695_vm0, %v863_v54  ;;  %723 = vst.msk [vmem:[%s1106_s13 + $0x6c] sm:$0xf] %vm695_vm0, %v879_v55  ;;  %v465_v60 = vadd.f32 %v938_v58, %v1093_v24  ;;  %v529_v61 = vadd.f32 %v954_v59, %v1093_v24  ;;  %v456_v62 = vpop.f32.mrb[13].mxu0  ;;  %v520_v63 = vpop.f32.mrb[13].mxu1 }
 0x113   : > { %705 = vst.msk [vmem:[%s1106_s13 + $0x24] sm:$0xf] %vm695_vm0, %v861_v56  ;;  %721 = vst.msk [vmem:[%s1106_s13 + $0x64] sm:$0xf] %vm695_vm0, %v877_v57  ;;  %v457_v0 = vadd.f32 %v1093_v24, %v456_v62  ;;  %v521_v1 = vadd.f32 %v1093_v24, %v520_v63  ;;  %v939_v2 = vpop.f32.mrb[14].mxu0  ;;  %v955_v3 = vpop.f32.mrb[14].mxu1 }
 0x114   : > { %v549_v4 = vmax.f32 %v465_v60, 0.0  ;;  %v565_v5 = vmax.f32 %v529_v61, 0.0  ;;  %v468_v6 = vadd.f32 %v939_v2, %v1093_v24  ;;  %v532_v7 = vadd.f32 %v955_v3, %v1093_v24  ;;  %v459_v8 = vpop.f32.mrb[15].mxu0  ;;  %v523_v9 = vpop.f32.mrb[15].mxu1 }
 0x115   : > { %v547_v10 = vmax.f32 %v457_v0, 0.0  ;;  %v563_v11 = vmax.f32 %v521_v1, 0.0  ;;  %v460_v12 = vadd.f32 %v1093_v24, %v459_v8  ;;  %v524_v13 = vadd.f32 %v1093_v24, %v523_v9 }
 0x116   : > { %v866_v14 = vpack.c.bf16 %v549_v4, %v549_v4  ;;  %v882_v15 = vpack.c.bf16 %v565_v5, %v565_v5  ;;  %v550_v16 = vmax.f32 %v468_v6, 0.0  ;;  %v566_v17 = vmax.f32 %v532_v7, 0.0 }
 0x117   : > { %v864_v18 = vpack.c.bf16 %v547_v10, %v547_v10  ;;  %v880_v19 = vpack.c.bf16 %v563_v11, %v563_v11  ;;  %v548_v20 = vmax.f32 %v460_v12, 0.0  ;;  %v564_v21 = vmax.f32 %v524_v13, 0.0 }
 0x118   : > { %710 = vst.msk [vmem:[%s1106_s13 + $0x38] sm:$0xf] %vm695_vm0, %v866_v14  ;;  %726 = vst.msk [vmem:[%s1106_s13 + $0x78] sm:$0xf] %vm695_vm0, %v882_v15  ;;  %v867_v22 = vpack.c.bf16 %v550_v16, %v550_v16  ;;  %v883_v23 = vpack.c.bf16 %v566_v17, %v566_v17 }
 0x119   : > { %708 = vst.msk [vmem:[%s1106_s13 + $0x30] sm:$0xf] %vm695_vm0, %v864_v18  ;;  %724 = vst.msk [vmem:[%s1106_s13 + $0x70] sm:$0xf] %vm695_vm0, %v880_v19  ;;  %v865_v24 = vpack.c.bf16 %v548_v20, %v548_v20  ;;  %v881_v25 = vpack.c.bf16 %v564_v21, %v564_v21 }
 0x11a   : > { %711 = vst.msk [vmem:[%s1106_s13 + $0x3c] sm:$0xf] %vm695_vm0, %v867_v22  ;;  %727 = vst.msk [vmem:[%s1106_s13 + $0x7c] sm:$0xf] %vm695_vm0, %v883_v23 }
 0x11b   : > { %709 = vst.msk [vmem:[%s1106_s13 + $0x34] sm:$0xf] %vm695_vm0, %v865_v24  ;;  %725 = vst.msk [vmem:[%s1106_s13 + $0x74] sm:$0xf] %vm695_vm0, %v881_v25 }
 0x11c PF: > { %s13_s12 = sadd.s32 1, %s1010_s12  }
 0x11d   : > { %p10_p4 = scmp.ge.s32.totalorder %s13_s12, 4  }
 0x11f   :  { %12 = sbr.rel (!%p10_p4) target bundleno = 1 (0x1), region = 62 }

// kernel: model_forward.22
= control target key start
LH: loop header
LB: loop body
LE: loop exit
PB: predicated region body
PF: predicated region fallthrough
CT: control target
= control target key end

     0   :  { %s1032_s12 = smov 0   ;;  %s1201_s0 = inlined_call_operand.vmem [shape: bf16[512,128], index: 0, kind: input, shape index: {}]   ;;  %s1202_s1 = inlined_call_operand.vmem [shape: bf16[128,32], index: 1, kind: input, shape index: {}]   ;;  %s1203_s2 = inlined_call_operand.vmem [shape: f32[1,32], index: 2, kind: input, shape index: {}]   ;;  %s1204_s3 = inlined_call_operand.vmem [shape: bf16[512,32], index: 3, kind: output, shape index: {}]  }
   0x1 LB: > { %s784_s13 = sadd.s32 4294967295, %s1010_s12   ;;  %p788_p0 = scmp.ge.s32.totalorder %s1010_s12, 1  ;;  %s1010_s12 = sphi %s1032_s12, %s13_s12  }
   0x2   : > { %p138_p1 = scmp.lt.s32.totalorder %s1010_s12, 3 }
   0x4   : > { %p139_p2 = pnand %p788_p0, %p138_p1 }
   0x5   : > { %v980_v0 = vld [vmem:[%s1202_s1] sm:$0xff] (!%p139_p2)   ;;  %s789_s16 = sshll.u32 (!%p139_p2), %s784_s13, 5  ;;  %v981_v1 = vld [vmem:[%s1202_s1 + $0x8] sm:$0xff] (!%p139_p2)   ;;  %v982_v2 = vld [vmem:[%s1202_s1 + $0x10] sm:$0xff] (!%p139_p2)   ;;  %vm695_vm0 = vcmask (!%p139_p2), 257024  }
   0x6   : > { %142 = sbr.rel (%p139_p2) target bundleno = 284 (0x11c), region = 32  ;;  %p163_p3 = scmp.lt.s32.totalorder (!%p139_p2), %s789_s16, 63  ;;  %908 = vmatprep.subr.bf16.mxu0 (!%p139_p2), %v980_v0  ;;  %956 = vmatprep.subr.bf16.mxu1 (!%p139_p2), %v980_v0  ;;  %v983_v3 = vld [vmem:[%s1202_s1 + $0x18] sm:$0xff] (!%p139_p2)   ;;  %v984_v6 = vld [vmem:[%s1202_s1 + $0x20] sm:$0xff] (!%p139_p2)   ;;  %v985_v7 = vld [vmem:[%s1202_s1 + $0x28] sm:$0xff] (!%p139_p2)  }
   0x7   : > { %909 = vmatpush3.bf16.msra.mxu0 (!%p139_p2), %v980_v0  ;;  %964 = vmatpush3.bf16.msra.mxu1 (!%p139_p2), %v980_v0  ;;  %v986_v8 = vld [vmem:[%s1202_s1 + $0x30] sm:$0xff] (!%p139_p2)   ;;  %v987_v9 = vld [vmem:[%s1202_s1 + $0x38] sm:$0xff] (!%p139_p2)   ;;  %v1093_v24 = vld [vmem:[%s1203_s2] ss:$0 sm:$0xff] (!%p139_p2) }
   0x8   : > { %910 = vmatprep.subr.bf16.mxu0 (!%p139_p2), %v981_v1  ;;  %957 = vmatprep.subr.bf16.mxu1 (!%p139_p2), %v981_v1 }
   0xb   : > { %911 = vmatpush3.bf16.msra.mxu0 (!%p139_p2), %v981_v1  ;;  %965 = vmatpush3.bf16.msra.mxu1 (!%p139_p2), %v981_v1 }
   0xc   : > { %912 = vmatprep.subr.bf16.mxu0 (!%p139_p2), %v982_v2  ;;  %958 = vmatprep.subr.bf16.mxu1 (!%p139_p2), %v982_v2 }
   0xd   : > { %s1206_s16 = smov (!%p163_p3, %s789_s16), 63 }
   0xe   : > { %s790_s21 = sshll.u32 %s1206_s16, 2 }
   0xf   : > { %s1057_s24 = scalar_lea.vmem %s1201_s0, %s790_s21  ;;  %913 = vmatpush3.bf16.msra.mxu0 %v982_v2  ;;  %966 = vmatpush3.bf16.msra.mxu1 %v982_v2  ;;  %s1106_s13 = scalar_lea.vmem %s1204_s3, %s790_s21 }
  0x10   : > { %v988_v4 = vld [vmem:[%s1057_s24] sm:$0xff]   ;;  %914 = vmatprep.subr.bf16.mxu0 %v983_v3  ;;  %959 = vmatprep.subr.bf16.mxu1 %v983_v3  ;;  %v990_v10 = vld [vmem:[%s1057_s24 + $0x8] sm:$0xff]   ;;  %v992_v12 = vld [vmem:[%s1057_s24 + $0x10] sm:$0xff]  }
  0x11   : > { %v989_v5 = vld [vmem:[%s1057_s24 + $0x40] sm:$0xff]   ;;  %924 = vmatprep.mubr.bf16.mxu0 %v988_v4  ;;  %v991_v11 = vld [vmem:[%s1057_s24 + $0x48] sm:$0xff]   ;;  %v993_v13 = vld [vmem:[%s1057_s24 + $0x50] sm:$0xff]  }
  0x12   : > { %940 = vmatprep.mubr.bf16.mxu1 %v989_v5  ;;  %v994_v14 = vld [vmem:[%s1057_s24 + $0x18] sm:$0xff]   ;;  %v996_v16 = vld [vmem:[%s1057_s24 + $0x20] sm:$0xff]   ;;  %v998_v18 = vld [vmem:[%s1057_s24 + $0x28] sm:$0xff]  }
  0x13   : > { %915 = vmatpush3.bf16.msra.mxu0 %v983_v3  ;;  %967 = vmatpush3.bf16.msra.mxu1 %v983_v3  ;;  %v995_v15 = vld [vmem:[%s1057_s24 + $0x58] sm:$0xff]   ;;  %v997_v17 = vld [vmem:[%s1057_s24 + $0x60] sm:$0xff]   ;;  %v999_v19 = vld [vmem:[%s1057_s24 + $0x68] sm:$0xff]  }
  0x14   : > { %916 = vmatprep.subr.bf16.mxu0 %v984_v6  ;;  %960 = vmatprep.subr.bf16.mxu1 %v984_v6  ;;  %v1000_v20 = vld [vmem:[%s1057_s24 + $0x30] sm:$0xff]   ;;  %v1002_v22 = vld [vmem:[%s1057_s24 + $0x38] sm:$0xff]  }
  0x15   : > { %v1001_v21 = vld [vmem:[%s1057_s24 + $0x70] sm:$0xff]   ;;  %v1003_v23 = vld [vmem:[%s1057_s24 + $0x78] sm:$0xff]  }
  0x17   : > { %917 = vmatpush3.bf16.msra.mxu0 %v984_v6  ;;  %968 = vmatpush3.bf16.msra.mxu1 %v984_v6 }
  0x18   : > { %918 = vmatprep.subr.bf16.mxu0 %v985_v7  ;;  %961 = vmatprep.subr.bf16.mxu1 %v985_v7 }
  0x1b   : > { %919 = vmatpush3.bf16.msra.mxu0 %v985_v7  ;;  %969 = vmatpush3.bf16.msra.mxu1 %v985_v7 }
  0x1c   : > { %920 = vmatprep.subr.bf16.mxu0 %v986_v8  ;;  %962 = vmatprep.subr.bf16.mxu1 %v986_v8 }
  0x1f   : > { %921 = vmatpush3.bf16.msra.mxu0 %v986_v8  ;;  %970 = vmatpush3.bf16.msra.mxu1 %v986_v8 }
  0x20   : > { %922 = vmatprep.subr.bf16.mxu0 %v987_v9  ;;  %963 = vmatprep.subr.bf16.mxu1 %v987_v9 }
  0x23   : > { %923 = vmatpush3.bf16.msra.mxu0 %v987_v9  ;;  %971 = vmatpush3.bf16.msra.mxu1 %v987_v9 }
  0x26   : > { %925 = vmatmul.mubr.bf16.vlgmr.msra.gmra.mrb[0].mxu0 %v990_v10  ;;  %941 = vmatmul.mubr.bf16.vlgmr.msra.gmra.mrb[0].mxu1 %v991_v11 }
  0x27   : > { %928 = vmatprep.mubr.bf16.mxu0 %v992_v12  ;;  %944 = vmatprep.mubr.bf16.mxu1 %v993_v13 }
  0x2e   : > { %929 = vmatmul.mubr.bf16.gmra.mrb[4].mxu0 %v994_v14  ;;  %945 = vmatmul.mubr.bf16.gmra.mrb[4].mxu1 %v995_v15 }
  0x2f   : > { %932 = vmatprep.mubr.bf16.mxu0 %v996_v16  ;;  %948 = vmatprep.mubr.bf16.mxu1 %v997_v17 }
  0x36   : > { %933 = vmatmul.mubr.bf16.gmra.mrb[8].mxu0 %v998_v18  ;;  %949 = vmatmul.mubr.bf16.gmra.mrb[8].mxu1 %v999_v19 }
  0x37   : > { %936 = vmatprep.mubr.bf16.mxu0 %v1000_v20  ;;  %952 = vmatprep.mubr.bf16.mxu1 %v1001_v21 }
  0x3e   : > { %937 = vmatmul.mubr.bf16.gmra.mrb[12].mxu0 %v1002_v22  ;;  %953 = vmatmul.mubr.bf16.gmra.mrb[12].mxu1 %v1003_v23 }
  0xf9   : > { %v926_v25 = vpop.f32.mrb[0].mxu0  ;;  %v942_v26 = vpop.f32.mrb[0].mxu1 }
  0xfa   : > { %v417_v27 = vadd.f32 %v926_v25, %v1093_v24  ;;  %v481_v28 = vadd.f32 %v942_v26, %v1093_v24  ;;  %v408_v29 = vpop.f32.mrb[1].mxu0  ;;  %v472_v30 = vpop.f32.mrb[1].mxu1 }
  0xfb   : > { %v409_v31 = vadd.f32 %v1093_v24, %v408_v29  ;;  %v473_v32 = vadd.f32 %v1093_v24, %v472_v30  ;;  %v927_v33 = vpop.f32.mrb[2].mxu0  ;;  %v943_v34 = vpop.f32.mrb[2].mxu1 }
  0xfc   : > { %v537_v35 = vmax.f32 %v417_v27, 0.0  ;;  %v553_v36 = vmax.f32 %v481_v28, 0.0  ;;  %v420_v37 = vadd.f32 %v927_v33, %v1093_v24  ;;  %v484_v38 = vadd.f32 %v943_v34, %v1093_v24  ;;  %v411_v39 = vpop.f32.mrb[3].mxu0  ;;  %v475_v40 = vpop.f32.mrb[3].mxu1 }
  0xfd   : > { %v535_v41 = vmax.f32 %v409_v31, 0.0  ;;  %v551_v42 = vmax.f32 %v473_v32, 0.0  ;;  %v412_v43 = vadd.f32 %v1093_v24, %v411_v39  ;;  %v476_v44 = vadd.f32 %v1093_v24, %v475_v40 }
  0xfe   : > { %v854_v45 = vpack.c.bf16 %v537_v35, %v537_v35  ;;  %v870_v46 = vpack.c.bf16 %v553_v36, %v553_v36  ;;  %v538_v47 = vmax.f32 %v420_v37, 0.0  ;;  %v554_v48 = vmax.f32 %v484_v38, 0.0 }
  0xff   : > { %v852_v49 = vpack.c.bf16 %v535_v41, %v535_v41  ;;  %v868_v50 = vpack.c.bf16 %v551_v42, %v551_v42  ;;  %v536_v51 = vmax.f32 %v412_v43, 0.0  ;;  %v552_v52 = vmax.f32 %v476_v44, 0.0 }
 0x100   : > { %698 = vst.msk [vmem:[%s1106_s13 + $0x8] sm:$0xf] %vm695_vm0, %v854_v45  ;;  %714 = vst.msk [vmem:[%s1106_s13 + $0x48] sm:$0xf] %vm695_vm0, %v870_v46  ;;  %v855_v53 = vpack.c.bf16 %v538_v47, %v538_v47  ;;  %v871_v54 = vpack.c.bf16 %v554_v48, %v554_v48 }
 0x101   : > { %696 = vst.msk [vmem:[%s1106_s13] sm:$0xf] %vm695_vm0, %v852_v49  ;;  %712 = vst.msk [vmem:[%s1106_s13 + $0x40] sm:$0xf] %vm695_vm0, %v868_v50  ;;  %v853_v55 = vpack.c.bf16 %v536_v51, %v536_v51  ;;  %v869_v56 = vpack.c.bf16 %v552_v52, %v552_v52  ;;  %v930_v57 = vpop.f32.mrb[4].mxu0  ;;  %v946_v58 = vpop.f32.mrb[4].mxu1 }
 0x102   : > { %699 = vst.msk [vmem:[%s1106_s13 + $0xc] sm:$0xf] %vm695_vm0, %v855_v53  ;;  %715 = vst.msk [vmem:[%s1106_s13 + $0x4c] sm:$0xf] %vm695_vm0, %v871_v54  ;;  %v433_v59 = vadd.f32 %v930_v57, %v1093_v24  ;;  %v497_v60 = vadd.f32 %v946_v58, %v1093_v24  ;;  %v424_v61 = vpop.f32.mrb[5].mxu0  ;;  %v488_v62 = vpop.f32.mrb[5].mxu1 }
 0x103   : > { %697 = vst.msk [vmem:[%s1106_s13 + $0x4] sm:$0xf] %vm695_vm0, %v853_v55  ;;  %713 = vst.msk [vmem:[%s1106_s13 + $0x44] sm:$0xf] %vm695_vm0, %v869_v56  ;;  %v425_v63 = vadd.f32 %v1093_v24, %v424_v61  ;;  %v489_v0 = vadd.f32 %v1093_v24, %v488_v62  ;;  %v931_v1 = vpop.f32.mrb[6].mxu0  ;;  %v947_v2 = vpop.f32.mrb[6].mxu1 }
 0x104   : > { %v541_v3 = vmax.f32 %v433_v59, 0.0  ;;  %v557_v4 = vmax.f32 %v497_v60, 0.0  ;;  %v436_v5 = vadd.f32 %v931_v1, %v1093_v24  ;;  %v500_v6 = vadd.f32 %v947_v2, %v1093_v24  ;;  %v427_v7 = vpop.f32.mrb[7].mxu0  ;;  %v491_v8 = vpop.f32.mrb[7].mxu1 }
 0x105   : > { %v539_v9 = vmax.f32 %v425_v63, 0.0  ;;  %v555_v10 = vmax.f32 %v489_v0, 0.0  ;;  %v428_v11 = vadd.f32 %v1093_v24, %v427_v7  ;;  %v492_v12 = vadd.f32 %v1093_v24, %v491_v8 }
 0x106   : > { %v858_v13 = vpack.c.bf16 %v541_v3, %v541_v3  ;;  %v874_v14 = vpack.c.bf16 %v557_v4, %v557_v4  ;;  %v542_v15 = vmax.f32 %v436_v5, 0.0  ;;  %v558_v16 = vmax.f32 %v500_v6, 0.0 }
 0x107   : > { %v856_v17 = vpack.c.bf16 %v539_v9, %v539_v9  ;;  %v872_v18 = vpack.c.bf16 %v555_v10, %v555_v10  ;;  %v540_v19 = vmax.f32 %v428_v11, 0.0  ;;  %v556_v20 = vmax.f32 %v492_v12, 0.0 }
 0x108   : > { %702 = vst.msk [vmem:[%s1106_s13 + $0x18] sm:$0xf] %vm695_vm0, %v858_v13  ;;  %718 = vst.msk [vmem:[%s1106_s13 + $0x58] sm:$0xf] %vm695_vm0, %v874_v14  ;;  %v859_v21 = vpack.c.bf16 %v542_v15, %v542_v15  ;;  %v875_v22 = vpack.c.bf16 %v558_v16, %v558_v16 }
 0x109   : > { %700 = vst.msk [vmem:[%s1106_s13 + $0x10] sm:$0xf] %vm695_vm0, %v856_v17  ;;  %716 = vst.msk [vmem:[%s1106_s13 + $0x50] sm:$0xf] %vm695_vm0, %v872_v18  ;;  %v857_v23 = vpack.c.bf16 %v540_v19, %v540_v19  ;;  %v873_v25 = vpack.c.bf16 %v556_v20, %v556_v20  ;;  %v934_v26 = vpop.f32.mrb[8].mxu0  ;;  %v950_v27 = vpop.f32.mrb[8].mxu1 }
 0x10a   : > { %703 = vst.msk [vmem:[%s1106_s13 + $0x1c] sm:$0xf] %vm695_vm0, %v859_v21  ;;  %719 = vst.msk [vmem:[%s1106_s13 + $0x5c] sm:$0xf] %vm695_vm0, %v875_v22  ;;  %v449_v28 = vadd.f32 %v934_v26, %v1093_v24  ;;  %v513_v29 = vadd.f32 %v950_v27, %v1093_v24  ;;  %v440_v30 = vpop.f32.mrb[9].mxu0  ;;  %v504_v31 = vpop.f32.mrb[9].mxu1 }
 0x10b   : > { %701 = vst.msk [vmem:[%s1106_s13 + $0x14] sm:$0xf] %vm695_vm0, %v857_v23  ;;  %717 = vst.msk [vmem:[%s1106_s13 + $0x54] sm:$0xf] %vm695_vm0, %v873_v25  ;;  %v441_v32 = vadd.f32 %v1093_v24, %v440_v30  ;;  %v505_v33 = vadd.f32 %v1093_v24, %v504_v31  ;;  %v935_v34 = vpop.f32.mrb[10].mxu0  ;;  %v951_v35 = vpop.f32.mrb[10].mxu1 }
 0x10c   : > { %v545_v36 = vmax.f32 %v449_v28, 0.0  ;;  %v561_v37 = vmax.f32 %v513_v29, 0.0  ;;  %v452_v38 = vadd.f32 %v935_v34, %v1093_v24  ;;  %v516_v39 = vadd.f32 %v951_v35, %v1093_v24  ;;  %v443_v40 = vpop.f32.mrb[11].mxu0  ;;  %v507_v41 = vpop.f32.mrb[11].mxu1 }
 0x10d   : > { %v543_v42 = vmax.f32 %v441_v32, 0.0  ;;  %v559_v43 = vmax.f32 %v505_v33, 0.0  ;;  %v444_v44 = vadd.f32 %v1093_v24, %v443_v40  ;;  %v508_v45 = vadd.f32 %v1093_v24, %v507_v41 }
 0x10e   : > { %v862_v46 = vpack.c.bf16 %v545_v36, %v545_v36  ;;  %v878_v47 = vpack.c.bf16 %v561_v37, %v561_v37  ;;  %v546_v48 = vmax.f32 %v452_v38, 0.0  ;;  %v562_v49 = vmax.f32 %v516_v39, 0.0 }
 0x10f   : > { %v860_v50 = vpack.c.bf16 %v543_v42, %v543_v42  ;;  %v876_v51 = vpack.c.bf16 %v559_v43, %v559_v43  ;;  %v544_v52 = vmax.f32 %v444_v44, 0.0  ;;  %v560_v53 = vmax.f32 %v508_v45, 0.0 }
 0x110   : > { %706 = vst.msk [vmem:[%s1106_s13 + $0x28] sm:$0xf] %vm695_vm0, %v862_v46  ;;  %722 = vst.msk [vmem:[%s1106_s13 + $0x68] sm:$0xf] %vm695_vm0, %v878_v47  ;;  %v863_v54 = vpack.c.bf16 %v546_v48, %v546_v48  ;;  %v879_v55 = vpack.c.bf16 %v562_v49, %v562_v49 }
 0x111   : > { %704 = vst.msk [vmem:[%s1106_s13 + $0x20] sm:$0xf] %vm695_vm0, %v860_v50  ;;  %720 = vst.msk [vmem:[%s1106_s13 + $0x60] sm:$0xf] %vm695_vm0, %v876_v51  ;;  %v861_v56 = vpack.c.bf16 %v544_v52, %v544_v52  ;;  %v877_v57 = vpack.c.bf16 %v560_v53, %v560_v53  ;;  %v938_v58 = vpop.f32.mrb[12].mxu0  ;;  %v954_v59 = vpop.f32.mrb[12].mxu1 }
 0x112   : > { %707 = vst.msk [vmem:[%s1106_s13 + $0x2c] sm:$0xf] %vm695_vm0, %v863_v54  ;;  %723 = vst.msk [vmem:[%s1106_s13 + $0x6c] sm:$0xf] %vm695_vm0, %v879_v55  ;;  %v465_v60 = vadd.f32 %v938_v58, %v1093_v24  ;;  %v529_v61 = vadd.f32 %v954_v59, %v1093_v24  ;;  %v456_v62 = vpop.f32.mrb[13].mxu0  ;;  %v520_v63 = vpop.f32.mrb[13].mxu1 }
 0x113   : > { %705 = vst.msk [vmem:[%s1106_s13 + $0x24] sm:$0xf] %vm695_vm0, %v861_v56  ;;  %721 = vst.msk [vmem:[%s1106_s13 + $0x64] sm:$0xf] %vm695_vm0, %v877_v57  ;;  %v457_v0 = vadd.f32 %v1093_v24, %v456_v62  ;;  %v521_v1 = vadd.f32 %v1093_v24, %v520_v63  ;;  %v939_v2 = vpop.f32.mrb[14].mxu0  ;;  %v955_v3 = vpop.f32.mrb[14].mxu1 }
 0x114   : > { %v549_v4 = vmax.f32 %v465_v60, 0.0  ;;  %v565_v5 = vmax.f32 %v529_v61, 0.0  ;;  %v468_v6 = vadd.f32 %v939_v2, %v1093_v24  ;;  %v532_v7 = vadd.f32 %v955_v3, %v1093_v24  ;;  %v459_v8 = vpop.f32.mrb[15].mxu0  ;;  %v523_v9 = vpop.f32.mrb[15].mxu1 }
 0x115   : > { %v547_v10 = vmax.f32 %v457_v0, 0.0  ;;  %v563_v11 = vmax.f32 %v521_v1, 0.0  ;;  %v460_v12 = vadd.f32 %v1093_v24, %v459_v8  ;;  %v524_v13 = vadd.f32 %v1093_v24, %v523_v9 }
 0x116   : > { %v866_v14 = vpack.c.bf16 %v549_v4, %v549_v4  ;;  %v882_v15 = vpack.c.bf16 %v565_v5, %v565_v5  ;;  %v550_v16 = vmax.f32 %v468_v6, 0.0  ;;  %v566_v17 = vmax.f32 %v532_v7, 0.0 }
 0x117   : > { %v864_v18 = vpack.c.bf16 %v547_v10, %v547_v10  ;;  %v880_v19 = vpack.c.bf16 %v563_v11, %v563_v11  ;;  %v548_v20 = vmax.f32 %v460_v12, 0.0  ;;  %v564_v21 = vmax.f32 %v524_v13, 0.0 }
 0x118   : > { %710 = vst.msk [vmem:[%s1106_s13 + $0x38] sm:$0xf] %vm695_vm0, %v866_v14  ;;  %726 = vst.msk [vmem:[%s1106_s13 + $0x78] sm:$0xf] %vm695_vm0, %v882_v15  ;;  %v867_v22 = vpack.c.bf16 %v550_v16, %v550_v16  ;;  %v883_v23 = vpack.c.bf16 %v566_v17, %v566_v17 }
 0x119   : > { %708 = vst.msk [vmem:[%s1106_s13 + $0x30] sm:$0xf] %vm695_vm0, %v864_v18  ;;  %724 = vst.msk [vmem:[%s1106_s13 + $0x70] sm:$0xf] %vm695_vm0, %v880_v19  ;;  %v865_v24 = vpack.c.bf16 %v548_v20, %v548_v20  ;;  %v881_v25 = vpack.c.bf16 %v564_v21, %v564_v21 }
 0x11a   : > { %711 = vst.msk [vmem:[%s1106_s13 + $0x3c] sm:$0xf] %vm695_vm0, %v867_v22  ;;  %727 = vst.msk [vmem:[%s1106_s13 + $0x7c] sm:$0xf] %vm695_vm0, %v883_v23 }
 0x11b   : > { %709 = vst.msk [vmem:[%s1106_s13 + $0x34] sm:$0xf] %vm695_vm0, %v865_v24  ;;  %725 = vst.msk [vmem:[%s1106_s13 + $0x74] sm:$0xf] %vm695_vm0, %v881_v25 }
 0x11c PF: > { %s13_s12 = sadd.s32 1, %s1010_s12  }
 0x11d   : > { %p10_p4 = scmp.ge.s32.totalorder %s13_s12, 4  }
 0x11f   :  { %12 = sbr.rel (!%p10_p4) target bundleno = 1 (0x1), region = 62 }

// kernel: model_forward.23
= control target key start
LH: loop header
LB: loop body
LE: loop exit
PB: predicated region body
PF: predicated region fallthrough
CT: control target
= control target key end

     0   :  { %s1955_s12 = smov 0   ;;  %s2439_s0 = inlined_call_operand.vmem [shape: bf16[512,288], index: 0, kind: input, shape index: {}]   ;;  %s2440_s1 = inlined_call_operand.vmem [shape: bf16[288,256], index: 1, kind: input, shape index: {}]   ;;  %s2441_s2 = inlined_call_operand.vmem [shape: f32[1,256], index: 2, kind: input, shape index: {}]   ;;  %s2442_s3 = inlined_call_operand.vmem [shape: bf16[512,256], index: 3, kind: output, shape index: {}]  }
   0x1 LB: > { %s1493_s13 = sadd.s32 4294967295, %s1932_s12   ;;  %p1497_p0 = scmp.ge.s32.totalorder %s1932_s12, 1  ;;  %s1932_s12 = sphi %s1955_s12, %s13_s12  }
   0x2   : > { %p139_p1 = scmp.lt.s32.totalorder %s1932_s12, 3 }
   0x4   : > { %p140_p2 = pnand %p1497_p0, %p139_p1 }
   0x5   : > { %v1808_v0 = vld [vmem:[%s2440_s1 + $0x4] ss:$8 sps:$4 sm:$0xff] (!%p140_p2)   ;;  %v1810_v1 = vld [vmem:[%s2440_s1] ss:$8 sps:$4 sm:$0xff] (!%p140_p2)   ;;  %v1934_v2 = vmov (!%p140_p2), 0   ;;  %s1498_s26 = sshll.u32 (!%p140_p2), %s1493_s13, 5 }
   0x6   : > { %143 = sbr.rel (%p140_p2) target bundleno = 414 (0x19e), region = 32  ;;  %986 = vmatprep.mubr.bf16.mxu0 (!%p140_p2), %v1934_v2  ;;  %761 = vmatprep.subr.bf16.mxu1 (!%p140_p2), %v1808_v0  ;;  %v1811_v3 = vld [vmem:[%s2440_s1 + $0x14] ss:$8 sps:$4 sm:$0xff] (!%p140_p2)   ;;  %v1813_v4 = vld [vmem:[%s2440_s1 + $0x10] ss:$8 sps:$4 sm:$0xff] (!%p140_p2)   ;;  %p166_p3 = scmp.lt.s32.totalorder (!%p140_p2), %s1498_s26, 63 }
   0x7   : > { %762 = vmatpush1.bf16.msra.mxu1 (!%p140_p2), %v1810_v1  ;;  %v1814_v5 = vld [vmem:[%s2440_s1 + $0x24] ss:$8 sps:$4 sm:$0xff] (!%p140_p2)   ;;  %v1816_v6 = vld [vmem:[%s2440_s1 + $0x20] ss:$8 sps:$4 sm:$0xff] (!%p140_p2)   ;;  %v1817_v7 = vld [vmem:[%s2440_s1 + $0x34] ss:$8 sps:$4 sm:$0xff] (!%p140_p2)  }
   0x8   : > { %763 = vmatprep.subr.bf16.mxu1 (!%p140_p2), %v1811_v3  ;;  %v1819_v8 = vld [vmem:[%s2440_s1 + $0x30] ss:$8 sps:$4 sm:$0xff] (!%p140_p2)   ;;  %v1820_v9 = vld [vmem:[%s2440_s1 + $0x44] ss:$8 sps:$4 sm:$0xff] (!%p140_p2)   ;;  %v1822_v10 = vld [vmem:[%s2440_s1 + $0x40] ss:$8 sps:$4 sm:$0xff] (!%p140_p2)  }
   0x9   : > { %v1823_v11 = vld [vmem:[%s2440_s1 + $0x54] ss:$8 sps:$4 sm:$0xff] (!%p140_p2)   ;;  %v1825_v12 = vld [vmem:[%s2440_s1 + $0x50] ss:$8 sps:$4 sm:$0xff] (!%p140_p2)   ;;  %v1850_v13 = vld [vmem:[%s2440_s1 + $0x104] ss:$8 sps:$4 sm:$0xff] (!%p140_p2)  }
   0xa   : > { %v1826_v14 = vld [vmem:[%s2440_s1 + $0x64] ss:$8 sps:$4 sm:$0xff] (!%p140_p2)   ;;  %v1854_v15 = vld [vmem:[%s2440_s1 + $0x100] ss:$8 sps:$4 sm:$0xff] (!%p140_p2)   ;;  %954 = vmatprep.subr.bf16.mxu0 (!%p140_p2), %v1850_v13  ;;  %v1856_v16 = vld [vmem:[%s2440_s1 + $0x114] ss:$8 sps:$4 sm:$0xff] (!%p140_p2)  }
   0xb   : > { %764 = vmatpush1.bf16.msra.mxu1 (!%p140_p2), %v1813_v4  ;;  %955 = vmatpush1.bf16.msra.mxu0 (!%p140_p2), %v1854_v15  ;;  %v1828_v17 = vld [vmem:[%s2440_s1 + $0x60] ss:$8 sps:$4 sm:$0xff] (!%p140_p2)   ;;  %v1860_v18 = vld [vmem:[%s2440_s1 + $0x110] ss:$8 sps:$4 sm:$0xff] (!%p140_p2)   ;;  %v1829_v19 = vld [vmem:[%s2440_s1 + $0x74] ss:$8 sps:$4 sm:$0xff] (!%p140_p2)  }
   0xc   : > { %765 = vmatprep.subr.bf16.mxu1 (!%p140_p2), %v1814_v5  ;;  %956 = vmatprep.subr.bf16.mxu0 (!%p140_p2), %v1856_v16  ;;  %vm712_vm0 = vcmask (!%p140_p2), 261120   ;;  %v1831_v22 = vld [vmem:[%s2440_s1 + $0x70] ss:$8 sps:$4 sm:$0xff] (!%p140_p2)   ;;  %v1832_v23 = vld [vmem:[%s2440_s1 + $0x84] ss:$8 sps:$4 sm:$0xff] (!%p140_p2)  }
   0xd   : > { %s2444_s26 = smov (!%p166_p3, %s1498_s26), 63  ;;  %v1834_v24 = vld [vmem:[%s2440_s1 + $0x80] ss:$8 sps:$4 sm:$0xff]   ;;  %v1835_v25 = vld [vmem:[%s2440_s1 + $0x94] ss:$8 sps:$4 sm:$0xff]  }
   0xe   : > { %s1798_s13 = smul.u32 12, %s2444_s26  ;;  %v1837_v27 = vld [vmem:[%s2440_s1 + $0x90] ss:$8 sps:$4 sm:$0xff]   ;;  %v1838_v28 = vld [vmem:[%s2440_s1 + $0xa4] ss:$8 sps:$4 sm:$0xff]   ;;  %s1637_s17 = sshll.u32 %s2444_s26, 3 }
   0xf   : > { %766 = vmatpush1.bf16.msra.mxu1 %v1816_v6  ;;  %957 = vmatpush1.bf16.msra.mxu0 %v1860_v18  ;;  %v1840_v29 = vld [vmem:[%s2440_s1 + $0xa0] ss:$8 sps:$4 sm:$0xff]   ;;  %v1841_v30 = vld [vmem:[%s2440_s1 + $0xb4] ss:$8 sps:$4 sm:$0xff]   ;;  %v1843_v32 = vld [vmem:[%s2440_s1 + $0xb0] ss:$8 sps:$4 sm:$0xff]   ;;  %s2206_s20 = scalar_lea.vmem %s2442_s3, %s1637_s17 }
  0x10   : > { %767 = vmatprep.subr.bf16.mxu1 %v1817_v7  ;;  %s2018_s24 = scalar_lea.vmem %s2439_s0, %s1798_s13  ;;  %v1844_v33 = vld [vmem:[%s2440_s1 + $0xc4] ss:$8 sps:$4 sm:$0xff]   ;;  %v1846_v34 = vld [vmem:[%s2440_s1 + $0xc0] ss:$8 sps:$4 sm:$0xff]   ;;  %v1847_v35 = vld [vmem:[%s2440_s1 + $0xd4] ss:$8 sps:$4 sm:$0xff]  }
  0x11   : > { %v1864_v20 = vld [vmem:[%s2018_s24 + $0x4] ss:$12 sps:$4 sm:$0xff]   ;;  %v1865_v21 = vld [vmem:[%s2018_s24 + $0x8] ss:$12 sps:$4 sm:$0xff]   ;;  %v1868_v26 = vld [vmem:[%s2018_s24 + $0x20] ss:$12 sps:$4 sm:$0xff]  }
  0x12   : > { %793 = vmatprep.mubr.bf16.mxu1 %v1864_v20  ;;  %1587 = vmatmul.mubr.msk.bf16.vlgmr.msra.gmra.mrb[0].mxu0 %vm712_vm0, %v1865_v21  ;;  %v1872_v31 = vld [vmem:[%s2018_s24 + $0x38] ss:$12 sps:$4 sm:$0xff]   ;;  %v1876_v36 = vld [vmem:[%s2018_s24 + $0x50] ss:$12 sps:$4 sm:$0xff]   ;;  %v1855_v39 = vld [vmem:[%s2440_s1 + $0xe0] ss:$8 sps:$4 sm:$0xff]  }
  0x13   : > { %768 = vmatpush1.bf16.msra.mxu1 %v1819_v8  ;;  %996 = vmatprep.mubr.bf16.mxu0 %v1934_v2  ;;  %v1849_v37 = vld [vmem:[%s2440_s1 + $0xd0] ss:$8 sps:$4 sm:$0xff]   ;;  %v1852_v38 = vld [vmem:[%s2440_s1 + $0xe4] ss:$8 sps:$4 sm:$0xff]   ;;  %v1858_v40 = vld [vmem:[%s2440_s1 + $0xf4] ss:$8 sps:$4 sm:$0xff]  }
  0x14   : > { %769 = vmatprep.subr.bf16.mxu1 %v1820_v9  ;;  %v1880_v41 = vld [vmem:[%s2018_s24 + $0x68] ss:$12 sps:$4 sm:$0xff]   ;;  %v1861_v42 = vld [vmem:[%s2440_s1 + $0xf0] ss:$8 sps:$4 sm:$0xff]   ;;  %v1862_v43 = vld [vmem:[%s2018_s24] ss:$12 sps:$4 sm:$0xff]  }
  0x15   : > { %v1866_v44 = vld [vmem:[%s2018_s24 + $0x1c] ss:$12 sps:$4 sm:$0xff]   ;;  %v1884_v45 = vld [vmem:[%s2018_s24 + $0x80] ss:$12 sps:$4 sm:$0xff]   ;;  %v1869_v46 = vld [vmem:[%s2018_s24 + $0x18] ss:$12 sps:$4 sm:$0xff]  }
  0x16   : > { %v1870_v47 = vld [vmem:[%s2018_s24 + $0x34] ss:$12 sps:$4 sm:$0xff]   ;;  %v1888_v48 = vld [vmem:[%s2018_s24 + $0x98] ss:$12 sps:$4 sm:$0xff]   ;;  %v1873_v49 = vld [vmem:[%s2018_s24 + $0x30] ss:$12 sps:$4 sm:$0xff]  }
  0x17   : > { %770 = vmatpush1.bf16.msra.mxu1 %v1822_v10  ;;  %v1874_v50 = vld [vmem:[%s2018_s24 + $0x4c] ss:$12 sps:$4 sm:$0xff]   ;;  %v1892_v51 = vld [vmem:[%s2018_s24 + $0xb0] ss:$12 sps:$4 sm:$0xff]   ;;  %v1877_v52 = vld [vmem:[%s2018_s24 + $0x48] ss:$12 sps:$4 sm:$0xff]  }
  0x18   : > { %771 = vmatprep.subr.bf16.mxu1 %v1823_v11  ;;  %v1878_v53 = vld [vmem:[%s2018_s24 + $0x64] ss:$12 sps:$4 sm:$0xff]   ;;  %v1896_v54 = vld [vmem:[%s2018_s24 + $0xc8] ss:$12 sps:$4 sm:$0xff]   ;;  %v1881_v55 = vld [vmem:[%s2018_s24 + $0x60] ss:$12 sps:$4 sm:$0xff]  }
  0x19   : > { %v1882_v56 = vld [vmem:[%s2018_s24 + $0x7c] ss:$12 sps:$4 sm:$0xff]   ;;  %v1900_v57 = vld [vmem:[%s2018_s24 + $0xe0] ss:$12 sps:$4 sm:$0xff]   ;;  %v1885_v58 = vld [vmem:[%s2018_s24 + $0x78] ss:$12 sps:$4 sm:$0xff]  }
  0x1a   : > { %1588 = vmatmul.mubr.msk.bf16.gmra.mrb[4].mxu0 %vm712_vm0, %v1868_v26  ;;  %v1886_v59 = vld [vmem:[%s2018_s24 + $0x94] ss:$12 sps:$4 sm:$0xff]   ;;  %v1904_v60 = vld [vmem:[%s2018_s24 + $0xf8] ss:$12 sps:$4 sm:$0xff]   ;;  %v1889_v61 = vld [vmem:[%s2018_s24 + $0x90] ss:$12 sps:$4 sm:$0xff]  }
  0x1b   : > { %772 = vmatpush1.bf16.msra.mxu1 %v1825_v12  ;;  %1006 = vmatprep.mubr.bf16.mxu0 %v1934_v2  ;;  %v1890_v62 = vld [vmem:[%s2018_s24 + $0xac] ss:$12 sps:$4 sm:$0xff]   ;;  %v1908_v63 = vld [vmem:[%s2018_s24 + $0x110] ss:$12 sps:$4 sm:$0xff]   ;;  %v1893_v0 = vld [vmem:[%s2018_s24 + $0xa8] ss:$12 sps:$4 sm:$0xff]  }
  0x1c   : > { %773 = vmatprep.subr.bf16.mxu1 %v1826_v14  ;;  %v1894_v1 = vld [vmem:[%s2018_s24 + $0xc4] ss:$12 sps:$4 sm:$0xff]   ;;  %v1912_v3 = vld [vmem:[%s2018_s24 + $0x128] ss:$12 sps:$4 sm:$0xff]   ;;  %v1897_v4 = vld [vmem:[%s2018_s24 + $0xc0] ss:$12 sps:$4 sm:$0xff]  }
  0x1d   : > { %v1898_v5 = vld [vmem:[%s2018_s24 + $0xdc] ss:$12 sps:$4 sm:$0xff]   ;;  %v1916_v6 = vld [vmem:[%s2018_s24 + $0x140] ss:$12 sps:$4 sm:$0xff]   ;;  %v1901_v7 = vld [vmem:[%s2018_s24 + $0xd8] ss:$12 sps:$4 sm:$0xff]  }
  0x1e   : > { %v1902_v8 = vld [vmem:[%s2018_s24 + $0xf4] ss:$12 sps:$4 sm:$0xff]   ;;  %v1920_v9 = vld [vmem:[%s2018_s24 + $0x158] ss:$12 sps:$4 sm:$0xff]   ;;  %v1905_v10 = vld [vmem:[%s2018_s24 + $0xf0] ss:$12 sps:$4 sm:$0xff]  }
  0x1f   : > { %774 = vmatpush1.bf16.msra.mxu1 %v1828_v17  ;;  %v1906_v11 = vld [vmem:[%s2018_s24 + $0x10c] ss:$12 sps:$4 sm:$0xff]   ;;  %v1924_v12 = vld [vmem:[%s2018_s24 + $0x170] ss:$12 sps:$4 sm:$0xff]   ;;  %v1909_v13 = vld [vmem:[%s2018_s24 + $0x108] ss:$12 sps:$4 sm:$0xff]  }
  0x20   : > { %775 = vmatprep.subr.bf16.mxu1 %v1829_v19  ;;  %v1910_v14 = vld [vmem:[%s2018_s24 + $0x124] ss:$12 sps:$4 sm:$0xff]   ;;  %v1913_v15 = vld [vmem:[%s2018_s24 + $0x120] ss:$12 sps:$4 sm:$0xff]   ;;  %v1914_v16 = vld [vmem:[%s2018_s24 + $0x13c] ss:$12 sps:$4 sm:$0xff]  }
  0x21   : > { %v1917_v17 = vld [vmem:[%s2018_s24 + $0x138] ss:$12 sps:$4 sm:$0xff]   ;;  %v1918_v18 = vld [vmem:[%s2018_s24 + $0x154] ss:$12 sps:$4 sm:$0xff]  }
  0x22   : > { %1589 = vmatmul.mubr.msk.bf16.gmra.mrb[8].mxu0 %vm712_vm0, %v1872_v31  ;;  %v1922_v19 = vld [vmem:[%s2018_s24 + $0x16c] ss:$12 sps:$4 sm:$0xff]   ;;  %v1925_v20 = vld [vmem:[%s2018_s24 + $0x168] ss:$12 sps:$4 sm:$0xff]  }
  0x23   : > { %776 = vmatpush1.bf16.msra.mxu1 %v1831_v22  ;;  %1016 = vmatprep.mubr.bf16.mxu0 %v1934_v2 }
  0x24   : > { %777 = vmatprep.subr.bf16.mxu1 %v1832_v23 }
  0x27   : > { %778 = vmatpush1.bf16.msra.mxu1 %v1834_v24 }
  0x28   : > { %779 = vmatprep.subr.bf16.mxu1 %v1835_v25 }
  0x2a   : > { %1590 = vmatmul.mubr.msk.bf16.gmra.mrb[12].mxu0 %vm712_vm0, %v1876_v36 }
  0x2b   : > { %780 = vmatpush1.bf16.msra.mxu1 %v1837_v27  ;;  %1026 = vmatprep.mubr.bf16.mxu0 %v1934_v2 }
  0x2c   : > { %781 = vmatprep.subr.bf16.mxu1 %v1838_v28 }
  0x2f   : > { %782 = vmatpush1.bf16.msra.mxu1 %v1840_v29 }
  0x30   : > { %783 = vmatprep.subr.bf16.mxu1 %v1841_v30 }
  0x32   : > { %1591 = vmatmul.mubr.msk.bf16.gmra.mrb[16].mxu0 %vm712_vm0, %v1880_v41 }
  0x33   : > { %784 = vmatpush1.bf16.msra.mxu1 %v1843_v32  ;;  %1036 = vmatprep.mubr.bf16.mxu0 %v1934_v2 }
  0x34   : > { %785 = vmatprep.subr.bf16.mxu1 %v1844_v33  ;;  %v282_v33 = vlaneseq }
  0x36   : > { %v283_v36 = vshrl.u32 %v282_v33, 7 }
  0x37   : > { %786 = vmatpush1.bf16.msra.mxu1 %v1846_v34 }
  0x38   : > { %787 = vmatprep.subr.bf16.mxu1 %v1847_v35  ;;  %v288_v41 = vsub.s32 1, %v283_v36 }
  0x3a   : > { %1592 = vmatmul.mubr.msk.bf16.gmra.mrb[20].mxu0 %vm712_vm0, %v1884_v45 }
  0x3b   : > { %788 = vmatpush1.bf16.msra.mxu1 %v1849_v37  ;;  %1046 = vmatprep.mubr.bf16.mxu0 %v1934_v2 }
  0x3c   : > { %789 = vmatprep.subr.bf16.mxu1 %v1852_v38 }
  0x3f   : > { %790 = vmatpush1.bf16.msra.mxu1 %v1855_v39  ;;  %v284_v39 = vsub.s32 0, %v283_v36 }
  0x40   : > { %791 = vmatprep.subr.bf16.mxu1 %v1858_v40  ;;  %v280_v40 = vld [vmem:[%s2441_s2] sm:$0x3] }
  0x42   : > { %1593 = vmatmul.mubr.msk.bf16.gmra.mrb[24].mxu0 %vm712_vm0, %v1888_v48 }
  0x43   : > { %792 = vmatpush1.bf16.msra.mxu1 %v1861_v42  ;;  %1056 = vmatprep.mubr.bf16.mxu0 %v1934_v2 }
  0x46   : > { %794 = vmatmul.mubr.bf16.vlgmr.msra.gmra.mrb[0].mxu1 %v1862_v43 }
  0x47   : > { %803 = vmatprep.mubr.bf16.mxu1 %v1866_v44  ;;  %v2182_v44 = vrot.slane %v280_v40, %v284_v39 }
  0x4a   : > { %1594 = vmatmul.mubr.msk.bf16.gmra.mrb[28].mxu0 %vm712_vm0, %v1892_v51 }
  0x4b   : > { %1066 = vmatprep.mubr.bf16.mxu0 %v1934_v2 }
  0x4e   : > { %804 = vmatmul.mubr.bf16.gmra.mrb[4].mxu1 %v1869_v46  ;;  %v2186_v46 = vrot.slane %v280_v40, %v288_v41 }
  0x4f   : > { %813 = vmatprep.mubr.bf16.mxu1 %v1870_v47 }
  0x52   : > { %1595 = vmatmul.mubr.msk.bf16.gmra.mrb[32].mxu0 %vm712_vm0, %v1896_v54 }
  0x53   : > { %1076 = vmatprep.mubr.bf16.mxu0 %v1934_v2 }
  0x56   : > { %814 = vmatmul.mubr.bf16.gmra.mrb[8].mxu1 %v1873_v49 }
  0x57   : > { %823 = vmatprep.mubr.bf16.mxu1 %v1874_v50 }
  0x5a   : > { %1596 = vmatmul.mubr.msk.bf16.gmra.mrb[36].mxu0 %vm712_vm0, %v1900_v57 }
  0x5b   : > { %1086 = vmatprep.mubr.bf16.mxu0 %v1934_v2 }
  0x5e   : > { %824 = vmatmul.mubr.bf16.gmra.mrb[12].mxu1 %v1877_v52 }
  0x5f   : > { %833 = vmatprep.mubr.bf16.mxu1 %v1878_v53 }
  0x62   : > { %1597 = vmatmul.mubr.msk.bf16.gmra.mrb[40].mxu0 %vm712_vm0, %v1904_v60 }
  0x63   : > { %1096 = vmatprep.mubr.bf16.mxu0 %v1934_v2 }
  0x66   : > { %834 = vmatmul.mubr.bf16.gmra.mrb[16].mxu1 %v1881_v55 }
  0x67   : > { %843 = vmatprep.mubr.bf16.mxu1 %v1882_v56 }
  0x6a   : > { %1598 = vmatmul.mubr.msk.bf16.gmra.mrb[44].mxu0 %vm712_vm0, %v1908_v63 }
  0x6b   : > { %1106 = vmatprep.mubr.bf16.mxu0 %v1934_v2 }
  0x6e   : > { %844 = vmatmul.mubr.bf16.gmra.mrb[20].mxu1 %v1885_v58 }
  0x6f   : > { %853 = vmatprep.mubr.bf16.mxu1 %v1886_v59 }
  0x72   : > { %1599 = vmatmul.mubr.msk.bf16.gmra.mrb[48].mxu0 %vm712_vm0, %v1912_v3 }
  0x73   : > { %1116 = vmatprep.mubr.bf16.mxu0 %v1934_v2 }
  0x76   : > { %854 = vmatmul.mubr.bf16.gmra.mrb[24].mxu1 %v1889_v61 }
  0x77   : > { %863 = vmatprep.mubr.bf16.mxu1 %v1890_v62 }
  0x7a   : > { %1600 = vmatmul.mubr.msk.bf16.gmra.mrb[52].mxu0 %vm712_vm0, %v1916_v6 }
  0x7b   : > { %1126 = vmatprep.mubr.bf16.mxu0 %v1934_v2 }
  0x7e   : > { %864 = vmatmul.mubr.bf16.gmra.mrb[28].mxu1 %v1893_v0 }
  0x7f   : > { %873 = vmatprep.mubr.bf16.mxu1 %v1894_v1 }
  0x82   : > { %1601 = vmatmul.mubr.msk.bf16.gmra.mrb[56].mxu0 %vm712_vm0, %v1920_v9 }
  0x83   : > { %1136 = vmatprep.mubr.bf16.mxu0 %v1934_v2  ;;  %v1921_v2 = vld [vmem:[%s2018_s24 + $0x150] ss:$12 sps:$4 sm:$0xff]  }
  0x86   : > { %874 = vmatmul.mubr.bf16.gmra.mrb[32].mxu1 %v1897_v4 }
  0x87   : > { %883 = vmatprep.mubr.bf16.mxu1 %v1898_v5 }
  0x8a   : > { %1602 = vmatmul.mubr.msk.bf16.gmra.mrb[60].mxu0 %vm712_vm0, %v1924_v12 }
  0x8e   : > { %884 = vmatmul.mubr.bf16.gmra.mrb[36].mxu1 %v1901_v7 }
  0x8f   : > { %893 = vmatprep.mubr.bf16.mxu1 %v1902_v8 }
  0x96   : > { %894 = vmatmul.mubr.bf16.gmra.mrb[40].mxu1 %v1905_v10 }
  0x97   : > { %903 = vmatprep.mubr.bf16.mxu1 %v1906_v11 }
  0x9e   : > { %904 = vmatmul.mubr.bf16.gmra.mrb[44].mxu1 %v1909_v13 }
  0x9f   : > { %913 = vmatprep.mubr.bf16.mxu1 %v1910_v14 }
  0xa6   : > { %914 = vmatmul.mubr.bf16.gmra.mrb[48].mxu1 %v1913_v15 }
  0xa7   : > { %923 = vmatprep.mubr.bf16.mxu1 %v1914_v16 }
  0xae   : > { %924 = vmatmul.mubr.bf16.gmra.mrb[52].mxu1 %v1917_v17 }
  0xaf   : > { %933 = vmatprep.mubr.bf16.mxu1 %v1918_v18 }
  0xb6   : > { %934 = vmatmul.mubr.bf16.gmra.mrb[56].mxu1 %v1921_v2 }
  0xb7   : > { %943 = vmatprep.mubr.bf16.mxu1 %v1922_v19 }
  0xbe   : > { %944 = vmatmul.mubr.bf16.gmra.mrb[60].mxu1 %v1925_v20 }
  0xe5   : > { %v988_v21 = vpop.f32.mrb[0].mxu0 }
  0xe6   : > { %v990_v22 = vpop.f32.mrb[1].mxu0 }
  0xe7   : > { %v992_v23 = vpop.f32.mrb[2].mxu0 }
  0xe8   : > { %v994_v24 = vpop.f32.mrb[3].mxu0 }
  0xed   : > { %v998_v25 = vpop.f32.mrb[4].mxu0 }
  0xee   : > { %v1000_v26 = vpop.f32.mrb[5].mxu0 }
  0xef   : > { %v1002_v27 = vpop.f32.mrb[6].mxu0 }
  0xf0   : > { %v1004_v28 = vpop.f32.mrb[7].mxu0 }
  0xf5   : > { %v2159_v29 = vpop.f32.mrb[8].mxu0 }
  0xf6   : > { %v2161_v30 = vpop.f32.mrb[9].mxu0 }
  0xf7   : > { %v2163_v31 = vpop.f32.mrb[10].mxu0 }
  0xf8   : > { %v2165_v32 = vpop.f32.mrb[11].mxu0 }
  0xfd   : > { %v2167_v34 = vpop.f32.mrb[12].mxu0 }
  0xfe   : > { %v2169_v35 = vpop.f32.mrb[13].mxu0 }
  0xff   : > { %v2171_v37 = vpop.f32.mrb[14].mxu0 }
 0x100   : > { %v2173_v38 = vpop.f32.mrb[15].mxu0 }
 0x105   : > { %v2178_v42 = vpop.f32.mrb[16].mxu0 }
 0x106   : > { %v2180_v43 = vpop.f32.mrb[17].mxu0 }
 0x107   : > { %v2184_v45 = vpop.f32.mrb[18].mxu0 }
 0x108   : > { %v2188_v47 = vpop.f32.mrb[19].mxu0 }
 0x10d   : > { %v2193_v56 = vpop.f32.mrb[20].mxu0 }
 0x10e   : > { %v2197_v59 = vpop.f32.mrb[21].mxu0 }
 0x10f   : > { %v2199_v62 = vpop.f32.mrb[22].mxu0 }
 0x110   : > { %v2201_v1 = vpop.f32.mrb[23].mxu0 }
 0x115   : > { %v2212_v15 = vpop.f32.mrb[24].mxu0 }
 0x116   : > { %v2216_v18 = vpop.f32.mrb[25].mxu0 }
 0x117   : > { %v2218_v20 = vpop.f32.mrb[26].mxu0 }
 0x119   : > { %v795_v48 = vpop.f32.mrb[0].mxu1 }
 0x11a   : > { %v796_v49 = vadd.f32 %v795_v48, %v2182_v44  ;;  %v797_v50 = vpop.f32.mrb[1].mxu1 }
 0x11b   : > { %v798_v51 = vadd.f32 %v797_v50, %v2186_v46  ;;  %v799_v52 = vpop.f32.mrb[2].mxu1 }
 0x11c   : > { %v989_v53 = vadd.f32 %v988_v21, %v796_v49  ;;  %v800_v54 = vadd.f32 %v799_v52, %v2182_v44  ;;  %v801_v55 = vpop.f32.mrb[3].mxu1 }
 0x11d   : > { %v991_v57 = vadd.f32 %v990_v22, %v798_v51  ;;  %v802_v58 = vadd.f32 %v801_v55, %v2186_v46 }
 0x11e   : > { %v1147_v60 = vmax.f32 %v989_v53, 0.0  ;;  %v993_v61 = vadd.f32 %v992_v23, %v800_v54  ;;  %v2220_v23 = vpop.f32.mrb[27].mxu0 }
 0x11f   : > { %v1148_v63 = vmax.f32 %v991_v57, 0.0  ;;  %v995_v0 = vadd.f32 %v994_v24, %v802_v58  ;;  %v2227_v50 = vpop.f32.mrb[28].mxu0 }
 0x120   : > { %v1149_v3 = vmax.f32 %v993_v61, 0.0  ;;  %v2232_v53 = vpop.f32.mrb[29].mxu0 }
 0x121   : > { %v1638_v4 = vpack.c.bf16 %v1148_v63, %v1147_v60  ;;  %v1150_v5 = vmax.f32 %v995_v0, 0.0  ;;  %v805_v6 = vpop.f32.mrb[4].mxu1  ;;  %v2235_v57 = vpop.f32.mrb[30].mxu0 }
 0x122   : > { %v806_v7 = vadd.f32 %v805_v6, %v2182_v44  ;;  %v807_v8 = vpop.f32.mrb[5].mxu1  ;;  %v2238_v60 = vpop.f32.mrb[31].mxu0 }
 0x123   : > { %1403 = vst [vmem:[%s2206_s20] sm:$0xff] %v1638_v4  ;;  %v1639_v9 = vpack.c.bf16 %v1150_v5, %v1149_v3  ;;  %v808_v10 = vadd.f32 %v807_v8, %v2186_v46  ;;  %v809_v11 = vpop.f32.mrb[6].mxu1 }
 0x124   : > { %v999_v12 = vadd.f32 %v998_v25, %v806_v7  ;;  %v810_v13 = vadd.f32 %v809_v11, %v2182_v44  ;;  %v811_v14 = vpop.f32.mrb[7].mxu1 }
 0x125   : > { %1404 = vst [vmem:[%s2206_s20 + $0x8] sm:$0xff] %v1639_v9  ;;  %v1001_v16 = vadd.f32 %v1000_v26, %v808_v10  ;;  %v812_v17 = vadd.f32 %v811_v14, %v2186_v46  ;;  %v2245_v9 = vpop.f32.mrb[32].mxu0 }
 0x126   : > { %v1151_v2 = vmax.f32 %v999_v12, 0.0  ;;  %v1003_v19 = vadd.f32 %v1002_v27, %v810_v13  ;;  %v2250_v12 = vpop.f32.mrb[33].mxu0 }
 0x127   : > { %v1152_v21 = vmax.f32 %v1001_v16, 0.0  ;;  %v1005_v22 = vadd.f32 %v1004_v28, %v812_v17  ;;  %v2253_v16 = vpop.f32.mrb[34].mxu0 }
 0x128   : > { %v1153_v24 = vmax.f32 %v1003_v19, 0.0 }
 0x129   : > { %v1640_v25 = vpack.c.bf16 %v1152_v21, %v1151_v2  ;;  %v1154_v33 = vmax.f32 %v1005_v22, 0.0  ;;  %v815_v36 = vpop.f32.mrb[8].mxu1  ;;  %v2256_v2 = vpop.f32.mrb[35].mxu0 }
 0x12a   : > { %v816_v39 = vadd.f32 %v815_v36, %v2182_v44  ;;  %v817_v26 = vpop.f32.mrb[9].mxu1 }
 0x12b   : > { %1405 = vst [vmem:[%s2206_s20 + $0x10] sm:$0xff] %v1640_v25  ;;  %v1641_v40 = vpack.c.bf16 %v1154_v33, %v1153_v24  ;;  %v818_v41 = vadd.f32 %v817_v26, %v2186_v46  ;;  %v819_v48 = vpop.f32.mrb[10].mxu1 }
 0x12c   : > { %v1009_v27 = vadd.f32 %v2159_v29, %v816_v39  ;;  %v820_v49 = vadd.f32 %v819_v48, %v2182_v44  ;;  %v821_v28 = vpop.f32.mrb[11].mxu1 }
 0x12d   : > { %1406 = vst [vmem:[%s2206_s20 + $0x18] sm:$0xff] %v1641_v40  ;;  %v1011_v51 = vadd.f32 %v2161_v30, %v818_v41  ;;  %v822_v52 = vadd.f32 %v821_v28, %v2186_v46  ;;  %v2263_v40 = vpop.f32.mrb[36].mxu0 }
 0x12e   : > { %v1155_v54 = vmax.f32 %v1009_v27, 0.0  ;;  %v1013_v55 = vadd.f32 %v2163_v31, %v820_v49  ;;  %v2268_v27 = vpop.f32.mrb[37].mxu0 }
 0x12f   : > { %v1156_v58 = vmax.f32 %v1011_v51, 0.0  ;;  %v1015_v29 = vadd.f32 %v2165_v32, %v822_v52  ;;  %v2271_v51 = vpop.f32.mrb[38].mxu0 }
 0x130   : > { %v1157_v61 = vmax.f32 %v1013_v55, 0.0 }
 0x131   : > { %v1642_v63 = vpack.c.bf16 %v1156_v58, %v1155_v54  ;;  %v1158_v0 = vmax.f32 %v1015_v29, 0.0  ;;  %v825_v3 = vpop.f32.mrb[12].mxu1  ;;  %v2274_v54 = vpop.f32.mrb[39].mxu0 }
 0x132   : > { %v826_v30 = vadd.f32 %v825_v3, %v2182_v44  ;;  %v827_v4 = vpop.f32.mrb[13].mxu1 }
 0x133   : > { %1407 = vst [vmem:[%s2206_s20 + $0x20] sm:$0xff] %v1642_v63  ;;  %v1643_v5 = vpack.c.bf16 %v1158_v0, %v1157_v61  ;;  %v828_v6 = vadd.f32 %v827_v4, %v2186_v46  ;;  %v829_v31 = vpop.f32.mrb[14].mxu1 }
 0x134   : > { %v1019_v7 = vadd.f32 %v2167_v34, %v826_v30  ;;  %v830_v8 = vadd.f32 %v829_v31, %v2182_v44  ;;  %v831_v32 = vpop.f32.mrb[15].mxu1 }
 0x135   : > { %1408 = vst [vmem:[%s2206_s20 + $0x28] sm:$0xff] %v1643_v5  ;;  %v1021_v10 = vadd.f32 %v2169_v35, %v828_v6  ;;  %v832_v11 = vadd.f32 %v831_v32, %v2186_v46  ;;  %v2281_v5 = vpop.f32.mrb[40].mxu0 }
 0x136   : > { %v1159_v13 = vmax.f32 %v1019_v7, 0.0  ;;  %v1023_v14 = vadd.f32 %v2171_v37, %v830_v8  ;;  %v2286_v7 = vpop.f32.mrb[41].mxu0 }
 0x137   : > { %v1160_v17 = vmax.f32 %v1021_v10, 0.0  ;;  %v1025_v34 = vadd.f32 %v2173_v38, %v832_v11  ;;  %v2289_v10 = vpop.f32.mrb[42].mxu0 }
 0x138   : > { %v1161_v19 = vmax.f32 %v1023_v14, 0.0 }
 0x139   : > { %v1644_v21 = vpack.c.bf16 %v1160_v17, %v1159_v13  ;;  %v1162_v22 = vmax.f32 %v1025_v34, 0.0  ;;  %v835_v24 = vpop.f32.mrb[16].mxu1  ;;  %v2292_v13 = vpop.f32.mrb[43].mxu0 }
 0x13a   : > { %v836_v35 = vadd.f32 %v835_v24, %v2182_v44  ;;  %v837_v25 = vpop.f32.mrb[17].mxu1 }
 0x13b   : > { %1409 = vst [vmem:[%s2206_s20 + $0x30] sm:$0xff] %v1644_v21  ;;  %v1645_v33 = vpack.c.bf16 %v1162_v22, %v1161_v19  ;;  %v838_v36 = vadd.f32 %v837_v25, %v2186_v46  ;;  %v839_v37 = vpop.f32.mrb[18].mxu1 }
 0x13c   : > { %v1029_v39 = vadd.f32 %v2178_v42, %v836_v35  ;;  %v840_v26 = vadd.f32 %v839_v37, %v2182_v44  ;;  %v841_v38 = vpop.f32.mrb[19].mxu1 }
 0x13d   : > { %1410 = vst [vmem:[%s2206_s20 + $0x38] sm:$0xff] %v1645_v33  ;;  %v1031_v41 = vadd.f32 %v2180_v43, %v838_v36  ;;  %v842_v48 = vadd.f32 %v841_v38, %v2186_v46  ;;  %v2299_v33 = vpop.f32.mrb[44].mxu0 }
 0x13e   : > { %v1163_v49 = vmax.f32 %v1029_v39, 0.0  ;;  %v1033_v28 = vadd.f32 %v2184_v45, %v840_v26  ;;  %v2304_v39 = vpop.f32.mrb[45].mxu0 }
 0x13f   : > { %v1164_v52 = vmax.f32 %v1031_v41, 0.0  ;;  %v1035_v42 = vadd.f32 %v2188_v47, %v842_v48  ;;  %v2307_v41 = vpop.f32.mrb[46].mxu0 }
 0x140   : > { %v1165_v55 = vmax.f32 %v1033_v28, 0.0 }
 0x141   : > { %v1646_v58 = vpack.c.bf16 %v1164_v52, %v1163_v49  ;;  %v1166_v29 = vmax.f32 %v1035_v42, 0.0  ;;  %v845_v61 = vpop.f32.mrb[20].mxu1  ;;  %v2310_v49 = vpop.f32.mrb[47].mxu0 }
 0x142   : > { %v846_v43 = vadd.f32 %v845_v61, %v2182_v44  ;;  %v847_v63 = vpop.f32.mrb[21].mxu1 }
 0x143   : > { %1411 = vst [vmem:[%s2206_s20 + $0x40] sm:$0xff] %v1646_v58  ;;  %v1647_v0 = vpack.c.bf16 %v1166_v29, %v1165_v55  ;;  %v848_v3 = vadd.f32 %v847_v63, %v2186_v46  ;;  %v849_v45 = vpop.f32.mrb[22].mxu1 }
 0x144   : > { %v1039_v30 = vadd.f32 %v2193_v56, %v846_v43  ;;  %v850_v4 = vadd.f32 %v849_v45, %v2182_v44  ;;  %v851_v47 = vpop.f32.mrb[23].mxu1 }
 0x145   : > { %1412 = vst [vmem:[%s2206_s20 + $0x48] sm:$0xff] %v1647_v0  ;;  %v1041_v6 = vadd.f32 %v2197_v59, %v848_v3  ;;  %v852_v31 = vadd.f32 %v851_v47, %v2186_v46  ;;  %v2317_v0 = vpop.f32.mrb[48].mxu0 }
 0x146   : > { %v1167_v8 = vmax.f32 %v1039_v30, 0.0  ;;  %v1043_v32 = vadd.f32 %v2199_v62, %v850_v4  ;;  %v2322_v30 = vpop.f32.mrb[49].mxu0 }
 0x147   : > { %v1168_v11 = vmax.f32 %v1041_v6, 0.0  ;;  %v1045_v56 = vadd.f32 %v2201_v1, %v852_v31  ;;  %v2325_v6 = vpop.f32.mrb[50].mxu0 }
 0x148   : > { %v1169_v14 = vmax.f32 %v1043_v32, 0.0 }
 0x149   : > { %v1648_v17 = vpack.c.bf16 %v1168_v11, %v1167_v8  ;;  %v1170_v34 = vmax.f32 %v1045_v56, 0.0  ;;  %v855_v19 = vpop.f32.mrb[24].mxu1  ;;  %v2328_v8 = vpop.f32.mrb[51].mxu0 }
 0x14a   : > { %v856_v59 = vadd.f32 %v855_v19, %v2182_v44  ;;  %v857_v21 = vpop.f32.mrb[25].mxu1 }
 0x14b   : > { %1413 = vst [vmem:[%s2206_s20 + $0x50] sm:$0xff] %v1648_v17  ;;  %v1649_v22 = vpack.c.bf16 %v1170_v34, %v1169_v14  ;;  %v858_v24 = vadd.f32 %v857_v21, %v2186_v46  ;;  %v859_v62 = vpop.f32.mrb[26].mxu1 }
 0x14c   : > { %v1049_v35 = vadd.f32 %v2212_v15, %v856_v59  ;;  %v860_v25 = vadd.f32 %v859_v62, %v2182_v44  ;;  %v861_v1 = vpop.f32.mrb[27].mxu1 }
 0x14d   : > { %1414 = vst [vmem:[%s2206_s20 + $0x58] sm:$0xff] %v1649_v22  ;;  %v1051_v36 = vadd.f32 %v2216_v18, %v858_v24  ;;  %v862_v37 = vadd.f32 %v861_v1, %v2186_v46  ;;  %v2335_v22 = vpop.f32.mrb[52].mxu0 }
 0x14e   : > { %v1171_v26 = vmax.f32 %v1049_v35, 0.0  ;;  %v1053_v38 = vadd.f32 %v2218_v20, %v860_v25  ;;  %v2340_v35 = vpop.f32.mrb[53].mxu0 }
 0x14f   : > { %v1172_v48 = vmax.f32 %v1051_v36, 0.0  ;;  %v1055_v15 = vadd.f32 %v2220_v23, %v862_v37  ;;  %v2343_v36 = vpop.f32.mrb[54].mxu0 }
 0x150   : > { %v1173_v28 = vmax.f32 %v1053_v38, 0.0 }
 0x151   : > { %v1650_v52 = vpack.c.bf16 %v1172_v48, %v1171_v26  ;;  %v1174_v42 = vmax.f32 %v1055_v15, 0.0  ;;  %v865_v55 = vpop.f32.mrb[28].mxu1  ;;  %v2346_v26 = vpop.f32.mrb[55].mxu0 }
 0x152   : > { %v866_v18 = vadd.f32 %v865_v55, %v2182_v44  ;;  %v867_v58 = vpop.f32.mrb[29].mxu1 }
 0x153   : > { %1415 = vst [vmem:[%s2206_s20 + $0x60] sm:$0xff] %v1650_v52  ;;  %v1651_v29 = vpack.c.bf16 %v1174_v42, %v1173_v28  ;;  %v868_v61 = vadd.f32 %v867_v58, %v2186_v46  ;;  %v869_v20 = vpop.f32.mrb[30].mxu1 }
 0x154   : > { %v1059_v43 = vadd.f32 %v2227_v50, %v866_v18  ;;  %v870_v63 = vadd.f32 %v869_v20, %v2182_v44  ;;  %v871_v23 = vpop.f32.mrb[31].mxu1 }
 0x155   : > { %1416 = vst [vmem:[%s2206_s20 + $0x68] sm:$0xff] %v1651_v29  ;;  %v1061_v3 = vadd.f32 %v2232_v53, %v868_v61  ;;  %v872_v45 = vadd.f32 %v871_v23, %v2186_v46  ;;  %v2353_v29 = vpop.f32.mrb[56].mxu0 }
 0x156   : > { %v1175_v4 = vmax.f32 %v1059_v43, 0.0  ;;  %v1063_v47 = vadd.f32 %v2235_v57, %v870_v63  ;;  %v2358_v43 = vpop.f32.mrb[57].mxu0 }
 0x157   : > { %v1176_v31 = vmax.f32 %v1061_v3, 0.0  ;;  %v1065_v50 = vadd.f32 %v2238_v60, %v872_v45  ;;  %v2361_v3 = vpop.f32.mrb[58].mxu0 }
 0x158   : > { %v1177_v32 = vmax.f32 %v1063_v47, 0.0 }
 0x159   : > { %v1652_v11 = vpack.c.bf16 %v1176_v31, %v1175_v4  ;;  %v1178_v56 = vmax.f32 %v1065_v50, 0.0  ;;  %v875_v14 = vpop.f32.mrb[32].mxu1  ;;  %v2364_v4 = vpop.f32.mrb[59].mxu0 }
 0x15a   : > { %v876_v53 = vadd.f32 %v875_v14, %v2182_v44  ;;  %v877_v17 = vpop.f32.mrb[33].mxu1 }
 0x15b   : > { %1417 = vst [vmem:[%s2206_s20 + $0x70] sm:$0xff] %v1652_v11  ;;  %v1653_v34 = vpack.c.bf16 %v1178_v56, %v1177_v32  ;;  %v878_v19 = vadd.f32 %v877_v17, %v2186_v46  ;;  %v879_v57 = vpop.f32.mrb[34].mxu1 }
 0x15c   : > { %v1069_v59 = vadd.f32 %v2245_v9, %v876_v53  ;;  %v880_v21 = vadd.f32 %v879_v57, %v2182_v44  ;;  %v881_v60 = vpop.f32.mrb[35].mxu1 }
 0x15d   : > { %1418 = vst [vmem:[%s2206_s20 + $0x78] sm:$0xff] %v1653_v34  ;;  %v1071_v24 = vadd.f32 %v2250_v12, %v878_v19  ;;  %v882_v62 = vadd.f32 %v881_v60, %v2186_v46  ;;  %v2371_v34 = vpop.f32.mrb[60].mxu0 }
 0x15e   : > { %v1179_v25 = vmax.f32 %v1069_v59, 0.0  ;;  %v1073_v1 = vadd.f32 %v2253_v16, %v880_v21  ;;  %v2376_v59 = vpop.f32.mrb[61].mxu0 }
 0x15f   : > { %v1180_v37 = vmax.f32 %v1071_v24, 0.0  ;;  %v1075_v9 = vadd.f32 %v2256_v2, %v882_v62  ;;  %v2379_v24 = vpop.f32.mrb[62].mxu0 }
 0x160   : > { %v1181_v38 = vmax.f32 %v1073_v1, 0.0 }
 0x161   : > { %v1654_v48 = vpack.c.bf16 %v1180_v37, %v1179_v25  ;;  %v1182_v15 = vmax.f32 %v1075_v9, 0.0  ;;  %v885_v28 = vpop.f32.mrb[36].mxu1  ;;  %v2382_v25 = vpop.f32.mrb[63].mxu0 }
 0x162   : > { %v886_v12 = vadd.f32 %v885_v28, %v2182_v44  ;;  %v887_v52 = vpop.f32.mrb[37].mxu1 }
 0x163   : > { %1419 = vst [vmem:[%s2206_s20 + $0x80] sm:$0xff] %v1654_v48  ;;  %v1655_v42 = vpack.c.bf16 %v1182_v15, %v1181_v38  ;;  %v888_v55 = vadd.f32 %v887_v52, %v2186_v46  ;;  %v889_v16 = vpop.f32.mrb[38].mxu1 }
 0x164   : > { %v1079_v18 = vadd.f32 %v2263_v40, %v886_v12  ;;  %v890_v58 = vadd.f32 %v889_v16, %v2182_v44  ;;  %v891_v2 = vpop.f32.mrb[39].mxu1 }
 0x165   : > { %1420 = vst [vmem:[%s2206_s20 + $0x88] sm:$0xff] %v1655_v42  ;;  %v1081_v61 = vadd.f32 %v2268_v27, %v888_v55  ;;  %v892_v20 = vadd.f32 %v891_v2, %v2186_v46 }
 0x166   : > { %v1183_v63 = vmax.f32 %v1079_v18, 0.0  ;;  %v1083_v23 = vadd.f32 %v2271_v51, %v890_v58 }
 0x167   : > { %v1184_v45 = vmax.f32 %v1081_v61, 0.0  ;;  %v1085_v40 = vadd.f32 %v2274_v54, %v892_v20 }
 0x168   : > { %v1185_v47 = vmax.f32 %v1083_v23, 0.0 }
 0x169   : > { %v1656_v31 = vpack.c.bf16 %v1184_v45, %v1183_v63  ;;  %v1186_v50 = vmax.f32 %v1085_v40, 0.0  ;;  %v895_v32 = vpop.f32.mrb[40].mxu1 }
 0x16a   : > { %v896_v27 = vadd.f32 %v895_v32, %v2182_v44  ;;  %v897_v11 = vpop.f32.mrb[41].mxu1 }
 0x16b   : > { %1421 = vst [vmem:[%s2206_s20 + $0x90] sm:$0xff] %v1656_v31  ;;  %v1657_v56 = vpack.c.bf16 %v1186_v50, %v1185_v47  ;;  %v898_v14 = vadd.f32 %v897_v11, %v2186_v46  ;;  %v899_v51 = vpop.f32.mrb[42].mxu1 }
 0x16c   : > { %v1089_v53 = vadd.f32 %v2281_v5, %v896_v27  ;;  %v900_v17 = vadd.f32 %v899_v51, %v2182_v44  ;;  %v901_v54 = vpop.f32.mrb[43].mxu1 }
 0x16d   : > { %1422 = vst [vmem:[%s2206_s20 + $0x98] sm:$0xff] %v1657_v56  ;;  %v1091_v19 = vadd.f32 %v2286_v7, %v898_v14  ;;  %v902_v57 = vadd.f32 %v901_v54, %v2186_v46 }
 0x16e   : > { %v1187_v21 = vmax.f32 %v1089_v53, 0.0  ;;  %v1093_v60 = vadd.f32 %v2289_v10, %v900_v17 }
 0x16f   : > { %v1188_v62 = vmax.f32 %v1091_v19, 0.0  ;;  %v1095_v5 = vadd.f32 %v2292_v13, %v902_v57 }
 0x170   : > { %v1189_v1 = vmax.f32 %v1093_v60, 0.0 }
 0x171   : > { %v1658_v37 = vpack.c.bf16 %v1188_v62, %v1187_v21  ;;  %v1190_v9 = vmax.f32 %v1095_v5, 0.0  ;;  %v905_v38 = vpop.f32.mrb[44].mxu1 }
 0x172   : > { %v906_v7 = vadd.f32 %v905_v38, %v2182_v44  ;;  %v907_v48 = vpop.f32.mrb[45].mxu1 }
 0x173   : > { %1423 = vst [vmem:[%s2206_s20 + $0xa0] sm:$0xff] %v1658_v37  ;;  %v1659_v15 = vpack.c.bf16 %v1190_v9, %v1189_v1  ;;  %v908_v28 = vadd.f32 %v907_v48, %v2186_v46  ;;  %v909_v10 = vpop.f32.mrb[46].mxu1 }
 0x174   : > { %v1099_v12 = vadd.f32 %v2299_v33, %v906_v7  ;;  %v910_v52 = vadd.f32 %v909_v10, %v2182_v44  ;;  %v911_v13 = vpop.f32.mrb[47].mxu1 }
 0x175   : > { %1424 = vst [vmem:[%s2206_s20 + $0xa8] sm:$0xff] %v1659_v15  ;;  %v1101_v42 = vadd.f32 %v2304_v39, %v908_v28  ;;  %v912_v55 = vadd.f32 %v911_v13, %v2186_v46 }
 0x176   : > { %v1191_v16 = vmax.f32 %v1099_v12, 0.0  ;;  %v1103_v18 = vadd.f32 %v2307_v41, %v910_v52 }
 0x177   : > { %v1192_v58 = vmax.f32 %v1101_v42, 0.0  ;;  %v1105_v2 = vadd.f32 %v2310_v49, %v912_v55 }
 0x178   : > { %v1193_v61 = vmax.f32 %v1103_v18, 0.0 }
 0x179   : > { %v1660_v20 = vpack.c.bf16 %v1192_v58, %v1191_v16  ;;  %v1194_v63 = vmax.f32 %v1105_v2, 0.0  ;;  %v915_v33 = vpop.f32.mrb[48].mxu1 }
 0x17a   : > { %v916_v23 = vadd.f32 %v915_v33, %v2182_v44  ;;  %v917_v45 = vpop.f32.mrb[49].mxu1 }
 0x17b   : > { %1425 = vst [vmem:[%s2206_s20 + $0xb0] sm:$0xff] %v1660_v20  ;;  %v1661_v40 = vpack.c.bf16 %v1194_v63, %v1193_v61  ;;  %v918_v39 = vadd.f32 %v917_v45, %v2186_v46  ;;  %v919_v47 = vpop.f32.mrb[50].mxu1 }
 0x17c   : > { %v1109_v31 = vadd.f32 %v2317_v0, %v916_v23  ;;  %v920_v41 = vadd.f32 %v919_v47, %v2182_v44  ;;  %v921_v50 = vpop.f32.mrb[51].mxu1 }
 0x17d   : > { %1426 = vst [vmem:[%s2206_s20 + $0xb8] sm:$0xff] %v1661_v40  ;;  %v1111_v49 = vadd.f32 %v2322_v30, %v918_v39  ;;  %v922_v32 = vadd.f32 %v921_v50, %v2186_v46 }
 0x17e   : > { %v1195_v27 = vmax.f32 %v1109_v31, 0.0  ;;  %v1113_v11 = vadd.f32 %v2325_v6, %v920_v41 }
 0x17f   : > { %v1196_v56 = vmax.f32 %v1111_v49, 0.0  ;;  %v1115_v14 = vadd.f32 %v2328_v8, %v922_v32 }
 0x180   : > { %v1197_v51 = vmax.f32 %v1113_v11, 0.0 }
 0x181   : > { %v1662_v53 = vpack.c.bf16 %v1196_v56, %v1195_v27  ;;  %v1198_v17 = vmax.f32 %v1115_v14, 0.0  ;;  %v925_v0 = vpop.f32.mrb[52].mxu1 }
 0x182   : > { %v926_v54 = vadd.f32 %v925_v0, %v2182_v44  ;;  %v927_v19 = vpop.f32.mrb[53].mxu1 }
 0x183   : > { %1427 = vst [vmem:[%s2206_s20 + $0xc0] sm:$0xff] %v1662_v53  ;;  %v1663_v57 = vpack.c.bf16 %v1198_v17, %v1197_v51  ;;  %v928_v30 = vadd.f32 %v927_v19, %v2186_v46  ;;  %v929_v21 = vpop.f32.mrb[54].mxu1 }
 0x184   : > { %v1119_v60 = vadd.f32 %v2335_v22, %v926_v54  ;;  %v930_v6 = vadd.f32 %v929_v21, %v2182_v44  ;;  %v931_v62 = vpop.f32.mrb[55].mxu1 }
 0x185   : > { %1428 = vst [vmem:[%s2206_s20 + $0xc8] sm:$0xff] %v1663_v57  ;;  %v1121_v8 = vadd.f32 %v2340_v35, %v928_v30  ;;  %v932_v5 = vadd.f32 %v931_v62, %v2186_v46 }
 0x186   : > { %v1199_v1 = vmax.f32 %v1119_v60, 0.0  ;;  %v1123_v37 = vadd.f32 %v2343_v36, %v930_v6 }
 0x187   : > { %v1200_v9 = vmax.f32 %v1121_v8, 0.0  ;;  %v1125_v38 = vadd.f32 %v2346_v26, %v932_v5 }
 0x188   : > { %v1201_v7 = vmax.f32 %v1123_v37, 0.0 }
 0x189   : > { %v1664_v48 = vpack.c.bf16 %v1200_v9, %v1199_v1  ;;  %v1202_v15 = vmax.f32 %v1125_v38, 0.0  ;;  %v935_v22 = vpop.f32.mrb[56].mxu1 }
 0x18a   : > { %v936_v28 = vadd.f32 %v935_v22, %v2182_v44  ;;  %v937_v10 = vpop.f32.mrb[57].mxu1 }
 0x18b   : > { %1429 = vst [vmem:[%s2206_s20 + $0xd0] sm:$0xff] %v1664_v48  ;;  %v1665_v12 = vpack.c.bf16 %v1202_v15, %v1201_v7  ;;  %v938_v35 = vadd.f32 %v937_v10, %v2186_v46  ;;  %v939_v52 = vpop.f32.mrb[58].mxu1 }
 0x18c   : > { %v1129_v13 = vadd.f32 %v2353_v29, %v936_v28  ;;  %v940_v36 = vadd.f32 %v939_v52, %v2182_v44  ;;  %v941_v42 = vpop.f32.mrb[59].mxu1 }
 0x18d   : > { %1430 = vst [vmem:[%s2206_s20 + $0xd8] sm:$0xff] %v1665_v12  ;;  %v1131_v26 = vadd.f32 %v2358_v43, %v938_v35  ;;  %v942_v55 = vadd.f32 %v941_v42, %v2186_v46 }
 0x18e   : > { %v1203_v16 = vmax.f32 %v1129_v13, 0.0  ;;  %v1133_v18 = vadd.f32 %v2361_v3, %v940_v36 }
 0x18f   : > { %v1204_v58 = vmax.f32 %v1131_v26, 0.0  ;;  %v1135_v2 = vadd.f32 %v2364_v4, %v942_v55 }
 0x190   : > { %v1205_v61 = vmax.f32 %v1133_v18, 0.0 }
 0x191   : > { %v1666_v20 = vpack.c.bf16 %v1204_v58, %v1203_v16  ;;  %v1206_v63 = vmax.f32 %v1135_v2, 0.0  ;;  %v945_v29 = vpop.f32.mrb[60].mxu1 }
 0x192   : > { %v946_v33 = vadd.f32 %v945_v29, %v2182_v44  ;;  %v947_v23 = vpop.f32.mrb[61].mxu1 }
 0x193   : > { %1431 = vst [vmem:[%s2206_s20 + $0xe0] sm:$0xff] %v1666_v20  ;;  %v1667_v45 = vpack.c.bf16 %v1206_v63, %v1205_v61  ;;  %v948_v43 = vadd.f32 %v947_v23, %v2186_v46  ;;  %v949_v40 = vpop.f32.mrb[62].mxu1 }
 0x194   : > { %v1139_v3 = vadd.f32 %v2371_v34, %v946_v33  ;;  %v950_v39 = vadd.f32 %v949_v40, %v2182_v44  ;;  %v951_v47 = vpop.f32.mrb[63].mxu1 }
 0x195   : > { %1432 = vst [vmem:[%s2206_s20 + $0xe8] sm:$0xff] %v1667_v45  ;;  %v1141_v4 = vadd.f32 %v2376_v59, %v948_v43  ;;  %v952_v31 = vadd.f32 %v951_v47, %v2186_v46 }
 0x196   : > { %v1207_v41 = vmax.f32 %v1139_v3, 0.0  ;;  %v1143_v50 = vadd.f32 %v2379_v24, %v950_v39 }
 0x197   : > { %v1208_v49 = vmax.f32 %v1141_v4, 0.0  ;;  %v1145_v32 = vadd.f32 %v2382_v25, %v952_v31 }
 0x198   : > { %v1209_v27 = vmax.f32 %v1143_v50, 0.0 }
 0x199   : > { %v1668_v11 = vpack.c.bf16 %v1208_v49, %v1207_v41  ;;  %v1210_v56 = vmax.f32 %v1145_v32, 0.0 }
 0x19b   : > { %1433 = vst [vmem:[%s2206_s20 + $0xf0] sm:$0xff] %v1668_v11  ;;  %v1669_v14 = vpack.c.bf16 %v1210_v56, %v1209_v27 }
 0x19d   : > { %1434 = vst [vmem:[%s2206_s20 + $0xf8] sm:$0xff] %v1669_v14 }
 0x19e PF: > { %s13_s12 = sadd.s32 1, %s1932_s12  }
 0x19f   : > { %p10_p4 = scmp.ge.s32.totalorder %s13_s12, 4  }
 0x1a1   :  { %12 = sbr.rel (!%p10_p4) target bundleno = 1 (0x1), region = 62 }

// kernel: model_forward.24
= control target key start
LH: loop header
LB: loop body
LE: loop exit
PB: predicated region body
PF: predicated region fallthrough
CT: control target
= control target key end

     0   :  { %vm423_vm0 = vcmask 257024   ;;  %s830_s1 = inlined_call_operand.vmem [shape: bf16[256,32], index: 1, kind: input, shape index: {}]   ;;  %s831_s0 = inlined_call_operand.vmem [shape: bf16[128,256], index: 0, kind: input, shape index: {}]   ;;  %s832_s2 = inlined_call_operand.vmem [shape: f32[1,32], index: 2, kind: input, shape index: {}]   ;;  %s833_s3 = inlined_call_operand.vmem [shape: bf16[128,32], index: 3, kind: output, shape index: {}]  }
   0x1   :  { %v589_v0 = vld [vmem:[%s830_s1 + $0x40] sm:$0xff]   ;;  %v591_v2 = vld [vmem:[%s830_s1 + $0x48] sm:$0xff]   ;;  %v593_v4 = vld [vmem:[%s830_s1 + $0x50] sm:$0xff]  }
   0x2   :  { %v590_v1 = vld [vmem:[%s830_s1] sm:$0xff]   ;;  %509 = vmatprep.subr.bf16.mxu0 %v589_v0  ;;  %573 = vmatprep.subr.bf16.mxu1 %v589_v0  ;;  %v592_v3 = vld [vmem:[%s830_s1 + $0x8] sm:$0xff]   ;;  %v594_v5 = vld [vmem:[%s830_s1 + $0x10] sm:$0xff]  }
   0x3   :  { %510 = vmatpush3.bf16.msra.mxu0 %v590_v1  ;;  %581 = vmatpush3.bf16.msra.mxu1 %v590_v1  ;;  %v595_v6 = vld [vmem:[%s830_s1 + $0x58] sm:$0xff]   ;;  %v597_v8 = vld [vmem:[%s830_s1 + $0x60] sm:$0xff]   ;;  %v599_v10 = vld [vmem:[%s830_s1 + $0x68] sm:$0xff]  }
   0x4   :  { %511 = vmatprep.subr.bf16.mxu0 %v591_v2  ;;  %574 = vmatprep.subr.bf16.mxu1 %v591_v2  ;;  %v596_v7 = vld [vmem:[%s830_s1 + $0x18] sm:$0xff]   ;;  %v598_v9 = vld [vmem:[%s830_s1 + $0x20] sm:$0xff]   ;;  %v600_v13 = vld [vmem:[%s830_s1 + $0x28] sm:$0xff]  }
   0x5   :  { %v607_v11 = vld [vmem:[%s831_s0 + $0x4] ss:$8 sps:$4 sm:$0xff]   ;;  %v601_v14 = vld [vmem:[%s830_s1 + $0x70] sm:$0xff]   ;;  %v603_v16 = vld [vmem:[%s830_s1 + $0x78] sm:$0xff]  }
   0x6   :  { %v610_v12 = vld [vmem:[%s831_s0 + $0x44] ss:$8 sps:$4 sm:$0xff]   ;;  %278 = vmatprep.mubr.bf16.mxu0 %v607_v11  ;;  %v602_v15 = vld [vmem:[%s830_s1 + $0x30] sm:$0xff]   ;;  %v604_v17 = vld [vmem:[%s830_s1 + $0x38] sm:$0xff]  }
   0x7   :  { %512 = vmatpush3.bf16.msra.mxu0 %v592_v3  ;;  %582 = vmatpush3.bf16.msra.mxu1 %v592_v3  ;;  %v605_v18 = vld [vmem:[%s831_s0] ss:$8 sps:$4 sm:$0xff]   ;;  %v611_v20 = vld [vmem:[%s831_s0 + $0x14] ss:$8 sps:$4 sm:$0xff]   ;;  %v615_v22 = vld [vmem:[%s831_s0 + $0x10] ss:$8 sps:$4 sm:$0xff]  }
   0x8   :  { %513 = vmatprep.subr.bf16.mxu0 %v593_v4  ;;  %575 = vmatprep.subr.bf16.mxu1 %v593_v4  ;;  %v608_v19 = vld [vmem:[%s831_s0 + $0x40] ss:$8 sps:$4 sm:$0xff]   ;;  %v613_v21 = vld [vmem:[%s831_s0 + $0x54] ss:$8 sps:$4 sm:$0xff]   ;;  %v616_v23 = vld [vmem:[%s831_s0 + $0x50] ss:$8 sps:$4 sm:$0xff]  }
   0x9   :  { %310 = vmatprep.mubr.bf16.mxu1 %v610_v12  ;;  %v617_v24 = vld [vmem:[%s831_s0 + $0x24] ss:$8 sps:$4 sm:$0xff]   ;;  %v621_v26 = vld [vmem:[%s831_s0 + $0x20] ss:$8 sps:$4 sm:$0xff]   ;;  %v623_v28 = vld [vmem:[%s831_s0 + $0x34] ss:$8 sps:$4 sm:$0xff]  }
   0xa   :  { %v619_v25 = vld [vmem:[%s831_s0 + $0x64] ss:$8 sps:$4 sm:$0xff]   ;;  %v622_v27 = vld [vmem:[%s831_s0 + $0x60] ss:$8 sps:$4 sm:$0xff]   ;;  %v625_v29 = vld [vmem:[%s831_s0 + $0x74] ss:$8 sps:$4 sm:$0xff]  }
   0xb   :  { %514 = vmatpush3.bf16.msra.mxu0 %v594_v5  ;;  %583 = vmatpush3.bf16.msra.mxu1 %v594_v5  ;;  %v627_v30 = vld [vmem:[%s831_s0 + $0x30] ss:$8 sps:$4 sm:$0xff]   ;;  %v748_v34 = vld [vmem:[%s832_s2] ss:$0 sm:$0xff] }
   0xc   :  { %515 = vmatprep.subr.bf16.mxu0 %v595_v6  ;;  %576 = vmatprep.subr.bf16.mxu1 %v595_v6  ;;  %v628_v31 = vld [vmem:[%s831_s0 + $0x70] ss:$8 sps:$4 sm:$0xff]  }
   0xf   :  { %516 = vmatpush3.bf16.msra.mxu0 %v596_v7  ;;  %584 = vmatpush3.bf16.msra.mxu1 %v596_v7 }
  0x10   :  { %517 = vmatprep.subr.bf16.mxu0 %v597_v8  ;;  %577 = vmatprep.subr.bf16.mxu1 %v597_v8 }
  0x13   :  { %518 = vmatpush3.bf16.msra.mxu0 %v598_v9  ;;  %585 = vmatpush3.bf16.msra.mxu1 %v598_v9 }
  0x14   :  { %519 = vmatprep.subr.bf16.mxu0 %v599_v10  ;;  %578 = vmatprep.subr.bf16.mxu1 %v599_v10 }
  0x17   :  { %520 = vmatpush3.bf16.msra.mxu0 %v600_v13  ;;  %586 = vmatpush3.bf16.msra.mxu1 %v600_v13 }
  0x18   :  { %521 = vmatprep.subr.bf16.mxu0 %v601_v14  ;;  %579 = vmatprep.subr.bf16.mxu1 %v601_v14 }
  0x1b   :  { %522 = vmatpush3.bf16.msra.mxu0 %v602_v15  ;;  %587 = vmatpush3.bf16.msra.mxu1 %v602_v15 }
  0x1c   :  { %523 = vmatprep.subr.bf16.mxu0 %v603_v16  ;;  %580 = vmatprep.subr.bf16.mxu1 %v603_v16 }
  0x1f   :  { %524 = vmatpush3.bf16.msra.mxu0 %v604_v17  ;;  %588 = vmatpush3.bf16.msra.mxu1 %v604_v17 }
  0x22   :  { %279 = vmatmul.mubr.bf16.vlgmr.msra.gmra.mrb[0].mxu0 %v605_v18  ;;  %311 = vmatmul.mubr.bf16.vlgmr.msra.gmra.mrb[0].mxu1 %v608_v19 }
  0x23   :  { %286 = vmatprep.mubr.bf16.mxu0 %v611_v20  ;;  %318 = vmatprep.mubr.bf16.mxu1 %v613_v21 }
  0x2a   :  { %287 = vmatmul.mubr.bf16.gmra.mrb[4].mxu0 %v615_v22  ;;  %319 = vmatmul.mubr.bf16.gmra.mrb[4].mxu1 %v616_v23 }
  0x2b   :  { %294 = vmatprep.mubr.bf16.mxu0 %v617_v24  ;;  %326 = vmatprep.mubr.bf16.mxu1 %v619_v25 }
  0x32   :  { %295 = vmatmul.mubr.bf16.gmra.mrb[8].mxu0 %v621_v26  ;;  %327 = vmatmul.mubr.bf16.gmra.mrb[8].mxu1 %v622_v27 }
  0x33   :  { %302 = vmatprep.mubr.bf16.mxu0 %v623_v28  ;;  %334 = vmatprep.mubr.bf16.mxu1 %v625_v29 }
  0x3a   :  { %303 = vmatmul.mubr.bf16.gmra.mrb[12].mxu0 %v627_v30  ;;  %335 = vmatmul.mubr.bf16.gmra.mrb[12].mxu1 %v628_v31 }
  0xf5   :  { %v525_v32 = vpop.f32.mrb[0].mxu0  ;;  %v549_v33 = vpop.f32.mrb[0].mxu1 }
  0xf6   :  { %v526_v35 = vpop.f32.mrb[1].mxu0  ;;  %v550_v36 = vpop.f32.mrb[1].mxu1 }
  0xf7   :  { %v527_v37 = vadd.f32 %v526_v35, %v525_v32  ;;  %v551_v38 = vadd.f32 %v550_v36, %v549_v33  ;;  %v528_v39 = vpop.f32.mrb[2].mxu0  ;;  %v552_v40 = vpop.f32.mrb[2].mxu1 }
  0xf8   :  { %v529_v41 = vpop.f32.mrb[3].mxu0  ;;  %v553_v42 = vpop.f32.mrb[3].mxu1 }
  0xf9   :  { %v281_v43 = vadd.f32 %v527_v37, %v748_v34  ;;  %v313_v44 = vadd.f32 %v551_v38, %v748_v34  ;;  %v530_v45 = vadd.f32 %v529_v41, %v528_v39  ;;  %v554_v46 = vadd.f32 %v553_v42, %v552_v40 }
  0xfb   :  { %v343_v47 = vmax.f32 %v281_v43, 0.0  ;;  %v351_v48 = vmax.f32 %v313_v44, 0.0  ;;  %v284_v49 = vadd.f32 %v530_v45, %v748_v34  ;;  %v316_v50 = vadd.f32 %v554_v46, %v748_v34 }
  0xfd   :  { %v493_v51 = vpack.c.bf16 %v343_v47, %v343_v47  ;;  %v501_v52 = vpack.c.bf16 %v351_v48, %v351_v48  ;;  %v344_v53 = vmax.f32 %v284_v49, 0.0  ;;  %v352_v54 = vmax.f32 %v316_v50, 0.0  ;;  %v531_v55 = vpop.f32.mrb[4].mxu0  ;;  %v555_v56 = vpop.f32.mrb[4].mxu1 }
  0xfe   :  { %v532_v57 = vpop.f32.mrb[5].mxu0  ;;  %v556_v58 = vpop.f32.mrb[5].mxu1 }
  0xff   :  { %424 = vst.msk [vmem:[%s833_s3] sm:$0xf] %vm423_vm0, %v493_v51  ;;  %432 = vst.msk [vmem:[%s833_s3 + $0x20] sm:$0xf] %vm423_vm0, %v501_v52  ;;  %v494_v59 = vpack.c.bf16 %v344_v53, %v344_v53  ;;  %v502_v60 = vpack.c.bf16 %v352_v54, %v352_v54  ;;  %v533_v61 = vadd.f32 %v532_v57, %v531_v55  ;;  %v534_v63 = vpop.f32.mrb[6].mxu0  ;;  %v558_v0 = vpop.f32.mrb[6].mxu1 }
 0x100   :  { %v557_v62 = vadd.f32 %v556_v58, %v555_v56  ;;  %v535_v1 = vpop.f32.mrb[7].mxu0  ;;  %v559_v2 = vpop.f32.mrb[7].mxu1 }
 0x101   :  { %425 = vst.msk [vmem:[%s833_s3 + $0x4] sm:$0xf] %vm423_vm0, %v494_v59  ;;  %433 = vst.msk [vmem:[%s833_s3 + $0x24] sm:$0xf] %vm423_vm0, %v502_v60  ;;  %v289_v3 = vadd.f32 %v533_v61, %v748_v34  ;;  %v536_v5 = vadd.f32 %v535_v1, %v534_v63  ;;  %v560_v6 = vadd.f32 %v559_v2, %v558_v0 }
 0x102   :  { %v321_v4 = vadd.f32 %v557_v62, %v748_v34 }
 0x103   :  { %v345_v7 = vmax.f32 %v289_v3, 0.0  ;;  %v292_v9 = vadd.f32 %v536_v5, %v748_v34  ;;  %v324_v10 = vadd.f32 %v560_v6, %v748_v34 }
 0x104   :  { %v353_v8 = vmax.f32 %v321_v4, 0.0 }
 0x105   :  { %v495_v11 = vpack.c.bf16 %v345_v7, %v345_v7  ;;  %v346_v13 = vmax.f32 %v292_v9, 0.0  ;;  %v354_v14 = vmax.f32 %v324_v10, 0.0  ;;  %v537_v15 = vpop.f32.mrb[8].mxu0  ;;  %v561_v16 = vpop.f32.mrb[8].mxu1 }
 0x106   :  { %v503_v12 = vpack.c.bf16 %v353_v8, %v353_v8  ;;  %v538_v17 = vpop.f32.mrb[9].mxu0  ;;  %v562_v18 = vpop.f32.mrb[9].mxu1 }
 0x107   :  { %426 = vst.msk [vmem:[%s833_s3 + $0x8] sm:$0xf] %vm423_vm0, %v495_v11  ;;  %v496_v19 = vpack.c.bf16 %v346_v13, %v346_v13  ;;  %v504_v20 = vpack.c.bf16 %v354_v14, %v354_v14  ;;  %v539_v21 = vadd.f32 %v538_v17, %v537_v15  ;;  %v563_v22 = vadd.f32 %v562_v18, %v561_v16  ;;  %v540_v23 = vpop.f32.mrb[10].mxu0  ;;  %v564_v24 = vpop.f32.mrb[10].mxu1 }
 0x108   :  { %434 = vst.msk [vmem:[%s833_s3 + $0x28] sm:$0xf] %vm423_vm0, %v503_v12  ;;  %v541_v25 = vpop.f32.mrb[11].mxu0  ;;  %v565_v26 = vpop.f32.mrb[11].mxu1 }
 0x109   :  { %427 = vst.msk [vmem:[%s833_s3 + $0xc] sm:$0xf] %vm423_vm0, %v496_v19  ;;  %435 = vst.msk [vmem:[%s833_s3 + $0x2c] sm:$0xf] %vm423_vm0, %v504_v20  ;;  %v297_v27 = vadd.f32 %v539_v21, %v748_v34  ;;  %v329_v28 = vadd.f32 %v563_v22, %v748_v34  ;;  %v542_v29 = vadd.f32 %v541_v25, %v540_v23 }
 0x10a   :  { %v566_v30 = vadd.f32 %v565_v26, %v564_v24 }
 0x10b   :  { %v347_v31 = vmax.f32 %v297_v27, 0.0  ;;  %v355_v32 = vmax.f32 %v329_v28, 0.0  ;;  %v300_v33 = vadd.f32 %v542_v29, %v748_v34 }
 0x10c   :  { %v332_v35 = vadd.f32 %v566_v30, %v748_v34 }
 0x10d   :  { %v497_v36 = vpack.c.bf16 %v347_v31, %v347_v31  ;;  %v505_v37 = vpack.c.bf16 %v355_v32, %v355_v32  ;;  %v348_v38 = vmax.f32 %v300_v33, 0.0  ;;  %v543_v40 = vpop.f32.mrb[12].mxu0  ;;  %v567_v41 = vpop.f32.mrb[12].mxu1 }
 0x10e   :  { %v356_v39 = vmax.f32 %v332_v35, 0.0  ;;  %v544_v42 = vpop.f32.mrb[13].mxu0  ;;  %v568_v43 = vpop.f32.mrb[13].mxu1 }
 0x10f   :  { %428 = vst.msk [vmem:[%s833_s3 + $0x10] sm:$0xf] %vm423_vm0, %v497_v36  ;;  %436 = vst.msk [vmem:[%s833_s3 + $0x30] sm:$0xf] %vm423_vm0, %v505_v37  ;;  %v498_v44 = vpack.c.bf16 %v348_v38, %v348_v38  ;;  %v545_v46 = vadd.f32 %v544_v42, %v543_v40  ;;  %v569_v47 = vadd.f32 %v568_v43, %v567_v41  ;;  %v546_v48 = vpop.f32.mrb[14].mxu0  ;;  %v570_v49 = vpop.f32.mrb[14].mxu1 }
 0x110   :  { %v506_v45 = vpack.c.bf16 %v356_v39, %v356_v39  ;;  %v547_v50 = vpop.f32.mrb[15].mxu0  ;;  %v571_v51 = vpop.f32.mrb[15].mxu1 }
 0x111   :  { %429 = vst.msk [vmem:[%s833_s3 + $0x14] sm:$0xf] %vm423_vm0, %v498_v44  ;;  %v305_v52 = vadd.f32 %v545_v46, %v748_v34  ;;  %v337_v53 = vadd.f32 %v569_v47, %v748_v34  ;;  %v548_v54 = vadd.f32 %v547_v50, %v546_v48  ;;  %v572_v55 = vadd.f32 %v571_v51, %v570_v49 }
 0x112   :  { %437 = vst.msk [vmem:[%s833_s3 + $0x34] sm:$0xf] %vm423_vm0, %v506_v45 }
 0x113   :  { %v349_v56 = vmax.f32 %v305_v52, 0.0  ;;  %v357_v57 = vmax.f32 %v337_v53, 0.0  ;;  %v308_v58 = vadd.f32 %v548_v54, %v748_v34  ;;  %v340_v59 = vadd.f32 %v572_v55, %v748_v34 }
 0x115   :  { %v499_v60 = vpack.c.bf16 %v349_v56, %v349_v56  ;;  %v507_v61 = vpack.c.bf16 %v357_v57, %v357_v57  ;;  %v350_v62 = vmax.f32 %v308_v58, 0.0  ;;  %v358_v63 = vmax.f32 %v340_v59, 0.0 }
 0x117   :  { %430 = vst.msk [vmem:[%s833_s3 + $0x18] sm:$0xf] %vm423_vm0, %v499_v60  ;;  %438 = vst.msk [vmem:[%s833_s3 + $0x38] sm:$0xf] %vm423_vm0, %v507_v61  ;;  %v500_v0 = vpack.c.bf16 %v350_v62, %v350_v62  ;;  %v508_v1 = vpack.c.bf16 %v358_v63, %v358_v63 }
 0x119   :  { %431 = vst.msk [vmem:[%s833_s3 + $0x1c] sm:$0xf] %vm423_vm0, %v500_v0  ;;  %439 = vst.msk [vmem:[%s833_s3 + $0x3c] sm:$0xf] %vm423_vm0, %v508_v1 }

// kernel: model_forward.25
= control target key start
LH: loop header
LB: loop body
LE: loop exit
PB: predicated region body
PF: predicated region fallthrough
CT: control target
= control target key end

     0   :  { %v1045_v1 = vmov 0   ;;  %vm395_vm0 = vcmask 261120   ;;  %s1421_s1 = inlined_call_operand.vmem [shape: bf16[288,256], index: 1, kind: input, shape index: {}]   ;;  %s1422_s0 = inlined_call_operand.vmem [shape: bf16[128,288], index: 0, kind: input, shape index: {}]   ;;  %s1423_s2 = inlined_call_operand.vmem [shape: f32[1,256], index: 2, kind: input, shape index: {}]   ;;  %s1424_s3 = inlined_call_operand.vmem [shape: bf16[128,256], index: 3, kind: output, shape index: {}]  }
   0x1   :  { %v959_v0 = vld [vmem:[%s1421_s1 + $0x4] ss:$8 sps:$4 sm:$0xff]   ;;  %565 = vmatprep.mubr.bf16.mxu0 %v1045_v1  ;;  %v961_v2 = vld [vmem:[%s1421_s1] ss:$8 sps:$4 sm:$0xff]   ;;  %v962_v3 = vld [vmem:[%s1421_s1 + $0x14] ss:$8 sps:$4 sm:$0xff]  }
   0x2   :  { %420 = vmatprep.subr.bf16.mxu1 %v959_v0  ;;  %v964_v4 = vld [vmem:[%s1421_s1 + $0x10] ss:$8 sps:$4 sm:$0xff]   ;;  %v965_v5 = vld [vmem:[%s1421_s1 + $0x24] ss:$8 sps:$4 sm:$0xff]   ;;  %v967_v6 = vld [vmem:[%s1421_s1 + $0x20] ss:$8 sps:$4 sm:$0xff]  }
   0x3   :  { %421 = vmatpush1.bf16.msra.mxu1 %v961_v2  ;;  %v968_v7 = vld [vmem:[%s1421_s1 + $0x34] ss:$8 sps:$4 sm:$0xff]   ;;  %v970_v8 = vld [vmem:[%s1421_s1 + $0x30] ss:$8 sps:$4 sm:$0xff]   ;;  %v971_v9 = vld [vmem:[%s1421_s1 + $0x44] ss:$8 sps:$4 sm:$0xff]  }
   0x4   :  { %422 = vmatprep.subr.bf16.mxu1 %v962_v3  ;;  %v973_v10 = vld [vmem:[%s1421_s1 + $0x40] ss:$8 sps:$4 sm:$0xff]   ;;  %v974_v11 = vld [vmem:[%s1421_s1 + $0x54] ss:$8 sps:$4 sm:$0xff]   ;;  %v976_v12 = vld [vmem:[%s1421_s1 + $0x50] ss:$8 sps:$4 sm:$0xff]  }
   0x5   :  { %v1001_v13 = vld [vmem:[%s1421_s1 + $0x104] ss:$8 sps:$4 sm:$0xff]   ;;  %v1005_v15 = vld [vmem:[%s1421_s1 + $0x100] ss:$8 sps:$4 sm:$0xff]   ;;  %v1007_v16 = vld [vmem:[%s1421_s1 + $0x114] ss:$8 sps:$4 sm:$0xff]  }
   0x6   :  { %v977_v14 = vld [vmem:[%s1421_s1 + $0x64] ss:$8 sps:$4 sm:$0xff]   ;;  %533 = vmatprep.subr.bf16.mxu0 %v1001_v13  ;;  %v979_v17 = vld [vmem:[%s1421_s1 + $0x60] ss:$8 sps:$4 sm:$0xff]   ;;  %v1011_v18 = vld [vmem:[%s1421_s1 + $0x110] ss:$8 sps:$4 sm:$0xff]  }
   0x7   :  { %423 = vmatpush1.bf16.msra.mxu1 %v964_v4  ;;  %534 = vmatpush1.bf16.msra.mxu0 %v1005_v15  ;;  %v980_v19 = vld [vmem:[%s1421_s1 + $0x74] ss:$8 sps:$4 sm:$0xff]   ;;  %v1015_v20 = vld [vmem:[%s1422_s0 + $0x4] ss:$12 sps:$4 sm:$0xff]   ;;  %v985_v24 = vld [vmem:[%s1421_s1 + $0x80] ss:$8 sps:$4 sm:$0xff]  }
   0x8   :  { %424 = vmatprep.subr.bf16.mxu1 %v965_v5  ;;  %535 = vmatprep.subr.bf16.mxu0 %v1007_v16  ;;  %v1016_v21 = vld [vmem:[%s1422_s0 + $0x8] ss:$12 sps:$4 sm:$0xff]   ;;  %v982_v22 = vld [vmem:[%s1421_s1 + $0x70] ss:$8 sps:$4 sm:$0xff]   ;;  %v983_v23 = vld [vmem:[%s1421_s1 + $0x84] ss:$8 sps:$4 sm:$0xff]  }
   0x9   :  { %452 = vmatprep.mubr.bf16.mxu1 %v1015_v20  ;;  %v986_v25 = vld [vmem:[%s1421_s1 + $0x94] ss:$8 sps:$4 sm:$0xff]   ;;  %v1019_v26 = vld [vmem:[%s1422_s0 + $0x20] ss:$12 sps:$4 sm:$0xff]   ;;  %v988_v27 = vld [vmem:[%s1421_s1 + $0x90] ss:$8 sps:$4 sm:$0xff]  }
   0xa   :  { %v989_v28 = vld [vmem:[%s1421_s1 + $0xa4] ss:$8 sps:$4 sm:$0xff]   ;;  %v991_v29 = vld [vmem:[%s1421_s1 + $0xa0] ss:$8 sps:$4 sm:$0xff]   ;;  %v992_v30 = vld [vmem:[%s1421_s1 + $0xb4] ss:$8 sps:$4 sm:$0xff]  }
   0xb   :  { %425 = vmatpush1.bf16.msra.mxu1 %v967_v6  ;;  %536 = vmatpush1.bf16.msra.mxu0 %v1011_v18  ;;  %v1023_v31 = vld [vmem:[%s1422_s0 + $0x38] ss:$12 sps:$4 sm:$0xff]   ;;  %v997_v34 = vld [vmem:[%s1421_s1 + $0xc0] ss:$8 sps:$4 sm:$0xff]   ;;  %v998_v35 = vld [vmem:[%s1421_s1 + $0xd4] ss:$8 sps:$4 sm:$0xff]  }
   0xc   :  { %426 = vmatprep.subr.bf16.mxu1 %v968_v7  ;;  %v994_v32 = vld [vmem:[%s1421_s1 + $0xb0] ss:$8 sps:$4 sm:$0xff]   ;;  %v995_v33 = vld [vmem:[%s1421_s1 + $0xc4] ss:$8 sps:$4 sm:$0xff]   ;;  %v1006_v39 = vld [vmem:[%s1421_s1 + $0xe0] ss:$8 sps:$4 sm:$0xff]  }
   0xd   :  { %v1027_v36 = vld [vmem:[%s1422_s0 + $0x50] ss:$12 sps:$4 sm:$0xff]   ;;  %v1003_v38 = vld [vmem:[%s1421_s1 + $0xe4] ss:$8 sps:$4 sm:$0xff]   ;;  %v1031_v41 = vld [vmem:[%s1422_s0 + $0x68] ss:$12 sps:$4 sm:$0xff]  }
   0xe   :  { %854 = vmatmul.mubr.msk.bf16.vlgmr.msra.gmra.mrb[0].mxu0 %vm395_vm0, %v1016_v21  ;;  %v1000_v37 = vld [vmem:[%s1421_s1 + $0xd0] ss:$8 sps:$4 sm:$0xff]   ;;  %v1009_v40 = vld [vmem:[%s1421_s1 + $0xf4] ss:$8 sps:$4 sm:$0xff]   ;;  %v1013_v43 = vld [vmem:[%s1422_s0] ss:$12 sps:$4 sm:$0xff]  }
   0xf   :  { %427 = vmatpush1.bf16.msra.mxu1 %v970_v8  ;;  %575 = vmatprep.mubr.bf16.mxu0 %v1045_v1  ;;  %v1012_v42 = vld [vmem:[%s1421_s1 + $0xf0] ss:$8 sps:$4 sm:$0xff]   ;;  %v1017_v44 = vld [vmem:[%s1422_s0 + $0x1c] ss:$12 sps:$4 sm:$0xff]   ;;  %v1035_v45 = vld [vmem:[%s1422_s0 + $0x80] ss:$12 sps:$4 sm:$0xff]  }
  0x10   :  { %428 = vmatprep.subr.bf16.mxu1 %v971_v9  ;;  %v1020_v46 = vld [vmem:[%s1422_s0 + $0x18] ss:$12 sps:$4 sm:$0xff]   ;;  %v1021_v47 = vld [vmem:[%s1422_s0 + $0x34] ss:$12 sps:$4 sm:$0xff]   ;;  %v1024_v49 = vld [vmem:[%s1422_s0 + $0x30] ss:$12 sps:$4 sm:$0xff]   ;;  %v85_v9 = vlaneseq }
  0x11   :  { %v1039_v48 = vld [vmem:[%s1422_s0 + $0x98] ss:$12 sps:$4 sm:$0xff]   ;;  %v1043_v51 = vld [vmem:[%s1422_s0 + $0xb0] ss:$12 sps:$4 sm:$0xff]   ;;  %v1028_v52 = vld [vmem:[%s1422_s0 + $0x48] ss:$12 sps:$4 sm:$0xff]  }
  0x12   :  { %v1025_v50 = vld [vmem:[%s1422_s0 + $0x4c] ss:$12 sps:$4 sm:$0xff]   ;;  %v1029_v53 = vld [vmem:[%s1422_s0 + $0x64] ss:$12 sps:$4 sm:$0xff]   ;;  %v1033_v55 = vld [vmem:[%s1422_s0 + $0x7c] ss:$12 sps:$4 sm:$0xff]  }
  0x13   :  { %429 = vmatpush1.bf16.msra.mxu1 %v973_v10  ;;  %v1032_v54 = vld [vmem:[%s1422_s0 + $0x60] ss:$12 sps:$4 sm:$0xff]   ;;  %v1036_v56 = vld [vmem:[%s1422_s0 + $0x78] ss:$12 sps:$4 sm:$0xff]   ;;  %v1040_v58 = vld [vmem:[%s1422_s0 + $0x90] ss:$12 sps:$4 sm:$0xff]  }
  0x14   :  { %430 = vmatprep.subr.bf16.mxu1 %v974_v11  ;;  %v1037_v57 = vld [vmem:[%s1422_s0 + $0x94] ss:$12 sps:$4 sm:$0xff]   ;;  %v1041_v59 = vld [vmem:[%s1422_s0 + $0xac] ss:$12 sps:$4 sm:$0xff]  }
  0x15   :  { %v1044_v60 = vld [vmem:[%s1422_s0 + $0xa8] ss:$12 sps:$4 sm:$0xff]   ;;  %v83_v16 = vld [vmem:[%s1423_s2] sm:$0x3] }
  0x16   :  { %855 = vmatmul.mubr.msk.bf16.gmra.mrb[4].mxu0 %vm395_vm0, %v1019_v26 }
  0x17   :  { %431 = vmatpush1.bf16.msra.mxu1 %v976_v12  ;;  %585 = vmatprep.mubr.bf16.mxu0 %v1045_v1  ;;  %v86_v12 = vshrl.u32 %v85_v9, 7 }
  0x18   :  { %432 = vmatprep.subr.bf16.mxu1 %v977_v14 }
  0x19   :  { %v87_v15 = vsub.s32 0, %v86_v12 }
  0x1b   :  { %433 = vmatpush1.bf16.msra.mxu1 %v979_v17  ;;  %v91_v17 = vsub.s32 1, %v86_v12  ;;  %v1285_v20 = vrot.slane %v83_v16, %v87_v15 }
  0x1c   :  { %434 = vmatprep.subr.bf16.mxu1 %v980_v19 }
  0x1e   :  { %856 = vmatmul.mubr.msk.bf16.gmra.mrb[8].mxu0 %vm395_vm0, %v1023_v31 }
  0x1f   :  { %435 = vmatpush1.bf16.msra.mxu1 %v982_v22  ;;  %595 = vmatprep.mubr.bf16.mxu0 %v1045_v1  ;;  %v1289_v22 = vrot.slane %v83_v16, %v91_v17 }
  0x20   :  { %436 = vmatprep.subr.bf16.mxu1 %v983_v23 }
  0x23   :  { %437 = vmatpush1.bf16.msra.mxu1 %v985_v24 }
  0x24   :  { %438 = vmatprep.subr.bf16.mxu1 %v986_v25 }
  0x26   :  { %857 = vmatmul.mubr.msk.bf16.gmra.mrb[12].mxu0 %vm395_vm0, %v1027_v36 }
  0x27   :  { %439 = vmatpush1.bf16.msra.mxu1 %v988_v27  ;;  %605 = vmatprep.mubr.bf16.mxu0 %v1045_v1 }
  0x28   :  { %440 = vmatprep.subr.bf16.mxu1 %v989_v28 }
  0x2b   :  { %441 = vmatpush1.bf16.msra.mxu1 %v991_v29 }
  0x2c   :  { %442 = vmatprep.subr.bf16.mxu1 %v992_v30 }
  0x2e   :  { %858 = vmatmul.mubr.msk.bf16.gmra.mrb[16].mxu0 %vm395_vm0, %v1031_v41 }
  0x2f   :  { %443 = vmatpush1.bf16.msra.mxu1 %v994_v32  ;;  %615 = vmatprep.mubr.bf16.mxu0 %v1045_v1 }
  0x30   :  { %444 = vmatprep.subr.bf16.mxu1 %v995_v33 }
  0x33   :  { %445 = vmatpush1.bf16.msra.mxu1 %v997_v34 }
  0x34   :  { %446 = vmatprep.subr.bf16.mxu1 %v998_v35 }
  0x36   :  { %859 = vmatmul.mubr.msk.bf16.gmra.mrb[20].mxu0 %vm395_vm0, %v1035_v45 }
  0x37   :  { %447 = vmatpush1.bf16.msra.mxu1 %v1000_v37  ;;  %625 = vmatprep.mubr.bf16.mxu0 %v1045_v1 }
  0x38   :  { %448 = vmatprep.subr.bf16.mxu1 %v1003_v38 }
  0x3b   :  { %449 = vmatpush1.bf16.msra.mxu1 %v1006_v39 }
  0x3c   :  { %450 = vmatprep.subr.bf16.mxu1 %v1009_v40 }
  0x3e   :  { %860 = vmatmul.mubr.msk.bf16.gmra.mrb[24].mxu0 %vm395_vm0, %v1039_v48 }
  0x3f   :  { %451 = vmatpush1.bf16.msra.mxu1 %v1012_v42  ;;  %635 = vmatprep.mubr.bf16.mxu0 %v1045_v1 }
  0x42   :  { %453 = vmatmul.mubr.bf16.vlgmr.msra.gmra.mrb[0].mxu1 %v1013_v43 }
  0x43   :  { %462 = vmatprep.mubr.bf16.mxu1 %v1017_v44 }
  0x46   :  { %861 = vmatmul.mubr.msk.bf16.gmra.mrb[28].mxu0 %vm395_vm0, %v1043_v51 }
  0x4a   :  { %463 = vmatmul.mubr.bf16.gmra.mrb[4].mxu1 %v1020_v46 }
  0x4b   :  { %472 = vmatprep.mubr.bf16.mxu1 %v1021_v47 }
  0x52   :  { %473 = vmatmul.mubr.bf16.gmra.mrb[8].mxu1 %v1024_v49 }
  0x53   :  { %482 = vmatprep.mubr.bf16.mxu1 %v1025_v50 }
  0x5a   :  { %483 = vmatmul.mubr.bf16.gmra.mrb[12].mxu1 %v1028_v52 }
  0x5b   :  { %492 = vmatprep.mubr.bf16.mxu1 %v1029_v53 }
  0x62   :  { %493 = vmatmul.mubr.bf16.gmra.mrb[16].mxu1 %v1032_v54 }
  0x63   :  { %502 = vmatprep.mubr.bf16.mxu1 %v1033_v55 }
  0x6a   :  { %503 = vmatmul.mubr.bf16.gmra.mrb[20].mxu1 %v1036_v56 }
  0x6b   :  { %512 = vmatprep.mubr.bf16.mxu1 %v1037_v57 }
  0x72   :  { %513 = vmatmul.mubr.bf16.gmra.mrb[24].mxu1 %v1040_v58 }
  0x73   :  { %522 = vmatprep.mubr.bf16.mxu1 %v1041_v59 }
  0x7a   :  { %523 = vmatmul.mubr.bf16.gmra.mrb[28].mxu1 %v1044_v60 }
  0xe1   :  { %v567_v61 = vpop.f32.mrb[0].mxu0 }
  0xe2   :  { %v569_v62 = vpop.f32.mrb[1].mxu0 }
  0xe3   :  { %v571_v63 = vpop.f32.mrb[2].mxu0 }
  0xe4   :  { %v573_v0 = vpop.f32.mrb[3].mxu0 }
  0xe9   :  { %v577_v1 = vpop.f32.mrb[4].mxu0 }
  0xea   :  { %v579_v2 = vpop.f32.mrb[5].mxu0 }
  0xeb   :  { %v581_v3 = vpop.f32.mrb[6].mxu0 }
  0xec   :  { %v583_v4 = vpop.f32.mrb[7].mxu0 }
  0xf1   :  { %v1262_v5 = vpop.f32.mrb[8].mxu0 }
  0xf2   :  { %v1264_v6 = vpop.f32.mrb[9].mxu0 }
  0xf3   :  { %v1266_v7 = vpop.f32.mrb[10].mxu0 }
  0xf4   :  { %v1268_v8 = vpop.f32.mrb[11].mxu0 }
  0xf9   :  { %v1270_v10 = vpop.f32.mrb[12].mxu0 }
  0xfa   :  { %v1272_v11 = vpop.f32.mrb[13].mxu0 }
  0xfb   :  { %v1274_v13 = vpop.f32.mrb[14].mxu0 }
  0xfc   :  { %v1276_v14 = vpop.f32.mrb[15].mxu0 }
 0x101   :  { %v1281_v18 = vpop.f32.mrb[16].mxu0 }
 0x102   :  { %v1283_v19 = vpop.f32.mrb[17].mxu0 }
 0x103   :  { %v1287_v21 = vpop.f32.mrb[18].mxu0 }
 0x104   :  { %v1291_v23 = vpop.f32.mrb[19].mxu0 }
 0x109   :  { %v1296_v32 = vpop.f32.mrb[20].mxu0 }
 0x10a   :  { %v1299_v35 = vpop.f32.mrb[21].mxu0 }
 0x10b   :  { %v1301_v38 = vpop.f32.mrb[22].mxu0 }
 0x10c   :  { %v1303_v41 = vpop.f32.mrb[23].mxu0 }
 0x111   :  { %v1311_v54 = vpop.f32.mrb[24].mxu0 }
 0x112   :  { %v1317_v57 = vpop.f32.mrb[25].mxu0 }
 0x113   :  { %v1319_v60 = vpop.f32.mrb[26].mxu0 }
 0x115   :  { %v454_v24 = vpop.f32.mrb[0].mxu1 }
 0x116   :  { %v455_v25 = vadd.f32 %v454_v24, %v1285_v20  ;;  %v456_v26 = vpop.f32.mrb[1].mxu1 }
 0x117   :  { %v457_v27 = vadd.f32 %v456_v26, %v1289_v22  ;;  %v458_v28 = vpop.f32.mrb[2].mxu1 }
 0x118   :  { %v568_v29 = vadd.f32 %v567_v61, %v455_v25  ;;  %v459_v30 = vadd.f32 %v458_v28, %v1285_v20  ;;  %v460_v31 = vpop.f32.mrb[3].mxu1 }
 0x119   :  { %v570_v33 = vadd.f32 %v569_v62, %v457_v27  ;;  %v461_v34 = vadd.f32 %v460_v31, %v1289_v22 }
 0x11a   :  { %v646_v36 = vmax.f32 %v568_v29, 0.0  ;;  %v572_v37 = vadd.f32 %v571_v63, %v459_v30  ;;  %v1321_v63 = vpop.f32.mrb[27].mxu0 }
 0x11b   :  { %v647_v39 = vmax.f32 %v570_v33, 0.0  ;;  %v574_v40 = vadd.f32 %v573_v0, %v461_v34  ;;  %v1330_v26 = vpop.f32.mrb[28].mxu0 }
 0x11c   :  { %v648_v42 = vmax.f32 %v572_v37, 0.0  ;;  %v1337_v29 = vpop.f32.mrb[29].mxu0 }
 0x11d   :  { %v878_v43 = vpack.c.bf16 %v647_v39, %v646_v36  ;;  %v649_v44 = vmax.f32 %v574_v40, 0.0  ;;  %v464_v45 = vpop.f32.mrb[4].mxu1  ;;  %v1340_v33 = vpop.f32.mrb[30].mxu0 }
 0x11e   :  { %v465_v46 = vadd.f32 %v464_v45, %v1285_v20  ;;  %v466_v47 = vpop.f32.mrb[5].mxu1  ;;  %v1343_v36 = vpop.f32.mrb[31].mxu0 }
 0x11f   :  { %774 = vst [vmem:[%s1424_s3] sm:$0xff] %v878_v43  ;;  %v879_v48 = vpack.c.bf16 %v649_v44, %v648_v42  ;;  %v467_v49 = vadd.f32 %v466_v47, %v1289_v22  ;;  %v468_v50 = vpop.f32.mrb[6].mxu1 }
 0x120   :  { %v578_v51 = vadd.f32 %v577_v1, %v465_v46  ;;  %v469_v52 = vadd.f32 %v468_v50, %v1285_v20  ;;  %v470_v53 = vpop.f32.mrb[7].mxu1 }
 0x121   :  { %775 = vst [vmem:[%s1424_s3 + $0x8] sm:$0xff] %v879_v48  ;;  %v580_v55 = vadd.f32 %v579_v2, %v467_v49  ;;  %v471_v56 = vadd.f32 %v470_v53, %v1289_v22 }
 0x122   :  { %v650_v58 = vmax.f32 %v578_v51, 0.0  ;;  %v582_v59 = vadd.f32 %v581_v3, %v469_v52 }
 0x123   :  { %v651_v61 = vmax.f32 %v580_v55, 0.0  ;;  %v584_v62 = vadd.f32 %v583_v4, %v471_v56 }
 0x124   :  { %v652_v0 = vmax.f32 %v582_v59, 0.0 }
 0x125   :  { %v880_v1 = vpack.c.bf16 %v651_v61, %v650_v58  ;;  %v653_v9 = vmax.f32 %v584_v62, 0.0  ;;  %v474_v12 = vpop.f32.mrb[8].mxu1 }
 0x126   :  { %v475_v15 = vadd.f32 %v474_v12, %v1285_v20  ;;  %v476_v16 = vpop.f32.mrb[9].mxu1 }
 0x127   :  { %776 = vst [vmem:[%s1424_s3 + $0x10] sm:$0xff] %v880_v1  ;;  %v881_v2 = vpack.c.bf16 %v653_v9, %v652_v0  ;;  %v477_v3 = vadd.f32 %v476_v16, %v1289_v22  ;;  %v478_v17 = vpop.f32.mrb[10].mxu1 }
 0x128   :  { %v588_v24 = vadd.f32 %v1262_v5, %v475_v15  ;;  %v479_v4 = vadd.f32 %v478_v17, %v1285_v20  ;;  %v480_v25 = vpop.f32.mrb[11].mxu1 }
 0x129   :  { %777 = vst [vmem:[%s1424_s3 + $0x18] sm:$0xff] %v881_v2  ;;  %v590_v27 = vadd.f32 %v1264_v6, %v477_v3  ;;  %v481_v28 = vadd.f32 %v480_v25, %v1289_v22 }
 0x12a   :  { %v654_v30 = vmax.f32 %v588_v24, 0.0  ;;  %v592_v31 = vadd.f32 %v1266_v7, %v479_v4 }
 0x12b   :  { %v655_v5 = vmax.f32 %v590_v27, 0.0  ;;  %v594_v34 = vadd.f32 %v1268_v8, %v481_v28 }
 0x12c   :  { %v656_v37 = vmax.f32 %v592_v31, 0.0 }
 0x12d   :  { %v882_v39 = vpack.c.bf16 %v655_v5, %v654_v30  ;;  %v657_v40 = vmax.f32 %v594_v34, 0.0  ;;  %v484_v42 = vpop.f32.mrb[12].mxu1 }
 0x12e   :  { %v485_v6 = vadd.f32 %v484_v42, %v1285_v20  ;;  %v486_v43 = vpop.f32.mrb[13].mxu1 }
 0x12f   :  { %778 = vst [vmem:[%s1424_s3 + $0x20] sm:$0xff] %v882_v39  ;;  %v883_v44 = vpack.c.bf16 %v657_v40, %v656_v37  ;;  %v487_v7 = vadd.f32 %v486_v43, %v1289_v22  ;;  %v488_v45 = vpop.f32.mrb[14].mxu1 }
 0x130   :  { %v598_v46 = vadd.f32 %v1270_v10, %v485_v6  ;;  %v489_v8 = vadd.f32 %v488_v45, %v1285_v20  ;;  %v490_v47 = vpop.f32.mrb[15].mxu1 }
 0x131   :  { %779 = vst [vmem:[%s1424_s3 + $0x28] sm:$0xff] %v883_v44  ;;  %v600_v48 = vadd.f32 %v1272_v11, %v487_v7  ;;  %v491_v49 = vadd.f32 %v490_v47, %v1289_v22 }
 0x132   :  { %v658_v50 = vmax.f32 %v598_v46, 0.0  ;;  %v602_v51 = vadd.f32 %v1274_v13, %v489_v8 }
 0x133   :  { %v659_v52 = vmax.f32 %v600_v48, 0.0  ;;  %v604_v53 = vadd.f32 %v1276_v14, %v491_v49 }
 0x134   :  { %v660_v55 = vmax.f32 %v602_v51, 0.0 }
 0x135   :  { %v884_v56 = vpack.c.bf16 %v659_v52, %v658_v50  ;;  %v661_v10 = vmax.f32 %v604_v53, 0.0  ;;  %v494_v58 = vpop.f32.mrb[16].mxu1 }
 0x136   :  { %v495_v59 = vadd.f32 %v494_v58, %v1285_v20  ;;  %v496_v61 = vpop.f32.mrb[17].mxu1 }
 0x137   :  { %780 = vst [vmem:[%s1424_s3 + $0x30] sm:$0xff] %v884_v56  ;;  %v885_v11 = vpack.c.bf16 %v661_v10, %v660_v55  ;;  %v497_v62 = vadd.f32 %v496_v61, %v1289_v22  ;;  %v498_v0 = vpop.f32.mrb[18].mxu1 }
 0x138   :  { %v608_v13 = vadd.f32 %v1281_v18, %v495_v59  ;;  %v499_v1 = vadd.f32 %v498_v0, %v1285_v20  ;;  %v500_v14 = vpop.f32.mrb[19].mxu1 }
 0x139   :  { %781 = vst [vmem:[%s1424_s3 + $0x38] sm:$0xff] %v885_v11  ;;  %v610_v9 = vadd.f32 %v1283_v19, %v497_v62  ;;  %v501_v12 = vadd.f32 %v500_v14, %v1289_v22 }
 0x13a   :  { %v662_v15 = vmax.f32 %v608_v13, 0.0  ;;  %v612_v16 = vadd.f32 %v1287_v21, %v499_v1 }
 0x13b   :  { %v663_v2 = vmax.f32 %v610_v9, 0.0  ;;  %v614_v3 = vadd.f32 %v1291_v23, %v501_v12 }
 0x13c   :  { %v664_v17 = vmax.f32 %v612_v16, 0.0 }
 0x13d   :  { %v886_v24 = vpack.c.bf16 %v663_v2, %v662_v15  ;;  %v665_v18 = vmax.f32 %v614_v3, 0.0  ;;  %v504_v4 = vpop.f32.mrb[20].mxu1 }
 0x13e   :  { %v505_v25 = vadd.f32 %v504_v4, %v1285_v20  ;;  %v506_v27 = vpop.f32.mrb[21].mxu1 }
 0x13f   :  { %782 = vst [vmem:[%s1424_s3 + $0x40] sm:$0xff] %v886_v24  ;;  %v887_v19 = vpack.c.bf16 %v665_v18, %v664_v17  ;;  %v507_v28 = vadd.f32 %v506_v27, %v1289_v22  ;;  %v508_v30 = vpop.f32.mrb[22].mxu1 }
 0x140   :  { %v618_v21 = vadd.f32 %v1296_v32, %v505_v25  ;;  %v509_v31 = vadd.f32 %v508_v30, %v1285_v20  ;;  %v510_v23 = vpop.f32.mrb[23].mxu1 }
 0x141   :  { %783 = vst [vmem:[%s1424_s3 + $0x48] sm:$0xff] %v887_v19  ;;  %v620_v5 = vadd.f32 %v1299_v35, %v507_v28  ;;  %v511_v34 = vadd.f32 %v510_v23, %v1289_v22 }
 0x142   :  { %v666_v37 = vmax.f32 %v618_v21, 0.0  ;;  %v622_v39 = vadd.f32 %v1301_v38, %v509_v31 }
 0x143   :  { %v667_v40 = vmax.f32 %v620_v5, 0.0  ;;  %v624_v42 = vadd.f32 %v1303_v41, %v511_v34 }
 0x144   :  { %v668_v6 = vmax.f32 %v622_v39, 0.0 }
 0x145   :  { %v888_v43 = vpack.c.bf16 %v667_v40, %v666_v37  ;;  %v669_v32 = vmax.f32 %v624_v42, 0.0  ;;  %v514_v44 = vpop.f32.mrb[24].mxu1 }
 0x146   :  { %v515_v7 = vadd.f32 %v514_v44, %v1285_v20  ;;  %v516_v45 = vpop.f32.mrb[25].mxu1 }
 0x147   :  { %784 = vst [vmem:[%s1424_s3 + $0x50] sm:$0xff] %v888_v43  ;;  %v889_v35 = vpack.c.bf16 %v669_v32, %v668_v6  ;;  %v517_v46 = vadd.f32 %v516_v45, %v1289_v22  ;;  %v518_v8 = vpop.f32.mrb[26].mxu1 }
 0x148   :  { %v628_v38 = vadd.f32 %v1311_v54, %v515_v7  ;;  %v519_v47 = vadd.f32 %v518_v8, %v1285_v20  ;;  %v520_v41 = vpop.f32.mrb[27].mxu1 }
 0x149   :  { %785 = vst [vmem:[%s1424_s3 + $0x58] sm:$0xff] %v889_v35  ;;  %v630_v48 = vadd.f32 %v1317_v57, %v517_v46  ;;  %v521_v49 = vadd.f32 %v520_v41, %v1289_v22 }
 0x14a   :  { %v670_v50 = vmax.f32 %v628_v38, 0.0  ;;  %v632_v51 = vadd.f32 %v1319_v60, %v519_v47 }
 0x14b   :  { %v671_v52 = vmax.f32 %v630_v48, 0.0  ;;  %v634_v53 = vadd.f32 %v1321_v63, %v521_v49 }
 0x14c   :  { %v672_v55 = vmax.f32 %v632_v51, 0.0 }
 0x14d   :  { %v890_v56 = vpack.c.bf16 %v671_v52, %v670_v50  ;;  %v673_v54 = vmax.f32 %v634_v53, 0.0  ;;  %v524_v10 = vpop.f32.mrb[28].mxu1 }
 0x14e   :  { %v525_v58 = vadd.f32 %v524_v10, %v1285_v20  ;;  %v526_v59 = vpop.f32.mrb[29].mxu1 }
 0x14f   :  { %786 = vst [vmem:[%s1424_s3 + $0x60] sm:$0xff] %v890_v56  ;;  %v891_v57 = vpack.c.bf16 %v673_v54, %v672_v55  ;;  %v527_v61 = vadd.f32 %v526_v59, %v1289_v22  ;;  %v528_v11 = vpop.f32.mrb[30].mxu1 }
 0x150   :  { %v638_v60 = vadd.f32 %v1330_v26, %v525_v58  ;;  %v529_v62 = vadd.f32 %v528_v11, %v1285_v20  ;;  %v530_v63 = vpop.f32.mrb[31].mxu1 }
 0x151   :  { %787 = vst [vmem:[%s1424_s3 + $0x68] sm:$0xff] %v891_v57  ;;  %v640_v0 = vadd.f32 %v1337_v29, %v527_v61  ;;  %v531_v13 = vadd.f32 %v530_v63, %v1289_v22 }
 0x152   :  { %v674_v1 = vmax.f32 %v638_v60, 0.0  ;;  %v642_v14 = vadd.f32 %v1340_v33, %v529_v62 }
 0x153   :  { %v675_v9 = vmax.f32 %v640_v0, 0.0  ;;  %v644_v12 = vadd.f32 %v1343_v36, %v531_v13 }
 0x154   :  { %v676_v15 = vmax.f32 %v642_v14, 0.0 }
 0x155   :  { %v892_v16 = vpack.c.bf16 %v675_v9, %v674_v1  ;;  %v677_v26 = vmax.f32 %v644_v12, 0.0 }
 0x157   :  { %788 = vst [vmem:[%s1424_s3 + $0x70] sm:$0xff] %v892_v16  ;;  %v893_v20 = vpack.c.bf16 %v677_v26, %v676_v15 }
 0x159   :  { %789 = vst [vmem:[%s1424_s3 + $0x78] sm:$0xff] %v893_v20 }

// kernel: model_forward.26
= control target key start
LH: loop header
LB: loop body
LE: loop exit
PB: predicated region body
PF: predicated region fallthrough
CT: control target
= control target key end

     0   :  { %vm423_vm0 = vcmask 388096   ;;  %s830_s1 = inlined_call_operand.vmem [shape: bf16[256,48], index: 1, kind: input, shape index: {}]   ;;  %s831_s0 = inlined_call_operand.vmem [shape: bf16[128,256], index: 0, kind: input, shape index: {}]   ;;  %s832_s2 = inlined_call_operand.vmem [shape: f32[1,48], index: 2, kind: input, shape index: {}]   ;;  %s833_s3 = inlined_call_operand.vmem [shape: bf16[128,48], index: 3, kind: output, shape index: {}]  }
   0x1   :  { %v589_v0 = vld [vmem:[%s830_s1 + $0x40] sm:$0xff]   ;;  %v591_v2 = vld [vmem:[%s830_s1 + $0x48] sm:$0xff]   ;;  %v593_v4 = vld [vmem:[%s830_s1 + $0x50] sm:$0xff]  }
   0x2   :  { %v590_v1 = vld [vmem:[%s830_s1] sm:$0xff]   ;;  %509 = vmatprep.subr.bf16.mxu0 %v589_v0  ;;  %573 = vmatprep.subr.bf16.mxu1 %v589_v0  ;;  %v592_v3 = vld [vmem:[%s830_s1 + $0x8] sm:$0xff]   ;;  %v594_v5 = vld [vmem:[%s830_s1 + $0x10] sm:$0xff]  }
   0x3   :  { %510 = vmatpush3.bf16.msra.mxu0 %v590_v1  ;;  %581 = vmatpush3.bf16.msra.mxu1 %v590_v1  ;;  %v595_v6 = vld [vmem:[%s830_s1 + $0x58] sm:$0xff]   ;;  %v597_v8 = vld [vmem:[%s830_s1 + $0x60] sm:$0xff]   ;;  %v599_v10 = vld [vmem:[%s830_s1 + $0x68] sm:$0xff]  }
   0x4   :  { %511 = vmatprep.subr.bf16.mxu0 %v591_v2  ;;  %574 = vmatprep.subr.bf16.mxu1 %v591_v2  ;;  %v596_v7 = vld [vmem:[%s830_s1 + $0x18] sm:$0xff]   ;;  %v598_v9 = vld [vmem:[%s830_s1 + $0x20] sm:$0xff]   ;;  %v600_v13 = vld [vmem:[%s830_s1 + $0x28] sm:$0xff]  }
   0x5   :  { %v607_v11 = vld [vmem:[%s831_s0 + $0x4] ss:$8 sps:$4 sm:$0xff]   ;;  %v601_v14 = vld [vmem:[%s830_s1 + $0x70] sm:$0xff]   ;;  %v603_v16 = vld [vmem:[%s830_s1 + $0x78] sm:$0xff]  }
   0x6   :  { %v610_v12 = vld [vmem:[%s831_s0 + $0x44] ss:$8 sps:$4 sm:$0xff]   ;;  %278 = vmatprep.mubr.bf16.mxu0 %v607_v11  ;;  %v602_v15 = vld [vmem:[%s830_s1 + $0x30] sm:$0xff]   ;;  %v604_v17 = vld [vmem:[%s830_s1 + $0x38] sm:$0xff]  }
   0x7   :  { %512 = vmatpush3.bf16.msra.mxu0 %v592_v3  ;;  %582 = vmatpush3.bf16.msra.mxu1 %v592_v3  ;;  %v605_v18 = vld [vmem:[%s831_s0] ss:$8 sps:$4 sm:$0xff]   ;;  %v611_v20 = vld [vmem:[%s831_s0 + $0x14] ss:$8 sps:$4 sm:$0xff]   ;;  %v615_v22 = vld [vmem:[%s831_s0 + $0x10] ss:$8 sps:$4 sm:$0xff]  }
   0x8   :  { %513 = vmatprep.subr.bf16.mxu0 %v593_v4  ;;  %575 = vmatprep.subr.bf16.mxu1 %v593_v4  ;;  %v608_v19 = vld [vmem:[%s831_s0 + $0x40] ss:$8 sps:$4 sm:$0xff]   ;;  %v613_v21 = vld [vmem:[%s831_s0 + $0x54] ss:$8 sps:$4 sm:$0xff]   ;;  %v616_v23 = vld [vmem:[%s831_s0 + $0x50] ss:$8 sps:$4 sm:$0xff]  }
   0x9   :  { %310 = vmatprep.mubr.bf16.mxu1 %v610_v12  ;;  %v617_v24 = vld [vmem:[%s831_s0 + $0x24] ss:$8 sps:$4 sm:$0xff]   ;;  %v621_v26 = vld [vmem:[%s831_s0 + $0x20] ss:$8 sps:$4 sm:$0xff]   ;;  %v623_v28 = vld [vmem:[%s831_s0 + $0x34] ss:$8 sps:$4 sm:$0xff]  }
   0xa   :  { %v619_v25 = vld [vmem:[%s831_s0 + $0x64] ss:$8 sps:$4 sm:$0xff]   ;;  %v622_v27 = vld [vmem:[%s831_s0 + $0x60] ss:$8 sps:$4 sm:$0xff]   ;;  %v625_v29 = vld [vmem:[%s831_s0 + $0x74] ss:$8 sps:$4 sm:$0xff]  }
   0xb   :  { %514 = vmatpush3.bf16.msra.mxu0 %v594_v5  ;;  %583 = vmatpush3.bf16.msra.mxu1 %v594_v5  ;;  %v627_v30 = vld [vmem:[%s831_s0 + $0x30] ss:$8 sps:$4 sm:$0xff]   ;;  %v748_v34 = vld [vmem:[%s832_s2] ss:$0 sm:$0xff] }
   0xc   :  { %515 = vmatprep.subr.bf16.mxu0 %v595_v6  ;;  %576 = vmatprep.subr.bf16.mxu1 %v595_v6  ;;  %v628_v31 = vld [vmem:[%s831_s0 + $0x70] ss:$8 sps:$4 sm:$0xff]  }
   0xf   :  { %516 = vmatpush3.bf16.msra.mxu0 %v596_v7  ;;  %584 = vmatpush3.bf16.msra.mxu1 %v596_v7 }
  0x10   :  { %517 = vmatprep.subr.bf16.mxu0 %v597_v8  ;;  %577 = vmatprep.subr.bf16.mxu1 %v597_v8 }
  0x13   :  { %518 = vmatpush3.bf16.msra.mxu0 %v598_v9  ;;  %585 = vmatpush3.bf16.msra.mxu1 %v598_v9 }
  0x14   :  { %519 = vmatprep.subr.bf16.mxu0 %v599_v10  ;;  %578 = vmatprep.subr.bf16.mxu1 %v599_v10 }
  0x17   :  { %520 = vmatpush3.bf16.msra.mxu0 %v600_v13  ;;  %586 = vmatpush3.bf16.msra.mxu1 %v600_v13 }
  0x18   :  { %521 = vmatprep.subr.bf16.mxu0 %v601_v14  ;;  %579 = vmatprep.subr.bf16.mxu1 %v601_v14 }
  0x1b   :  { %522 = vmatpush3.bf16.msra.mxu0 %v602_v15  ;;  %587 = vmatpush3.bf16.msra.mxu1 %v602_v15 }
  0x1c   :  { %523 = vmatprep.subr.bf16.mxu0 %v603_v16  ;;  %580 = vmatprep.subr.bf16.mxu1 %v603_v16 }
  0x1f   :  { %524 = vmatpush3.bf16.msra.mxu0 %v604_v17  ;;  %588 = vmatpush3.bf16.msra.mxu1 %v604_v17 }
  0x22   :  { %279 = vmatmul.mubr.bf16.vlgmr.msra.gmra.mrb[0].mxu0 %v605_v18  ;;  %311 = vmatmul.mubr.bf16.vlgmr.msra.gmra.mrb[0].mxu1 %v608_v19 }
  0x23   :  { %286 = vmatprep.mubr.bf16.mxu0 %v611_v20  ;;  %318 = vmatprep.mubr.bf16.mxu1 %v613_v21 }
  0x2a   :  { %287 = vmatmul.mubr.bf16.gmra.mrb[4].mxu0 %v615_v22  ;;  %319 = vmatmul.mubr.bf16.gmra.mrb[4].mxu1 %v616_v23 }
  0x2b   :  { %294 = vmatprep.mubr.bf16.mxu0 %v617_v24  ;;  %326 = vmatprep.mubr.bf16.mxu1 %v619_v25 }
  0x32   :  { %295 = vmatmul.mubr.bf16.gmra.mrb[8].mxu0 %v621_v26  ;;  %327 = vmatmul.mubr.bf16.gmra.mrb[8].mxu1 %v622_v27 }
  0x33   :  { %302 = vmatprep.mubr.bf16.mxu0 %v623_v28  ;;  %334 = vmatprep.mubr.bf16.mxu1 %v625_v29 }
  0x3a   :  { %303 = vmatmul.mubr.bf16.gmra.mrb[12].mxu0 %v627_v30  ;;  %335 = vmatmul.mubr.bf16.gmra.mrb[12].mxu1 %v628_v31 }
  0xf5   :  { %v525_v32 = vpop.f32.mrb[0].mxu0  ;;  %v549_v33 = vpop.f32.mrb[0].mxu1 }
  0xf6   :  { %v526_v35 = vpop.f32.mrb[1].mxu0  ;;  %v550_v36 = vpop.f32.mrb[1].mxu1 }
  0xf7   :  { %v527_v37 = vadd.f32 %v526_v35, %v525_v32  ;;  %v551_v38 = vadd.f32 %v550_v36, %v549_v33  ;;  %v528_v39 = vpop.f32.mrb[2].mxu0  ;;  %v552_v40 = vpop.f32.mrb[2].mxu1 }
  0xf8   :  { %v529_v41 = vpop.f32.mrb[3].mxu0  ;;  %v553_v42 = vpop.f32.mrb[3].mxu1 }
  0xf9   :  { %v281_v43 = vadd.f32 %v527_v37, %v748_v34  ;;  %v313_v44 = vadd.f32 %v551_v38, %v748_v34  ;;  %v530_v45 = vadd.f32 %v529_v41, %v528_v39  ;;  %v554_v46 = vadd.f32 %v553_v42, %v552_v40 }
  0xfb   :  { %v343_v47 = vmax.f32 %v281_v43, 0.0  ;;  %v351_v48 = vmax.f32 %v313_v44, 0.0  ;;  %v284_v49 = vadd.f32 %v530_v45, %v748_v34  ;;  %v316_v50 = vadd.f32 %v554_v46, %v748_v34 }
  0xfd   :  { %v493_v51 = vpack.c.bf16 %v343_v47, %v343_v47  ;;  %v501_v52 = vpack.c.bf16 %v351_v48, %v351_v48  ;;  %v344_v53 = vmax.f32 %v284_v49, 0.0  ;;  %v352_v54 = vmax.f32 %v316_v50, 0.0  ;;  %v531_v55 = vpop.f32.mrb[4].mxu0  ;;  %v555_v56 = vpop.f32.mrb[4].mxu1 }
  0xfe   :  { %v532_v57 = vpop.f32.mrb[5].mxu0  ;;  %v556_v58 = vpop.f32.mrb[5].mxu1 }
  0xff   :  { %424 = vst.msk [vmem:[%s833_s3] sm:$0xf] %vm423_vm0, %v493_v51  ;;  %432 = vst.msk [vmem:[%s833_s3 + $0x20] sm:$0xf] %vm423_vm0, %v501_v52  ;;  %v494_v59 = vpack.c.bf16 %v344_v53, %v344_v53  ;;  %v502_v60 = vpack.c.bf16 %v352_v54, %v352_v54  ;;  %v533_v61 = vadd.f32 %v532_v57, %v531_v55  ;;  %v534_v63 = vpop.f32.mrb[6].mxu0  ;;  %v558_v0 = vpop.f32.mrb[6].mxu1 }
 0x100   :  { %v557_v62 = vadd.f32 %v556_v58, %v555_v56  ;;  %v535_v1 = vpop.f32.mrb[7].mxu0  ;;  %v559_v2 = vpop.f32.mrb[7].mxu1 }
 0x101   :  { %425 = vst.msk [vmem:[%s833_s3 + $0x4] sm:$0xf] %vm423_vm0, %v494_v59  ;;  %433 = vst.msk [vmem:[%s833_s3 + $0x24] sm:$0xf] %vm423_vm0, %v502_v60  ;;  %v289_v3 = vadd.f32 %v533_v61, %v748_v34  ;;  %v536_v5 = vadd.f32 %v535_v1, %v534_v63  ;;  %v560_v6 = vadd.f32 %v559_v2, %v558_v0 }
 0x102   :  { %v321_v4 = vadd.f32 %v557_v62, %v748_v34 }
 0x103   :  { %v345_v7 = vmax.f32 %v289_v3, 0.0  ;;  %v292_v9 = vadd.f32 %v536_v5, %v748_v34  ;;  %v324_v10 = vadd.f32 %v560_v6, %v748_v34 }
 0x104   :  { %v353_v8 = vmax.f32 %v321_v4, 0.0 }
 0x105   :  { %v495_v11 = vpack.c.bf16 %v345_v7, %v345_v7  ;;  %v346_v13 = vmax.f32 %v292_v9, 0.0  ;;  %v354_v14 = vmax.f32 %v324_v10, 0.0  ;;  %v537_v15 = vpop.f32.mrb[8].mxu0  ;;  %v561_v16 = vpop.f32.mrb[8].mxu1 }
 0x106   :  { %v503_v12 = vpack.c.bf16 %v353_v8, %v353_v8  ;;  %v538_v17 = vpop.f32.mrb[9].mxu0  ;;  %v562_v18 = vpop.f32.mrb[9].mxu1 }
 0x107   :  { %426 = vst.msk [vmem:[%s833_s3 + $0x8] sm:$0xf] %vm423_vm0, %v495_v11  ;;  %v496_v19 = vpack.c.bf16 %v346_v13, %v346_v13  ;;  %v504_v20 = vpack.c.bf16 %v354_v14, %v354_v14  ;;  %v539_v21 = vadd.f32 %v538_v17, %v537_v15  ;;  %v563_v22 = vadd.f32 %v562_v18, %v561_v16  ;;  %v540_v23 = vpop.f32.mrb[10].mxu0  ;;  %v564_v24 = vpop.f32.mrb[10].mxu1 }
 0x108   :  { %434 = vst.msk [vmem:[%s833_s3 + $0x28] sm:$0xf] %vm423_vm0, %v503_v12  ;;  %v541_v25 = vpop.f32.mrb[11].mxu0  ;;  %v565_v26 = vpop.f32.mrb[11].mxu1 }
 0x109   :  { %427 = vst.msk [vmem:[%s833_s3 + $0xc] sm:$0xf] %vm423_vm0, %v496_v19  ;;  %435 = vst.msk [vmem:[%s833_s3 + $0x2c] sm:$0xf] %vm423_vm0, %v504_v20  ;;  %v297_v27 = vadd.f32 %v539_v21, %v748_v34  ;;  %v329_v28 = vadd.f32 %v563_v22, %v748_v34  ;;  %v542_v29 = vadd.f32 %v541_v25, %v540_v23 }
 0x10a   :  { %v566_v30 = vadd.f32 %v565_v26, %v564_v24 }
 0x10b   :  { %v347_v31 = vmax.f32 %v297_v27, 0.0  ;;  %v355_v32 = vmax.f32 %v329_v28, 0.0  ;;  %v300_v33 = vadd.f32 %v542_v29, %v748_v34 }
 0x10c   :  { %v332_v35 = vadd.f32 %v566_v30, %v748_v34 }
 0x10d   :  { %v497_v36 = vpack.c.bf16 %v347_v31, %v347_v31  ;;  %v505_v37 = vpack.c.bf16 %v355_v32, %v355_v32  ;;  %v348_v38 = vmax.f32 %v300_v33, 0.0  ;;  %v543_v40 = vpop.f32.mrb[12].mxu0  ;;  %v567_v41 = vpop.f32.mrb[12].mxu1 }
 0x10e   :  { %v356_v39 = vmax.f32 %v332_v35, 0.0  ;;  %v544_v42 = vpop.f32.mrb[13].mxu0  ;;  %v568_v43 = vpop.f32.mrb[13].mxu1 }
 0x10f   :  { %428 = vst.msk [vmem:[%s833_s3 + $0x10] sm:$0xf] %vm423_vm0, %v497_v36  ;;  %436 = vst.msk [vmem:[%s833_s3 + $0x30] sm:$0xf] %vm423_vm0, %v505_v37  ;;  %v498_v44 = vpack.c.bf16 %v348_v38, %v348_v38  ;;  %v545_v46 = vadd.f32 %v544_v42, %v543_v40  ;;  %v569_v47 = vadd.f32 %v568_v43, %v567_v41  ;;  %v546_v48 = vpop.f32.mrb[14].mxu0  ;;  %v570_v49 = vpop.f32.mrb[14].mxu1 }
 0x110   :  { %v506_v45 = vpack.c.bf16 %v356_v39, %v356_v39  ;;  %v547_v50 = vpop.f32.mrb[15].mxu0  ;;  %v571_v51 = vpop.f32.mrb[15].mxu1 }
 0x111   :  { %429 = vst.msk [vmem:[%s833_s3 + $0x14] sm:$0xf] %vm423_vm0, %v498_v44  ;;  %v305_v52 = vadd.f32 %v545_v46, %v748_v34  ;;  %v337_v53 = vadd.f32 %v569_v47, %v748_v34  ;;  %v548_v54 = vadd.f32 %v547_v50, %v546_v48  ;;  %v572_v55 = vadd.f32 %v571_v51, %v570_v49 }
 0x112   :  { %437 = vst.msk [vmem:[%s833_s3 + $0x34] sm:$0xf] %vm423_vm0, %v506_v45 }
 0x113   :  { %v349_v56 = vmax.f32 %v305_v52, 0.0  ;;  %v357_v57 = vmax.f32 %v337_v53, 0.0  ;;  %v308_v58 = vadd.f32 %v548_v54, %v748_v34  ;;  %v340_v59 = vadd.f32 %v572_v55, %v748_v34 }
 0x115   :  { %v499_v60 = vpack.c.bf16 %v349_v56, %v349_v56  ;;  %v507_v61 = vpack.c.bf16 %v357_v57, %v357_v57  ;;  %v350_v62 = vmax.f32 %v308_v58, 0.0  ;;  %v358_v63 = vmax.f32 %v340_v59, 0.0 }
 0x117   :  { %430 = vst.msk [vmem:[%s833_s3 + $0x18] sm:$0xf] %vm423_vm0, %v499_v60  ;;  %438 = vst.msk [vmem:[%s833_s3 + $0x38] sm:$0xf] %vm423_vm0, %v507_v61  ;;  %v500_v0 = vpack.c.bf16 %v350_v62, %v350_v62  ;;  %v508_v1 = vpack.c.bf16 %v358_v63, %v358_v63 }
 0x119   :  { %431 = vst.msk [vmem:[%s833_s3 + $0x1c] sm:$0xf] %vm423_vm0, %v500_v0  ;;  %439 = vst.msk [vmem:[%s833_s3 + $0x3c] sm:$0xf] %vm423_vm0, %v508_v1 }

// kernel: model_forward.28
= control target key start
LH: loop header
LB: loop body
LE: loop exit
PB: predicated region body
PF: predicated region fallthrough
CT: control target
= control target key end

     0   :  { %vm648_vm0 = vcmask 388096   ;;  %s1173_s1 = inlined_call_operand.vmem [shape: bf16[384,48], index: 1, kind: input, shape index: {}]   ;;  %s1174_s0 = inlined_call_operand.vmem [shape: bf16[128,384], index: 0, kind: input, shape index: {}]   ;;  %s1175_s2 = inlined_call_operand.vmem [shape: f32[1,48], index: 2, kind: input, shape index: {}]   ;;  %s1176_s3 = inlined_call_operand.vmem [shape: bf16[128,48], index: 3, kind: output, shape index: {}]  }
   0x1   :  { %v862_v0 = vld [vmem:[%s1173_s1 + $0x40] sm:$0xff]   ;;  %v864_v2 = vld [vmem:[%s1173_s1 + $0x48] sm:$0xff]   ;;  %v867_v5 = vld [vmem:[%s1173_s1 + $0x50] sm:$0xff]  }
   0x2   :  { %v863_v1 = vld [vmem:[%s1173_s1] sm:$0xff]   ;;  %750 = vmatprep.subr.bf16.mxu0 %v862_v0  ;;  %v866_v4 = vld [vmem:[%s1173_s1 + $0x8] sm:$0xff]   ;;  %v869_v7 = vld [vmem:[%s1173_s1 + $0x10] sm:$0xff]  }
   0x3   :  { %751 = vmatpush3.bf16.msra.mxu0 %v863_v1  ;;  %v865_v3 = vld [vmem:[%s1173_s1 + $0x80] sm:$0xff]   ;;  %v868_v6 = vld [vmem:[%s1173_s1 + $0x88] sm:$0xff]   ;;  %v870_v8 = vld [vmem:[%s1173_s1 + $0x58] sm:$0xff]  }
   0x4   :  { %752 = vmatprep.subr.bf16.mxu0 %v864_v2  ;;  %830 = vmatprep.subr.bf16.mxu1 %v865_v3  ;;  %v871_v9 = vld [vmem:[%s1173_s1 + $0x90] sm:$0xff]   ;;  %v872_v10 = vld [vmem:[%s1173_s1 + $0x18] sm:$0xff]   ;;  %v873_v11 = vld [vmem:[%s1173_s1 + $0x60] sm:$0xff]  }
   0x5   :  { %831 = vmatpush3.bf16.msra.mxu1 %v865_v3  ;;  %v874_v12 = vld [vmem:[%s1173_s1 + $0x98] sm:$0xff]   ;;  %v875_v13 = vld [vmem:[%s1173_s1 + $0x20] sm:$0xff]   ;;  %v876_v15 = vld [vmem:[%s1173_s1 + $0x68] sm:$0xff]  }
   0x6   :  { %832 = vmatprep.subr.bf16.mxu1 %v868_v6  ;;  %v877_v14 = vld [vmem:[%s1173_s1 + $0xa0] sm:$0xff]   ;;  %v878_v16 = vld [vmem:[%s1173_s1 + $0x28] sm:$0xff]   ;;  %v879_v18 = vld [vmem:[%s1173_s1 + $0x70] sm:$0xff]  }
   0x7   :  { %753 = vmatpush3.bf16.msra.mxu0 %v866_v4  ;;  %v880_v17 = vld [vmem:[%s1173_s1 + $0xa8] sm:$0xff]   ;;  %v881_v19 = vld [vmem:[%s1173_s1 + $0x30] sm:$0xff]   ;;  %v882_v20 = vld [vmem:[%s1173_s1 + $0x78] sm:$0xff]  }
   0x8   :  { %754 = vmatprep.subr.bf16.mxu0 %v867_v5  ;;  %v883_v21 = vld [vmem:[%s1173_s1 + $0xb0] sm:$0xff]   ;;  %v884_v23 = vld [vmem:[%s1173_s1 + $0x38] sm:$0xff]   ;;  %v885_v26 = vld [vmem:[%s1174_s0] ss:$12 sps:$4 sm:$0xff]  }
   0x9   :  { %833 = vmatpush3.bf16.msra.mxu1 %v868_v6  ;;  %v887_v22 = vld [vmem:[%s1174_s0 + $0x4] ss:$12 sps:$4 sm:$0xff]   ;;  %v889_v24 = vld [vmem:[%s1174_s0 + $0x8] ss:$12 sps:$4 sm:$0xff]   ;;  %v888_v25 = vld [vmem:[%s1173_s1 + $0xb8] sm:$0xff]  }
   0xa   :  { %834 = vmatprep.subr.bf16.mxu1 %v871_v9  ;;  %406 = vmatprep.mubr.bf16.mxu0 %v887_v22  ;;  %v891_v27 = vld [vmem:[%s1174_s0 + $0x1c] ss:$12 sps:$4 sm:$0xff]   ;;  %v890_v28 = vld [vmem:[%s1174_s0 + $0x20] ss:$12 sps:$4 sm:$0xff]   ;;  %v897_v29 = vld [vmem:[%s1174_s0 + $0x38] ss:$12 sps:$4 sm:$0xff]  }
   0xb   :  { %755 = vmatpush3.bf16.msra.mxu0 %v869_v7  ;;  %846 = vmatprep.mubr.bf16.mxu1 %v889_v24  ;;  %v893_v30 = vld [vmem:[%s1174_s0 + $0x18] ss:$12 sps:$4 sm:$0xff]   ;;  %v894_v31 = vld [vmem:[%s1174_s0 + $0x34] ss:$12 sps:$4 sm:$0xff]   ;;  %v898_v32 = vld [vmem:[%s1174_s0 + $0x50] ss:$12 sps:$4 sm:$0xff]  }
   0xc   :  { %756 = vmatprep.subr.bf16.mxu0 %v870_v8  ;;  %v905_v33 = vld [vmem:[%s1174_s0 + $0x68] ss:$12 sps:$4 sm:$0xff]   ;;  %v896_v34 = vld [vmem:[%s1174_s0 + $0x30] ss:$12 sps:$4 sm:$0xff]   ;;  %v899_v35 = vld [vmem:[%s1174_s0 + $0x4c] ss:$12 sps:$4 sm:$0xff]  }
   0xd   :  { %835 = vmatpush3.bf16.msra.mxu1 %v871_v9  ;;  %v906_v36 = vld [vmem:[%s1174_s0 + $0x80] ss:$12 sps:$4 sm:$0xff]   ;;  %v913_v37 = vld [vmem:[%s1174_s0 + $0x98] ss:$12 sps:$4 sm:$0xff]   ;;  %v901_v38 = vld [vmem:[%s1174_s0 + $0x48] ss:$12 sps:$4 sm:$0xff]  }
   0xe   :  { %836 = vmatprep.subr.bf16.mxu1 %v874_v12  ;;  %v902_v39 = vld [vmem:[%s1174_s0 + $0x64] ss:$12 sps:$4 sm:$0xff]   ;;  %v904_v41 = vld [vmem:[%s1174_s0 + $0x60] ss:$12 sps:$4 sm:$0xff]   ;;  %v907_v42 = vld [vmem:[%s1174_s0 + $0x7c] ss:$12 sps:$4 sm:$0xff]  }
   0xf   :  { %757 = vmatpush3.bf16.msra.mxu0 %v872_v10  ;;  %v914_v40 = vld [vmem:[%s1174_s0 + $0xb0] ss:$12 sps:$4 sm:$0xff]   ;;  %v909_v43 = vld [vmem:[%s1174_s0 + $0x78] ss:$12 sps:$4 sm:$0xff]   ;;  %v910_v44 = vld [vmem:[%s1174_s0 + $0x94] ss:$12 sps:$4 sm:$0xff]  }
  0x10   :  { %758 = vmatprep.subr.bf16.mxu0 %v873_v11  ;;  %v912_v45 = vld [vmem:[%s1174_s0 + $0x90] ss:$12 sps:$4 sm:$0xff]   ;;  %v915_v46 = vld [vmem:[%s1174_s0 + $0xac] ss:$12 sps:$4 sm:$0xff]   ;;  %v917_v47 = vld [vmem:[%s1174_s0 + $0xa8] ss:$12 sps:$4 sm:$0xff]  }
  0x11   :  { %837 = vmatpush3.bf16.msra.mxu1 %v874_v12  ;;  %v1085_v50 = vld [vmem:[%s1175_s2] ss:$0 sm:$0xff] }
  0x12   :  { %838 = vmatprep.subr.bf16.mxu1 %v877_v14 }
  0x13   :  { %759 = vmatpush3.bf16.msra.mxu0 %v875_v13 }
  0x14   :  { %760 = vmatprep.subr.bf16.mxu0 %v876_v15 }
  0x15   :  { %839 = vmatpush3.bf16.msra.mxu1 %v877_v14 }
  0x16   :  { %840 = vmatprep.subr.bf16.mxu1 %v880_v17 }
  0x17   :  { %761 = vmatpush3.bf16.msra.mxu0 %v878_v16 }
  0x18   :  { %762 = vmatprep.subr.bf16.mxu0 %v879_v18 }
  0x19   :  { %841 = vmatpush3.bf16.msra.mxu1 %v880_v17 }
  0x1a   :  { %842 = vmatprep.subr.bf16.mxu1 %v883_v21 }
  0x1b   :  { %763 = vmatpush3.bf16.msra.mxu0 %v881_v19 }
  0x1c   :  { %764 = vmatprep.subr.bf16.mxu0 %v882_v20 }
  0x1d   :  { %843 = vmatpush3.bf16.msra.mxu1 %v883_v21 }
  0x1e   :  { %844 = vmatprep.subr.bf16.mxu1 %v888_v25 }
  0x1f   :  { %765 = vmatpush3.bf16.msra.mxu0 %v884_v23 }
  0x21   :  { %845 = vmatpush3.bf16.msra.mxu1 %v888_v25 }
  0x22   :  { %407 = vmatmul.mubr.bf16.vlgmr.msra.gmra.mrb[0].mxu0 %v885_v26 }
  0x23   :  { %414 = vmatprep.mubr.bf16.mxu0 %v891_v27 }
  0x24   :  { %847 = vmatmul.mubr.bf16.vlgmr.msra.gmra.mrb[0].mxu1 %v890_v28 }
  0x25   :  { %850 = vmatprep.mubr.bf16.mxu1 %v897_v29 }
  0x2a   :  { %415 = vmatmul.mubr.bf16.gmra.mrb[4].mxu0 %v893_v30 }
  0x2b   :  { %422 = vmatprep.mubr.bf16.mxu0 %v894_v31 }
  0x2c   :  { %851 = vmatmul.mubr.bf16.gmra.mrb[4].mxu1 %v898_v32 }
  0x2d   :  { %854 = vmatprep.mubr.bf16.mxu1 %v905_v33 }
  0x32   :  { %423 = vmatmul.mubr.bf16.gmra.mrb[8].mxu0 %v896_v34 }
  0x33   :  { %430 = vmatprep.mubr.bf16.mxu0 %v899_v35 }
  0x34   :  { %855 = vmatmul.mubr.bf16.gmra.mrb[8].mxu1 %v906_v36 }
  0x35   :  { %858 = vmatprep.mubr.bf16.mxu1 %v913_v37 }
  0x3a   :  { %431 = vmatmul.mubr.bf16.gmra.mrb[12].mxu0 %v901_v38 }
  0x3b   :  { %438 = vmatprep.mubr.bf16.mxu0 %v902_v39 }
  0x3c   :  { %859 = vmatmul.mubr.bf16.gmra.mrb[12].mxu1 %v914_v40 }
  0x42   :  { %439 = vmatmul.mubr.bf16.gmra.mrb[16].mxu0 %v904_v41 }
  0x43   :  { %446 = vmatprep.mubr.bf16.mxu0 %v907_v42 }
  0x4a   :  { %447 = vmatmul.mubr.bf16.gmra.mrb[20].mxu0 %v909_v43 }
  0x4b   :  { %454 = vmatprep.mubr.bf16.mxu0 %v910_v44 }
  0x52   :  { %455 = vmatmul.mubr.bf16.gmra.mrb[24].mxu0 %v912_v45 }
  0x53   :  { %462 = vmatprep.mubr.bf16.mxu0 %v915_v46 }
  0x5a   :  { %463 = vmatmul.mubr.bf16.gmra.mrb[28].mxu0 %v917_v47 }
  0xf5   :  { %v766_v48 = vpop.f32.mrb[0].mxu0 }
  0xf6   :  { %v767_v49 = vpop.f32.mrb[1].mxu0 }
  0xf7   :  { %v768_v51 = vadd.f32 %v767_v49, %v766_v48  ;;  %v769_v52 = vpop.f32.mrb[2].mxu0  ;;  %v848_v54 = vpop.f32.mrb[0].mxu1 }
  0xf8   :  { %v770_v53 = vpop.f32.mrb[3].mxu0  ;;  %v505_v57 = vpop.f32.mrb[1].mxu1 }
  0xf9   :  { %v771_v55 = vadd.f32 %v770_v53, %v769_v52  ;;  %v409_v56 = vadd.f32 %v768_v51, %v1085_v50  ;;  %v849_v58 = vpop.f32.mrb[2].mxu1 }
  0xfa   :  { %v508_v61 = vpop.f32.mrb[3].mxu1 }
  0xfb   :  { %v506_v59 = vadd.f32 %v505_v57, %v409_v56  ;;  %v412_v60 = vadd.f32 %v771_v55, %v1085_v50 }
  0xfd   :  { %v568_v62 = vmax.f32 %v506_v59, 0.0  ;;  %v509_v63 = vadd.f32 %v508_v61, %v412_v60  ;;  %v772_v0 = vpop.f32.mrb[4].mxu0 }
  0xfe   :  { %v773_v1 = vpop.f32.mrb[5].mxu0 }
  0xff   :  { %v734_v2 = vpack.c.bf16 %v568_v62, %v568_v62  ;;  %v569_v3 = vmax.f32 %v509_v63, 0.0  ;;  %v774_v4 = vadd.f32 %v773_v1, %v772_v0  ;;  %v775_v5 = vpop.f32.mrb[6].mxu0  ;;  %v852_v7 = vpop.f32.mrb[4].mxu1 }
 0x100   :  { %v776_v6 = vpop.f32.mrb[7].mxu0  ;;  %v521_v11 = vpop.f32.mrb[5].mxu1 }
 0x101   :  { %649 = vst.msk [vmem:[%s1176_s3] sm:$0xf] %vm648_vm0, %v734_v2  ;;  %v735_v8 = vpack.c.bf16 %v569_v3, %v569_v3  ;;  %v417_v9 = vadd.f32 %v774_v4, %v1085_v50  ;;  %v777_v10 = vadd.f32 %v776_v6, %v775_v5  ;;  %v853_v12 = vpop.f32.mrb[6].mxu1 }
 0x102   :  { %v524_v15 = vpop.f32.mrb[7].mxu1 }
 0x103   :  { %650 = vst.msk [vmem:[%s1176_s3 + $0x4] sm:$0xf] %vm648_vm0, %v735_v8  ;;  %v514_v13 = vadd.f32 %v848_v54, %v417_v9  ;;  %v420_v14 = vadd.f32 %v777_v10, %v1085_v50 }
 0x105   :  { %v570_v16 = vmax.f32 %v514_v13, 0.0  ;;  %v517_v17 = vadd.f32 %v849_v58, %v420_v14  ;;  %v778_v18 = vpop.f32.mrb[8].mxu0 }
 0x106   :  { %v779_v19 = vpop.f32.mrb[9].mxu0 }
 0x107   :  { %v736_v20 = vpack.c.bf16 %v570_v16, %v570_v16  ;;  %v571_v21 = vmax.f32 %v517_v17, 0.0  ;;  %v780_v22 = vadd.f32 %v779_v19, %v778_v18  ;;  %v781_v23 = vpop.f32.mrb[10].mxu0  ;;  %v856_v25 = vpop.f32.mrb[8].mxu1 }
 0x108   :  { %v782_v24 = vpop.f32.mrb[11].mxu0  ;;  %v537_v29 = vpop.f32.mrb[9].mxu1 }
 0x109   :  { %651 = vst.msk [vmem:[%s1176_s3 + $0x8] sm:$0xf] %vm648_vm0, %v736_v20  ;;  %v737_v26 = vpack.c.bf16 %v571_v21, %v571_v21  ;;  %v783_v27 = vadd.f32 %v782_v24, %v781_v23  ;;  %v425_v28 = vadd.f32 %v780_v22, %v1085_v50  ;;  %v857_v30 = vpop.f32.mrb[10].mxu1 }
 0x10a   :  { %v540_v33 = vpop.f32.mrb[11].mxu1 }
 0x10b   :  { %652 = vst.msk [vmem:[%s1176_s3 + $0xc] sm:$0xf] %vm648_vm0, %v737_v26  ;;  %v522_v31 = vadd.f32 %v521_v11, %v425_v28  ;;  %v428_v32 = vadd.f32 %v783_v27, %v1085_v50 }
 0x10d   :  { %v572_v34 = vmax.f32 %v522_v31, 0.0  ;;  %v525_v35 = vadd.f32 %v524_v15, %v428_v32  ;;  %v784_v36 = vpop.f32.mrb[12].mxu0 }
 0x10e   :  { %v785_v37 = vpop.f32.mrb[13].mxu0 }
 0x10f   :  { %v738_v38 = vpack.c.bf16 %v572_v34, %v572_v34  ;;  %v573_v39 = vmax.f32 %v525_v35, 0.0  ;;  %v786_v40 = vadd.f32 %v785_v37, %v784_v36  ;;  %v787_v41 = vpop.f32.mrb[14].mxu0  ;;  %v1109_v43 = vpop.f32.mrb[12].mxu1 }
 0x110   :  { %v788_v42 = vpop.f32.mrb[15].mxu0  ;;  %v553_v47 = vpop.f32.mrb[13].mxu1 }
 0x111   :  { %653 = vst.msk [vmem:[%s1176_s3 + $0x10] sm:$0xf] %vm648_vm0, %v738_v38  ;;  %v739_v44 = vpack.c.bf16 %v573_v39, %v573_v39  ;;  %v433_v45 = vadd.f32 %v786_v40, %v1085_v50  ;;  %v789_v46 = vadd.f32 %v788_v42, %v787_v41  ;;  %v1116_v48 = vpop.f32.mrb[14].mxu1 }
 0x112   :  { %v556_v52 = vpop.f32.mrb[15].mxu1 }
 0x113   :  { %654 = vst.msk [vmem:[%s1176_s3 + $0x14] sm:$0xf] %vm648_vm0, %v739_v44  ;;  %v530_v49 = vadd.f32 %v852_v7, %v433_v45  ;;  %v436_v51 = vadd.f32 %v789_v46, %v1085_v50 }
 0x115   :  { %v574_v53 = vmax.f32 %v530_v49, 0.0  ;;  %v533_v54 = vadd.f32 %v853_v12, %v436_v51  ;;  %v790_v55 = vpop.f32.mrb[16].mxu0 }
 0x116   :  { %v791_v56 = vpop.f32.mrb[17].mxu0 }
 0x117   :  { %v740_v57 = vpack.c.bf16 %v574_v53, %v574_v53  ;;  %v575_v58 = vmax.f32 %v533_v54, 0.0  ;;  %v792_v59 = vadd.f32 %v791_v56, %v790_v55  ;;  %v793_v60 = vpop.f32.mrb[18].mxu0 }
 0x118   :  { %v794_v61 = vpop.f32.mrb[19].mxu0 }
 0x119   :  { %655 = vst.msk [vmem:[%s1176_s3 + $0x18] sm:$0xf] %vm648_vm0, %v740_v57  ;;  %v741_v62 = vpack.c.bf16 %v575_v58, %v575_v58  ;;  %v795_v63 = vadd.f32 %v794_v61, %v793_v60  ;;  %v441_v0 = vadd.f32 %v792_v59, %v1085_v50 }
 0x11b   :  { %656 = vst.msk [vmem:[%s1176_s3 + $0x1c] sm:$0xf] %vm648_vm0, %v741_v62  ;;  %v538_v1 = vadd.f32 %v537_v29, %v441_v0  ;;  %v444_v2 = vadd.f32 %v795_v63, %v1085_v50 }
 0x11d   :  { %v576_v3 = vmax.f32 %v538_v1, 0.0  ;;  %v541_v4 = vadd.f32 %v540_v33, %v444_v2  ;;  %v796_v5 = vpop.f32.mrb[20].mxu0 }
 0x11e   :  { %v797_v6 = vpop.f32.mrb[21].mxu0 }
 0x11f   :  { %v742_v7 = vpack.c.bf16 %v576_v3, %v576_v3  ;;  %v577_v8 = vmax.f32 %v541_v4, 0.0  ;;  %v798_v9 = vadd.f32 %v797_v6, %v796_v5  ;;  %v799_v10 = vpop.f32.mrb[22].mxu0 }
 0x120   :  { %v800_v11 = vpop.f32.mrb[23].mxu0 }
 0x121   :  { %657 = vst.msk [vmem:[%s1176_s3 + $0x20] sm:$0xf] %vm648_vm0, %v742_v7  ;;  %v743_v12 = vpack.c.bf16 %v577_v8, %v577_v8  ;;  %v449_v13 = vadd.f32 %v798_v9, %v1085_v50  ;;  %v801_v14 = vadd.f32 %v800_v11, %v799_v10 }
 0x123   :  { %658 = vst.msk [vmem:[%s1176_s3 + $0x24] sm:$0xf] %vm648_vm0, %v743_v12  ;;  %v546_v15 = vadd.f32 %v856_v25, %v449_v13  ;;  %v452_v16 = vadd.f32 %v801_v14, %v1085_v50 }
 0x125   :  { %v578_v17 = vmax.f32 %v546_v15, 0.0  ;;  %v549_v18 = vadd.f32 %v857_v30, %v452_v16  ;;  %v802_v19 = vpop.f32.mrb[24].mxu0 }
 0x126   :  { %v803_v20 = vpop.f32.mrb[25].mxu0 }
 0x127   :  { %v744_v21 = vpack.c.bf16 %v578_v17, %v578_v17  ;;  %v579_v22 = vmax.f32 %v549_v18, 0.0  ;;  %v804_v23 = vadd.f32 %v803_v20, %v802_v19  ;;  %v805_v24 = vpop.f32.mrb[26].mxu0 }
 0x128   :  { %v806_v26 = vpop.f32.mrb[27].mxu0 }
 0x129   :  { %659 = vst.msk [vmem:[%s1176_s3 + $0x28] sm:$0xf] %vm648_vm0, %v744_v21  ;;  %v745_v27 = vpack.c.bf16 %v579_v22, %v579_v22  ;;  %v807_v28 = vadd.f32 %v806_v26, %v805_v24  ;;  %v457_v25 = vadd.f32 %v804_v23, %v1085_v50 }
 0x12b   :  { %660 = vst.msk [vmem:[%s1176_s3 + $0x2c] sm:$0xf] %vm648_vm0, %v745_v27  ;;  %v554_v29 = vadd.f32 %v553_v47, %v457_v25  ;;  %v460_v30 = vadd.f32 %v807_v28, %v1085_v50 }
 0x12d   :  { %v580_v31 = vmax.f32 %v554_v29, 0.0  ;;  %v557_v32 = vadd.f32 %v556_v52, %v460_v30  ;;  %v808_v33 = vpop.f32.mrb[28].mxu0 }
 0x12e   :  { %v809_v34 = vpop.f32.mrb[29].mxu0 }
 0x12f   :  { %v746_v35 = vpack.c.bf16 %v580_v31, %v580_v31  ;;  %v581_v36 = vmax.f32 %v557_v32, 0.0  ;;  %v810_v37 = vadd.f32 %v809_v34, %v808_v33  ;;  %v811_v38 = vpop.f32.mrb[30].mxu0 }
 0x130   :  { %v812_v39 = vpop.f32.mrb[31].mxu0 }
 0x131   :  { %661 = vst.msk [vmem:[%s1176_s3 + $0x30] sm:$0xf] %vm648_vm0, %v746_v35  ;;  %v747_v40 = vpack.c.bf16 %v581_v36, %v581_v36  ;;  %v465_v41 = vadd.f32 %v810_v37, %v1085_v50  ;;  %v813_v42 = vadd.f32 %v812_v39, %v811_v38 }
 0x133   :  { %662 = vst.msk [vmem:[%s1176_s3 + $0x34] sm:$0xf] %vm648_vm0, %v747_v40  ;;  %v562_v44 = vadd.f32 %v1109_v43, %v465_v41  ;;  %v468_v45 = vadd.f32 %v813_v42, %v1085_v50 }
 0x135   :  { %v582_v46 = vmax.f32 %v562_v44, 0.0  ;;  %v565_v47 = vadd.f32 %v1116_v48, %v468_v45 }
 0x137   :  { %v748_v49 = vpack.c.bf16 %v582_v46, %v582_v46  ;;  %v583_v51 = vmax.f32 %v565_v47, 0.0 }
 0x139   :  { %663 = vst.msk [vmem:[%s1176_s3 + $0x38] sm:$0xf] %vm648_vm0, %v748_v49  ;;  %v749_v52 = vpack.c.bf16 %v583_v51, %v583_v51 }
 0x13b   :  { %664 = vst.msk [vmem:[%s1176_s3 + $0x3c] sm:$0xf] %vm648_vm0, %v749_v52 }

// kernel: model_forward.27
= control target key start
LH: loop header
LB: loop body
LE: loop exit
PB: predicated region body
PF: predicated region fallthrough
CT: control target
= control target key end

     0   :  { %v1923_v38 = vmov 0   ;;  %vm756_vm0 = vcmask 392192   ;;  %s2557_s1 = inlined_call_operand.vmem [shape: bf16[432,384], index: 1, kind: input, shape index: {}]   ;;  %s2558_s0 = inlined_call_operand.vmem [shape: bf16[128,432], index: 0, kind: input, shape index: {}]   ;;  %s2559_s2 = inlined_call_operand.vmem [shape: f32[1,384], index: 2, kind: input, shape index: {}]   ;;  %s2560_s3 = inlined_call_operand.vmem [shape: bf16[128,384], index: 3, kind: output, shape index: {}]  }
   0x1   :  { %v1767_v0 = vld [vmem:[%s2557_s1 + $0x4] ss:$12 sps:$4 sm:$0xff]   ;;  %v1769_v1 = vld [vmem:[%s2557_s1 + $0xc8] ss:$12 sps:$4 sm:$0xff]   ;;  %v1770_v2 = vld [vmem:[%s2557_s1] ss:$12 sps:$4 sm:$0xff]  }
   0x2   :  { %781 = vmatprep.subr.bf16.mxu0 %v1767_v0  ;;  %1638 = vmatprep.subr.bf16.mxu1 %v1769_v1  ;;  %v1771_v3 = vld [vmem:[%s2557_s1 + $0x8] ss:$12 sps:$4 sm:$0xff]   ;;  %v1774_v5 = vld [vmem:[%s2557_s1 + $0xe0] ss:$12 sps:$4 sm:$0xff]   ;;  %v1775_v6 = vld [vmem:[%s2557_s1 + $0x18] ss:$12 sps:$4 sm:$0xff]  }
   0x3   :  { %782 = vmatpush1.bf16.msra.mxu0 %v1770_v2  ;;  %v1772_v4 = vld [vmem:[%s2557_s1 + $0x1c] ss:$12 sps:$4 sm:$0xff]   ;;  %1639 = vmatpush3.bf16.msra.mxu1 %v1771_v3  ;;  %v1776_v7 = vld [vmem:[%s2557_s1 + $0x20] ss:$12 sps:$4 sm:$0xff]   ;;  %v1779_v9 = vld [vmem:[%s2557_s1 + $0xf8] ss:$12 sps:$4 sm:$0xff]  }
   0x4   :  { %783 = vmatprep.subr.bf16.mxu0 %v1772_v4  ;;  %1640 = vmatprep.subr.bf16.mxu1 %v1774_v5  ;;  %v1777_v8 = vld [vmem:[%s2557_s1 + $0x34] ss:$12 sps:$4 sm:$0xff]   ;;  %v1780_v10 = vld [vmem:[%s2557_s1 + $0x30] ss:$12 sps:$4 sm:$0xff]   ;;  %v1781_v11 = vld [vmem:[%s2557_s1 + $0x38] ss:$12 sps:$4 sm:$0xff]  }
   0x5   :  { %v1782_v12 = vld [vmem:[%s2557_s1 + $0x4c] ss:$12 sps:$4 sm:$0xff]   ;;  %v1784_v13 = vld [vmem:[%s2557_s1 + $0x110] ss:$12 sps:$4 sm:$0xff]   ;;  %v1785_v14 = vld [vmem:[%s2557_s1 + $0x48] ss:$12 sps:$4 sm:$0xff]  }
   0x6   :  { %v1786_v15 = vld [vmem:[%s2557_s1 + $0x50] ss:$12 sps:$4 sm:$0xff]   ;;  %v1789_v17 = vld [vmem:[%s2557_s1 + $0x128] ss:$12 sps:$4 sm:$0xff]   ;;  %v1790_v18 = vld [vmem:[%s2557_s1 + $0x60] ss:$12 sps:$4 sm:$0xff]  }
   0x7   :  { %784 = vmatpush1.bf16.msra.mxu0 %v1775_v6  ;;  %1641 = vmatpush3.bf16.msra.mxu1 %v1776_v7  ;;  %v1787_v16 = vld [vmem:[%s2557_s1 + $0x64] ss:$12 sps:$4 sm:$0xff]   ;;  %v1791_v19 = vld [vmem:[%s2557_s1 + $0x68] ss:$12 sps:$4 sm:$0xff]   ;;  %v1794_v21 = vld [vmem:[%s2557_s1 + $0x140] ss:$12 sps:$4 sm:$0xff]  }
   0x8   :  { %785 = vmatprep.subr.bf16.mxu0 %v1777_v8  ;;  %1642 = vmatprep.subr.bf16.mxu1 %v1779_v9  ;;  %v1792_v20 = vld [vmem:[%s2557_s1 + $0x7c] ss:$12 sps:$4 sm:$0xff]   ;;  %v1795_v22 = vld [vmem:[%s2557_s1 + $0x78] ss:$12 sps:$4 sm:$0xff]   ;;  %v1796_v23 = vld [vmem:[%s2557_s1 + $0x80] ss:$12 sps:$4 sm:$0xff]  }
   0x9   :  { %v1797_v24 = vld [vmem:[%s2557_s1 + $0x94] ss:$12 sps:$4 sm:$0xff]   ;;  %v1799_v25 = vld [vmem:[%s2557_s1 + $0x158] ss:$12 sps:$4 sm:$0xff]   ;;  %v1800_v26 = vld [vmem:[%s2557_s1 + $0x90] ss:$12 sps:$4 sm:$0xff]  }
   0xa   :  { %v1801_v27 = vld [vmem:[%s2557_s1 + $0x98] ss:$12 sps:$4 sm:$0xff]   ;;  %v1804_v29 = vld [vmem:[%s2557_s1 + $0x170] ss:$12 sps:$4 sm:$0xff]   ;;  %v1805_v30 = vld [vmem:[%s2557_s1 + $0xa8] ss:$12 sps:$4 sm:$0xff]  }
   0xb   :  { %786 = vmatpush1.bf16.msra.mxu0 %v1780_v10  ;;  %1643 = vmatpush3.bf16.msra.mxu1 %v1781_v11  ;;  %v1802_v28 = vld [vmem:[%s2557_s1 + $0xac] ss:$12 sps:$4 sm:$0xff]   ;;  %v1809_v31 = vld [vmem:[%s2558_s0 + $0x4] ss:$16 sps:$4 sm:$0xff]   ;;  %v1806_v32 = vld [vmem:[%s2557_s1 + $0xb0] ss:$12 sps:$4 sm:$0xff]  }
   0xc   :  { %787 = vmatprep.subr.bf16.mxu0 %v1782_v12  ;;  %1644 = vmatprep.subr.bf16.mxu1 %v1784_v13  ;;  %v1810_v33 = vld [vmem:[%s2557_s1 + $0xc4] ss:$12 sps:$4 sm:$0xff]   ;;  %v1812_v35 = vld [vmem:[%s2557_s1 + $0xc0] ss:$12 sps:$4 sm:$0xff]   ;;  %v1813_v36 = vld [vmem:[%s2557_s1 + $0xdc] ss:$12 sps:$4 sm:$0xff]  }
   0xd   :  { %1039 = vmatprep.mubr.bf16.mxu1 %v1809_v31  ;;  %v2049_v34 = vld [vmem:[%s2558_s0] ss:$16 sps:$4 sm:$0xff]   ;;  %813 = vmatprep.mubr.bf16.mxu0 %v1809_v31  ;;  %v2060_v37 = vld [vmem:[%s2558_s0 + $0x24] ss:$16 sps:$4 sm:$0xff]   ;;  %v1822_v44 = vld [vmem:[%s2557_s1 + $0x10c] ss:$12 sps:$4 sm:$0xff]  }
   0xe   :  { %v1815_v39 = vld [vmem:[%s2557_s1 + $0xd8] ss:$12 sps:$4 sm:$0xff]   ;;  %v1818_v40 = vld [vmem:[%s2557_s1 + $0xf4] ss:$12 sps:$4 sm:$0xff]   ;;  %v1821_v43 = vld [vmem:[%s2557_s1 + $0xf0] ss:$12 sps:$4 sm:$0xff]  }
   0xf   :  { %788 = vmatpush1.bf16.msra.mxu0 %v1785_v14  ;;  %1645 = vmatpush3.bf16.msra.mxu1 %v1786_v15  ;;  %v2074_v41 = vld [vmem:[%s2558_s0 + $0x20] ss:$16 sps:$4 sm:$0xff]   ;;  %v1834_v42 = vld [vmem:[%s2557_s1 + $0x188] ss:$12 sps:$4 sm:$0xff]   ;;  %v1845_v49 = vld [vmem:[%s2557_s1 + $0x1b8] ss:$12 sps:$4 sm:$0xff]  }
  0x10   :  { %789 = vmatprep.subr.bf16.mxu0 %v1787_v16  ;;  %1646 = vmatprep.subr.bf16.mxu1 %v1789_v17  ;;  %v2088_v45 = vld [vmem:[%s2558_s0 + $0x44] ss:$16 sps:$4 sm:$0xff]   ;;  %v1841_v46 = vld [vmem:[%s2557_s1 + $0x1a0] ss:$12 sps:$4 sm:$0xff]   ;;  %v1831_v52 = vld [vmem:[%s2557_s1 + $0x13c] ss:$12 sps:$4 sm:$0xff]  }
  0x11   :  { %v1824_v47 = vld [vmem:[%s2557_s1 + $0x108] ss:$12 sps:$4 sm:$0xff]   ;;  %v1827_v48 = vld [vmem:[%s2557_s1 + $0x124] ss:$12 sps:$4 sm:$0xff]   ;;  %v1830_v51 = vld [vmem:[%s2557_s1 + $0x120] ss:$12 sps:$4 sm:$0xff]  }
  0x12   :  { %v2108_v50 = vld [vmem:[%s2558_s0 + $0x40] ss:$16 sps:$4 sm:$0xff]   ;;  %v2120_v53 = vld [vmem:[%s2558_s0 + $0x64] ss:$16 sps:$4 sm:$0xff]   ;;  %v1842_v60 = vld [vmem:[%s2557_s1 + $0x16c] ss:$12 sps:$4 sm:$0xff]  }
  0x13   :  { %790 = vmatpush1.bf16.msra.mxu0 %v1790_v18  ;;  %1647 = vmatpush3.bf16.msra.mxu1 %v1791_v19  ;;  %v1852_v54 = vld [vmem:[%s2557_s1 + $0x1d0] ss:$12 sps:$4 sm:$0xff]   ;;  %v1833_v55 = vld [vmem:[%s2557_s1 + $0x138] ss:$12 sps:$4 sm:$0xff]   ;;  %v1837_v56 = vld [vmem:[%s2557_s1 + $0x154] ss:$12 sps:$4 sm:$0xff]  }
  0x14   :  { %791 = vmatprep.subr.bf16.mxu0 %v1792_v20  ;;  %1648 = vmatprep.subr.bf16.mxu1 %v1794_v21  ;;  %v1853_v57 = vld [vmem:[%s2557_s1 + $0x1e8] ss:$12 sps:$4 sm:$0xff]   ;;  %v2140_v58 = vld [vmem:[%s2558_s0 + $0x60] ss:$16 sps:$4 sm:$0xff]   ;;  %v1864_v1 = vld [vmem:[%s2557_s1 + $0x218] ss:$12 sps:$4 sm:$0xff]  }
  0x15   :  { %v1840_v59 = vld [vmem:[%s2557_s1 + $0x150] ss:$12 sps:$4 sm:$0xff]   ;;  %v2152_v61 = vld [vmem:[%s2558_s0 + $0x84] ss:$16 sps:$4 sm:$0xff]   ;;  %v1860_v62 = vld [vmem:[%s2557_s1 + $0x200] ss:$12 sps:$4 sm:$0xff]  }
  0x16   :  { %v1844_v63 = vld [vmem:[%s2557_s1 + $0x168] ss:$12 sps:$4 sm:$0xff]   ;;  %v1850_v0 = vld [vmem:[%s2557_s1 + $0x184] ss:$12 sps:$4 sm:$0xff]   ;;  %v1848_v2 = vld [vmem:[%s2557_s1 + $0x180] ss:$12 sps:$4 sm:$0xff]  }
  0x17   :  { %792 = vmatpush1.bf16.msra.mxu0 %v1795_v22  ;;  %1649 = vmatpush3.bf16.msra.mxu1 %v1796_v23  ;;  %v2176_v3 = vld [vmem:[%s2558_s0 + $0x80] ss:$16 sps:$4 sm:$0xff]   ;;  %v1856_v4 = vld [vmem:[%s2557_s1 + $0x19c] ss:$12 sps:$4 sm:$0xff]   ;;  %v2184_v5 = vld [vmem:[%s2558_s0 + $0xa4] ss:$16 sps:$4 sm:$0xff]  }
  0x18   :  { %793 = vmatprep.subr.bf16.mxu0 %v1797_v24  ;;  %1650 = vmatprep.subr.bf16.mxu1 %v1799_v25  ;;  %v1868_v6 = vld [vmem:[%s2557_s1 + $0x230] ss:$12 sps:$4 sm:$0xff]   ;;  %v1854_v7 = vld [vmem:[%s2557_s1 + $0x198] ss:$12 sps:$4 sm:$0xff]   ;;  %v1863_v8 = vld [vmem:[%s2557_s1 + $0x1b4] ss:$12 sps:$4 sm:$0xff]  }
  0x19   :  { %v1872_v9 = vld [vmem:[%s2557_s1 + $0x248] ss:$12 sps:$4 sm:$0xff]   ;;  %v2206_v10 = vld [vmem:[%s2558_s0 + $0xa0] ss:$16 sps:$4 sm:$0xff]   ;;  %v1871_v13 = vld [vmem:[%s2557_s1 + $0x1cc] ss:$12 sps:$4 sm:$0xff]  }
  0x1a   :  { %v1861_v11 = vld [vmem:[%s2557_s1 + $0x1b0] ss:$12 sps:$4 sm:$0xff]   ;;  %v2215_v12 = vld [vmem:[%s2558_s0 + $0xc4] ss:$16 sps:$4 sm:$0xff]   ;;  %v1879_v14 = vld [vmem:[%s2557_s1 + $0x260] ss:$12 sps:$4 sm:$0xff]  }
  0x1b   :  { %794 = vmatpush1.bf16.msra.mxu0 %v1800_v26  ;;  %1651 = vmatpush3.bf16.msra.mxu1 %v1801_v27  ;;  %v1869_v15 = vld [vmem:[%s2557_s1 + $0x1c8] ss:$12 sps:$4 sm:$0xff]   ;;  %v1877_v16 = vld [vmem:[%s2557_s1 + $0x1e4] ss:$12 sps:$4 sm:$0xff]   ;;  %v1875_v20 = vld [vmem:[%s2557_s1 + $0x1e0] ss:$12 sps:$4 sm:$0xff]  }
  0x1c   :  { %795 = vmatprep.subr.bf16.mxu0 %v1802_v28  ;;  %1652 = vmatprep.subr.bf16.mxu1 %v1804_v29  ;;  %v1880_v17 = vld [vmem:[%s2557_s1 + $0x278] ss:$12 sps:$4 sm:$0xff]   ;;  %v1867_v18 = vld [vmem:[%s2558_s0 + $0xc0] ss:$16 sps:$4 sm:$0xff]   ;;  %v1883_v21 = vld [vmem:[%s2557_s1 + $0x1fc] ss:$12 sps:$4 sm:$0xff]  }
  0x1d   :  { %v1873_v19 = vld [vmem:[%s2558_s0 + $0xe4] ss:$16 sps:$4 sm:$0xff]   ;;  %v1878_v24 = vld [vmem:[%s2558_s0 + $0xe0] ss:$16 sps:$4 sm:$0xff]   ;;  %v1886_v25 = vld [vmem:[%s2558_s0 + $0xc] ss:$16 sps:$4 sm:$0xff]  }
  0x1e   :  { %v1881_v22 = vld [vmem:[%s2557_s1 + $0x1f8] ss:$12 sps:$4 sm:$0xff]   ;;  %v1889_v23 = vld [vmem:[%s2557_s1 + $0x214] ss:$12 sps:$4 sm:$0xff]   ;;  %v1887_v26 = vld [vmem:[%s2557_s1 + $0x210] ss:$12 sps:$4 sm:$0xff]  }
  0x1f   :  { %796 = vmatpush1.bf16.msra.mxu0 %v1805_v30  ;;  %1653 = vmatpush3.bf16.msra.mxu1 %v1806_v32  ;;  %v1895_v27 = vld [vmem:[%s2557_s1 + $0x22c] ss:$12 sps:$4 sm:$0xff]   ;;  %v1893_v28 = vld [vmem:[%s2557_s1 + $0x228] ss:$12 sps:$4 sm:$0xff]   ;;  %v1898_v29 = vld [vmem:[%s2557_s1 + $0x244] ss:$12 sps:$4 sm:$0xff]  }
  0x20   :  { %797 = vmatprep.subr.bf16.mxu0 %v1810_v33  ;;  %1104 = vmatprep.subr.bf16.mxu1 %v1923_v38  ;;  %v1884_v30 = vld [vmem:[%s2558_s0 + $0x8] ss:$16 sps:$4 sm:$0xff]   ;;  %v1890_v31 = vld [vmem:[%s2558_s0 + $0x2c] ss:$16 sps:$4 sm:$0xff]  }
  0x21   :  { %v1896_v32 = vld [vmem:[%s2557_s1 + $0x240] ss:$12 sps:$4 sm:$0xff]   ;;  %v1904_v33 = vld [vmem:[%s2557_s1 + $0x25c] ss:$12 sps:$4 sm:$0xff]  }
  0x22   :  { %1040 = vmatmul.mubr.bf16.vlgmr.msra.gmra.mrb[0].mxu1 %v2049_v34 }
  0x23   :  { %798 = vmatpush1.bf16.msra.mxu0 %v1812_v35  ;;  %1047 = vmatprep.mubr.bf16.mxu1 %v2060_v37  ;;  %v1910_v35 = vld [vmem:[%s2557_s1 + $0x274] ss:$12 sps:$4 sm:$0xff]  }
  0x24   :  { %799 = vmatprep.subr.bf16.mxu0 %v1813_v36  ;;  %1105 = vmatpush1.bf16.msra.mxu1 %v1834_v42  ;;  %v1892_v36 = vld [vmem:[%s2558_s0 + $0x28] ss:$16 sps:$4 sm:$0xff]   ;;  %v1911_v42 = vld [vmem:[%s2558_s0 + $0x8c] ss:$16 sps:$4 sm:$0xff]  }
  0x25   :  { %1106 = vmatprep.subr.bf16.mxu1 %v1923_v38 }
  0x27   :  { %800 = vmatpush1.bf16.msra.mxu0 %v1815_v39  ;;  %v1901_v39 = vld [vmem:[%s2558_s0 + $0x48] ss:$16 sps:$4 sm:$0xff]  }
  0x28   :  { %801 = vmatprep.subr.bf16.mxu0 %v1818_v40  ;;  %1107 = vmatpush1.bf16.msra.mxu1 %v1841_v46  ;;  %v1905_v40 = vld [vmem:[%s2558_s0 + $0x6c] ss:$16 sps:$4 sm:$0xff]  }
  0x29   :  { %1108 = vmatprep.subr.bf16.mxu1 %v1923_v38  ;;  %v1917_v46 = vld [vmem:[%s2558_s0 + $0xcc] ss:$16 sps:$4 sm:$0xff]  }
  0x2a   :  { %1048 = vmatmul.mubr.bf16.gmra.mrb[4].mxu1 %v2074_v41 }
  0x2b   :  { %802 = vmatpush1.bf16.msra.mxu0 %v1821_v43  ;;  %1055 = vmatprep.mubr.bf16.mxu1 %v2088_v45  ;;  %v1913_v43 = vld [vmem:[%s2558_s0 + $0x88] ss:$16 sps:$4 sm:$0xff]  }
  0x2c   :  { %803 = vmatprep.subr.bf16.mxu0 %v1822_v44  ;;  %1109 = vmatpush1.bf16.msra.mxu1 %v1845_v49  ;;  %v1914_v44 = vld [vmem:[%s2558_s0 + $0xac] ss:$16 sps:$4 sm:$0xff]   ;;  %v1922_v49 = vld [vmem:[%s2558_s0 + $0xe8] ss:$16 sps:$4 sm:$0xff]  }
  0x2d   :  { %1110 = vmatprep.subr.bf16.mxu1 %v1923_v38 }
  0x2f   :  { %804 = vmatpush1.bf16.msra.mxu0 %v1824_v47  ;;  %v1919_v47 = vld [vmem:[%s2558_s0 + $0xc8] ss:$16 sps:$4 sm:$0xff]  }
  0x30   :  { %805 = vmatprep.subr.bf16.mxu0 %v1827_v48  ;;  %1111 = vmatpush1.bf16.msra.mxu1 %v1852_v54  ;;  %v1920_v48 = vld [vmem:[%s2558_s0 + $0xec] ss:$16 sps:$4 sm:$0xff]  }
  0x31   :  { %1112 = vmatprep.subr.bf16.mxu1 %v1923_v38 }
  0x32   :  { %1056 = vmatmul.mubr.bf16.gmra.mrb[8].mxu1 %v2108_v50 }
  0x33   :  { %806 = vmatpush1.bf16.msra.mxu0 %v1830_v51  ;;  %1063 = vmatprep.mubr.bf16.mxu1 %v2120_v53 }
  0x34   :  { %807 = vmatprep.subr.bf16.mxu0 %v1831_v52  ;;  %1113 = vmatpush1.bf16.msra.mxu1 %v1853_v57 }
  0x35   :  { %1114 = vmatprep.subr.bf16.mxu1 %v1923_v38 }
  0x37   :  { %808 = vmatpush1.bf16.msra.mxu0 %v1833_v55 }
  0x38   :  { %809 = vmatprep.subr.bf16.mxu0 %v1837_v56  ;;  %1115 = vmatpush1.bf16.msra.mxu1 %v1860_v62 }
  0x39   :  { %1116 = vmatprep.subr.bf16.mxu1 %v1923_v38 }
  0x3a   :  { %1064 = vmatmul.mubr.bf16.gmra.mrb[12].mxu1 %v2140_v58 }
  0x3b   :  { %810 = vmatpush1.bf16.msra.mxu0 %v1840_v59  ;;  %1071 = vmatprep.mubr.bf16.mxu1 %v2152_v61 }
  0x3c   :  { %811 = vmatprep.subr.bf16.mxu0 %v1842_v60  ;;  %1117 = vmatpush1.bf16.msra.mxu1 %v1864_v1 }
  0x3d   :  { %1118 = vmatprep.subr.bf16.mxu1 %v1923_v38 }
  0x3f   :  { %812 = vmatpush1.bf16.msra.mxu0 %v1844_v63 }
  0x40   :  { %894 = vmatprep.subr.bf16.mxu0 %v1850_v0  ;;  %1119 = vmatpush1.bf16.msra.mxu1 %v1868_v6 }
  0x41   :  { %1120 = vmatprep.subr.bf16.mxu1 %v1923_v38 }
  0x42   :  { %814 = vmatmul.mubr.bf16.vlgmr.msra.gmra.mrb[0].mxu0 %v2049_v34  ;;  %1072 = vmatmul.mubr.bf16.gmra.mrb[16].mxu1 %v2176_v3  ;;  %v1902_v34 = vld [vmem:[%s2557_s1 + $0x258] ss:$12 sps:$4 sm:$0xff]  }
  0x43   :  { %895 = vmatpush1.bf16.msra.mxu0 %v1848_v2  ;;  %823 = vmatprep.mubr.bf16.mxu0 %v2060_v37  ;;  %v1899_v37 = vld [vmem:[%s2558_s0 + $0x4c] ss:$16 sps:$4 sm:$0xff]  }
  0x44   :  { %896 = vmatprep.subr.bf16.mxu0 %v1856_v4  ;;  %1079 = vmatprep.mubr.bf16.mxu1 %v2184_v5 }
  0x45   :  { %1121 = vmatpush1.bf16.msra.mxu1 %v1872_v9 }
  0x46   :  { %1122 = vmatprep.subr.bf16.mxu1 %v1923_v38 }
  0x47   :  { %897 = vmatpush1.bf16.msra.mxu0 %v1854_v7 }
  0x48   :  { %898 = vmatprep.subr.bf16.mxu0 %v1863_v8 }
  0x49   :  { %1123 = vmatpush1.bf16.msra.mxu1 %v1879_v14 }
  0x4a   :  { %824 = vmatmul.mubr.bf16.gmra.mrb[4].mxu0 %v2074_v41  ;;  %1080 = vmatmul.mubr.bf16.gmra.mrb[20].mxu1 %v2206_v10  ;;  %v1907_v41 = vld [vmem:[%s2558_s0 + $0x68] ss:$16 sps:$4 sm:$0xff]  }
  0x4b   :  { %899 = vmatpush1.bf16.msra.mxu0 %v1861_v11  ;;  %833 = vmatprep.mubr.bf16.mxu0 %v2088_v45  ;;  %v1916_v45 = vld [vmem:[%s2558_s0 + $0xa8] ss:$16 sps:$4 sm:$0xff]  }
  0x4c   :  { %1087 = vmatprep.mubr.bf16.mxu1 %v2215_v12  ;;  %900 = vmatprep.subr.bf16.mxu0 %v1871_v13 }
  0x4d   :  { %1124 = vmatprep.subr.bf16.mxu1 %v1923_v38  ;;  %v1908_v38 = vld [vmem:[%s2557_s1 + $0x270] ss:$12 sps:$4 sm:$0xff]  }
  0x4e   :  { %1125 = vmatpush1.bf16.msra.mxu1 %v1880_v17 }
  0x4f   :  { %901 = vmatpush1.bf16.msra.mxu0 %v1869_v15 }
  0x50   :  { %902 = vmatprep.subr.bf16.mxu0 %v1877_v16 }
  0x52   :  { %834 = vmatmul.mubr.bf16.gmra.mrb[8].mxu0 %v2108_v50  ;;  %1088 = vmatmul.mubr.bf16.gmra.mrb[24].mxu1 %v1867_v18 }
  0x53   :  { %843 = vmatprep.mubr.bf16.mxu0 %v2120_v53  ;;  %1095 = vmatprep.mubr.bf16.mxu1 %v1873_v19 }
  0x54   :  { %903 = vmatpush1.bf16.msra.mxu0 %v1875_v20 }
  0x55   :  { %904 = vmatprep.subr.bf16.mxu0 %v1883_v21 }
  0x58   :  { %905 = vmatpush1.bf16.msra.mxu0 %v1881_v22  ;;  %v157_v22 = vlaneseq }
  0x59   :  { %906 = vmatprep.subr.bf16.mxu0 %v1889_v23 }
  0x5a   :  { %844 = vmatmul.mubr.bf16.gmra.mrb[12].mxu0 %v2140_v58  ;;  %1096 = vmatmul.mubr.bf16.gmra.mrb[28].mxu1 %v1878_v24 }
  0x5b   :  { %853 = vmatprep.mubr.bf16.mxu0 %v2152_v61  ;;  %1566 = vmatprep.mubr.msk.bf16.mxu1 %vm756_vm0, %v1886_v25 }
  0x5c   :  { %907 = vmatpush1.bf16.msra.mxu0 %v1887_v26 }
  0x5d   :  { %908 = vmatprep.subr.bf16.mxu0 %v1895_v27 }
  0x60   :  { %909 = vmatpush1.bf16.msra.mxu0 %v1893_v28  ;;  %v2376_v28 = vshrl.u32 %v157_v22, 7 }
  0x61   :  { %910 = vmatprep.subr.bf16.mxu0 %v1898_v29 }
  0x62   :  { %854 = vmatmul.mubr.bf16.gmra.mrb[16].mxu0 %v2176_v3  ;;  %1137 = vmatmul.mubr.bf16.vlgmr.msra.gmra.mrb[32].mxu1 %v1884_v30 }
  0x63   :  { %863 = vmatprep.mubr.bf16.mxu0 %v2184_v5  ;;  %1567 = vmatprep.mubr.msk.bf16.mxu1 %vm756_vm0, %v1890_v31 }
  0x64   :  { %911 = vmatpush1.bf16.msra.mxu0 %v1896_v32  ;;  %v2384_v32 = vld [vmem:[%s2559_s2] sm:$0x7] }
  0x65   :  { %912 = vmatprep.subr.bf16.mxu0 %v1904_v33 }
  0x68   :  { %913 = vmatpush1.bf16.msra.mxu0 %v1902_v34 }
  0x69   :  { %914 = vmatprep.subr.bf16.mxu0 %v1910_v35 }
  0x6a   :  { %864 = vmatmul.mubr.bf16.gmra.mrb[20].mxu0 %v2206_v10  ;;  %1145 = vmatmul.mubr.bf16.gmra.mrb[36].mxu1 %v1892_v36 }
  0x6b   :  { %873 = vmatprep.mubr.bf16.mxu0 %v2215_v12  ;;  %1568 = vmatprep.mubr.msk.bf16.mxu1 %vm756_vm0, %v1899_v37 }
  0x6c   :  { %915 = vmatpush1.bf16.msra.mxu0 %v1908_v38 }
  0x72   :  { %874 = vmatmul.mubr.bf16.gmra.mrb[24].mxu0 %v1867_v18  ;;  %1153 = vmatmul.mubr.bf16.gmra.mrb[40].mxu1 %v1901_v39 }
  0x73   :  { %883 = vmatprep.mubr.bf16.mxu0 %v1873_v19  ;;  %1569 = vmatprep.mubr.msk.bf16.mxu1 %vm756_vm0, %v1905_v40 }
  0x7a   :  { %884 = vmatmul.mubr.bf16.gmra.mrb[28].mxu0 %v1878_v24  ;;  %1161 = vmatmul.mubr.bf16.gmra.mrb[44].mxu1 %v1907_v41 }
  0x7b   :  { %1558 = vmatprep.mubr.msk.bf16.mxu0 %vm756_vm0, %v1886_v25  ;;  %1570 = vmatprep.mubr.msk.bf16.mxu1 %vm756_vm0, %v1911_v42 }
  0x82   :  { %927 = vmatmul.mubr.bf16.vlgmr.msra.gmra.mrb[0].mxu0 %v1884_v30  ;;  %1169 = vmatmul.mubr.bf16.gmra.mrb[48].mxu1 %v1913_v43  ;;  %v167_v30 = vsub.s32 2, %v2376_v28 }
  0x83   :  { %1559 = vmatprep.mubr.msk.bf16.mxu0 %vm756_vm0, %v1890_v31  ;;  %1571 = vmatprep.mubr.msk.bf16.mxu1 %vm756_vm0, %v1914_v44 }
  0x8a   :  { %937 = vmatmul.mubr.bf16.gmra.mrb[4].mxu0 %v1892_v36  ;;  %1177 = vmatmul.mubr.bf16.gmra.mrb[52].mxu1 %v1916_v45 }
  0x8b   :  { %1560 = vmatprep.mubr.msk.bf16.mxu0 %vm756_vm0, %v1899_v37  ;;  %1572 = vmatprep.mubr.msk.bf16.mxu1 %vm756_vm0, %v1917_v46  ;;  %v2389_v37 = vrot.slane %v2384_v32, %v167_v30 }
  0x92   :  { %947 = vmatmul.mubr.bf16.gmra.mrb[8].mxu0 %v1901_v39  ;;  %1185 = vmatmul.mubr.bf16.gmra.mrb[56].mxu1 %v1919_v47 }
  0x93   :  { %1561 = vmatprep.mubr.msk.bf16.mxu0 %vm756_vm0, %v1905_v40  ;;  %1573 = vmatprep.mubr.msk.bf16.mxu1 %vm756_vm0, %v1920_v48 }
  0x9a   :  { %957 = vmatmul.mubr.bf16.gmra.mrb[12].mxu0 %v1907_v41  ;;  %1193 = vmatmul.mubr.bf16.gmra.mrb[60].mxu1 %v1922_v49 }
  0x9b   :  { %1562 = vmatprep.mubr.msk.bf16.mxu0 %vm756_vm0, %v1911_v42 }
  0xa2   :  { %967 = vmatmul.mubr.bf16.gmra.mrb[16].mxu0 %v1913_v43 }
  0xa3   :  { %1563 = vmatprep.mubr.msk.bf16.mxu0 %vm756_vm0, %v1914_v44 }
  0xaa   :  { %977 = vmatmul.mubr.bf16.gmra.mrb[20].mxu0 %v1916_v45 }
  0xab   :  { %1564 = vmatprep.mubr.msk.bf16.mxu0 %vm756_vm0, %v1917_v46 }
  0xb2   :  { %987 = vmatmul.mubr.bf16.gmra.mrb[24].mxu0 %v1919_v47 }
  0xb3   :  { %1565 = vmatprep.mubr.msk.bf16.mxu0 %vm756_vm0, %v1920_v48 }
  0xba   :  { %997 = vmatmul.mubr.bf16.gmra.mrb[28].mxu0 %v1922_v49 }
  0xf5   :  { %v1654_v50 = vpop.f32.mrb[0].mxu1 }
  0xf6   :  { %v1655_v51 = vpop.f32.mrb[1].mxu1 }
  0xf7   :  { %v1656_v52 = vadd.f32 %v1655_v51, %v1654_v50  ;;  %v1657_v53 = vpop.f32.mrb[2].mxu1 }
  0xf8   :  { %v1658_v54 = vpop.f32.mrb[3].mxu1 }
  0xf9   :  { %v1659_v55 = vadd.f32 %v1658_v54, %v1657_v53  ;;  %v1042_v39 = vadd.f32 %v1656_v52, %v2389_v37 }
  0xfb   :  { %v1045_v43 = vadd.f32 %v1659_v55, %v2389_v37 }
  0xfd   :  { %v1660_v56 = vpop.f32.mrb[4].mxu1 }
  0xfe   :  { %v1661_v57 = vpop.f32.mrb[5].mxu1 }
  0xff   :  { %v1662_v58 = vadd.f32 %v1661_v57, %v1660_v56  ;;  %v1663_v59 = vpop.f32.mrb[6].mxu1 }
 0x100   :  { %v1664_v60 = vpop.f32.mrb[7].mxu1 }
 0x101   :  { %v1665_v61 = vadd.f32 %v1664_v60, %v1663_v59  ;;  %v1050_v51 = vadd.f32 %v1662_v58, %v2389_v37 }
 0x103   :  { %v1053_v55 = vadd.f32 %v1665_v61, %v2389_v37 }
 0x105   :  { %v1666_v62 = vpop.f32.mrb[8].mxu1 }
 0x106   :  { %v1667_v63 = vpop.f32.mrb[9].mxu1 }
 0x107   :  { %v2358_v0 = vadd.f32 %v1667_v63, %v1666_v62  ;;  %v1669_v1 = vpop.f32.mrb[10].mxu1 }
 0x108   :  { %v1670_v2 = vpop.f32.mrb[11].mxu1 }
 0x109   :  { %v2360_v3 = vadd.f32 %v1670_v2, %v1669_v1  ;;  %v1058_v1 = vadd.f32 %v2358_v0, %v2389_v37 }
 0x10d   :  { %v1672_v4 = vpop.f32.mrb[12].mxu1 }
 0x10e   :  { %v1673_v5 = vpop.f32.mrb[13].mxu1 }
 0x10f   :  { %v2362_v6 = vadd.f32 %v1673_v5, %v1672_v4  ;;  %v1675_v7 = vpop.f32.mrb[14].mxu1  ;;  %v1061_v5 = vadd.f32 %v2360_v3, %v2389_v37 }
 0x110   :  { %v1676_v8 = vpop.f32.mrb[15].mxu1 }
 0x111   :  { %v2364_v9 = vadd.f32 %v1676_v8, %v1675_v7 }
 0x113   :  { %v1069_v22 = vadd.f32 %v2364_v9, %v2389_v37 }
 0x115   :  { %v1678_v10 = vpop.f32.mrb[16].mxu1 }
 0x116   :  { %v1679_v11 = vpop.f32.mrb[17].mxu1 }
 0x117   :  { %v2366_v12 = vadd.f32 %v1679_v11, %v1678_v10  ;;  %v1681_v13 = vpop.f32.mrb[18].mxu1 }
 0x118   :  { %v1682_v14 = vpop.f32.mrb[19].mxu1 }
 0x119   :  { %v2368_v15 = vadd.f32 %v1682_v14, %v1681_v13 }
 0x11d   :  { %v1684_v16 = vpop.f32.mrb[20].mxu1 }
 0x11e   :  { %v1685_v17 = vpop.f32.mrb[21].mxu1 }
 0x11f   :  { %v2370_v18 = vadd.f32 %v1685_v17, %v1684_v16  ;;  %v1687_v19 = vpop.f32.mrb[22].mxu1  ;;  %v1066_v16 = vadd.f32 %v2362_v6, %v2389_v37 }
 0x120   :  { %v1688_v20 = vpop.f32.mrb[23].mxu1 }
 0x121   :  { %v2372_v21 = vadd.f32 %v1688_v20, %v1687_v19  ;;  %v159_v19 = vsub.s32 0, %v2376_v28 }
 0x123   :  { %v2426_v6 = vrot.slane %v2384_v32, %v159_v19 }
 0x125   :  { %v1690_v23 = vpop.f32.mrb[24].mxu1 }
 0x126   :  { %v1691_v24 = vpop.f32.mrb[25].mxu1 }
 0x127   :  { %v2374_v25 = vadd.f32 %v1691_v24, %v1690_v23  ;;  %v1693_v26 = vpop.f32.mrb[26].mxu1  ;;  %v163_v23 = vsub.s32 1, %v2376_v28  ;;  %v1074_v28 = vadd.f32 %v2366_v12, %v2389_v37 }
 0x128   :  { %v1694_v27 = vpop.f32.mrb[27].mxu1 }
 0x129   :  { %v2378_v29 = vadd.f32 %v1694_v27, %v1693_v26 }
 0x12d   :  { %v1696_v31 = vpop.f32.mrb[28].mxu1 }
 0x12e   :  { %v1697_v33 = vpop.f32.mrb[29].mxu1 }
 0x12f   :  { %v2386_v34 = vadd.f32 %v1697_v33, %v1696_v31  ;;  %v1699_v35 = vpop.f32.mrb[30].mxu1 }
 0x130   :  { %v1700_v36 = vpop.f32.mrb[31].mxu1 }
 0x131   :  { %v2391_v38 = vadd.f32 %v1700_v36, %v1699_v35  ;;  %v2429_v35 = vrot.slane %v2384_v32, %v163_v23 }
 0x135   :  { %v1138_v40 = vpop.f32.mrb[32].mxu1 }
 0x136   :  { %v1139_v41 = vadd.f32 %v1138_v40, %v1042_v39  ;;  %v1140_v42 = vpop.f32.mrb[33].mxu1 }
 0x137   :  { %v1141_v44 = vpop.f32.mrb[34].mxu1 }
 0x138   :  { %v1203_v45 = vmax.f32 %v1139_v41, 0.0  ;;  %v1142_v46 = vadd.f32 %v1141_v44, %v1045_v43  ;;  %v1143_v47 = vpop.f32.mrb[35].mxu1 }
 0x13a   :  { %v1607_v48 = vpack.c.bf16 %v1203_v45, %v1203_v45  ;;  %v1206_v49 = vmax.f32 %v1142_v46, 0.0  ;;  %v1077_v45 = vadd.f32 %v2368_v15, %v2389_v37 }
 0x13c   :  { %1410 = vst [vmem:[%s2560_s3 + $0x8] sm:$0xf] %v1607_v48  ;;  %v1609_v50 = vpack.c.bf16 %v1206_v49, %v1206_v49 }
 0x13d   :  { %v1146_v53 = vpop.f32.mrb[36].mxu1 }
 0x13e   :  { %1412 = vst [vmem:[%s2560_s3 + $0x14] sm:$0xf] %v1609_v50  ;;  %v1147_v52 = vadd.f32 %v1146_v53, %v1050_v51  ;;  %v1148_v54 = vpop.f32.mrb[37].mxu1 }
 0x13f   :  { %v1149_v56 = vpop.f32.mrb[38].mxu1 }
 0x140   :  { %v1209_v57 = vmax.f32 %v1147_v52, 0.0  ;;  %v1150_v59 = vadd.f32 %v1149_v56, %v1053_v55  ;;  %v1151_v60 = vpop.f32.mrb[39].mxu1 }
 0x142   :  { %v1611_v62 = vpack.c.bf16 %v1209_v57, %v1209_v57  ;;  %v1212_v63 = vmax.f32 %v1150_v59, 0.0 }
 0x144   :  { %1414 = vst [vmem:[%s2560_s3 + $0x20] sm:$0xf] %v1611_v62  ;;  %v1613_v58 = vpack.c.bf16 %v1212_v63, %v1212_v63  ;;  %v1082_v63 = vadd.f32 %v2370_v18, %v2389_v37  ;;  %v1085_v18 = vadd.f32 %v2372_v21, %v2389_v37 }
 0x145   :  { %v1154_v2 = vpop.f32.mrb[40].mxu1 }
 0x146   :  { %1416 = vst [vmem:[%s2560_s3 + $0x2c] sm:$0xf] %v1613_v58  ;;  %v1155_v61 = vadd.f32 %v1154_v2, %v1058_v1  ;;  %v1156_v4 = vpop.f32.mrb[41].mxu1 }
 0x147   :  { %v1157_v7 = vpop.f32.mrb[42].mxu1 }
 0x148   :  { %v1215_v8 = vmax.f32 %v1155_v61, 0.0  ;;  %v1158_v10 = vadd.f32 %v1157_v7, %v1061_v5  ;;  %v1159_v11 = vpop.f32.mrb[43].mxu1 }
 0x14a   :  { %v1615_v13 = vpack.c.bf16 %v1215_v8, %v1215_v8  ;;  %v1218_v14 = vmax.f32 %v1158_v10, 0.0 }
 0x14c   :  { %1418 = vst [vmem:[%s2560_s3 + $0x38] sm:$0xf] %v1615_v13  ;;  %v1617_v0 = vpack.c.bf16 %v1218_v14, %v1218_v14 }
 0x14d   :  { %v1162_v17 = vpop.f32.mrb[44].mxu1 }
 0x14e   :  { %1420 = vst [vmem:[%s2560_s3 + $0x44] sm:$0xf] %v1617_v0  ;;  %v1163_v3 = vadd.f32 %v1162_v17, %v1066_v16  ;;  %v1164_v20 = vpop.f32.mrb[45].mxu1 }
 0x14f   :  { %v1165_v24 = vpop.f32.mrb[46].mxu1 }
 0x150   :  { %v1221_v26 = vmax.f32 %v1163_v3, 0.0  ;;  %v1166_v27 = vadd.f32 %v1165_v24, %v1069_v22  ;;  %v1167_v30 = vpop.f32.mrb[47].mxu1 }
 0x151   :  { %v1090_v30 = vadd.f32 %v2374_v25, %v2389_v37  ;;  %v1093_v25 = vadd.f32 %v2378_v29, %v2389_v37 }
 0x152   :  { %v1619_v31 = vpack.c.bf16 %v1221_v26, %v1221_v26  ;;  %v1224_v33 = vmax.f32 %v1166_v27, 0.0 }
 0x154   :  { %1422 = vst [vmem:[%s2560_s3 + $0x50] sm:$0xf] %v1619_v31  ;;  %v1621_v36 = vpack.c.bf16 %v1224_v33, %v1224_v33 }
 0x155   :  { %v928_v9 = vpop.f32.mrb[0].mxu0  ;;  %v1170_v40 = vpop.f32.mrb[48].mxu1 }
 0x156   :  { %v1702_v39 = vadd.f32 %v928_v9, %v2426_v6  ;;  %v930_v41 = vpop.f32.mrb[1].mxu0  ;;  %1424 = vst [vmem:[%s2560_s3 + $0x5c] sm:$0xf] %v1621_v36  ;;  %v1171_v42 = vadd.f32 %v1170_v40, %v1074_v28  ;;  %v1172_v43 = vpop.f32.mrb[49].mxu1 }
 0x157   :  { %v1703_v32 = vadd.f32 %v930_v41, %v2429_v35  ;;  %v932_v44 = vpop.f32.mrb[2].mxu0  ;;  %v1173_v12 = vpop.f32.mrb[50].mxu1 }
 0x158   :  { %v1201_v46 = vmax.f32 %v1702_v39, 0.0  ;;  %v1704_v47 = vadd.f32 %v932_v44, %v2426_v6  ;;  %v934_v48 = vpop.f32.mrb[3].mxu0  ;;  %v1227_v49 = vmax.f32 %v1171_v42, 0.0  ;;  %v1174_v51 = vadd.f32 %v1173_v12, %v1077_v45  ;;  %v1175_v52 = vpop.f32.mrb[51].mxu1 }
 0x159   :  { %v1202_v50 = vmax.f32 %v1703_v32, 0.0  ;;  %v1705_v53 = vadd.f32 %v934_v48, %v2429_v35 }
 0x15a   :  { %v1204_v54 = vmax.f32 %v1704_v47, 0.0  ;;  %v1623_v55 = vpack.c.bf16 %v1227_v49, %v1227_v49  ;;  %v1230_v57 = vmax.f32 %v1174_v51, 0.0 }
 0x15b   :  { %v1606_v56 = vpack.c.bf16 %v1202_v50, %v1201_v46  ;;  %v1205_v59 = vmax.f32 %v1705_v53, 0.0 }
 0x15c   :  { %1426 = vst [vmem:[%s2560_s3 + $0x68] sm:$0xf] %v1623_v55  ;;  %v1625_v15 = vpack.c.bf16 %v1230_v57, %v1230_v57  ;;  %v1098_v55 = vadd.f32 %v2386_v34, %v2389_v37  ;;  %v1101_v34 = vadd.f32 %v2391_v38, %v2389_v37 }
 0x15d   :  { %1409 = vst [vmem:[%s2560_s3] sm:$0xff] %v1606_v56  ;;  %v1608_v60 = vpack.c.bf16 %v1205_v59, %v1204_v54  ;;  %v938_v62 = vpop.f32.mrb[4].mxu0  ;;  %v1178_v1 = vpop.f32.mrb[52].mxu1 }
 0x15e   :  { %v1706_v58 = vadd.f32 %v938_v62, %v2426_v6  ;;  %v940_v2 = vpop.f32.mrb[5].mxu0  ;;  %1428 = vst [vmem:[%s2560_s3 + $0x74] sm:$0xf] %v1625_v15  ;;  %v1179_v61 = vadd.f32 %v1178_v1, %v1082_v63  ;;  %v1180_v5 = vpop.f32.mrb[53].mxu1 }
 0x15f   :  { %1411 = vst [vmem:[%s2560_s3 + $0xc] sm:$0xff] %v1608_v60  ;;  %v1707_v4 = vadd.f32 %v940_v2, %v2429_v35  ;;  %v942_v7 = vpop.f32.mrb[6].mxu0  ;;  %v1181_v11 = vpop.f32.mrb[54].mxu1 }
 0x160   :  { %v1207_v8 = vmax.f32 %v1706_v58, 0.0  ;;  %v1708_v10 = vadd.f32 %v942_v7, %v2426_v6  ;;  %v944_v13 = vpop.f32.mrb[7].mxu0  ;;  %v1233_v14 = vmax.f32 %v1179_v61, 0.0  ;;  %v1182_v16 = vadd.f32 %v1181_v11, %v1085_v18  ;;  %v1183_v19 = vpop.f32.mrb[55].mxu1 }
 0x161   :  { %v1208_v0 = vmax.f32 %v1707_v4, 0.0  ;;  %v1709_v17 = vadd.f32 %v944_v13, %v2429_v35 }
 0x162   :  { %v1210_v3 = vmax.f32 %v1708_v10, 0.0  ;;  %v1627_v20 = vpack.c.bf16 %v1233_v14, %v1233_v14  ;;  %v1236_v23 = vmax.f32 %v1182_v16, 0.0 }
 0x163   :  { %v1610_v22 = vpack.c.bf16 %v1208_v0, %v1207_v8  ;;  %v1211_v24 = vmax.f32 %v1709_v17, 0.0 }
 0x164   :  { %1430 = vst [vmem:[%s2560_s3 + $0x80] sm:$0xf] %v1627_v20  ;;  %v1629_v21 = vpack.c.bf16 %v1236_v23, %v1236_v23 }
 0x165   :  { %1413 = vst [vmem:[%s2560_s3 + $0x18] sm:$0xff] %v1610_v22  ;;  %v1612_v26 = vpack.c.bf16 %v1211_v24, %v1210_v3  ;;  %v948_v27 = vpop.f32.mrb[8].mxu0  ;;  %v1186_v33 = vpop.f32.mrb[56].mxu1 }
 0x166   :  { %v1710_v31 = vadd.f32 %v948_v27, %v2426_v6  ;;  %v950_v36 = vpop.f32.mrb[9].mxu0  ;;  %1432 = vst [vmem:[%s2560_s3 + $0x8c] sm:$0xf] %v1629_v21  ;;  %v1187_v9 = vadd.f32 %v1186_v33, %v1090_v30  ;;  %v1188_v39 = vpop.f32.mrb[57].mxu1 }
 0x167   :  { %1415 = vst [vmem:[%s2560_s3 + $0x24] sm:$0xff] %v1612_v26  ;;  %v1711_v28 = vadd.f32 %v950_v36, %v2429_v35  ;;  %v952_v40 = vpop.f32.mrb[10].mxu0  ;;  %v1189_v32 = vpop.f32.mrb[58].mxu1 }
 0x168   :  { %v1213_v41 = vmax.f32 %v1710_v31, 0.0  ;;  %v1712_v42 = vadd.f32 %v952_v40, %v2426_v6  ;;  %v954_v43 = vpop.f32.mrb[11].mxu0  ;;  %v1239_v44 = vmax.f32 %v1187_v9, 0.0  ;;  %v1190_v46 = vadd.f32 %v1189_v32, %v1093_v25  ;;  %v1191_v12 = vpop.f32.mrb[59].mxu1 }
 0x169   :  { %v1214_v45 = vmax.f32 %v1711_v28, 0.0  ;;  %v1713_v47 = vadd.f32 %v954_v43, %v2429_v35 }
 0x16a   :  { %v1216_v48 = vmax.f32 %v1712_v42, 0.0  ;;  %v1631_v49 = vpack.c.bf16 %v1239_v44, %v1239_v44  ;;  %v1242_v51 = vmax.f32 %v1190_v46, 0.0 }
 0x16b   :  { %v1614_v50 = vpack.c.bf16 %v1214_v45, %v1213_v41  ;;  %v1217_v53 = vmax.f32 %v1713_v47, 0.0 }
 0x16c   :  { %1434 = vst [vmem:[%s2560_s3 + $0x98] sm:$0xf] %v1631_v49  ;;  %v1633_v29 = vpack.c.bf16 %v1242_v51, %v1242_v51 }
 0x16d   :  { %1417 = vst [vmem:[%s2560_s3 + $0x30] sm:$0xff] %v1614_v50  ;;  %v1616_v52 = vpack.c.bf16 %v1217_v53, %v1216_v48  ;;  %v958_v54 = vpop.f32.mrb[12].mxu0  ;;  %v1194_v57 = vpop.f32.mrb[60].mxu1 }
 0x16e   :  { %v1714_v56 = vadd.f32 %v958_v54, %v2426_v6  ;;  %v960_v59 = vpop.f32.mrb[13].mxu0  ;;  %1436 = vst [vmem:[%s2560_s3 + $0xa4] sm:$0xf] %v1633_v29  ;;  %v1195_v15 = vadd.f32 %v1194_v57, %v1098_v55  ;;  %v1196_v62 = vpop.f32.mrb[61].mxu1 }
 0x16f   :  { %1419 = vst [vmem:[%s2560_s3 + $0x3c] sm:$0xff] %v1616_v52  ;;  %v1715_v60 = vadd.f32 %v960_v59, %v2429_v35  ;;  %v962_v63 = vpop.f32.mrb[14].mxu0  ;;  %v1197_v2 = vpop.f32.mrb[62].mxu1 }
 0x170   :  { %v1219_v58 = vmax.f32 %v1714_v56, 0.0  ;;  %v1716_v1 = vadd.f32 %v962_v63, %v2426_v6  ;;  %v964_v61 = vpop.f32.mrb[15].mxu0  ;;  %v1245_v4 = vmax.f32 %v1195_v15, 0.0  ;;  %v1198_v7 = vadd.f32 %v1197_v2, %v1101_v34  ;;  %v1199_v8 = vpop.f32.mrb[63].mxu1 }
 0x171   :  { %v1220_v5 = vmax.f32 %v1715_v60, 0.0  ;;  %v1717_v18 = vadd.f32 %v964_v61, %v2429_v35 }
 0x172   :  { %v1222_v10 = vmax.f32 %v1716_v1, 0.0  ;;  %v1635_v11 = vpack.c.bf16 %v1245_v4, %v1245_v4  ;;  %v1248_v14 = vmax.f32 %v1198_v7, 0.0 }
 0x173   :  { %v1618_v13 = vpack.c.bf16 %v1220_v5, %v1219_v58  ;;  %v1223_v0 = vmax.f32 %v1717_v18, 0.0 }
 0x174   :  { %1438 = vst [vmem:[%s2560_s3 + $0xb0] sm:$0xf] %v1635_v11  ;;  %v1637_v37 = vpack.c.bf16 %v1248_v14, %v1248_v14 }
 0x175   :  { %1421 = vst [vmem:[%s2560_s3 + $0x48] sm:$0xff] %v1618_v13  ;;  %v1620_v38 = vpack.c.bf16 %v1223_v0, %v1222_v10  ;;  %v968_v16 = vpop.f32.mrb[16].mxu0 }
 0x176   :  { %v1718_v17 = vadd.f32 %v968_v16, %v2426_v6  ;;  %v970_v19 = vpop.f32.mrb[17].mxu0  ;;  %1440 = vst [vmem:[%s2560_s3 + $0xbc] sm:$0xf] %v1637_v37 }
 0x177   :  { %1423 = vst [vmem:[%s2560_s3 + $0x54] sm:$0xff] %v1620_v38  ;;  %v1719_v3 = vadd.f32 %v970_v19, %v2429_v35  ;;  %v972_v20 = vpop.f32.mrb[18].mxu0 }
 0x178   :  { %v1225_v22 = vmax.f32 %v1718_v17, 0.0  ;;  %v1720_v23 = vadd.f32 %v972_v20, %v2426_v6  ;;  %v974_v24 = vpop.f32.mrb[19].mxu0 }
 0x179   :  { %v1226_v21 = vmax.f32 %v1719_v3, 0.0  ;;  %v1721_v26 = vadd.f32 %v974_v24, %v2429_v35 }
 0x17a   :  { %v1228_v27 = vmax.f32 %v1720_v23, 0.0 }
 0x17b   :  { %v1622_v30 = vpack.c.bf16 %v1226_v21, %v1225_v22  ;;  %v1229_v31 = vmax.f32 %v1721_v26, 0.0 }
 0x17d   :  { %1425 = vst [vmem:[%s2560_s3 + $0x60] sm:$0xff] %v1622_v30  ;;  %v1624_v33 = vpack.c.bf16 %v1229_v31, %v1228_v27  ;;  %v978_v36 = vpop.f32.mrb[20].mxu0 }
 0x17e   :  { %v1722_v9 = vadd.f32 %v978_v36, %v2426_v6  ;;  %v980_v28 = vpop.f32.mrb[21].mxu0 }
 0x17f   :  { %1427 = vst [vmem:[%s2560_s3 + $0x6c] sm:$0xff] %v1624_v33  ;;  %v1723_v39 = vadd.f32 %v980_v28, %v2429_v35  ;;  %v982_v40 = vpop.f32.mrb[22].mxu0 }
 0x180   :  { %v1231_v25 = vmax.f32 %v1722_v9, 0.0  ;;  %v1724_v41 = vadd.f32 %v982_v40, %v2426_v6  ;;  %v984_v42 = vpop.f32.mrb[23].mxu0 }
 0x181   :  { %v1232_v32 = vmax.f32 %v1723_v39, 0.0  ;;  %v1725_v43 = vadd.f32 %v984_v42, %v2429_v35 }
 0x182   :  { %v1234_v44 = vmax.f32 %v1724_v41, 0.0 }
 0x183   :  { %v1626_v45 = vpack.c.bf16 %v1232_v32, %v1231_v25  ;;  %v1235_v46 = vmax.f32 %v1725_v43, 0.0 }
 0x185   :  { %1429 = vst [vmem:[%s2560_s3 + $0x78] sm:$0xff] %v1626_v45  ;;  %v1628_v47 = vpack.c.bf16 %v1235_v46, %v1234_v44  ;;  %v988_v12 = vpop.f32.mrb[24].mxu0 }
 0x186   :  { %v1726_v48 = vadd.f32 %v988_v12, %v2426_v6  ;;  %v990_v49 = vpop.f32.mrb[25].mxu0 }
 0x187   :  { %1431 = vst [vmem:[%s2560_s3 + $0x84] sm:$0xff] %v1628_v47  ;;  %v1727_v50 = vadd.f32 %v990_v49, %v2429_v35  ;;  %v992_v51 = vpop.f32.mrb[26].mxu0 }
 0x188   :  { %v1237_v53 = vmax.f32 %v1726_v48, 0.0  ;;  %v1728_v29 = vadd.f32 %v992_v51, %v2426_v6  ;;  %v994_v52 = vpop.f32.mrb[27].mxu0 }
 0x189   :  { %v1238_v54 = vmax.f32 %v1727_v50, 0.0  ;;  %v1729_v55 = vadd.f32 %v994_v52, %v2429_v35 }
 0x18a   :  { %v1240_v56 = vmax.f32 %v1728_v29, 0.0 }
 0x18b   :  { %v1630_v57 = vpack.c.bf16 %v1238_v54, %v1237_v53  ;;  %v1241_v59 = vmax.f32 %v1729_v55, 0.0 }
 0x18d   :  { %1433 = vst [vmem:[%s2560_s3 + $0x90] sm:$0xff] %v1630_v57  ;;  %v1632_v15 = vpack.c.bf16 %v1241_v59, %v1240_v56  ;;  %v998_v60 = vpop.f32.mrb[28].mxu0 }
 0x18e   :  { %v1730_v62 = vadd.f32 %v998_v60, %v2426_v6  ;;  %v1000_v63 = vpop.f32.mrb[29].mxu0 }
 0x18f   :  { %1435 = vst [vmem:[%s2560_s3 + $0x9c] sm:$0xff] %v1632_v15  ;;  %v1731_v34 = vadd.f32 %v1000_v63, %v2429_v35  ;;  %v1002_v58 = vpop.f32.mrb[30].mxu0 }
 0x190   :  { %v1243_v1 = vmax.f32 %v1730_v62, 0.0  ;;  %v1732_v2 = vadd.f32 %v1002_v58, %v2426_v6  ;;  %v1004_v61 = vpop.f32.mrb[31].mxu0 }
 0x191   :  { %v1244_v4 = vmax.f32 %v1731_v34, 0.0  ;;  %v1733_v5 = vadd.f32 %v1004_v61, %v2429_v35 }
 0x192   :  { %v1246_v7 = vmax.f32 %v1732_v2, 0.0 }
 0x193   :  { %v1634_v18 = vpack.c.bf16 %v1244_v4, %v1243_v1  ;;  %v1247_v8 = vmax.f32 %v1733_v5, 0.0 }
 0x195   :  { %1437 = vst [vmem:[%s2560_s3 + $0xa8] sm:$0xff] %v1634_v18  ;;  %v1636_v10 = vpack.c.bf16 %v1247_v8, %v1246_v7 }
 0x197   :  { %1439 = vst [vmem:[%s2560_s3 + $0xb4] sm:$0xff] %v1636_v10 }

// kernel: model_forward.30
= control target key start
LH: loop header
LB: loop body
LE: loop exit
PB: predicated region body
PF: predicated region fallthrough
CT: control target
= control target key end

     0   :  { %vm372_vm0 = vcmask 519168   ;;  %s639_s1 = inlined_call_operand.vmem [shape: bf16[384,64], index: 1, kind: input, shape index: {}]   ;;  %s640_s0 = inlined_call_operand.vmem [shape: bf16[32,384], index: 0, kind: input, shape index: {}]   ;;  %s641_s2 = inlined_call_operand.vmem [shape: f32[1,64], index: 2, kind: input, shape index: {}]   ;;  %s642_s3 = inlined_call_operand.vmem [shape: bf16[32,64], index: 3, kind: output, shape index: {}]  }
   0x1   :  { %v478_v0 = vld [vmem:[%s639_s1 + $0x40] sm:$0xff]   ;;  %v480_v2 = vld [vmem:[%s639_s1 + $0x48] sm:$0xff]   ;;  %v483_v5 = vld [vmem:[%s639_s1 + $0x50] sm:$0xff]  }
   0x2   :  { %v479_v1 = vld [vmem:[%s639_s1] sm:$0xff]   ;;  %420 = vmatprep.subr.bf16.mxu0 %v478_v0  ;;  %v482_v4 = vld [vmem:[%s639_s1 + $0x8] sm:$0xff]   ;;  %v485_v7 = vld [vmem:[%s639_s1 + $0x10] sm:$0xff]  }
   0x3   :  { %421 = vmatpush3.bf16.msra.mxu0 %v479_v1  ;;  %v481_v3 = vld [vmem:[%s639_s1 + $0x80] sm:$0xff]   ;;  %v484_v6 = vld [vmem:[%s639_s1 + $0x88] sm:$0xff]   ;;  %v486_v8 = vld [vmem:[%s639_s1 + $0x58] sm:$0xff]  }
   0x4   :  { %422 = vmatprep.subr.bf16.mxu0 %v480_v2  ;;  %458 = vmatprep.subr.bf16.mxu1 %v481_v3  ;;  %v487_v9 = vld [vmem:[%s639_s1 + $0x90] sm:$0xff]   ;;  %v488_v10 = vld [vmem:[%s639_s1 + $0x18] sm:$0xff]   ;;  %v489_v11 = vld [vmem:[%s639_s1 + $0x60] sm:$0xff]  }
   0x5   :  { %459 = vmatpush3.bf16.msra.mxu1 %v481_v3  ;;  %v490_v12 = vld [vmem:[%s639_s1 + $0x98] sm:$0xff]   ;;  %v491_v13 = vld [vmem:[%s639_s1 + $0x20] sm:$0xff]   ;;  %v492_v15 = vld [vmem:[%s639_s1 + $0x68] sm:$0xff]  }
   0x6   :  { %460 = vmatprep.subr.bf16.mxu1 %v484_v6  ;;  %v493_v14 = vld [vmem:[%s639_s1 + $0xa0] sm:$0xff]   ;;  %v494_v16 = vld [vmem:[%s639_s1 + $0x28] sm:$0xff]   ;;  %v495_v18 = vld [vmem:[%s639_s1 + $0x70] sm:$0xff]  }
   0x7   :  { %423 = vmatpush3.bf16.msra.mxu0 %v482_v4  ;;  %v496_v17 = vld [vmem:[%s639_s1 + $0xa8] sm:$0xff]   ;;  %v497_v19 = vld [vmem:[%s639_s1 + $0x30] sm:$0xff]   ;;  %v498_v20 = vld [vmem:[%s639_s1 + $0x78] sm:$0xff]  }
   0x8   :  { %424 = vmatprep.subr.bf16.mxu0 %v483_v5  ;;  %v499_v21 = vld [vmem:[%s639_s1 + $0xb0] sm:$0xff]   ;;  %v500_v23 = vld [vmem:[%s639_s1 + $0x38] sm:$0xff]   ;;  %v501_v26 = vld [vmem:[%s640_s0] ss:$12 sps:$4 sm:$0xff]  }
   0x9   :  { %461 = vmatpush3.bf16.msra.mxu1 %v484_v6  ;;  %v503_v22 = vld [vmem:[%s640_s0 + $0x4] ss:$12 sps:$4 sm:$0xff]   ;;  %v505_v24 = vld [vmem:[%s640_s0 + $0x8] ss:$12 sps:$4 sm:$0xff]   ;;  %v504_v25 = vld [vmem:[%s639_s1 + $0xb8] sm:$0xff]  }
   0xa   :  { %462 = vmatprep.subr.bf16.mxu1 %v487_v9  ;;  %286 = vmatprep.mubr.bf16.mxu0 %v503_v22  ;;  %v507_v27 = vld [vmem:[%s640_s0 + $0x1c] ss:$12 sps:$4 sm:$0xff]   ;;  %v506_v28 = vld [vmem:[%s640_s0 + $0x20] ss:$12 sps:$4 sm:$0xff]   ;;  %v509_v29 = vld [vmem:[%s640_s0 + $0x18] ss:$12 sps:$4 sm:$0xff]  }
   0xb   :  { %425 = vmatpush3.bf16.msra.mxu0 %v485_v7  ;;  %474 = vmatprep.mubr.bf16.mxu1 %v505_v24  ;;  %v381_v32 = vld [vmem:[%s641_s2] ss:$0 sm:$0xff] }
   0xc   :  { %426 = vmatprep.subr.bf16.mxu0 %v486_v8 }
   0xd   :  { %463 = vmatpush3.bf16.msra.mxu1 %v487_v9 }
   0xe   :  { %464 = vmatprep.subr.bf16.mxu1 %v490_v12 }
   0xf   :  { %427 = vmatpush3.bf16.msra.mxu0 %v488_v10 }
  0x10   :  { %428 = vmatprep.subr.bf16.mxu0 %v489_v11 }
  0x11   :  { %465 = vmatpush3.bf16.msra.mxu1 %v490_v12 }
  0x12   :  { %466 = vmatprep.subr.bf16.mxu1 %v493_v14 }
  0x13   :  { %429 = vmatpush3.bf16.msra.mxu0 %v491_v13 }
  0x14   :  { %430 = vmatprep.subr.bf16.mxu0 %v492_v15 }
  0x15   :  { %467 = vmatpush3.bf16.msra.mxu1 %v493_v14 }
  0x16   :  { %468 = vmatprep.subr.bf16.mxu1 %v496_v17 }
  0x17   :  { %431 = vmatpush3.bf16.msra.mxu0 %v494_v16 }
  0x18   :  { %432 = vmatprep.subr.bf16.mxu0 %v495_v18 }
  0x19   :  { %469 = vmatpush3.bf16.msra.mxu1 %v496_v17 }
  0x1a   :  { %470 = vmatprep.subr.bf16.mxu1 %v499_v21 }
  0x1b   :  { %433 = vmatpush3.bf16.msra.mxu0 %v497_v19 }
  0x1c   :  { %434 = vmatprep.subr.bf16.mxu0 %v498_v20 }
  0x1d   :  { %471 = vmatpush3.bf16.msra.mxu1 %v499_v21 }
  0x1e   :  { %472 = vmatprep.subr.bf16.mxu1 %v504_v25 }
  0x1f   :  { %435 = vmatpush3.bf16.msra.mxu0 %v500_v23 }
  0x21   :  { %473 = vmatpush3.bf16.msra.mxu1 %v504_v25 }
  0x22   :  { %287 = vmatmul.mubr.bf16.vlgmr.msra.gmra.mrb[0].mxu0 %v501_v26 }
  0x23   :  { %294 = vmatprep.mubr.bf16.mxu0 %v507_v27 }
  0x24   :  { %475 = vmatmul.mubr.bf16.vlgmr.msra.gmra.mrb[0].mxu1 %v506_v28 }
  0x2a   :  { %295 = vmatmul.mubr.bf16.gmra.mrb[4].mxu0 %v509_v29 }
  0xf5   :  { %v436_v30 = vpop.f32.mrb[0].mxu0 }
  0xf6   :  { %v437_v31 = vpop.f32.mrb[1].mxu0 }
  0xf7   :  { %v438_v33 = vadd.f32 %v437_v31, %v436_v30  ;;  %v439_v34 = vpop.f32.mrb[2].mxu0  ;;  %v476_v36 = vpop.f32.mrb[0].mxu1 }
  0xf8   :  { %v440_v35 = vpop.f32.mrb[3].mxu0  ;;  %v337_v39 = vpop.f32.mrb[1].mxu1 }
  0xf9   :  { %v441_v37 = vadd.f32 %v440_v35, %v439_v34  ;;  %v289_v38 = vadd.f32 %v438_v33, %v381_v32  ;;  %v477_v40 = vpop.f32.mrb[2].mxu1 }
  0xfa   :  { %v340_v43 = vpop.f32.mrb[3].mxu1 }
  0xfb   :  { %v338_v41 = vadd.f32 %v337_v39, %v289_v38  ;;  %v292_v42 = vadd.f32 %v441_v37, %v381_v32 }
  0xfd   :  { %v352_v44 = vmax.f32 %v338_v41, 0.0  ;;  %v341_v45 = vadd.f32 %v340_v43, %v292_v42  ;;  %v442_v46 = vpop.f32.mrb[4].mxu0 }
  0xfe   :  { %v443_v47 = vpop.f32.mrb[5].mxu0 }
  0xff   :  { %v416_v48 = vpack.c.bf16 %v352_v44, %v352_v44  ;;  %v353_v49 = vmax.f32 %v341_v45, 0.0  ;;  %v444_v50 = vadd.f32 %v443_v47, %v442_v46  ;;  %v445_v51 = vpop.f32.mrb[6].mxu0 }
 0x100   :  { %v446_v52 = vpop.f32.mrb[7].mxu0 }
 0x101   :  { %373 = vst.msk [vmem:[%s642_s3] sm:$0xf] %vm372_vm0, %v416_v48  ;;  %v417_v53 = vpack.c.bf16 %v353_v49, %v353_v49  ;;  %v297_v54 = vadd.f32 %v444_v50, %v381_v32  ;;  %v447_v55 = vadd.f32 %v446_v52, %v445_v51 }
 0x103   :  { %374 = vst.msk [vmem:[%s642_s3 + $0x4] sm:$0xf] %vm372_vm0, %v417_v53  ;;  %v346_v56 = vadd.f32 %v476_v36, %v297_v54  ;;  %v300_v57 = vadd.f32 %v447_v55, %v381_v32 }
 0x105   :  { %v354_v58 = vmax.f32 %v346_v56, 0.0  ;;  %v349_v59 = vadd.f32 %v477_v40, %v300_v57 }
 0x107   :  { %v418_v60 = vpack.c.bf16 %v354_v58, %v354_v58  ;;  %v355_v61 = vmax.f32 %v349_v59, 0.0 }
 0x109   :  { %375 = vst.msk [vmem:[%s642_s3 + $0x8] sm:$0xf] %vm372_vm0, %v418_v60  ;;  %v419_v62 = vpack.c.bf16 %v355_v61, %v355_v61 }
 0x10b   :  { %376 = vst.msk [vmem:[%s642_s3 + $0xc] sm:$0xf] %vm372_vm0, %v419_v62 }

// kernel: model_forward.32
= control target key start
LH: loop header
LB: loop body
LE: loop exit
PB: predicated region body
PF: predicated region fallthrough
CT: control target
= control target key end

     0   :  { %vm376_vm0 = vcmask 650240   ;;  %s627_s1 = inlined_call_operand.vmem [shape: bf16[512,80], index: 1, kind: input, shape index: {}]   ;;  %s628_s0 = inlined_call_operand.vmem [shape: bf16[8,512], index: 0, kind: input, shape index: {}]   ;;  %s629_s2 = inlined_call_operand.vmem [shape: f32[1,80], index: 2, kind: input, shape index: {}]   ;;  %s630_s3 = inlined_call_operand.vmem [shape: bf16[8,80], index: 3, kind: output, shape index: {}]  }
   0x1   :  { %v463_v0 = vld [vmem:[%s627_s1 + $0x40] sm:$0xff]   ;;  %v467_v4 = vld [vmem:[%s627_s1 + $0x48] sm:$0xff]   ;;  %v471_v8 = vld [vmem:[%s627_s1 + $0x50] sm:$0xff]  }
   0x2   :  { %v464_v1 = vld [vmem:[%s627_s1 + $0xc0] sm:$0xff]   ;;  %419 = vmatprep.subr.bf16.mxu0 %v463_v0  ;;  %v468_v5 = vld [vmem:[%s627_s1 + $0xc8] sm:$0xff]   ;;  %v472_v9 = vld [vmem:[%s627_s1 + $0xd0] sm:$0xff]  }
   0x3   :  { %v465_v2 = vld [vmem:[%s627_s1] sm:$0xff]   ;;  %441 = vmatprep.subr.bf16.mxu1 %v464_v1  ;;  %v469_v6 = vld [vmem:[%s627_s1 + $0x8] sm:$0xff]   ;;  %v473_v10 = vld [vmem:[%s627_s1 + $0x10] sm:$0xff]  }
   0x4   :  { %v466_v3 = vld [vmem:[%s627_s1 + $0x80] sm:$0xff]   ;;  %420 = vmatpush3.bf16.msra.mxu0 %v465_v2  ;;  %v470_v7 = vld [vmem:[%s627_s1 + $0x88] sm:$0xff]   ;;  %v474_v11 = vld [vmem:[%s627_s1 + $0x90] sm:$0xff]  }
   0x5   :  { %442 = vmatpush3.bf16.msra.mxu1 %v466_v3  ;;  %421 = vmatprep.subr.bf16.mxu0 %v467_v4  ;;  %v475_v12 = vld [vmem:[%s627_s1 + $0x58] sm:$0xff]   ;;  %v479_v16 = vld [vmem:[%s627_s1 + $0x60] sm:$0xff]   ;;  %v483_v20 = vld [vmem:[%s627_s1 + $0x68] sm:$0xff]  }
   0x6   :  { %443 = vmatprep.subr.bf16.mxu1 %v468_v5  ;;  %v476_v13 = vld [vmem:[%s627_s1 + $0xd8] sm:$0xff]   ;;  %v480_v17 = vld [vmem:[%s627_s1 + $0xe0] sm:$0xff]   ;;  %v484_v21 = vld [vmem:[%s627_s1 + $0xe8] sm:$0xff]  }
   0x7   :  { %v477_v14 = vld [vmem:[%s627_s1 + $0x18] sm:$0xff]   ;;  %v481_v18 = vld [vmem:[%s627_s1 + $0x20] sm:$0xff]   ;;  %v485_v22 = vld [vmem:[%s627_s1 + $0x28] sm:$0xff]  }
   0x8   :  { %422 = vmatpush3.bf16.msra.mxu0 %v469_v6  ;;  %v478_v15 = vld [vmem:[%s627_s1 + $0x98] sm:$0xff]   ;;  %v482_v19 = vld [vmem:[%s627_s1 + $0xa0] sm:$0xff]   ;;  %v486_v23 = vld [vmem:[%s627_s1 + $0xa8] sm:$0xff]  }
   0x9   :  { %444 = vmatpush3.bf16.msra.mxu1 %v470_v7  ;;  %423 = vmatprep.subr.bf16.mxu0 %v471_v8  ;;  %v487_v24 = vld [vmem:[%s627_s1 + $0x70] sm:$0xff]   ;;  %v491_v28 = vld [vmem:[%s627_s1 + $0x78] sm:$0xff]   ;;  %v15_v32 = vld [vmem:[%s628_s0] sm:$0xff] }
   0xa   :  { %445 = vmatprep.subr.bf16.mxu1 %v472_v9  ;;  %v488_v25 = vld [vmem:[%s627_s1 + $0xf0] sm:$0xff]   ;;  %v492_v29 = vld [vmem:[%s627_s1 + $0xf8] sm:$0xff]   ;;  %v16_v33 = vld [vmem:[%s628_s0 + $0x8] sm:$0xff]  ;;  %v383_v34 = vcombine.low %v15_v32, %v15_v32  ;;  %v384_v35 = vcombine.high %v15_v32, %v15_v32 }
   0xb   :  { %v489_v26 = vld [vmem:[%s627_s1 + $0x30] sm:$0xff]   ;;  %v493_v30 = vld [vmem:[%s627_s1 + $0x38] sm:$0xff]   ;;  %v385_v36 = vcombine.low %v16_v33, %v16_v33  ;;  %v386_v37 = vcombine.high %v16_v33, %v16_v33  ;;  %v382_v40 = vld [vmem:[%s629_s2] ss:$0 sm:$0xff] }
   0xc   :  { %424 = vmatpush3.bf16.msra.mxu0 %v473_v10  ;;  %v490_v27 = vld [vmem:[%s627_s1 + $0xb0] sm:$0xff]   ;;  %v494_v31 = vld [vmem:[%s627_s1 + $0xb8] sm:$0xff]   ;;  %326 = vmatprep.mubr.bf16.mxu0 %v384_v35 }
   0xd   :  { %446 = vmatpush3.bf16.msra.mxu1 %v474_v11  ;;  %425 = vmatprep.subr.bf16.mxu0 %v475_v12 }
   0xe   :  { %447 = vmatprep.subr.bf16.mxu1 %v476_v13  ;;  %366 = vmatprep.mubr.bf16.mxu1 %v386_v37 }
  0x10   :  { %426 = vmatpush3.bf16.msra.mxu0 %v477_v14 }
  0x11   :  { %448 = vmatpush3.bf16.msra.mxu1 %v478_v15  ;;  %427 = vmatprep.subr.bf16.mxu0 %v479_v16 }
  0x12   :  { %449 = vmatprep.subr.bf16.mxu1 %v480_v17 }
  0x14   :  { %428 = vmatpush3.bf16.msra.mxu0 %v481_v18 }
  0x15   :  { %450 = vmatpush3.bf16.msra.mxu1 %v482_v19  ;;  %429 = vmatprep.subr.bf16.mxu0 %v483_v20 }
  0x16   :  { %451 = vmatprep.subr.bf16.mxu1 %v484_v21 }
  0x18   :  { %430 = vmatpush3.bf16.msra.mxu0 %v485_v22 }
  0x19   :  { %452 = vmatpush3.bf16.msra.mxu1 %v486_v23  ;;  %431 = vmatprep.subr.bf16.mxu0 %v487_v24 }
  0x1a   :  { %453 = vmatprep.subr.bf16.mxu1 %v488_v25 }
  0x1c   :  { %432 = vmatpush3.bf16.msra.mxu0 %v489_v26 }
  0x1d   :  { %454 = vmatpush3.bf16.msra.mxu1 %v490_v27  ;;  %433 = vmatprep.subr.bf16.mxu0 %v491_v28 }
  0x1e   :  { %455 = vmatprep.subr.bf16.mxu1 %v492_v29 }
  0x20   :  { %434 = vmatpush3.bf16.msra.mxu0 %v493_v30 }
  0x21   :  { %456 = vmatpush3.bf16.msra.mxu1 %v494_v31 }
  0x23   :  { %327 = vmatmul.mubr.bf16.vlgmr.msra.gmra.mrb[0].mxu0 %v383_v34 }
  0x24   :  { %367 = vmatmul.mubr.bf16.vlgmr.msra.gmra.mrb[0].mxu1 %v385_v36 }
  0xf6   :  { %v435_v38 = vpop.f32.mrb[0].mxu0 }
  0xf7   :  { %v457_v39 = vpop.f32.mrb[0].mxu1  ;;  %v436_v41 = vpop.f32.mrb[1].mxu0 }
  0xf8   :  { %v458_v42 = vpop.f32.mrb[1].mxu1  ;;  %v437_v43 = vadd.f32 %v436_v41, %v435_v38  ;;  %v438_v45 = vpop.f32.mrb[2].mxu0 }
  0xf9   :  { %v459_v44 = vadd.f32 %v458_v42, %v457_v39  ;;  %v460_v46 = vpop.f32.mrb[2].mxu1  ;;  %v439_v47 = vpop.f32.mrb[3].mxu0 }
  0xfa   :  { %v461_v48 = vpop.f32.mrb[3].mxu1  ;;  %v329_v49 = vadd.f32 %v437_v43, %v382_v40 }
  0xfc   :  { %v369_v50 = vadd.f32 %v459_v44, %v329_v49 }
  0xfe   :  { %v374_v51 = vmax.f32 %v369_v50, 0.0 }
 0x100   :  { %v375_v52 = vpack.c.bf16 %v374_v51, %v374_v51 }
 0x102   :  { %377 = vst.msk [vmem:[%s630_s3] sm:$0xf] %vm376_vm0, %v375_v52 }

// kernel: model_forward.31
= control target key start
LH: loop header
LB: loop body
LE: loop exit
PB: predicated region body
PF: predicated region fallthrough
CT: control target
= control target key end

     0   :  { %vm963_vm0 = vcmask 523264   ;;  %s2327_s1 = inlined_call_operand.vmem [shape: bf16[576,512], index: 1, kind: input, shape index: {}]   ;;  %s2328_s0 = inlined_call_operand.vmem [shape: bf16[32,576], index: 0, kind: input, shape index: {}]   ;;  %s2329_s2 = inlined_call_operand.vmem [shape: f32[1,512], index: 2, kind: input, shape index: {}]   ;;  %s2330_s3 = inlined_call_operand.vmem [shape: bf16[32,512], index: 3, kind: output, shape index: {}]  }
   0x1   :  { %v1587_v0 = vld [vmem:[%s2327_s1 + $0x4] ss:$16 sps:$4 sm:$0xff]   ;;  %v1589_v1 = vld [vmem:[%s2327_s1 + $0xc] ss:$16 sps:$4 sm:$0xff]   ;;  %v1591_v2 = vld [vmem:[%s2327_s1] ss:$16 sps:$4 sm:$0xff]  }
   0x2   :  { %970 = vmatprep.subr.bf16.mxu0 %v1587_v0  ;;  %v1592_v3 = vld [vmem:[%s2327_s1 + $0x8] ss:$16 sps:$4 sm:$0xff]   ;;  %1129 = vmatprep.subr.bf16.mxu1 %v1589_v1  ;;  %v1593_v4 = vld [vmem:[%s2327_s1 + $0x24] ss:$16 sps:$4 sm:$0xff]   ;;  %v1595_v5 = vld [vmem:[%s2327_s1 + $0x2c] ss:$16 sps:$4 sm:$0xff]  }
   0x3   :  { %971 = vmatpush1.bf16.msra.mxu0 %v1591_v2  ;;  %1130 = vmatpush1.bf16.msra.mxu1 %v1592_v3  ;;  %v1597_v6 = vld [vmem:[%s2327_s1 + $0x20] ss:$16 sps:$4 sm:$0xff]   ;;  %v1598_v7 = vld [vmem:[%s2327_s1 + $0x28] ss:$16 sps:$4 sm:$0xff]   ;;  %v1599_v8 = vld [vmem:[%s2327_s1 + $0x44] ss:$16 sps:$4 sm:$0xff]  }
   0x4   :  { %972 = vmatprep.subr.bf16.mxu0 %v1593_v4  ;;  %1131 = vmatprep.subr.bf16.mxu1 %v1595_v5  ;;  %v1601_v9 = vld [vmem:[%s2327_s1 + $0x4c] ss:$16 sps:$4 sm:$0xff]   ;;  %v1603_v10 = vld [vmem:[%s2327_s1 + $0x40] ss:$16 sps:$4 sm:$0xff]   ;;  %v1604_v11 = vld [vmem:[%s2327_s1 + $0x48] ss:$16 sps:$4 sm:$0xff]  }
   0x5   :  { %v1605_v12 = vld [vmem:[%s2327_s1 + $0x64] ss:$16 sps:$4 sm:$0xff]   ;;  %v1607_v13 = vld [vmem:[%s2327_s1 + $0x6c] ss:$16 sps:$4 sm:$0xff]   ;;  %v1609_v14 = vld [vmem:[%s2327_s1 + $0x60] ss:$16 sps:$4 sm:$0xff]  }
   0x6   :  { %v1610_v15 = vld [vmem:[%s2327_s1 + $0x68] ss:$16 sps:$4 sm:$0xff]   ;;  %v1611_v16 = vld [vmem:[%s2327_s1 + $0x84] ss:$16 sps:$4 sm:$0xff]   ;;  %v1613_v17 = vld [vmem:[%s2327_s1 + $0x8c] ss:$16 sps:$4 sm:$0xff]  }
   0x7   :  { %973 = vmatpush1.bf16.msra.mxu0 %v1597_v6  ;;  %1132 = vmatpush1.bf16.msra.mxu1 %v1598_v7  ;;  %v1615_v18 = vld [vmem:[%s2327_s1 + $0x80] ss:$16 sps:$4 sm:$0xff]   ;;  %v1616_v19 = vld [vmem:[%s2327_s1 + $0x88] ss:$16 sps:$4 sm:$0xff]   ;;  %v1617_v20 = vld [vmem:[%s2327_s1 + $0xa4] ss:$16 sps:$4 sm:$0xff]  }
   0x8   :  { %974 = vmatprep.subr.bf16.mxu0 %v1599_v8  ;;  %1133 = vmatprep.subr.bf16.mxu1 %v1601_v9  ;;  %v1619_v21 = vld [vmem:[%s2327_s1 + $0xac] ss:$16 sps:$4 sm:$0xff]   ;;  %v1621_v22 = vld [vmem:[%s2327_s1 + $0xa0] ss:$16 sps:$4 sm:$0xff]   ;;  %v1622_v23 = vld [vmem:[%s2327_s1 + $0xa8] ss:$16 sps:$4 sm:$0xff]  }
   0x9   :  { %v1623_v24 = vld [vmem:[%s2327_s1 + $0xc4] ss:$16 sps:$4 sm:$0xff]   ;;  %v1625_v25 = vld [vmem:[%s2327_s1 + $0xcc] ss:$16 sps:$4 sm:$0xff]   ;;  %v1627_v26 = vld [vmem:[%s2327_s1 + $0xc0] ss:$16 sps:$4 sm:$0xff]  }
   0xa   :  { %v1628_v27 = vld [vmem:[%s2327_s1 + $0xc8] ss:$16 sps:$4 sm:$0xff]   ;;  %v1629_v28 = vld [vmem:[%s2327_s1 + $0xe4] ss:$16 sps:$4 sm:$0xff]   ;;  %v1631_v29 = vld [vmem:[%s2327_s1 + $0xec] ss:$16 sps:$4 sm:$0xff]  }
   0xb   :  { %975 = vmatpush1.bf16.msra.mxu0 %v1603_v10  ;;  %1134 = vmatpush1.bf16.msra.mxu1 %v1604_v11  ;;  %v1633_v30 = vld [vmem:[%s2327_s1 + $0xe0] ss:$16 sps:$4 sm:$0xff]   ;;  %v1634_v31 = vld [vmem:[%s2327_s1 + $0xe8] ss:$16 sps:$4 sm:$0xff]   ;;  %v1635_v32 = vld [vmem:[%s2327_s1 + $0x104] ss:$16 sps:$4 sm:$0xff]  }
   0xc   :  { %976 = vmatprep.subr.bf16.mxu0 %v1605_v12  ;;  %1135 = vmatprep.subr.bf16.mxu1 %v1607_v13  ;;  %v1637_v33 = vld [vmem:[%s2327_s1 + $0x10c] ss:$16 sps:$4 sm:$0xff]   ;;  %v1639_v34 = vld [vmem:[%s2327_s1 + $0x100] ss:$16 sps:$4 sm:$0xff]   ;;  %v1640_v35 = vld [vmem:[%s2327_s1 + $0x108] ss:$16 sps:$4 sm:$0xff]  }
   0xd   :  { %v1641_v36 = vld [vmem:[%s2327_s1 + $0x124] ss:$16 sps:$4 sm:$0xff]   ;;  %v1643_v37 = vld [vmem:[%s2327_s1 + $0x12c] ss:$16 sps:$4 sm:$0xff]   ;;  %v1645_v38 = vld [vmem:[%s2327_s1 + $0x120] ss:$16 sps:$4 sm:$0xff]  }
   0xe   :  { %v1646_v39 = vld [vmem:[%s2327_s1 + $0x128] ss:$16 sps:$4 sm:$0xff]   ;;  %v1647_v40 = vld [vmem:[%s2327_s1 + $0x144] ss:$16 sps:$4 sm:$0xff]   ;;  %v1649_v41 = vld [vmem:[%s2327_s1 + $0x14c] ss:$16 sps:$4 sm:$0xff]  }
   0xf   :  { %977 = vmatpush1.bf16.msra.mxu0 %v1609_v14  ;;  %1136 = vmatpush1.bf16.msra.mxu1 %v1610_v15  ;;  %v1651_v42 = vld [vmem:[%s2327_s1 + $0x140] ss:$16 sps:$4 sm:$0xff]   ;;  %v1652_v43 = vld [vmem:[%s2327_s1 + $0x148] ss:$16 sps:$4 sm:$0xff]   ;;  %v1653_v44 = vld [vmem:[%s2327_s1 + $0x164] ss:$16 sps:$4 sm:$0xff]  }
  0x10   :  { %978 = vmatprep.subr.bf16.mxu0 %v1611_v16  ;;  %1137 = vmatprep.subr.bf16.mxu1 %v1613_v17  ;;  %v1655_v45 = vld [vmem:[%s2327_s1 + $0x16c] ss:$16 sps:$4 sm:$0xff]   ;;  %v1657_v46 = vld [vmem:[%s2327_s1 + $0x160] ss:$16 sps:$4 sm:$0xff]   ;;  %v1658_v47 = vld [vmem:[%s2327_s1 + $0x168] ss:$16 sps:$4 sm:$0xff]  }
  0x11   :  { %v1685_v48 = vld [vmem:[%s2328_s0 + $0x4] ss:$20 sps:$4 sm:$0xff]   ;;  %v1661_v50 = vld [vmem:[%s2327_s1 + $0x18c] ss:$16 sps:$4 sm:$0xff]   ;;  %v1663_v51 = vld [vmem:[%s2327_s1 + $0x180] ss:$16 sps:$4 sm:$0xff]  }
  0x12   :  { %v1659_v49 = vld [vmem:[%s2327_s1 + $0x184] ss:$16 sps:$4 sm:$0xff]   ;;  %1002 = vmatprep.mubr.bf16.mxu0 %v1685_v48  ;;  %1161 = vmatprep.mubr.bf16.mxu1 %v1685_v48  ;;  %v1664_v52 = vld [vmem:[%s2327_s1 + $0x188] ss:$16 sps:$4 sm:$0xff]   ;;  %v1667_v54 = vld [vmem:[%s2327_s1 + $0x1ac] ss:$16 sps:$4 sm:$0xff]  }
  0x13   :  { %979 = vmatpush1.bf16.msra.mxu0 %v1615_v18  ;;  %1138 = vmatpush1.bf16.msra.mxu1 %v1616_v19  ;;  %v1665_v53 = vld [vmem:[%s2327_s1 + $0x1a4] ss:$16 sps:$4 sm:$0xff]   ;;  %v1669_v55 = vld [vmem:[%s2327_s1 + $0x1a0] ss:$16 sps:$4 sm:$0xff]   ;;  %v1670_v56 = vld [vmem:[%s2327_s1 + $0x1a8] ss:$16 sps:$4 sm:$0xff]  }
  0x14   :  { %980 = vmatprep.subr.bf16.mxu0 %v1617_v20  ;;  %1139 = vmatprep.subr.bf16.mxu1 %v1619_v21  ;;  %v1671_v57 = vld [vmem:[%s2327_s1 + $0x1c4] ss:$16 sps:$4 sm:$0xff]   ;;  %v1673_v58 = vld [vmem:[%s2327_s1 + $0x1cc] ss:$16 sps:$4 sm:$0xff]   ;;  %v1675_v59 = vld [vmem:[%s2327_s1 + $0x1c0] ss:$16 sps:$4 sm:$0xff]  }
  0x15   :  { %v1676_v60 = vld [vmem:[%s2327_s1 + $0x1c8] ss:$16 sps:$4 sm:$0xff]   ;;  %v1677_v61 = vld [vmem:[%s2327_s1 + $0x1e4] ss:$16 sps:$4 sm:$0xff]   ;;  %v1679_v62 = vld [vmem:[%s2327_s1 + $0x1ec] ss:$16 sps:$4 sm:$0xff]  }
  0x16   :  { %v1681_v63 = vld [vmem:[%s2327_s1 + $0x1e0] ss:$16 sps:$4 sm:$0xff]   ;;  %v1682_v0 = vld [vmem:[%s2327_s1 + $0x1e8] ss:$16 sps:$4 sm:$0xff]   ;;  %v1688_v1 = vld [vmem:[%s2327_s1 + $0x204] ss:$16 sps:$4 sm:$0xff]  }
  0x17   :  { %981 = vmatpush1.bf16.msra.mxu0 %v1621_v22  ;;  %1140 = vmatpush1.bf16.msra.mxu1 %v1622_v23  ;;  %v1691_v2 = vld [vmem:[%s2327_s1 + $0x20c] ss:$16 sps:$4 sm:$0xff]   ;;  %v1683_v3 = vld [vmem:[%s2328_s0] ss:$20 sps:$4 sm:$0xff]   ;;  %v1689_v5 = vld [vmem:[%s2327_s1 + $0x208] ss:$16 sps:$4 sm:$0xff]  }
  0x18   :  { %982 = vmatprep.subr.bf16.mxu0 %v1623_v24  ;;  %1141 = vmatprep.subr.bf16.mxu1 %v1625_v25  ;;  %v1686_v4 = vld [vmem:[%s2327_s1 + $0x200] ss:$16 sps:$4 sm:$0xff]   ;;  %v1694_v6 = vld [vmem:[%s2327_s1 + $0x224] ss:$16 sps:$4 sm:$0xff]   ;;  %v1697_v7 = vld [vmem:[%s2327_s1 + $0x22c] ss:$16 sps:$4 sm:$0xff]  }
  0x19   :  { %v1692_v8 = vld [vmem:[%s2327_s1 + $0x220] ss:$16 sps:$4 sm:$0xff]   ;;  %v1695_v9 = vld [vmem:[%s2327_s1 + $0x228] ss:$16 sps:$4 sm:$0xff]   ;;  %v1700_v10 = vld [vmem:[%s2327_s1 + $0x244] ss:$16 sps:$4 sm:$0xff]  }
  0x1a   :  { %v1703_v11 = vld [vmem:[%s2327_s1 + $0x24c] ss:$16 sps:$4 sm:$0xff]   ;;  %v1698_v12 = vld [vmem:[%s2327_s1 + $0x240] ss:$16 sps:$4 sm:$0xff]   ;;  %v1701_v13 = vld [vmem:[%s2327_s1 + $0x248] ss:$16 sps:$4 sm:$0xff]  }
  0x1b   :  { %983 = vmatpush1.bf16.msra.mxu0 %v1627_v26  ;;  %1142 = vmatpush1.bf16.msra.mxu1 %v1628_v27  ;;  %v1706_v14 = vld [vmem:[%s2327_s1 + $0x264] ss:$16 sps:$4 sm:$0xff]   ;;  %v1709_v15 = vld [vmem:[%s2327_s1 + $0x26c] ss:$16 sps:$4 sm:$0xff]   ;;  %v1704_v16 = vld [vmem:[%s2327_s1 + $0x260] ss:$16 sps:$4 sm:$0xff]  }
  0x1c   :  { %984 = vmatprep.subr.bf16.mxu0 %v1629_v28  ;;  %1143 = vmatprep.subr.bf16.mxu1 %v1631_v29  ;;  %v1707_v17 = vld [vmem:[%s2327_s1 + $0x268] ss:$16 sps:$4 sm:$0xff]   ;;  %v1712_v18 = vld [vmem:[%s2327_s1 + $0x284] ss:$16 sps:$4 sm:$0xff]   ;;  %v1715_v19 = vld [vmem:[%s2327_s1 + $0x28c] ss:$16 sps:$4 sm:$0xff]  }
  0x1d   :  { %v1710_v20 = vld [vmem:[%s2327_s1 + $0x280] ss:$16 sps:$4 sm:$0xff]   ;;  %v1713_v21 = vld [vmem:[%s2327_s1 + $0x288] ss:$16 sps:$4 sm:$0xff]   ;;  %v1718_v22 = vld [vmem:[%s2327_s1 + $0x2a4] ss:$16 sps:$4 sm:$0xff]  }
  0x1e   :  { %v1721_v23 = vld [vmem:[%s2327_s1 + $0x2ac] ss:$16 sps:$4 sm:$0xff]   ;;  %v1716_v24 = vld [vmem:[%s2327_s1 + $0x2a0] ss:$16 sps:$4 sm:$0xff]   ;;  %v1719_v26 = vld [vmem:[%s2327_s1 + $0x2a8] ss:$16 sps:$4 sm:$0xff]  }
  0x1f   :  { %985 = vmatpush1.bf16.msra.mxu0 %v1633_v30  ;;  %1144 = vmatpush1.bf16.msra.mxu1 %v1634_v31  ;;  %v1770_v25 = vld [vmem:[%s2328_s0 + $0x2c] ss:$20 sps:$4 sm:$0xff]   ;;  %v1772_v27 = vld [vmem:[%s2328_s0 + $0x28] ss:$20 sps:$4 sm:$0xff]   ;;  %v1724_v28 = vld [vmem:[%s2327_s1 + $0x2c4] ss:$16 sps:$4 sm:$0xff]  }
  0x20   :  { %986 = vmatprep.subr.bf16.mxu0 %v1635_v32  ;;  %1145 = vmatprep.subr.bf16.mxu1 %v1637_v33  ;;  %v1727_v29 = vld [vmem:[%s2327_s1 + $0x2cc] ss:$16 sps:$4 sm:$0xff]   ;;  %v1722_v30 = vld [vmem:[%s2327_s1 + $0x2c0] ss:$16 sps:$4 sm:$0xff]   ;;  %v1725_v31 = vld [vmem:[%s2327_s1 + $0x2c8] ss:$16 sps:$4 sm:$0xff]  }
  0x21   :  { %v1730_v32 = vld [vmem:[%s2327_s1 + $0x2e4] ss:$16 sps:$4 sm:$0xff]   ;;  %v1733_v33 = vld [vmem:[%s2327_s1 + $0x2ec] ss:$16 sps:$4 sm:$0xff]   ;;  %v1749_v48 = vld [vmem:[%s2327_s1 + $0x348] ss:$16 sps:$4 sm:$0xff]  }
  0x23   :  { %987 = vmatpush1.bf16.msra.mxu0 %v1639_v34  ;;  %1146 = vmatpush1.bf16.msra.mxu1 %v1640_v35  ;;  %v1787_v34 = vld [vmem:[%s2328_s0 + $0xc] ss:$20 sps:$4 sm:$0xff]  }
  0x24   :  { %988 = vmatprep.subr.bf16.mxu0 %v1641_v36  ;;  %1147 = vmatprep.subr.bf16.mxu1 %v1643_v37  ;;  %v1728_v35 = vld [vmem:[%s2327_s1 + $0x2e0] ss:$16 sps:$4 sm:$0xff]   ;;  %v1731_v36 = vld [vmem:[%s2327_s1 + $0x2e8] ss:$16 sps:$4 sm:$0xff]   ;;  %v1736_v37 = vld [vmem:[%s2327_s1 + $0x304] ss:$16 sps:$4 sm:$0xff]  }
  0x27   :  { %989 = vmatpush1.bf16.msra.mxu0 %v1645_v38  ;;  %1148 = vmatpush1.bf16.msra.mxu1 %v1646_v39  ;;  %v1739_v38 = vld [vmem:[%s2327_s1 + $0x30c] ss:$16 sps:$4 sm:$0xff]   ;;  %v1734_v39 = vld [vmem:[%s2327_s1 + $0x300] ss:$16 sps:$4 sm:$0xff]  }
  0x28   :  { %990 = vmatprep.subr.bf16.mxu0 %v1647_v40  ;;  %1149 = vmatprep.subr.bf16.mxu1 %v1649_v41  ;;  %v1737_v40 = vld [vmem:[%s2327_s1 + $0x308] ss:$16 sps:$4 sm:$0xff]   ;;  %v1742_v41 = vld [vmem:[%s2327_s1 + $0x324] ss:$16 sps:$4 sm:$0xff]  }
  0x2b   :  { %991 = vmatpush1.bf16.msra.mxu0 %v1651_v42  ;;  %1150 = vmatpush1.bf16.msra.mxu1 %v1652_v43  ;;  %v1745_v42 = vld [vmem:[%s2327_s1 + $0x32c] ss:$16 sps:$4 sm:$0xff]   ;;  %v1740_v43 = vld [vmem:[%s2327_s1 + $0x320] ss:$16 sps:$4 sm:$0xff]  }
  0x2c   :  { %992 = vmatprep.subr.bf16.mxu0 %v1653_v44  ;;  %1151 = vmatprep.subr.bf16.mxu1 %v1655_v45  ;;  %v1743_v44 = vld [vmem:[%s2327_s1 + $0x328] ss:$16 sps:$4 sm:$0xff]   ;;  %v1748_v45 = vld [vmem:[%s2327_s1 + $0x344] ss:$16 sps:$4 sm:$0xff]  }
  0x2f   :  { %993 = vmatpush1.bf16.msra.mxu0 %v1657_v46  ;;  %1152 = vmatpush1.bf16.msra.mxu1 %v1658_v47  ;;  %v1751_v46 = vld [vmem:[%s2327_s1 + $0x34c] ss:$16 sps:$4 sm:$0xff]   ;;  %v1746_v47 = vld [vmem:[%s2327_s1 + $0x340] ss:$16 sps:$4 sm:$0xff]  }
  0x30   :  { %994 = vmatprep.subr.bf16.mxu0 %v1659_v49  ;;  %1153 = vmatprep.subr.bf16.mxu1 %v1661_v50  ;;  %v1754_v49 = vld [vmem:[%s2327_s1 + $0x364] ss:$16 sps:$4 sm:$0xff]   ;;  %v1757_v50 = vld [vmem:[%s2327_s1 + $0x36c] ss:$16 sps:$4 sm:$0xff]  }
  0x33   :  { %995 = vmatpush1.bf16.msra.mxu0 %v1663_v51  ;;  %1154 = vmatpush1.bf16.msra.mxu1 %v1664_v52  ;;  %v1752_v51 = vld [vmem:[%s2327_s1 + $0x360] ss:$16 sps:$4 sm:$0xff]   ;;  %v1755_v52 = vld [vmem:[%s2327_s1 + $0x368] ss:$16 sps:$4 sm:$0xff]  }
  0x34   :  { %996 = vmatprep.subr.bf16.mxu0 %v1665_v53  ;;  %1155 = vmatprep.subr.bf16.mxu1 %v1667_v54  ;;  %v1760_v53 = vld [vmem:[%s2327_s1 + $0x384] ss:$16 sps:$4 sm:$0xff]   ;;  %v1763_v54 = vld [vmem:[%s2327_s1 + $0x38c] ss:$16 sps:$4 sm:$0xff]  }
  0x37   :  { %997 = vmatpush1.bf16.msra.mxu0 %v1669_v55  ;;  %1156 = vmatpush1.bf16.msra.mxu1 %v1670_v56  ;;  %v1758_v55 = vld [vmem:[%s2327_s1 + $0x380] ss:$16 sps:$4 sm:$0xff]   ;;  %v1761_v56 = vld [vmem:[%s2327_s1 + $0x388] ss:$16 sps:$4 sm:$0xff]  }
  0x38   :  { %998 = vmatprep.subr.bf16.mxu0 %v1671_v57  ;;  %1157 = vmatprep.subr.bf16.mxu1 %v1673_v58  ;;  %v1766_v57 = vld [vmem:[%s2327_s1 + $0x3a4] ss:$16 sps:$4 sm:$0xff]   ;;  %v1769_v58 = vld [vmem:[%s2327_s1 + $0x3ac] ss:$16 sps:$4 sm:$0xff]  }
  0x3b   :  { %999 = vmatpush1.bf16.msra.mxu0 %v1675_v59  ;;  %1158 = vmatpush1.bf16.msra.mxu1 %v1676_v60  ;;  %v1764_v59 = vld [vmem:[%s2327_s1 + $0x3a0] ss:$16 sps:$4 sm:$0xff]   ;;  %v1767_v60 = vld [vmem:[%s2327_s1 + $0x3a8] ss:$16 sps:$4 sm:$0xff]  }
  0x3c   :  { %1000 = vmatprep.subr.bf16.mxu0 %v1677_v61  ;;  %1159 = vmatprep.subr.bf16.mxu1 %v1679_v62  ;;  %v1775_v61 = vld [vmem:[%s2327_s1 + $0x3c4] ss:$16 sps:$4 sm:$0xff]   ;;  %v1778_v62 = vld [vmem:[%s2327_s1 + $0x3cc] ss:$16 sps:$4 sm:$0xff]  }
  0x3f   :  { %1001 = vmatpush1.bf16.msra.mxu0 %v1681_v63  ;;  %1160 = vmatpush1.bf16.msra.mxu1 %v1682_v0  ;;  %v1773_v63 = vld [vmem:[%s2327_s1 + $0x3c0] ss:$16 sps:$4 sm:$0xff]   ;;  %v1776_v0 = vld [vmem:[%s2327_s1 + $0x3c8] ss:$16 sps:$4 sm:$0xff]  }
  0x40   :  { %1023 = vmatprep.subr.bf16.mxu0 %v1688_v1  ;;  %1182 = vmatprep.subr.bf16.mxu1 %v1691_v2  ;;  %v1781_v1 = vld [vmem:[%s2327_s1 + $0x3e4] ss:$16 sps:$4 sm:$0xff]   ;;  %v1784_v2 = vld [vmem:[%s2327_s1 + $0x3ec] ss:$16 sps:$4 sm:$0xff]  }
  0x42   :  { %1003 = vmatmul.mubr.bf16.vlgmr.msra.gmra.mrb[0].mxu0 %v1683_v3  ;;  %1162 = vmatmul.mubr.bf16.vlgmr.msra.gmra.mrb[0].mxu1 %v1683_v3  ;;  %v1779_v3 = vld [vmem:[%s2327_s1 + $0x3e0] ss:$16 sps:$4 sm:$0xff]  }
  0x43   :  { %1024 = vmatpush1.bf16.msra.mxu0 %v1686_v4  ;;  %1183 = vmatpush1.bf16.msra.mxu1 %v1689_v5  ;;  %v1782_v4 = vld [vmem:[%s2327_s1 + $0x3e8] ss:$16 sps:$4 sm:$0xff]   ;;  %v1790_v5 = vld [vmem:[%s2327_s1 + $0x404] ss:$16 sps:$4 sm:$0xff]  }
  0x44   :  { %1025 = vmatprep.subr.bf16.mxu0 %v1694_v6  ;;  %1184 = vmatprep.subr.bf16.mxu1 %v1697_v7  ;;  %v1793_v6 = vld [vmem:[%s2327_s1 + $0x40c] ss:$16 sps:$4 sm:$0xff]  }
  0x45   :  { %1012 = vmatprep.mubr.bf16.mxu0 %v1770_v25  ;;  %1171 = vmatprep.mubr.bf16.mxu1 %v1770_v25  ;;  %v1785_v7 = vld [vmem:[%s2328_s0 + $0x8] ss:$20 sps:$4 sm:$0xff]   ;;  %v1815_v25 = vld [vmem:[%s2328_s0 + $0x10] ss:$20 sps:$4 sm:$0xff]  }
  0x47   :  { %1026 = vmatpush1.bf16.msra.mxu0 %v1692_v8  ;;  %1185 = vmatpush1.bf16.msra.mxu1 %v1695_v9  ;;  %v1788_v8 = vld [vmem:[%s2327_s1 + $0x400] ss:$16 sps:$4 sm:$0xff]   ;;  %v1791_v9 = vld [vmem:[%s2327_s1 + $0x408] ss:$16 sps:$4 sm:$0xff]  }
  0x48   :  { %1027 = vmatprep.subr.bf16.mxu0 %v1700_v10  ;;  %1186 = vmatprep.subr.bf16.mxu1 %v1703_v11  ;;  %v1796_v10 = vld [vmem:[%s2327_s1 + $0x424] ss:$16 sps:$4 sm:$0xff]   ;;  %v1799_v11 = vld [vmem:[%s2327_s1 + $0x42c] ss:$16 sps:$4 sm:$0xff]  }
  0x4a   :  { %1013 = vmatmul.mubr.bf16.gmra.mrb[4].mxu0 %v1772_v27  ;;  %1172 = vmatmul.mubr.bf16.gmra.mrb[4].mxu1 %v1772_v27  ;;  %v173_v27 = vlaneseq }
  0x4b   :  { %1028 = vmatpush1.bf16.msra.mxu0 %v1698_v12  ;;  %1187 = vmatpush1.bf16.msra.mxu1 %v1701_v13  ;;  %v1800_v12 = vld [vmem:[%s2328_s0 + $0x34] ss:$20 sps:$4 sm:$0xff]   ;;  %v1794_v13 = vld [vmem:[%s2327_s1 + $0x420] ss:$16 sps:$4 sm:$0xff]  }
  0x4c   :  { %1029 = vmatprep.subr.bf16.mxu0 %v1706_v14  ;;  %1188 = vmatprep.subr.bf16.mxu1 %v1709_v15  ;;  %v1797_v14 = vld [vmem:[%s2327_s1 + $0x428] ss:$16 sps:$4 sm:$0xff]   ;;  %v1805_v15 = vld [vmem:[%s2327_s1 + $0x444] ss:$16 sps:$4 sm:$0xff]  }
  0x4d   :  { %1055 = vmatprep.mubr.bf16.mxu0 %v1787_v34  ;;  %1214 = vmatprep.mubr.bf16.mxu1 %v1787_v34 }
  0x4f   :  { %1030 = vmatpush1.bf16.msra.mxu0 %v1704_v16  ;;  %1189 = vmatpush1.bf16.msra.mxu1 %v1707_v17  ;;  %v1808_v16 = vld [vmem:[%s2327_s1 + $0x44c] ss:$16 sps:$4 sm:$0xff]   ;;  %v1802_v17 = vld [vmem:[%s2328_s0 + $0x30] ss:$20 sps:$4 sm:$0xff]  }
  0x50   :  { %1031 = vmatprep.subr.bf16.mxu0 %v1712_v18  ;;  %1190 = vmatprep.subr.bf16.mxu1 %v1715_v19  ;;  %v1803_v18 = vld [vmem:[%s2327_s1 + $0x440] ss:$16 sps:$4 sm:$0xff]   ;;  %v1806_v19 = vld [vmem:[%s2327_s1 + $0x448] ss:$16 sps:$4 sm:$0xff]  }
  0x53   :  { %1032 = vmatpush1.bf16.msra.mxu0 %v1710_v20  ;;  %1191 = vmatpush1.bf16.msra.mxu1 %v1713_v21  ;;  %v1811_v20 = vld [vmem:[%s2327_s1 + $0x464] ss:$16 sps:$4 sm:$0xff]   ;;  %v1814_v21 = vld [vmem:[%s2327_s1 + $0x46c] ss:$16 sps:$4 sm:$0xff]  }
  0x54   :  { %1033 = vmatprep.subr.bf16.mxu0 %v1718_v22  ;;  %1192 = vmatprep.subr.bf16.mxu1 %v1721_v23  ;;  %v1809_v22 = vld [vmem:[%s2327_s1 + $0x460] ss:$16 sps:$4 sm:$0xff]   ;;  %v1812_v23 = vld [vmem:[%s2327_s1 + $0x468] ss:$16 sps:$4 sm:$0xff]  }
  0x57   :  { %1034 = vmatpush1.bf16.msra.mxu0 %v1716_v24  ;;  %1193 = vmatpush1.bf16.msra.mxu1 %v1719_v26  ;;  %v1817_v24 = vmov 0   ;;  %v1816_v26 = vld [vmem:[%s2328_s0 + $0x38] ss:$20 sps:$4 sm:$0xff]  }
  0x58   :  { %1035 = vmatprep.subr.bf16.mxu0 %v1724_v28  ;;  %1194 = vmatprep.subr.bf16.mxu1 %v1727_v29  ;;  %v174_v28 = vshrl.u32 %v173_v27, 7 }
  0x5a   :  { %v175_v29 = vsub.s32 0, %v174_v28 }
  0x5b   :  { %1036 = vmatpush1.bf16.msra.mxu0 %v1722_v30  ;;  %1195 = vmatpush1.bf16.msra.mxu1 %v1725_v31  ;;  %v183_v30 = vsub.s32 2, %v174_v28  ;;  %v171_v31 = vld [vmem:[%s2329_s2] sm:$0xf] }
  0x5c   :  { %1037 = vmatprep.subr.bf16.mxu0 %v1730_v32  ;;  %1196 = vmatprep.subr.bf16.mxu1 %v1733_v33  ;;  %v179_v32 = vsub.s32 1, %v174_v28  ;;  %v187_v33 = vsub.s32 3, %v174_v28  ;;  %v176_v34 = vrot.slane %v171_v31, %v175_v29 }
  0x5f   :  { %1038 = vmatpush1.bf16.msra.mxu0 %v1728_v35  ;;  %1197 = vmatpush1.bf16.msra.mxu1 %v1731_v36  ;;  %v184_v35 = vrot.slane %v171_v31, %v183_v30  ;;  %v180_v36 = vrot.slane %v171_v31, %v179_v32 }
  0x60   :  { %1039 = vmatprep.subr.bf16.mxu0 %v1736_v37  ;;  %1198 = vmatprep.subr.bf16.mxu1 %v1739_v38  ;;  %v188_v37 = vrot.slane %v171_v31, %v187_v33 }
  0x63   :  { %1040 = vmatpush1.bf16.msra.mxu0 %v1734_v39  ;;  %1199 = vmatpush1.bf16.msra.mxu1 %v1737_v40 }
  0x64   :  { %1041 = vmatprep.subr.bf16.mxu0 %v1742_v41  ;;  %1200 = vmatprep.subr.bf16.mxu1 %v1745_v42 }
  0x67   :  { %1042 = vmatpush1.bf16.msra.mxu0 %v1740_v43  ;;  %1201 = vmatpush1.bf16.msra.mxu1 %v1743_v44 }
  0x68   :  { %1043 = vmatprep.subr.bf16.mxu0 %v1748_v45  ;;  %1202 = vmatprep.subr.bf16.mxu1 %v1751_v46 }
  0x6b   :  { %1044 = vmatpush1.bf16.msra.mxu0 %v1746_v47  ;;  %1203 = vmatpush1.bf16.msra.mxu1 %v1749_v48 }
  0x6c   :  { %1045 = vmatprep.subr.bf16.mxu0 %v1754_v49  ;;  %1204 = vmatprep.subr.bf16.mxu1 %v1757_v50 }
  0x6f   :  { %1046 = vmatpush1.bf16.msra.mxu0 %v1752_v51  ;;  %1205 = vmatpush1.bf16.msra.mxu1 %v1755_v52 }
  0x70   :  { %1047 = vmatprep.subr.bf16.mxu0 %v1760_v53  ;;  %1206 = vmatprep.subr.bf16.mxu1 %v1763_v54 }
  0x73   :  { %1048 = vmatpush1.bf16.msra.mxu0 %v1758_v55  ;;  %1207 = vmatpush1.bf16.msra.mxu1 %v1761_v56 }
  0x74   :  { %1049 = vmatprep.subr.bf16.mxu0 %v1766_v57  ;;  %1208 = vmatprep.subr.bf16.mxu1 %v1769_v58 }
  0x77   :  { %1050 = vmatpush1.bf16.msra.mxu0 %v1764_v59  ;;  %1209 = vmatpush1.bf16.msra.mxu1 %v1767_v60 }
  0x78   :  { %1051 = vmatprep.subr.bf16.mxu0 %v1775_v61  ;;  %1210 = vmatprep.subr.bf16.mxu1 %v1778_v62 }
  0x7b   :  { %1052 = vmatpush1.bf16.msra.mxu0 %v1773_v63  ;;  %1211 = vmatpush1.bf16.msra.mxu1 %v1776_v0 }
  0x7c   :  { %1053 = vmatprep.subr.bf16.mxu0 %v1781_v1  ;;  %1212 = vmatprep.subr.bf16.mxu1 %v1784_v2 }
  0x7f   :  { %1054 = vmatpush1.bf16.msra.mxu0 %v1779_v3  ;;  %1213 = vmatpush1.bf16.msra.mxu1 %v1782_v4 }
  0x80   :  { %1076 = vmatprep.subr.bf16.mxu0 %v1790_v5  ;;  %1235 = vmatprep.subr.bf16.mxu1 %v1793_v6 }
  0x82   :  { %1056 = vmatmul.mubr.bf16.vlgmr.msra.gmra.mrb[0].mxu0 %v1785_v7  ;;  %1215 = vmatmul.mubr.bf16.vlgmr.msra.gmra.mrb[0].mxu1 %v1785_v7 }
  0x83   :  { %1077 = vmatpush1.bf16.msra.mxu0 %v1788_v8  ;;  %1236 = vmatpush1.bf16.msra.mxu1 %v1791_v9 }
  0x84   :  { %1078 = vmatprep.subr.bf16.mxu0 %v1796_v10  ;;  %1237 = vmatprep.subr.bf16.mxu1 %v1799_v11 }
  0x85   :  { %1065 = vmatprep.mubr.bf16.mxu0 %v1800_v12  ;;  %1224 = vmatprep.mubr.bf16.mxu1 %v1800_v12 }
  0x87   :  { %1079 = vmatpush1.bf16.msra.mxu0 %v1794_v13  ;;  %1238 = vmatpush1.bf16.msra.mxu1 %v1797_v14 }
  0x88   :  { %1080 = vmatprep.subr.bf16.mxu0 %v1805_v15  ;;  %1239 = vmatprep.subr.bf16.mxu1 %v1808_v16 }
  0x8a   :  { %1066 = vmatmul.mubr.bf16.gmra.mrb[4].mxu0 %v1802_v17  ;;  %1225 = vmatmul.mubr.bf16.gmra.mrb[4].mxu1 %v1802_v17 }
  0x8b   :  { %1081 = vmatpush1.bf16.msra.mxu0 %v1803_v18  ;;  %1240 = vmatpush1.bf16.msra.mxu1 %v1806_v19 }
  0x8c   :  { %1082 = vmatprep.subr.bf16.mxu0 %v1811_v20  ;;  %1241 = vmatprep.subr.bf16.mxu1 %v1814_v21 }
  0x8d   :  { %1108 = vmatprep.mubr.bf16.mxu0 %v1817_v24  ;;  %1267 = vmatprep.mubr.bf16.mxu1 %v1817_v24 }
  0x8f   :  { %1083 = vmatpush1.bf16.msra.mxu0 %v1809_v22  ;;  %1242 = vmatpush1.bf16.msra.mxu1 %v1812_v23 }
  0x92   :  { %1518 = vmatmul.mubr.msk.bf16.vlgmr.msra.gmra.mrb[0].mxu0 %vm963_vm0, %v1815_v25  ;;  %1520 = vmatmul.mubr.msk.bf16.vlgmr.msra.gmra.mrb[0].mxu1 %vm963_vm0, %v1815_v25 }
  0x93   :  { %1118 = vmatprep.mubr.bf16.mxu0 %v1817_v24  ;;  %1277 = vmatprep.mubr.bf16.mxu1 %v1817_v24 }
  0x9a   :  { %1519 = vmatmul.mubr.msk.bf16.gmra.mrb[4].mxu0 %vm963_vm0, %v1816_v26  ;;  %1521 = vmatmul.mubr.msk.bf16.gmra.mrb[4].mxu1 %vm963_vm0, %v1816_v26 }
 0x165   :  { %v1110_v38 = vpop.f32.mrb[0].mxu0  ;;  %v1269_v39 = vpop.f32.mrb[0].mxu1 }
 0x166   :  { %v1538_v40 = vadd.f32 %v1110_v38, %v176_v34  ;;  %v1546_v41 = vadd.f32 %v1269_v39, %v184_v35  ;;  %v1112_v42 = vpop.f32.mrb[1].mxu0  ;;  %v1271_v43 = vpop.f32.mrb[1].mxu1 }
 0x167   :  { %v1539_v44 = vadd.f32 %v1112_v42, %v180_v36  ;;  %v1547_v45 = vadd.f32 %v1271_v43, %v188_v37  ;;  %v1114_v46 = vpop.f32.mrb[2].mxu0  ;;  %v1273_v47 = vpop.f32.mrb[2].mxu1 }
 0x168   :  { %v1288_v48 = vmax.f32 %v1538_v40, 0.0  ;;  %v1290_v49 = vmax.f32 %v1546_v41, 0.0  ;;  %v1540_v50 = vadd.f32 %v1114_v46, %v176_v34  ;;  %v1548_v51 = vadd.f32 %v1273_v47, %v184_v35  ;;  %v1116_v52 = vpop.f32.mrb[3].mxu0  ;;  %v1275_v53 = vpop.f32.mrb[3].mxu1 }
 0x169   :  { %v1289_v54 = vmax.f32 %v1539_v44, 0.0  ;;  %v1291_v55 = vmax.f32 %v1547_v45, 0.0  ;;  %v1541_v56 = vadd.f32 %v1116_v52, %v180_v36  ;;  %v1549_v57 = vadd.f32 %v1275_v53, %v188_v37 }
 0x16a   :  { %v1292_v58 = vmax.f32 %v1540_v50, 0.0  ;;  %v1294_v59 = vmax.f32 %v1548_v51, 0.0 }
 0x16b   :  { %v1530_v60 = vpack.c.bf16 %v1289_v54, %v1288_v48  ;;  %v1531_v61 = vpack.c.bf16 %v1291_v55, %v1290_v49  ;;  %v1293_v62 = vmax.f32 %v1541_v56, 0.0  ;;  %v1295_v63 = vmax.f32 %v1549_v57, 0.0 }
 0x16d   :  { %1352 = vst [vmem:[%s2330_s3] sm:$0xff] %v1530_v60  ;;  %1353 = vst [vmem:[%s2330_s3 + $0x8] sm:$0xff] %v1531_v61  ;;  %v1532_v0 = vpack.c.bf16 %v1293_v62, %v1292_v58  ;;  %v1533_v1 = vpack.c.bf16 %v1295_v63, %v1294_v59  ;;  %v1120_v2 = vpop.f32.mrb[4].mxu0  ;;  %v1279_v3 = vpop.f32.mrb[4].mxu1 }
 0x16e   :  { %v1542_v4 = vadd.f32 %v1120_v2, %v176_v34  ;;  %v1550_v5 = vadd.f32 %v1279_v3, %v184_v35  ;;  %v1122_v6 = vpop.f32.mrb[5].mxu0  ;;  %v1281_v7 = vpop.f32.mrb[5].mxu1 }
 0x16f   :  { %1354 = vst [vmem:[%s2330_s3 + $0x10] sm:$0xff] %v1532_v0  ;;  %1355 = vst [vmem:[%s2330_s3 + $0x18] sm:$0xff] %v1533_v1  ;;  %v1543_v8 = vadd.f32 %v1122_v6, %v180_v36  ;;  %v1551_v9 = vadd.f32 %v1281_v7, %v188_v37  ;;  %v1124_v10 = vpop.f32.mrb[6].mxu0  ;;  %v1283_v11 = vpop.f32.mrb[6].mxu1 }
 0x170   :  { %v1296_v12 = vmax.f32 %v1542_v4, 0.0  ;;  %v1298_v13 = vmax.f32 %v1550_v5, 0.0  ;;  %v1544_v14 = vadd.f32 %v1124_v10, %v176_v34  ;;  %v1552_v15 = vadd.f32 %v1283_v11, %v184_v35  ;;  %v1126_v16 = vpop.f32.mrb[7].mxu0  ;;  %v1285_v17 = vpop.f32.mrb[7].mxu1 }
 0x171   :  { %v1297_v18 = vmax.f32 %v1543_v8, 0.0  ;;  %v1299_v19 = vmax.f32 %v1551_v9, 0.0  ;;  %v1545_v20 = vadd.f32 %v1126_v16, %v180_v36  ;;  %v1553_v21 = vadd.f32 %v1285_v17, %v188_v37 }
 0x172   :  { %v1300_v22 = vmax.f32 %v1544_v14, 0.0  ;;  %v1302_v23 = vmax.f32 %v1552_v15, 0.0 }
 0x173   :  { %v1534_v24 = vpack.c.bf16 %v1297_v18, %v1296_v12  ;;  %v1535_v25 = vpack.c.bf16 %v1299_v19, %v1298_v13  ;;  %v1301_v26 = vmax.f32 %v1545_v20, 0.0  ;;  %v1303_v27 = vmax.f32 %v1553_v21, 0.0 }
 0x175   :  { %1356 = vst [vmem:[%s2330_s3 + $0x20] sm:$0xff] %v1534_v24  ;;  %1357 = vst [vmem:[%s2330_s3 + $0x28] sm:$0xff] %v1535_v25  ;;  %v1536_v28 = vpack.c.bf16 %v1301_v26, %v1300_v22  ;;  %v1537_v29 = vpack.c.bf16 %v1303_v27, %v1302_v23 }
 0x177   :  { %1358 = vst [vmem:[%s2330_s3 + $0x30] sm:$0xff] %v1536_v28  ;;  %1359 = vst [vmem:[%s2330_s3 + $0x38] sm:$0xff] %v1537_v29 }

// kernel: model_forward.33
= control target key start
LH: loop header
LB: loop body
LE: loop exit
PB: predicated region body
PF: predicated region fallthrough
CT: control target
= control target key end

     0   :  { %vm2240_vm0 = vcmask 654336   ;;  %s4390_s1 = inlined_call_operand.vmem [shape: bf16[720,1024], index: 1, kind: input, shape index: {}]   ;;  %s4391_s0 = inlined_call_operand.vmem [shape: bf16[8,720], index: 0, kind: input, shape index: {}]   ;;  %s4392_s2 = inlined_call_operand.vmem [shape: f32[1,1024], index: 2, kind: input, shape index: {}]   ;;  %s4393_s3 = inlined_call_operand.vmem [shape: bf16[8,1024], index: 3, kind: output, shape index: {}]  }
   0x1   :  { %v18_v0 = vld [vmem:[%s4390_s1] sm:$0xff]  ;;  %v19_v2 = vld [vmem:[%s4390_s1 + $0x8] sm:$0xff] }
   0x2   :  { %v22_v1 = vld [vmem:[%s4390_s1 + $0x20] sm:$0xff]  ;;  %v23_v4 = vld [vmem:[%s4390_s1 + $0x28] sm:$0xff] }
   0x3   :  { %v2791_v3 = vcombine.high %v18_v0, %v22_v1  ;;  %v2790_v5 = vcombine.low %v18_v0, %v22_v1  ;;  %v26_v6 = vld [vmem:[%s4390_s1 + $0x40] sm:$0xff]  ;;  %v2793_v8 = vcombine.high %v19_v2, %v23_v4  ;;  %v2792_v9 = vcombine.low %v19_v2, %v23_v4  ;;  %v27_v11 = vld [vmem:[%s4390_s1 + $0x48] sm:$0xff] }
   0x4   :  { %v30_v7 = vld [vmem:[%s4390_s1 + $0x60] sm:$0xff]  ;;  %v31_v12 = vld [vmem:[%s4390_s1 + $0x68] sm:$0xff] }
   0x5   :  { %v2799_v10 = vcombine.high %v26_v6, %v30_v7  ;;  %v34_v13 = vld [vmem:[%s4390_s1 + $0x80] sm:$0xff]  ;;  %2244 = vmatprep.subr.bf16.mxu0 %v2791_v3  ;;  %v2801_v14 = vcombine.high %v27_v11, %v31_v12  ;;  %v35_v16 = vld [vmem:[%s4390_s1 + $0x88] sm:$0xff]  ;;  %2367 = vmatprep.subr.bf16.mxu1 %v2793_v8  ;;  %v2798_v18 = vcombine.low %v26_v6, %v30_v7 }
   0x6   :  { %v38_v15 = vld [vmem:[%s4390_s1 + $0xa0] sm:$0xff]  ;;  %v39_v17 = vld [vmem:[%s4390_s1 + $0xa8] sm:$0xff]  ;;  %2245 = vmatpush1.bf16.msra.mxu0 %v2790_v5  ;;  %2368 = vmatpush1.bf16.msra.mxu1 %v2792_v9  ;;  %v2800_v19 = vcombine.low %v27_v11, %v31_v12 }
   0x7   :  { %2246 = vmatprep.subr.bf16.mxu0 %v2799_v10  ;;  %v2807_v20 = vcombine.high %v34_v13, %v38_v15  ;;  %2369 = vmatprep.subr.bf16.mxu1 %v2801_v14  ;;  %v2809_v21 = vcombine.high %v35_v16, %v39_v17  ;;  %v42_v22 = vld [vmem:[%s4390_s1 + $0xc0] sm:$0xff]  ;;  %v43_v24 = vld [vmem:[%s4390_s1 + $0xc8] sm:$0xff]  ;;  %v2806_v26 = vcombine.low %v34_v13, %v38_v15 }
   0x8   :  { %v46_v23 = vld [vmem:[%s4390_s1 + $0xe0] sm:$0xff]  ;;  %v47_v25 = vld [vmem:[%s4390_s1 + $0xe8] sm:$0xff]  ;;  %v2808_v27 = vcombine.low %v35_v16, %v39_v17 }
   0x9   :  { %v2815_v28 = vcombine.high %v42_v22, %v46_v23  ;;  %v2817_v29 = vcombine.high %v43_v24, %v47_v25  ;;  %v50_v30 = vld [vmem:[%s4390_s1 + $0x100] sm:$0xff]  ;;  %v51_v32 = vld [vmem:[%s4390_s1 + $0x108] sm:$0xff]  ;;  %v2814_v34 = vcombine.low %v42_v22, %v46_v23  ;;  %v2816_v35 = vcombine.low %v43_v24, %v47_v25 }
   0xa   :  { %2247 = vmatpush1.bf16.msra.mxu0 %v2798_v18  ;;  %2370 = vmatpush1.bf16.msra.mxu1 %v2800_v19  ;;  %v54_v31 = vld [vmem:[%s4390_s1 + $0x120] sm:$0xff]  ;;  %v55_v33 = vld [vmem:[%s4390_s1 + $0x128] sm:$0xff] }
   0xb   :  { %2248 = vmatprep.subr.bf16.mxu0 %v2807_v20  ;;  %2371 = vmatprep.subr.bf16.mxu1 %v2809_v21  ;;  %v2823_v36 = vcombine.high %v50_v30, %v54_v31  ;;  %v2825_v37 = vcombine.high %v51_v32, %v55_v33  ;;  %v58_v38 = vld [vmem:[%s4390_s1 + $0x140] sm:$0xff]  ;;  %v59_v40 = vld [vmem:[%s4390_s1 + $0x148] sm:$0xff]  ;;  %v2822_v42 = vcombine.low %v50_v30, %v54_v31 }
   0xc   :  { %v62_v39 = vld [vmem:[%s4390_s1 + $0x160] sm:$0xff]  ;;  %v63_v41 = vld [vmem:[%s4390_s1 + $0x168] sm:$0xff]  ;;  %v2824_v43 = vcombine.low %v51_v32, %v55_v33 }
   0xd   :  { %v2831_v44 = vcombine.high %v58_v38, %v62_v39  ;;  %v2833_v45 = vcombine.high %v59_v40, %v63_v41  ;;  %v66_v46 = vld [vmem:[%s4390_s1 + $0x180] sm:$0xff]  ;;  %v67_v48 = vld [vmem:[%s4390_s1 + $0x188] sm:$0xff]  ;;  %v2830_v50 = vcombine.low %v58_v38, %v62_v39  ;;  %v2832_v51 = vcombine.low %v59_v40, %v63_v41 }
   0xe   :  { %2249 = vmatpush1.bf16.msra.mxu0 %v2806_v26  ;;  %2372 = vmatpush1.bf16.msra.mxu1 %v2808_v27  ;;  %v70_v47 = vld [vmem:[%s4390_s1 + $0x1a0] sm:$0xff]  ;;  %v71_v49 = vld [vmem:[%s4390_s1 + $0x1a8] sm:$0xff] }
   0xf   :  { %2250 = vmatprep.subr.bf16.mxu0 %v2815_v28  ;;  %2373 = vmatprep.subr.bf16.mxu1 %v2817_v29  ;;  %v2839_v52 = vcombine.high %v66_v46, %v70_v47  ;;  %v3315_v53 = vld [vmem:[%s4391_s0] sm:$0xff]  ;;  %v2841_v54 = vcombine.high %v67_v48, %v71_v49  ;;  %v75_v58 = vld [vmem:[%s4390_s1 + $0x1c8] sm:$0xff]  ;;  %v2838_v60 = vcombine.low %v66_v46, %v70_v47 }
  0x10   :  { %v74_v55 = vld [vmem:[%s4390_s1 + $0x1c0] sm:$0xff]  ;;  %v3325_v57 = vcombine.high %v3315_v53, %v3315_v53  ;;  %v79_v59 = vld [vmem:[%s4390_s1 + $0x1e8] sm:$0xff]  ;;  %v2840_v61 = vcombine.low %v67_v48, %v71_v49 }
  0x11   :  { %v78_v56 = vld [vmem:[%s4390_s1 + $0x1e0] sm:$0xff]  ;;  %v2849_v63 = vcombine.high %v75_v58, %v79_v59  ;;  %v83_v2 = vld [vmem:[%s4390_s1 + $0x208] sm:$0xff]  ;;  %v2848_v5 = vcombine.low %v75_v58, %v79_v59 }
  0x12   :  { %2251 = vmatpush1.bf16.msra.mxu0 %v2814_v34  ;;  %2374 = vmatpush1.bf16.msra.mxu1 %v2816_v35  ;;  %v2847_v62 = vcombine.high %v74_v55, %v78_v56  ;;  %v82_v0 = vld [vmem:[%s4390_s1 + $0x200] sm:$0xff]  ;;  %v87_v3 = vld [vmem:[%s4390_s1 + $0x228] sm:$0xff]  ;;  %v2846_v4 = vcombine.low %v74_v55, %v78_v56 }
  0x13   :  { %2252 = vmatprep.subr.bf16.mxu0 %v2823_v36  ;;  %2375 = vmatprep.subr.bf16.mxu1 %v2825_v37  ;;  %v86_v1 = vld [vmem:[%s4390_s1 + $0x220] sm:$0xff]  ;;  %v2857_v7 = vcombine.high %v83_v2, %v87_v3  ;;  %v91_v10 = vld [vmem:[%s4390_s1 + $0x248] sm:$0xff]  ;;  %v2856_v13 = vcombine.low %v83_v2, %v87_v3 }
  0x14   :  { %2276 = vmatprep.mubr.bf16.mxu0 %v3325_v57  ;;  %2399 = vmatprep.mubr.bf16.mxu1 %v3325_v57  ;;  %v2855_v6 = vcombine.high %v82_v0, %v86_v1  ;;  %v90_v8 = vld [vmem:[%s4390_s1 + $0x240] sm:$0xff]  ;;  %v95_v11 = vld [vmem:[%s4390_s1 + $0x268] sm:$0xff]  ;;  %v2854_v12 = vcombine.low %v82_v0, %v86_v1 }
  0x15   :  { %v94_v9 = vld [vmem:[%s4390_s1 + $0x260] sm:$0xff]  ;;  %v2865_v15 = vcombine.high %v91_v10, %v95_v11  ;;  %v99_v18 = vld [vmem:[%s4390_s1 + $0x288] sm:$0xff]  ;;  %v2864_v21 = vcombine.low %v91_v10, %v95_v11 }
  0x16   :  { %2253 = vmatpush1.bf16.msra.mxu0 %v2822_v42  ;;  %2376 = vmatpush1.bf16.msra.mxu1 %v2824_v43  ;;  %v2863_v14 = vcombine.high %v90_v8, %v94_v9  ;;  %v98_v16 = vld [vmem:[%s4390_s1 + $0x280] sm:$0xff]  ;;  %v103_v19 = vld [vmem:[%s4390_s1 + $0x2a8] sm:$0xff]  ;;  %v2862_v20 = vcombine.low %v90_v8, %v94_v9 }
  0x17   :  { %2254 = vmatprep.subr.bf16.mxu0 %v2831_v44  ;;  %2377 = vmatprep.subr.bf16.mxu1 %v2833_v45  ;;  %v102_v17 = vld [vmem:[%s4390_s1 + $0x2a0] sm:$0xff]  ;;  %v2873_v23 = vcombine.high %v99_v18, %v103_v19  ;;  %v107_v26 = vld [vmem:[%s4390_s1 + $0x2c8] sm:$0xff]  ;;  %v2872_v29 = vcombine.low %v99_v18, %v103_v19 }
  0x18   :  { %v2871_v22 = vcombine.high %v98_v16, %v102_v17  ;;  %v106_v24 = vld [vmem:[%s4390_s1 + $0x2c0] sm:$0xff]  ;;  %v111_v27 = vld [vmem:[%s4390_s1 + $0x2e8] sm:$0xff]  ;;  %v2870_v28 = vcombine.low %v98_v16, %v102_v17 }
  0x19   :  { %v110_v25 = vld [vmem:[%s4390_s1 + $0x2e0] sm:$0xff]  ;;  %v2881_v31 = vcombine.high %v107_v26, %v111_v27  ;;  %v115_v34 = vld [vmem:[%s4390_s1 + $0x308] sm:$0xff]  ;;  %v2880_v37 = vcombine.low %v107_v26, %v111_v27 }
  0x1a   :  { %2255 = vmatpush1.bf16.msra.mxu0 %v2830_v50  ;;  %2378 = vmatpush1.bf16.msra.mxu1 %v2832_v51  ;;  %v2879_v30 = vcombine.high %v106_v24, %v110_v25  ;;  %v114_v32 = vld [vmem:[%s4390_s1 + $0x300] sm:$0xff]  ;;  %v119_v35 = vld [vmem:[%s4390_s1 + $0x328] sm:$0xff]  ;;  %v2878_v36 = vcombine.low %v106_v24, %v110_v25 }
  0x1b   :  { %2256 = vmatprep.subr.bf16.mxu0 %v2839_v52  ;;  %2379 = vmatprep.subr.bf16.mxu1 %v2841_v54  ;;  %v118_v33 = vld [vmem:[%s4390_s1 + $0x320] sm:$0xff]  ;;  %v2889_v39 = vcombine.high %v115_v34, %v119_v35  ;;  %v123_v42 = vld [vmem:[%s4390_s1 + $0x348] sm:$0xff]  ;;  %v2888_v45 = vcombine.low %v115_v34, %v119_v35 }
  0x1c   :  { %v2887_v38 = vcombine.high %v114_v32, %v118_v33  ;;  %v122_v40 = vld [vmem:[%s4390_s1 + $0x340] sm:$0xff]  ;;  %v127_v43 = vld [vmem:[%s4390_s1 + $0x368] sm:$0xff]  ;;  %v2886_v44 = vcombine.low %v114_v32, %v118_v33 }
  0x1d   :  { %v126_v41 = vld [vmem:[%s4390_s1 + $0x360] sm:$0xff]  ;;  %v2897_v47 = vcombine.high %v123_v42, %v127_v43  ;;  %v131_v50 = vld [vmem:[%s4390_s1 + $0x388] sm:$0xff]  ;;  %v2896_v54 = vcombine.low %v123_v42, %v127_v43 }
  0x1e   :  { %2257 = vmatpush1.bf16.msra.mxu0 %v2838_v60  ;;  %2380 = vmatpush1.bf16.msra.mxu1 %v2840_v61  ;;  %v2895_v46 = vcombine.high %v122_v40, %v126_v41  ;;  %v130_v48 = vld [vmem:[%s4390_s1 + $0x380] sm:$0xff]  ;;  %v135_v51 = vld [vmem:[%s4390_s1 + $0x3a8] sm:$0xff]  ;;  %v2894_v52 = vcombine.low %v122_v40, %v126_v41 }
  0x1f   :  { %2258 = vmatprep.subr.bf16.mxu0 %v2847_v62  ;;  %2381 = vmatprep.subr.bf16.mxu1 %v2849_v63  ;;  %v134_v49 = vld [vmem:[%s4390_s1 + $0x3a0] sm:$0xff]  ;;  %v2905_v56 = vcombine.high %v131_v50, %v135_v51  ;;  %v139_v60 = vld [vmem:[%s4390_s1 + $0x3c8] sm:$0xff]  ;;  %v2904_v63 = vcombine.low %v131_v50, %v135_v51 }
  0x20   :  { %v2903_v55 = vcombine.high %v130_v48, %v134_v49  ;;  %v138_v58 = vld [vmem:[%s4390_s1 + $0x3c0] sm:$0xff]  ;;  %v143_v61 = vld [vmem:[%s4390_s1 + $0x3e8] sm:$0xff]  ;;  %v2902_v62 = vcombine.low %v130_v48, %v134_v49 }
  0x21   :  { %v142_v59 = vld [vmem:[%s4390_s1 + $0x3e0] sm:$0xff]  ;;  %v2913_v1 = vcombine.high %v139_v60, %v143_v61 }
  0x22   :  { %2259 = vmatpush1.bf16.msra.mxu0 %v2846_v4  ;;  %2382 = vmatpush1.bf16.msra.mxu1 %v2848_v5  ;;  %v2911_v0 = vcombine.high %v138_v58, %v142_v59  ;;  %v146_v2 = vld [vmem:[%s4390_s1 + $0x400] sm:$0xff]  ;;  %v147_v4 = vld [vmem:[%s4390_s1 + $0x408] sm:$0xff] }
  0x23   :  { %2260 = vmatprep.subr.bf16.mxu0 %v2855_v6  ;;  %2383 = vmatprep.subr.bf16.mxu1 %v2857_v7  ;;  %v150_v3 = vld [vmem:[%s4390_s1 + $0x420] sm:$0xff]  ;;  %v151_v5 = vld [vmem:[%s4390_s1 + $0x428] sm:$0xff]  ;;  %v2910_v6 = vcombine.low %v138_v58, %v142_v59  ;;  %v2912_v7 = vcombine.low %v139_v60, %v143_v61 }
  0x24   :  { %v2919_v8 = vcombine.high %v146_v2, %v150_v3  ;;  %v2921_v9 = vcombine.high %v147_v4, %v151_v5  ;;  %v154_v10 = vld [vmem:[%s4390_s1 + $0x440] sm:$0xff]  ;;  %v2918_v16 = vcombine.low %v146_v2, %v150_v3  ;;  %v2920_v17 = vcombine.low %v147_v4, %v151_v5 }
  0x25   :  { %v158_v11 = vld [vmem:[%s4390_s1 + $0x460] sm:$0xff] }
  0x26   :  { %2261 = vmatpush1.bf16.msra.mxu0 %v2854_v12  ;;  %2384 = vmatpush1.bf16.msra.mxu1 %v2856_v13  ;;  %v3451_v12 = vcombine.low %v3315_v53, %v3315_v53  ;;  %v155_v13 = vld [vmem:[%s4390_s1 + $0x448] sm:$0xff]  ;;  %v2927_v53 = vcombine.high %v154_v10, %v158_v11  ;;  %v162_v19 = vld [vmem:[%s4390_s1 + $0x480] sm:$0xff]  ;;  %v2926_v24 = vcombine.low %v154_v10, %v158_v11 }
  0x27   :  { %2262 = vmatprep.subr.bf16.mxu0 %v2863_v14  ;;  %2385 = vmatprep.subr.bf16.mxu1 %v2865_v15  ;;  %v159_v14 = vld [vmem:[%s4390_s1 + $0x468] sm:$0xff] }
  0x28   :  { %v3462_v15 = vld [vmem:[%s4391_s0 + $0x8] sm:$0xff]  ;;  %v2929_v18 = vcombine.high %v155_v13, %v159_v14  ;;  %v2928_v25 = vcombine.low %v155_v13, %v159_v14 }
  0x2a   :  { %2263 = vmatpush1.bf16.msra.mxu0 %v2862_v20  ;;  %2386 = vmatpush1.bf16.msra.mxu1 %v2864_v21  ;;  %v166_v20 = vld [vmem:[%s4390_s1 + $0x4a0] sm:$0xff]  ;;  %v3472_v21 = vcombine.high %v3462_v15, %v3462_v15 }
  0x2b   :  { %2264 = vmatprep.subr.bf16.mxu0 %v2871_v22  ;;  %2387 = vmatprep.subr.bf16.mxu1 %v2873_v23  ;;  %v163_v22 = vld [vmem:[%s4390_s1 + $0x488] sm:$0xff]  ;;  %v2935_v26 = vcombine.high %v162_v19, %v166_v20  ;;  %v2934_v32 = vcombine.low %v162_v19, %v166_v20 }
  0x2c   :  { %v167_v23 = vld [vmem:[%s4390_s1 + $0x4a8] sm:$0xff] }
  0x2d   :  { %v2937_v27 = vcombine.high %v163_v22, %v167_v23  ;;  %v2936_v33 = vcombine.low %v163_v22, %v167_v23 }
  0x2e   :  { %2265 = vmatpush1.bf16.msra.mxu0 %v2870_v28  ;;  %2388 = vmatpush1.bf16.msra.mxu1 %v2872_v29  ;;  %v170_v28 = vld [vmem:[%s4390_s1 + $0x4c0] sm:$0xff] }
  0x2f   :  { %2266 = vmatprep.subr.bf16.mxu0 %v2879_v30  ;;  %2389 = vmatprep.subr.bf16.mxu1 %v2881_v31  ;;  %v174_v29 = vld [vmem:[%s4390_s1 + $0x4e0] sm:$0xff]  ;;  %v171_v30 = vld [vmem:[%s4390_s1 + $0x4c8] sm:$0xff] }
  0x30   :  { %v175_v31 = vld [vmem:[%s4390_s1 + $0x4e8] sm:$0xff]  ;;  %v2943_v34 = vcombine.high %v170_v28, %v174_v29  ;;  %v2942_v40 = vcombine.low %v170_v28, %v174_v29 }
  0x31   :  { %v2945_v35 = vcombine.high %v171_v30, %v175_v31  ;;  %v2944_v41 = vcombine.low %v171_v30, %v175_v31 }
  0x32   :  { %2267 = vmatpush1.bf16.msra.mxu0 %v2878_v36  ;;  %2390 = vmatpush1.bf16.msra.mxu1 %v2880_v37  ;;  %v178_v36 = vld [vmem:[%s4390_s1 + $0x500] sm:$0xff] }
  0x33   :  { %2268 = vmatprep.subr.bf16.mxu0 %v2887_v38  ;;  %2391 = vmatprep.subr.bf16.mxu1 %v2889_v39  ;;  %v182_v37 = vld [vmem:[%s4390_s1 + $0x520] sm:$0xff]  ;;  %v179_v38 = vld [vmem:[%s4390_s1 + $0x508] sm:$0xff] }
  0x34   :  { %v183_v39 = vld [vmem:[%s4390_s1 + $0x528] sm:$0xff]  ;;  %v2951_v42 = vcombine.high %v178_v36, %v182_v37  ;;  %v2950_v48 = vcombine.low %v178_v36, %v182_v37 }
  0x35   :  { %v2953_v43 = vcombine.high %v179_v38, %v183_v39  ;;  %v2952_v49 = vcombine.low %v179_v38, %v183_v39 }
  0x36   :  { %2269 = vmatpush1.bf16.msra.mxu0 %v2886_v44  ;;  %2392 = vmatpush1.bf16.msra.mxu1 %v2888_v45  ;;  %v186_v44 = vld [vmem:[%s4390_s1 + $0x540] sm:$0xff] }
  0x37   :  { %2270 = vmatprep.subr.bf16.mxu0 %v2895_v46  ;;  %2393 = vmatprep.subr.bf16.mxu1 %v2897_v47  ;;  %v190_v45 = vld [vmem:[%s4390_s1 + $0x560] sm:$0xff]  ;;  %v187_v46 = vld [vmem:[%s4390_s1 + $0x548] sm:$0xff] }
  0x38   :  { %v191_v47 = vld [vmem:[%s4390_s1 + $0x568] sm:$0xff]  ;;  %v2959_v50 = vcombine.high %v186_v44, %v190_v45  ;;  %v2958_v58 = vcombine.low %v186_v44, %v190_v45 }
  0x39   :  { %v2961_v51 = vcombine.high %v187_v46, %v191_v47  ;;  %v2960_v59 = vcombine.low %v187_v46, %v191_v47 }
  0x3a   :  { %2271 = vmatpush1.bf16.msra.mxu0 %v2894_v52  ;;  %2394 = vmatpush1.bf16.msra.mxu1 %v2896_v54  ;;  %v194_v52 = vld [vmem:[%s4390_s1 + $0x580] sm:$0xff] }
  0x3b   :  { %2272 = vmatprep.subr.bf16.mxu0 %v2903_v55  ;;  %2395 = vmatprep.subr.bf16.mxu1 %v2905_v56  ;;  %v198_v54 = vld [vmem:[%s4390_s1 + $0x5a0] sm:$0xff]  ;;  %v195_v55 = vld [vmem:[%s4390_s1 + $0x588] sm:$0xff] }
  0x3c   :  { %v199_v56 = vld [vmem:[%s4390_s1 + $0x5a8] sm:$0xff]  ;;  %v2967_v60 = vcombine.high %v194_v52, %v198_v54  ;;  %v2966_v2 = vcombine.low %v194_v52, %v198_v54 }
  0x3d   :  { %v2969_v61 = vcombine.high %v195_v55, %v199_v56  ;;  %v2968_v3 = vcombine.low %v195_v55, %v199_v56 }
  0x3e   :  { %2273 = vmatpush1.bf16.msra.mxu0 %v2902_v62  ;;  %2396 = vmatpush1.bf16.msra.mxu1 %v2904_v63  ;;  %v202_v62 = vld [vmem:[%s4390_s1 + $0x5c0] sm:$0xff] }
  0x3f   :  { %2274 = vmatprep.subr.bf16.mxu0 %v2911_v0  ;;  %2397 = vmatprep.subr.bf16.mxu1 %v2913_v1  ;;  %v206_v63 = vld [vmem:[%s4390_s1 + $0x5e0] sm:$0xff]  ;;  %v203_v0 = vld [vmem:[%s4390_s1 + $0x5c8] sm:$0xff] }
  0x40   :  { %v207_v1 = vld [vmem:[%s4390_s1 + $0x5e8] sm:$0xff]  ;;  %v2975_v4 = vcombine.high %v202_v62, %v206_v63  ;;  %v2974_v10 = vcombine.low %v202_v62, %v206_v63 }
  0x41   :  { %v2977_v5 = vcombine.high %v203_v0, %v207_v1  ;;  %v2976_v11 = vcombine.low %v203_v0, %v207_v1 }
  0x42   :  { %2275 = vmatpush1.bf16.msra.mxu0 %v2910_v6  ;;  %2398 = vmatpush1.bf16.msra.mxu1 %v2912_v7  ;;  %v210_v6 = vld [vmem:[%s4390_s1 + $0x600] sm:$0xff] }
  0x43   :  { %2285 = vmatprep.subr.bf16.mxu0 %v2919_v8  ;;  %2408 = vmatprep.subr.bf16.mxu1 %v2921_v9  ;;  %v214_v7 = vld [vmem:[%s4390_s1 + $0x620] sm:$0xff]  ;;  %v211_v8 = vld [vmem:[%s4390_s1 + $0x608] sm:$0xff] }
  0x44   :  { %v215_v9 = vld [vmem:[%s4390_s1 + $0x628] sm:$0xff]  ;;  %v2983_v13 = vcombine.high %v210_v6, %v214_v7  ;;  %v2982_v19 = vcombine.low %v210_v6, %v214_v7 }
  0x45   :  { %2277 = vmatmul.mubr.bf16.vlgmr.msra.gmra.mrb[0].mxu0 %v3451_v12  ;;  %2400 = vmatmul.mubr.bf16.vlgmr.msra.gmra.mrb[0].mxu1 %v3451_v12  ;;  %v2985_v14 = vcombine.high %v211_v8, %v215_v9  ;;  %v2984_v20 = vcombine.low %v211_v8, %v215_v9 }
  0x46   :  { %2286 = vmatpush1.bf16.msra.mxu0 %v2918_v16  ;;  %2409 = vmatpush1.bf16.msra.mxu1 %v2920_v17  ;;  %v218_v16 = vld [vmem:[%s4390_s1 + $0x640] sm:$0xff] }
  0x47   :  { %2287 = vmatprep.subr.bf16.mxu0 %v2927_v53  ;;  %2410 = vmatprep.subr.bf16.mxu1 %v2929_v18  ;;  %v222_v17 = vld [vmem:[%s4390_s1 + $0x660] sm:$0xff]  ;;  %v219_v53 = vld [vmem:[%s4390_s1 + $0x648] sm:$0xff] }
  0x48   :  { %2317 = vmatprep.mubr.bf16.mxu0 %v3472_v21  ;;  %2440 = vmatprep.mubr.bf16.mxu1 %v3472_v21  ;;  %v223_v18 = vld [vmem:[%s4390_s1 + $0x668] sm:$0xff]  ;;  %v2991_v22 = vcombine.high %v218_v16, %v222_v17  ;;  %v2990_v28 = vcombine.low %v218_v16, %v222_v17 }
  0x49   :  { %v2993_v23 = vcombine.high %v219_v53, %v223_v18  ;;  %v2992_v29 = vcombine.low %v219_v53, %v223_v18 }
  0x4a   :  { %2288 = vmatpush1.bf16.msra.mxu0 %v2926_v24  ;;  %2411 = vmatpush1.bf16.msra.mxu1 %v2928_v25  ;;  %v226_v24 = vld [vmem:[%s4390_s1 + $0x680] sm:$0xff] }
  0x4b   :  { %2289 = vmatprep.subr.bf16.mxu0 %v2935_v26  ;;  %2412 = vmatprep.subr.bf16.mxu1 %v2937_v27  ;;  %v230_v25 = vld [vmem:[%s4390_s1 + $0x6a0] sm:$0xff]  ;;  %v227_v26 = vld [vmem:[%s4390_s1 + $0x688] sm:$0xff] }
  0x4c   :  { %v231_v27 = vld [vmem:[%s4390_s1 + $0x6a8] sm:$0xff]  ;;  %v2999_v30 = vcombine.high %v226_v24, %v230_v25  ;;  %v2998_v36 = vcombine.low %v226_v24, %v230_v25  ;;  %v3671_v25 = vld [vmem:[%s4391_s0 + $0x10] sm:$0xff] }
  0x4d   :  { %v3001_v31 = vcombine.high %v227_v26, %v231_v27  ;;  %v3000_v37 = vcombine.low %v227_v26, %v231_v27  ;;  %v287_v24 = vld [vmem:[%s4390_s1 + $0x868] sm:$0xff] }
  0x4e   :  { %2290 = vmatpush1.bf16.msra.mxu0 %v2934_v32  ;;  %2413 = vmatpush1.bf16.msra.mxu1 %v2936_v33  ;;  %v234_v32 = vld [vmem:[%s4390_s1 + $0x6c0] sm:$0xff] }
  0x4f   :  { %2291 = vmatprep.subr.bf16.mxu0 %v2943_v34  ;;  %2414 = vmatprep.subr.bf16.mxu1 %v2945_v35  ;;  %v238_v33 = vld [vmem:[%s4390_s1 + $0x6e0] sm:$0xff]  ;;  %v235_v34 = vld [vmem:[%s4390_s1 + $0x6c8] sm:$0xff] }
  0x50   :  { %v239_v35 = vld [vmem:[%s4390_s1 + $0x6e8] sm:$0xff]  ;;  %v3007_v38 = vcombine.high %v234_v32, %v238_v33  ;;  %v3006_v44 = vcombine.low %v234_v32, %v238_v33 }
  0x51   :  { %v3009_v39 = vcombine.high %v235_v34, %v239_v35  ;;  %v3008_v45 = vcombine.low %v235_v34, %v239_v35  ;;  %v291_v32 = vld [vmem:[%s4390_s1 + $0x888] sm:$0xff] }
  0x52   :  { %2292 = vmatpush1.bf16.msra.mxu0 %v2942_v40  ;;  %2415 = vmatpush1.bf16.msra.mxu1 %v2944_v41  ;;  %v242_v40 = vld [vmem:[%s4390_s1 + $0x700] sm:$0xff]  ;;  %v295_v33 = vld [vmem:[%s4390_s1 + $0x8a8] sm:$0xff] }
  0x53   :  { %2293 = vmatprep.subr.bf16.mxu0 %v2951_v42  ;;  %2416 = vmatprep.subr.bf16.mxu1 %v2953_v43  ;;  %v246_v41 = vld [vmem:[%s4390_s1 + $0x720] sm:$0xff]  ;;  %v243_v42 = vld [vmem:[%s4390_s1 + $0x708] sm:$0xff] }
  0x54   :  { %v247_v43 = vld [vmem:[%s4390_s1 + $0x728] sm:$0xff]  ;;  %v3015_v46 = vcombine.high %v242_v40, %v246_v41  ;;  %v3014_v52 = vcombine.low %v242_v40, %v246_v41 }
  0x55   :  { %v3017_v47 = vcombine.high %v243_v42, %v247_v43  ;;  %v3016_v54 = vcombine.low %v243_v42, %v247_v43  ;;  %v299_v40 = vld [vmem:[%s4390_s1 + $0x8c8] sm:$0xff]  ;;  %v3064_v43 = vcombine.low %v291_v32, %v295_v33 }
  0x56   :  { %2294 = vmatpush1.bf16.msra.mxu0 %v2950_v48  ;;  %2417 = vmatpush1.bf16.msra.mxu1 %v2952_v49  ;;  %v250_v48 = vld [vmem:[%s4390_s1 + $0x740] sm:$0xff]  ;;  %v303_v41 = vld [vmem:[%s4390_s1 + $0x8e8] sm:$0xff] }
  0x57   :  { %2295 = vmatprep.subr.bf16.mxu0 %v2959_v50  ;;  %2418 = vmatprep.subr.bf16.mxu1 %v2961_v51  ;;  %v254_v49 = vld [vmem:[%s4390_s1 + $0x760] sm:$0xff]  ;;  %v251_v50 = vld [vmem:[%s4390_s1 + $0x748] sm:$0xff] }
  0x58   :  { %v255_v51 = vld [vmem:[%s4390_s1 + $0x768] sm:$0xff]  ;;  %v3023_v55 = vcombine.high %v250_v48, %v254_v49  ;;  %v3022_v62 = vcombine.low %v250_v48, %v254_v49 }
  0x59   :  { %v3025_v56 = vcombine.high %v251_v50, %v255_v51  ;;  %v3024_v63 = vcombine.low %v251_v50, %v255_v51  ;;  %v307_v48 = vld [vmem:[%s4390_s1 + $0x908] sm:$0xff]  ;;  %v3072_v51 = vcombine.low %v299_v40, %v303_v41 }
  0x5a   :  { %2296 = vmatpush1.bf16.msra.mxu0 %v2958_v58  ;;  %2419 = vmatpush1.bf16.msra.mxu1 %v2960_v59  ;;  %v258_v58 = vld [vmem:[%s4390_s1 + $0x780] sm:$0xff]  ;;  %v311_v49 = vld [vmem:[%s4390_s1 + $0x928] sm:$0xff] }
  0x5b   :  { %2297 = vmatprep.subr.bf16.mxu0 %v2967_v60  ;;  %2420 = vmatprep.subr.bf16.mxu1 %v2969_v61  ;;  %v262_v59 = vld [vmem:[%s4390_s1 + $0x7a0] sm:$0xff]  ;;  %v259_v60 = vld [vmem:[%s4390_s1 + $0x788] sm:$0xff] }
  0x5c   :  { %v263_v61 = vld [vmem:[%s4390_s1 + $0x7a8] sm:$0xff]  ;;  %v3031_v0 = vcombine.high %v258_v58, %v262_v59  ;;  %v3030_v6 = vcombine.low %v258_v58, %v262_v59 }
  0x5d   :  { %v3033_v1 = vcombine.high %v259_v60, %v263_v61  ;;  %v3032_v7 = vcombine.low %v259_v60, %v263_v61  ;;  %v315_v58 = vld [vmem:[%s4390_s1 + $0x948] sm:$0xff]  ;;  %v3080_v61 = vcombine.low %v307_v48, %v311_v49 }
  0x5e   :  { %2298 = vmatpush1.bf16.msra.mxu0 %v2966_v2  ;;  %2421 = vmatpush1.bf16.msra.mxu1 %v2968_v3  ;;  %v266_v2 = vld [vmem:[%s4390_s1 + $0x7c0] sm:$0xff]  ;;  %v319_v59 = vld [vmem:[%s4390_s1 + $0x968] sm:$0xff] }
  0x5f   :  { %2299 = vmatprep.subr.bf16.mxu0 %v2975_v4  ;;  %2422 = vmatprep.subr.bf16.mxu1 %v2977_v5  ;;  %v270_v3 = vld [vmem:[%s4390_s1 + $0x7e0] sm:$0xff]  ;;  %v267_v4 = vld [vmem:[%s4390_s1 + $0x7c8] sm:$0xff] }
  0x60   :  { %v271_v5 = vld [vmem:[%s4390_s1 + $0x7e8] sm:$0xff]  ;;  %v3039_v8 = vcombine.high %v266_v2, %v270_v3  ;;  %v3038_v16 = vcombine.low %v266_v2, %v270_v3 }
  0x61   :  { %v3041_v9 = vcombine.high %v267_v4, %v271_v5  ;;  %v3040_v17 = vcombine.low %v267_v4, %v271_v5  ;;  %v323_v2 = vld [vmem:[%s4390_s1 + $0x988] sm:$0xff]  ;;  %v3088_v5 = vcombine.low %v315_v58, %v319_v59 }
  0x62   :  { %2300 = vmatpush1.bf16.msra.mxu0 %v2974_v10  ;;  %2423 = vmatpush1.bf16.msra.mxu1 %v2976_v11  ;;  %v274_v10 = vld [vmem:[%s4390_s1 + $0x800] sm:$0xff]  ;;  %v327_v3 = vld [vmem:[%s4390_s1 + $0x9a8] sm:$0xff] }
  0x63   :  { %2301 = vmatprep.subr.bf16.mxu0 %v2983_v13  ;;  %2424 = vmatprep.subr.bf16.mxu1 %v2985_v14  ;;  %v278_v11 = vld [vmem:[%s4390_s1 + $0x820] sm:$0xff]  ;;  %v275_v13 = vld [vmem:[%s4390_s1 + $0x808] sm:$0xff] }
  0x64   :  { %v279_v14 = vld [vmem:[%s4390_s1 + $0x828] sm:$0xff]  ;;  %v3047_v53 = vcombine.high %v274_v10, %v278_v11  ;;  %v3046_v26 = vcombine.low %v274_v10, %v278_v11 }
  0x65   :  { %v3049_v18 = vcombine.high %v275_v13, %v279_v14  ;;  %v3048_v27 = vcombine.low %v275_v13, %v279_v14  ;;  %v331_v10 = vld [vmem:[%s4390_s1 + $0x9c8] sm:$0xff]  ;;  %v3096_v14 = vcombine.low %v323_v2, %v327_v3 }
  0x66   :  { %2302 = vmatpush1.bf16.msra.mxu0 %v2982_v19  ;;  %2425 = vmatpush1.bf16.msra.mxu1 %v2984_v20  ;;  %v282_v19 = vld [vmem:[%s4390_s1 + $0x840] sm:$0xff]  ;;  %v335_v11 = vld [vmem:[%s4390_s1 + $0x9e8] sm:$0xff] }
  0x67   :  { %2303 = vmatprep.subr.bf16.mxu0 %v2991_v22  ;;  %2426 = vmatprep.subr.bf16.mxu1 %v2993_v23  ;;  %v286_v20 = vld [vmem:[%s4390_s1 + $0x860] sm:$0xff]  ;;  %v3660_v22 = vcombine.low %v3462_v15, %v3462_v15  ;;  %v283_v23 = vld [vmem:[%s4390_s1 + $0x848] sm:$0xff] }
  0x68   :  { %v3055_v15 = vcombine.high %v282_v19, %v286_v20  ;;  %v3054_v34 = vcombine.low %v282_v19, %v286_v20  ;;  %v3056_v35 = vcombine.low %v283_v23, %v287_v24  ;;  %v339_v19 = vld [vmem:[%s4390_s1 + $0xa08] sm:$0xff] }
  0x69   :  { %v343_v20 = vld [vmem:[%s4390_s1 + $0xa28] sm:$0xff] }
  0x6a   :  { %2304 = vmatpush1.bf16.msra.mxu0 %v2990_v28  ;;  %2427 = vmatpush1.bf16.msra.mxu1 %v2992_v29  ;;  %v3057_v28 = vcombine.high %v283_v23, %v287_v24  ;;  %v290_v29 = vld [vmem:[%s4390_s1 + $0x880] sm:$0xff]  ;;  %v3104_v24 = vcombine.low %v331_v10, %v335_v11 }
  0x6b   :  { %2305 = vmatprep.subr.bf16.mxu0 %v2999_v30  ;;  %2428 = vmatprep.subr.bf16.mxu1 %v3001_v31  ;;  %v294_v30 = vld [vmem:[%s4390_s1 + $0x8a0] sm:$0xff]  ;;  %v3681_v31 = vcombine.high %v3671_v25, %v3671_v25 }
  0x6c   :  { %v3062_v42 = vcombine.low %v290_v29, %v294_v30 }
  0x6e   :  { %2306 = vmatpush1.bf16.msra.mxu0 %v2998_v36  ;;  %2429 = vmatpush1.bf16.msra.mxu1 %v3000_v37  ;;  %v3063_v36 = vcombine.high %v290_v29, %v294_v30  ;;  %v3065_v37 = vcombine.high %v291_v32, %v295_v33  ;;  %v347_v29 = vld [vmem:[%s4390_s1 + $0xa48] sm:$0xff]  ;;  %v3112_v33 = vcombine.low %v339_v19, %v343_v20 }
  0x6f   :  { %2307 = vmatprep.subr.bf16.mxu0 %v3007_v38  ;;  %2430 = vmatprep.subr.bf16.mxu1 %v3009_v39  ;;  %v298_v38 = vld [vmem:[%s4390_s1 + $0x8c0] sm:$0xff]  ;;  %v351_v30 = vld [vmem:[%s4390_s1 + $0xa68] sm:$0xff] }
  0x70   :  { %v302_v39 = vld [vmem:[%s4390_s1 + $0x8e0] sm:$0xff] }
  0x71   :  { %v3070_v50 = vcombine.low %v298_v38, %v302_v39 }
  0x72   :  { %2308 = vmatpush1.bf16.msra.mxu0 %v3006_v44  ;;  %2431 = vmatpush1.bf16.msra.mxu1 %v3008_v45  ;;  %v3071_v44 = vcombine.high %v298_v38, %v302_v39  ;;  %v3073_v45 = vcombine.high %v299_v40, %v303_v41  ;;  %v355_v38 = vld [vmem:[%s4390_s1 + $0xa88] sm:$0xff]  ;;  %v3120_v41 = vcombine.low %v347_v29, %v351_v30 }
  0x73   :  { %2309 = vmatprep.subr.bf16.mxu0 %v3015_v46  ;;  %2432 = vmatprep.subr.bf16.mxu1 %v3017_v47  ;;  %v306_v46 = vld [vmem:[%s4390_s1 + $0x900] sm:$0xff]  ;;  %v359_v39 = vld [vmem:[%s4390_s1 + $0xaa8] sm:$0xff] }
  0x74   :  { %v310_v47 = vld [vmem:[%s4390_s1 + $0x920] sm:$0xff] }
  0x75   :  { %v3078_v60 = vcombine.low %v306_v46, %v310_v47 }
  0x76   :  { %2310 = vmatpush1.bf16.msra.mxu0 %v3014_v52  ;;  %2433 = vmatpush1.bf16.msra.mxu1 %v3016_v54  ;;  %v3079_v52 = vcombine.high %v306_v46, %v310_v47  ;;  %v3081_v54 = vcombine.high %v307_v48, %v311_v49  ;;  %v363_v46 = vld [vmem:[%s4390_s1 + $0xac8] sm:$0xff]  ;;  %v3128_v49 = vcombine.low %v355_v38, %v359_v39 }
  0x77   :  { %2311 = vmatprep.subr.bf16.mxu0 %v3023_v55  ;;  %2434 = vmatprep.subr.bf16.mxu1 %v3025_v56  ;;  %v314_v55 = vld [vmem:[%s4390_s1 + $0x940] sm:$0xff]  ;;  %v367_v47 = vld [vmem:[%s4390_s1 + $0xae8] sm:$0xff] }
  0x78   :  { %v318_v56 = vld [vmem:[%s4390_s1 + $0x960] sm:$0xff] }
  0x79   :  { %v3086_v4 = vcombine.low %v314_v55, %v318_v56 }
  0x7a   :  { %2312 = vmatpush1.bf16.msra.mxu0 %v3022_v62  ;;  %2435 = vmatpush1.bf16.msra.mxu1 %v3024_v63  ;;  %v3087_v62 = vcombine.high %v314_v55, %v318_v56  ;;  %v3089_v63 = vcombine.high %v315_v58, %v319_v59  ;;  %v371_v55 = vld [vmem:[%s4390_s1 + $0xb08] sm:$0xff]  ;;  %v3136_v59 = vcombine.low %v363_v46, %v367_v47 }
  0x7b   :  { %2313 = vmatprep.subr.bf16.mxu0 %v3031_v0  ;;  %2436 = vmatprep.subr.bf16.mxu1 %v3033_v1  ;;  %v322_v0 = vld [vmem:[%s4390_s1 + $0x980] sm:$0xff]  ;;  %v375_v56 = vld [vmem:[%s4390_s1 + $0xb28] sm:$0xff] }
  0x7c   :  { %v326_v1 = vld [vmem:[%s4390_s1 + $0x9a0] sm:$0xff] }
  0x7d   :  { %v3094_v13 = vcombine.low %v322_v0, %v326_v1 }
  0x7e   :  { %2314 = vmatpush1.bf16.msra.mxu0 %v3030_v6  ;;  %2437 = vmatpush1.bf16.msra.mxu1 %v3032_v7  ;;  %v3095_v6 = vcombine.high %v322_v0, %v326_v1  ;;  %v3097_v7 = vcombine.high %v323_v2, %v327_v3  ;;  %v21_v0 = vld [vmem:[%s4390_s1 + $0x18] sm:$0xff]  ;;  %v3144_v3 = vcombine.low %v371_v55, %v375_v56 }
  0x7f   :  { %2315 = vmatprep.subr.bf16.mxu0 %v3039_v8  ;;  %2438 = vmatprep.subr.bf16.mxu1 %v3041_v9  ;;  %v330_v8 = vld [vmem:[%s4390_s1 + $0x9c0] sm:$0xff]  ;;  %v25_v1 = vld [vmem:[%s4390_s1 + $0x38] sm:$0xff] }
  0x80   :  { %v334_v9 = vld [vmem:[%s4390_s1 + $0x9e0] sm:$0xff] }
  0x81   :  { %v3102_v23 = vcombine.low %v330_v8, %v334_v9 }
  0x82   :  { %2316 = vmatpush1.bf16.msra.mxu0 %v3038_v16  ;;  %2439 = vmatpush1.bf16.msra.mxu1 %v3040_v17  ;;  %v3103_v16 = vcombine.high %v330_v8, %v334_v9  ;;  %v3105_v17 = vcombine.high %v331_v10, %v335_v11  ;;  %v3835_v8 = vcombine.low %v3671_v25, %v3671_v25  ;;  %v29_v9 = vld [vmem:[%s4390_s1 + $0x58] sm:$0xff]  ;;  %v36_v25 = vld [vmem:[%s4390_s1 + $0x90] sm:$0xff] }
  0x83   :  { %2326 = vmatprep.subr.bf16.mxu0 %v3047_v53  ;;  %2449 = vmatprep.subr.bf16.mxu1 %v3049_v18  ;;  %v338_v53 = vld [vmem:[%s4390_s1 + $0xa00] sm:$0xff]  ;;  %v33_v10 = vld [vmem:[%s4390_s1 + $0x78] sm:$0xff] }
  0x84   :  { %v342_v18 = vld [vmem:[%s4390_s1 + $0xa20] sm:$0xff] }
  0x85   :  { %2318 = vmatmul.mubr.bf16.vlgmr.msra.gmra.mrb[0].mxu0 %v3660_v22  ;;  %2441 = vmatmul.mubr.bf16.vlgmr.msra.gmra.mrb[0].mxu1 %v3660_v22  ;;  %v3110_v32 = vcombine.low %v338_v53, %v342_v18 }
  0x86   :  { %2327 = vmatpush1.bf16.msra.mxu0 %v3046_v26  ;;  %2450 = vmatpush1.bf16.msra.mxu1 %v3048_v27  ;;  %v3111_v26 = vcombine.high %v338_v53, %v342_v18  ;;  %v3113_v27 = vcombine.high %v339_v19, %v343_v20  ;;  %v37_v53 = vld [vmem:[%s4390_s1 + $0x98] sm:$0xff]  ;;  %v2804_v20 = vcombine.low %v29_v9, %v33_v10 }
  0x87   :  { %2328 = vmatprep.subr.bf16.mxu0 %v3055_v15  ;;  %2451 = vmatprep.subr.bf16.mxu1 %v3057_v28  ;;  %v346_v15 = vld [vmem:[%s4390_s1 + $0xa40] sm:$0xff]  ;;  %v41_v18 = vld [vmem:[%s4390_s1 + $0xb8] sm:$0xff] }
  0x88   :  { %3150 = vmatprep.mubr.msk.bf16.mxu0 %vm2240_vm0, %v3681_v31  ;;  %3151 = vmatprep.mubr.msk.bf16.mxu1 %vm2240_vm0, %v3681_v31  ;;  %v350_v28 = vld [vmem:[%s4390_s1 + $0xa60] sm:$0xff] }
  0x89   :  { %v3118_v40 = vcombine.low %v346_v15, %v350_v28 }
  0x8a   :  { %2329 = vmatpush1.bf16.msra.mxu0 %v3054_v34  ;;  %2452 = vmatpush1.bf16.msra.mxu1 %v3056_v35  ;;  %v3119_v34 = vcombine.high %v346_v15, %v350_v28  ;;  %v3121_v35 = vcombine.high %v347_v29, %v351_v30  ;;  %v45_v15 = vld [vmem:[%s4390_s1 + $0xd8] sm:$0xff]  ;;  %v2812_v30 = vcombine.low %v37_v53, %v41_v18 }
  0x8b   :  { %2330 = vmatprep.subr.bf16.mxu0 %v3063_v36  ;;  %2453 = vmatprep.subr.bf16.mxu1 %v3065_v37  ;;  %v354_v36 = vld [vmem:[%s4390_s1 + $0xa80] sm:$0xff]  ;;  %v49_v28 = vld [vmem:[%s4390_s1 + $0xf8] sm:$0xff] }
  0x8c   :  { %v358_v37 = vld [vmem:[%s4390_s1 + $0xaa0] sm:$0xff] }
  0x8d   :  { %v3126_v48 = vcombine.low %v354_v36, %v358_v37 }
  0x8e   :  { %2331 = vmatpush1.bf16.msra.mxu0 %v3062_v42  ;;  %2454 = vmatpush1.bf16.msra.mxu1 %v3064_v43  ;;  %v3127_v42 = vcombine.high %v354_v36, %v358_v37  ;;  %v3129_v43 = vcombine.high %v355_v38, %v359_v39  ;;  %v57_v36 = vld [vmem:[%s4390_s1 + $0x138] sm:$0xff]  ;;  %v2820_v38 = vcombine.low %v45_v15, %v49_v28 }
  0x8f   :  { %2332 = vmatprep.subr.bf16.mxu0 %v3071_v44  ;;  %2455 = vmatprep.subr.bf16.mxu1 %v3073_v45  ;;  %v362_v44 = vld [vmem:[%s4390_s1 + $0xac0] sm:$0xff] }
  0x90   :  { %v366_v45 = vld [vmem:[%s4390_s1 + $0xae0] sm:$0xff] }
  0x91   :  { %v3134_v58 = vcombine.low %v362_v44, %v366_v45 }
  0x92   :  { %2333 = vmatpush1.bf16.msra.mxu0 %v3070_v50  ;;  %2456 = vmatpush1.bf16.msra.mxu1 %v3072_v51  ;;  %v3135_v50 = vcombine.high %v362_v44, %v366_v45  ;;  %v3137_v51 = vcombine.high %v363_v46, %v367_v47  ;;  %v65_v44 = vld [vmem:[%s4390_s1 + $0x178] sm:$0xff] }
  0x93   :  { %2334 = vmatprep.subr.bf16.mxu0 %v3079_v52  ;;  %2457 = vmatprep.subr.bf16.mxu1 %v3081_v54  ;;  %v370_v52 = vld [vmem:[%s4390_s1 + $0xb00] sm:$0xff] }
  0x94   :  { %v374_v54 = vld [vmem:[%s4390_s1 + $0xb20] sm:$0xff] }
  0x95   :  { %v3142_v2 = vcombine.low %v370_v52, %v374_v54 }
  0x96   :  { %2335 = vmatpush1.bf16.msra.mxu0 %v3078_v60  ;;  %2458 = vmatpush1.bf16.msra.mxu1 %v3080_v61  ;;  %v3143_v60 = vcombine.high %v370_v52, %v374_v54  ;;  %v3145_v61 = vcombine.high %v371_v55, %v375_v56  ;;  %v73_v52 = vld [vmem:[%s4390_s1 + $0x1b8] sm:$0xff] }
  0x97   :  { %2336 = vmatprep.subr.bf16.mxu0 %v3087_v62  ;;  %2459 = vmatprep.subr.bf16.mxu1 %v3089_v63  ;;  %v20_v62 = vld [vmem:[%s4390_s1 + $0x10] sm:$0xff] }
  0x98   :  { %v24_v63 = vld [vmem:[%s4390_s1 + $0x30] sm:$0xff] }
  0x99   :  { %v2794_v11 = vcombine.low %v20_v62, %v24_v63 }
  0x9a   :  { %2337 = vmatpush1.bf16.msra.mxu0 %v3086_v4  ;;  %2460 = vmatpush1.bf16.msra.mxu1 %v3088_v5  ;;  %v2795_v4 = vcombine.high %v20_v62, %v24_v63  ;;  %v2797_v5 = vcombine.high %v21_v0, %v25_v1  ;;  %v81_v62 = vld [vmem:[%s4390_s1 + $0x1f8] sm:$0xff] }
  0x9b   :  { %2338 = vmatprep.subr.bf16.mxu0 %v3095_v6  ;;  %2461 = vmatprep.subr.bf16.mxu1 %v3097_v7  ;;  %v28_v6 = vld [vmem:[%s4390_s1 + $0x50] sm:$0xff] }
  0x9c   :  { %v32_v7 = vld [vmem:[%s4390_s1 + $0x70] sm:$0xff] }
  0x9d   :  { %v2802_v19 = vcombine.low %v28_v6, %v32_v7 }
  0x9e   :  { %2339 = vmatpush1.bf16.msra.mxu0 %v3094_v13  ;;  %2462 = vmatpush1.bf16.msra.mxu1 %v3096_v14  ;;  %v2796_v13 = vcombine.low %v21_v0, %v25_v1  ;;  %v2803_v14 = vcombine.high %v28_v6, %v32_v7  ;;  %v89_v6 = vld [vmem:[%s4390_s1 + $0x238] sm:$0xff] }
  0x9f   :  { %2340 = vmatprep.subr.bf16.mxu0 %v3103_v16  ;;  %2463 = vmatprep.subr.bf16.mxu1 %v3105_v17  ;;  %v2805_v16 = vcombine.high %v29_v9, %v33_v10  ;;  %v40_v17 = vld [vmem:[%s4390_s1 + $0xb0] sm:$0xff] }
  0xa0   :  { %v2810_v29 = vcombine.low %v36_v25, %v40_v17 }
  0xa2   :  { %2341 = vmatpush1.bf16.msra.mxu0 %v3102_v23  ;;  %2464 = vmatpush1.bf16.msra.mxu1 %v3104_v24  ;;  %v2811_v23 = vcombine.high %v36_v25, %v40_v17  ;;  %v2813_v24 = vcombine.high %v37_v53, %v41_v18  ;;  %v97_v25 = vld [vmem:[%s4390_s1 + $0x278] sm:$0xff] }
  0xa3   :  { %2342 = vmatprep.subr.bf16.mxu0 %v3111_v26  ;;  %2465 = vmatprep.subr.bf16.mxu1 %v3113_v27  ;;  %v44_v26 = vld [vmem:[%s4390_s1 + $0xd0] sm:$0xff] }
  0xa4   :  { %v48_v27 = vld [vmem:[%s4390_s1 + $0xf0] sm:$0xff] }
  0xa5   :  { %v2818_v37 = vcombine.low %v44_v26, %v48_v27 }
  0xa6   :  { %2343 = vmatpush1.bf16.msra.mxu0 %v3110_v32  ;;  %2466 = vmatpush1.bf16.msra.mxu1 %v3112_v33  ;;  %v2819_v32 = vcombine.high %v44_v26, %v48_v27  ;;  %v2821_v33 = vcombine.high %v45_v15, %v49_v28  ;;  %v105_v26 = vld [vmem:[%s4390_s1 + $0x2b8] sm:$0xff] }
  0xa7   :  { %2344 = vmatprep.subr.bf16.mxu0 %v3119_v34  ;;  %2467 = vmatprep.subr.bf16.mxu1 %v3121_v35  ;;  %v52_v34 = vld [vmem:[%s4390_s1 + $0x110] sm:$0xff] }
  0xa8   :  { %v56_v35 = vld [vmem:[%s4390_s1 + $0x130] sm:$0xff] }
  0xa9   :  { %v2827_v39 = vcombine.high %v52_v34, %v56_v35  ;;  %v2826_v45 = vcombine.low %v52_v34, %v56_v35  ;;  %v113_v34 = vld [vmem:[%s4390_s1 + $0x2f8] sm:$0xff] }
  0xaa   :  { %2345 = vmatpush1.bf16.msra.mxu0 %v3118_v40  ;;  %2468 = vmatpush1.bf16.msra.mxu1 %v3120_v41  ;;  %v60_v41 = vld [vmem:[%s4390_s1 + $0x150] sm:$0xff] }
  0xab   :  { %2346 = vmatprep.subr.bf16.mxu0 %v3127_v42  ;;  %2469 = vmatprep.subr.bf16.mxu1 %v3129_v43  ;;  %v64_v42 = vld [vmem:[%s4390_s1 + $0x170] sm:$0xff]  ;;  %v61_v43 = vld [vmem:[%s4390_s1 + $0x158] sm:$0xff] }
  0xac   :  { %v2835_v47 = vcombine.high %v60_v41, %v64_v42  ;;  %v2834_v54 = vcombine.low %v60_v41, %v64_v42  ;;  %v2836_v55 = vcombine.low %v61_v43, %v65_v44  ;;  %v121_v41 = vld [vmem:[%s4390_s1 + $0x338] sm:$0xff] }
  0xae   :  { %2347 = vmatpush1.bf16.msra.mxu0 %v3126_v48  ;;  %2470 = vmatpush1.bf16.msra.mxu1 %v3128_v49  ;;  %v2837_v48 = vcombine.high %v61_v43, %v65_v44  ;;  %v68_v49 = vld [vmem:[%s4390_s1 + $0x190] sm:$0xff] }
  0xaf   :  { %2348 = vmatprep.subr.bf16.mxu0 %v3135_v50  ;;  %2471 = vmatprep.subr.bf16.mxu1 %v3137_v51  ;;  %v72_v50 = vld [vmem:[%s4390_s1 + $0x1b0] sm:$0xff]  ;;  %v69_v51 = vld [vmem:[%s4390_s1 + $0x198] sm:$0xff] }
  0xb0   :  { %v2843_v56 = vcombine.high %v68_v49, %v72_v50  ;;  %v2842_v63 = vcombine.low %v68_v49, %v72_v50  ;;  %v2844_v0 = vcombine.low %v69_v51, %v73_v52  ;;  %v129_v49 = vld [vmem:[%s4390_s1 + $0x378] sm:$0xff] }
  0xb2   :  { %2349 = vmatpush1.bf16.msra.mxu0 %v3134_v58  ;;  %2472 = vmatpush1.bf16.msra.mxu1 %v3136_v59  ;;  %v2845_v58 = vcombine.high %v69_v51, %v73_v52  ;;  %v76_v59 = vld [vmem:[%s4390_s1 + $0x1d0] sm:$0xff] }
  0xb3   :  { %2350 = vmatprep.subr.bf16.mxu0 %v3143_v60  ;;  %2473 = vmatprep.subr.bf16.mxu1 %v3145_v61  ;;  %v80_v60 = vld [vmem:[%s4390_s1 + $0x1f0] sm:$0xff]  ;;  %v77_v61 = vld [vmem:[%s4390_s1 + $0x1d8] sm:$0xff] }
  0xb4   :  { %v2851_v1 = vcombine.high %v76_v59, %v80_v60  ;;  %v2850_v7 = vcombine.low %v76_v59, %v80_v60  ;;  %v2852_v9 = vcombine.low %v77_v61, %v81_v62  ;;  %v137_v59 = vld [vmem:[%s4390_s1 + $0x3b8] sm:$0xff] }
  0xb6   :  { %2351 = vmatpush1.bf16.msra.mxu0 %v3142_v2  ;;  %2474 = vmatpush1.bf16.msra.mxu1 %v3144_v3  ;;  %v2853_v2 = vcombine.high %v77_v61, %v81_v62  ;;  %v84_v3 = vld [vmem:[%s4390_s1 + $0x210] sm:$0xff] }
  0xb7   :  { %2490 = vmatprep.subr.bf16.mxu0 %v2795_v4  ;;  %2613 = vmatprep.subr.bf16.mxu1 %v2797_v5  ;;  %v88_v4 = vld [vmem:[%s4390_s1 + $0x230] sm:$0xff]  ;;  %v85_v5 = vld [vmem:[%s4390_s1 + $0x218] sm:$0xff] }
  0xb8   :  { %v2859_v10 = vcombine.high %v84_v3, %v88_v4  ;;  %v2858_v17 = vcombine.low %v84_v3, %v88_v4  ;;  %v2860_v53 = vcombine.low %v85_v5, %v89_v6  ;;  %v145_v3 = vld [vmem:[%s4390_s1 + $0x3f8] sm:$0xff] }
  0xb9   :  { %2359 = vmatmul.mubr.bf16.vlgmr.msra.gmra.mrb[0].mxu0 %v3835_v8  ;;  %2482 = vmatmul.mubr.bf16.vlgmr.msra.gmra.mrb[0].mxu1 %v3835_v8 }
  0xba   :  { %2491 = vmatpush1.bf16.msra.mxu0 %v2794_v11  ;;  %2614 = vmatpush1.bf16.msra.mxu1 %v2796_v13  ;;  %v2861_v11 = vcombine.high %v85_v5, %v89_v6  ;;  %v92_v13 = vld [vmem:[%s4390_s1 + $0x250] sm:$0xff] }
  0xbb   :  { %2492 = vmatprep.subr.bf16.mxu0 %v2803_v14  ;;  %2615 = vmatprep.subr.bf16.mxu1 %v2805_v16  ;;  %v96_v14 = vld [vmem:[%s4390_s1 + $0x270] sm:$0xff]  ;;  %v93_v16 = vld [vmem:[%s4390_s1 + $0x258] sm:$0xff] }
  0xbc   :  { %2522 = vmatprep.mubr.bf16.mxu0 %v3325_v57  ;;  %2645 = vmatprep.mubr.bf16.mxu1 %v3325_v57  ;;  %v53_v57 = vld [vmem:[%s4390_s1 + $0x118] sm:$0xff]  ;;  %v2867_v18 = vcombine.high %v92_v13, %v96_v14  ;;  %v2866_v27 = vcombine.low %v92_v13, %v96_v14  ;;  %v2868_v15 = vcombine.low %v93_v16, %v97_v25 }
  0xbd   :  { %v2829_v40 = vcombine.high %v53_v57, %v57_v36  ;;  %v2828_v46 = vcombine.low %v53_v57, %v57_v36  ;;  %v153_v13 = vld [vmem:[%s4390_s1 + $0x438] sm:$0xff] }
  0xbe   :  { %2493 = vmatpush1.bf16.msra.mxu0 %v2802_v19  ;;  %2616 = vmatpush1.bf16.msra.mxu1 %v2804_v20  ;;  %v2869_v19 = vcombine.high %v93_v16, %v97_v25  ;;  %v100_v20 = vld [vmem:[%s4390_s1 + $0x290] sm:$0xff] }
  0xbf   :  { %2494 = vmatprep.subr.bf16.mxu0 %v2811_v23  ;;  %2617 = vmatprep.subr.bf16.mxu1 %v2813_v24  ;;  %v104_v23 = vld [vmem:[%s4390_s1 + $0x2b0] sm:$0xff]  ;;  %v101_v24 = vld [vmem:[%s4390_s1 + $0x298] sm:$0xff] }
  0xc0   :  { %v2875_v28 = vcombine.high %v100_v20, %v104_v23  ;;  %v2874_v35 = vcombine.low %v100_v20, %v104_v23  ;;  %v2876_v57 = vcombine.low %v101_v24, %v105_v26  ;;  %v161_v20 = vld [vmem:[%s4390_s1 + $0x478] sm:$0xff] }
  0xc2   :  { %2495 = vmatpush1.bf16.msra.mxu0 %v2810_v29  ;;  %2618 = vmatpush1.bf16.msra.mxu1 %v2812_v30  ;;  %v2877_v29 = vcombine.high %v101_v24, %v105_v26  ;;  %v108_v30 = vld [vmem:[%s4390_s1 + $0x2d0] sm:$0xff] }
  0xc3   :  { %2496 = vmatprep.subr.bf16.mxu0 %v2819_v32  ;;  %2619 = vmatprep.subr.bf16.mxu1 %v2821_v33  ;;  %v112_v32 = vld [vmem:[%s4390_s1 + $0x2f0] sm:$0xff]  ;;  %v109_v33 = vld [vmem:[%s4390_s1 + $0x2d8] sm:$0xff] }
  0xc4   :  { %v2883_v36 = vcombine.high %v108_v30, %v112_v32  ;;  %v2882_v42 = vcombine.low %v108_v30, %v112_v32  ;;  %v2884_v43 = vcombine.low %v109_v33, %v113_v34  ;;  %v169_v30 = vld [vmem:[%s4390_s1 + $0x4b8] sm:$0xff] }
  0xc6   :  { %2497 = vmatpush1.bf16.msra.mxu0 %v2818_v37  ;;  %2620 = vmatpush1.bf16.msra.mxu1 %v2820_v38  ;;  %v2885_v37 = vcombine.high %v109_v33, %v113_v34  ;;  %v116_v38 = vld [vmem:[%s4390_s1 + $0x310] sm:$0xff] }
  0xc7   :  { %2498 = vmatprep.subr.bf16.mxu0 %v2827_v39  ;;  %2621 = vmatprep.subr.bf16.mxu1 %v2829_v40  ;;  %v120_v39 = vld [vmem:[%s4390_s1 + $0x330] sm:$0xff]  ;;  %v117_v40 = vld [vmem:[%s4390_s1 + $0x318] sm:$0xff] }
  0xc8   :  { %v2891_v44 = vcombine.high %v116_v38, %v120_v39  ;;  %v2890_v50 = vcombine.low %v116_v38, %v120_v39  ;;  %v2892_v51 = vcombine.low %v117_v40, %v121_v41 }
  0xca   :  { %2499 = vmatpush1.bf16.msra.mxu0 %v2826_v45  ;;  %2622 = vmatpush1.bf16.msra.mxu1 %v2828_v46  ;;  %v2893_v45 = vcombine.high %v117_v40, %v121_v41  ;;  %v124_v46 = vld [vmem:[%s4390_s1 + $0x350] sm:$0xff] }
  0xcb   :  { %2500 = vmatprep.subr.bf16.mxu0 %v2835_v47  ;;  %2623 = vmatprep.subr.bf16.mxu1 %v2837_v48  ;;  %v128_v47 = vld [vmem:[%s4390_s1 + $0x370] sm:$0xff]  ;;  %v125_v48 = vld [vmem:[%s4390_s1 + $0x358] sm:$0xff] }
  0xcc   :  { %v2899_v52 = vcombine.high %v124_v46, %v128_v47  ;;  %v2898_v60 = vcombine.low %v124_v46, %v128_v47  ;;  %v2900_v61 = vcombine.low %v125_v48, %v129_v49 }
  0xce   :  { %2501 = vmatpush1.bf16.msra.mxu0 %v2834_v54  ;;  %2624 = vmatpush1.bf16.msra.mxu1 %v2836_v55  ;;  %v2901_v54 = vcombine.high %v125_v48, %v129_v49  ;;  %v132_v55 = vld [vmem:[%s4390_s1 + $0x390] sm:$0xff] }
  0xcf   :  { %2502 = vmatprep.subr.bf16.mxu0 %v2843_v56  ;;  %2625 = vmatprep.subr.bf16.mxu1 %v2845_v58  ;;  %v136_v56 = vld [vmem:[%s4390_s1 + $0x3b0] sm:$0xff]  ;;  %v133_v58 = vld [vmem:[%s4390_s1 + $0x398] sm:$0xff] }
  0xd0   :  { %v2907_v62 = vcombine.high %v132_v55, %v136_v56  ;;  %v2906_v4 = vcombine.low %v132_v55, %v136_v56  ;;  %v2908_v5 = vcombine.low %v133_v58, %v137_v59  ;;  %v188_v49 = vld [vmem:[%s4390_s1 + $0x550] sm:$0xff] }
  0xd2   :  { %2503 = vmatpush1.bf16.msra.mxu0 %v2842_v63  ;;  %2626 = vmatpush1.bf16.msra.mxu1 %v2844_v0  ;;  %v2909_v63 = vcombine.high %v133_v58, %v137_v59  ;;  %v140_v0 = vld [vmem:[%s4390_s1 + $0x3d0] sm:$0xff] }
  0xd3   :  { %2504 = vmatprep.subr.bf16.mxu0 %v2851_v1  ;;  %2627 = vmatprep.subr.bf16.mxu1 %v2853_v2  ;;  %v144_v1 = vld [vmem:[%s4390_s1 + $0x3f0] sm:$0xff]  ;;  %v141_v2 = vld [vmem:[%s4390_s1 + $0x3d8] sm:$0xff] }
  0xd4   :  { %v2915_v6 = vcombine.high %v140_v0, %v144_v1  ;;  %v2914_v14 = vcombine.low %v140_v0, %v144_v1  ;;  %v2916_v16 = vcombine.low %v141_v2, %v145_v3  ;;  %v196_v59 = vld [vmem:[%s4390_s1 + $0x590] sm:$0xff] }
  0xd6   :  { %2505 = vmatpush1.bf16.msra.mxu0 %v2850_v7  ;;  %2628 = vmatpush1.bf16.msra.mxu1 %v2852_v9  ;;  %v2917_v7 = vcombine.high %v141_v2, %v145_v3  ;;  %v148_v9 = vld [vmem:[%s4390_s1 + $0x410] sm:$0xff] }
  0xd7   :  { %2506 = vmatprep.subr.bf16.mxu0 %v2859_v10  ;;  %2629 = vmatprep.subr.bf16.mxu1 %v2861_v11  ;;  %v152_v10 = vld [vmem:[%s4390_s1 + $0x430] sm:$0xff]  ;;  %v149_v11 = vld [vmem:[%s4390_s1 + $0x418] sm:$0xff] }
  0xd8   :  { %v2923_v25 = vcombine.high %v148_v9, %v152_v10  ;;  %v2922_v23 = vcombine.low %v148_v9, %v152_v10  ;;  %v2924_v24 = vcombine.low %v149_v11, %v153_v13  ;;  %v204_v3 = vld [vmem:[%s4390_s1 + $0x5d0] sm:$0xff] }
  0xda   :  { %2507 = vmatpush1.bf16.msra.mxu0 %v2858_v17  ;;  %2630 = vmatpush1.bf16.msra.mxu1 %v2860_v53  ;;  %v2925_v17 = vcombine.high %v149_v11, %v153_v13  ;;  %v156_v53 = vld [vmem:[%s4390_s1 + $0x450] sm:$0xff] }
  0xdb   :  { %2508 = vmatprep.subr.bf16.mxu0 %v2867_v18  ;;  %2631 = vmatprep.subr.bf16.mxu1 %v2869_v19  ;;  %v160_v18 = vld [vmem:[%s4390_s1 + $0x470] sm:$0xff]  ;;  %v157_v19 = vld [vmem:[%s4390_s1 + $0x458] sm:$0xff] }
  0xdc   :  { %v2931_v26 = vcombine.high %v156_v53, %v160_v18  ;;  %v2930_v32 = vcombine.low %v156_v53, %v160_v18  ;;  %v2932_v33 = vcombine.low %v157_v19, %v161_v20  ;;  %v212_v13 = vld [vmem:[%s4390_s1 + $0x610] sm:$0xff] }
  0xde   :  { %2509 = vmatpush1.bf16.msra.mxu0 %v2866_v27  ;;  %2632 = vmatpush1.bf16.msra.mxu1 %v2868_v15  ;;  %v2933_v27 = vcombine.high %v157_v19, %v161_v20  ;;  %v164_v15 = vld [vmem:[%s4390_s1 + $0x490] sm:$0xff] }
  0xdf   :  { %2510 = vmatprep.subr.bf16.mxu0 %v2875_v28  ;;  %2633 = vmatprep.subr.bf16.mxu1 %v2877_v29  ;;  %v168_v28 = vld [vmem:[%s4390_s1 + $0x4b0] sm:$0xff]  ;;  %v165_v29 = vld [vmem:[%s4390_s1 + $0x498] sm:$0xff] }
  0xe0   :  { %v2939_v34 = vcombine.high %v164_v15, %v168_v28  ;;  %v2938_v38 = vcombine.low %v164_v15, %v168_v28  ;;  %v2940_v39 = vcombine.low %v165_v29, %v169_v30  ;;  %v220_v20 = vld [vmem:[%s4390_s1 + $0x650] sm:$0xff] }
  0xe2   :  { %2511 = vmatpush1.bf16.msra.mxu0 %v2874_v35  ;;  %2634 = vmatpush1.bf16.msra.mxu1 %v2876_v57  ;;  %v2941_v35 = vcombine.high %v165_v29, %v169_v30  ;;  %v172_v57 = vld [vmem:[%s4390_s1 + $0x4d0] sm:$0xff] }
  0xe3   :  { %2512 = vmatprep.subr.bf16.mxu0 %v2883_v36  ;;  %2635 = vmatprep.subr.bf16.mxu1 %v2885_v37  ;;  %v176_v36 = vld [vmem:[%s4390_s1 + $0x4f0] sm:$0xff]  ;;  %v177_v37 = vld [vmem:[%s4390_s1 + $0x4f8] sm:$0xff] }
  0xe4   :  { %v2947_v40 = vcombine.high %v172_v57, %v176_v36  ;;  %v228_v30 = vld [vmem:[%s4390_s1 + $0x690] sm:$0xff] }
  0xe6   :  { %2513 = vmatpush1.bf16.msra.mxu0 %v2882_v42  ;;  %2636 = vmatpush1.bf16.msra.mxu1 %v2884_v43  ;;  %v180_v42 = vld [vmem:[%s4390_s1 + $0x510] sm:$0xff] }
  0xe7   :  { %2514 = vmatprep.subr.bf16.mxu0 %v2891_v44  ;;  %2637 = vmatprep.subr.bf16.mxu1 %v2893_v45  ;;  %v184_v43 = vld [vmem:[%s4390_s1 + $0x530] sm:$0xff]  ;;  %v185_v44 = vld [vmem:[%s4390_s1 + $0x538] sm:$0xff]  ;;  %v2946_v45 = vcombine.low %v172_v57, %v176_v36 }
  0xe8   :  { %v2955_v47 = vcombine.high %v180_v42, %v184_v43 }
  0xea   :  { %2515 = vmatpush1.bf16.msra.mxu0 %v2890_v50  ;;  %2638 = vmatpush1.bf16.msra.mxu1 %v2892_v51  ;;  %v192_v50 = vld [vmem:[%s4390_s1 + $0x570] sm:$0xff]  ;;  %v189_v51 = vld [vmem:[%s4390_s1 + $0x558] sm:$0xff] }
  0xeb   :  { %2516 = vmatprep.subr.bf16.mxu0 %v2899_v52  ;;  %2639 = vmatprep.subr.bf16.mxu1 %v2901_v54  ;;  %v193_v52 = vld [vmem:[%s4390_s1 + $0x578] sm:$0xff]  ;;  %v2954_v54 = vcombine.low %v180_v42, %v184_v43  ;;  %v2963_v56 = vcombine.high %v188_v49, %v192_v50 }
  0xec   :  { %v2965_v58 = vcombine.high %v189_v51, %v193_v52  ;;  %v2964_v0 = vcombine.low %v189_v51, %v193_v52  ;;  %v252_v52 = vld [vmem:[%s4390_s1 + $0x750] sm:$0xff] }
  0xee   :  { %2517 = vmatpush1.bf16.msra.mxu0 %v2898_v60  ;;  %2640 = vmatpush1.bf16.msra.mxu1 %v2900_v61  ;;  %v200_v60 = vld [vmem:[%s4390_s1 + $0x5b0] sm:$0xff]  ;;  %v197_v61 = vld [vmem:[%s4390_s1 + $0x598] sm:$0xff] }
  0xef   :  { %2518 = vmatprep.subr.bf16.mxu0 %v2907_v62  ;;  %2641 = vmatprep.subr.bf16.mxu1 %v2909_v63  ;;  %v201_v62 = vld [vmem:[%s4390_s1 + $0x5b8] sm:$0xff]  ;;  %v2962_v63 = vcombine.low %v188_v49, %v192_v50  ;;  %v2971_v1 = vcombine.high %v196_v59, %v200_v60 }
  0xf0   :  { %v2973_v2 = vcombine.high %v197_v61, %v201_v62  ;;  %v2972_v9 = vcombine.low %v197_v61, %v201_v62  ;;  %v260_v62 = vld [vmem:[%s4390_s1 + $0x790] sm:$0xff] }
  0xf2   :  { %2519 = vmatpush1.bf16.msra.mxu0 %v2906_v4  ;;  %2642 = vmatpush1.bf16.msra.mxu1 %v2908_v5  ;;  %v208_v4 = vld [vmem:[%s4390_s1 + $0x5f0] sm:$0xff]  ;;  %v205_v5 = vld [vmem:[%s4390_s1 + $0x5d8] sm:$0xff] }
  0xf3   :  { %2520 = vmatprep.subr.bf16.mxu0 %v2915_v6  ;;  %2643 = vmatprep.subr.bf16.mxu1 %v2917_v7  ;;  %v209_v6 = vld [vmem:[%s4390_s1 + $0x5f8] sm:$0xff]  ;;  %v2970_v7 = vcombine.low %v196_v59, %v200_v60  ;;  %v2979_v10 = vcombine.high %v204_v3, %v208_v4 }
  0xf4   :  { %v2981_v11 = vcombine.high %v205_v5, %v209_v6  ;;  %v2980_v53 = vcombine.low %v205_v5, %v209_v6  ;;  %v268_v6 = vld [vmem:[%s4390_s1 + $0x7d0] sm:$0xff] }
  0xf6   :  { %2521 = vmatpush1.bf16.msra.mxu0 %v2914_v14  ;;  %2644 = vmatpush1.bf16.msra.mxu1 %v2916_v16  ;;  %v216_v14 = vld [vmem:[%s4390_s1 + $0x630] sm:$0xff]  ;;  %v213_v16 = vld [vmem:[%s4390_s1 + $0x618] sm:$0xff] }
  0xf7   :  { %2531 = vmatprep.subr.bf16.mxu0 %v2923_v25  ;;  %2654 = vmatprep.subr.bf16.mxu1 %v2925_v17  ;;  %v217_v25 = vld [vmem:[%s4390_s1 + $0x638] sm:$0xff]  ;;  %v2978_v17 = vcombine.low %v204_v3, %v208_v4  ;;  %v2987_v18 = vcombine.high %v212_v13, %v216_v14 }
  0xf8   :  { %v2989_v19 = vcombine.high %v213_v16, %v217_v25  ;;  %v2988_v15 = vcombine.low %v213_v16, %v217_v25  ;;  %v276_v25 = vld [vmem:[%s4390_s1 + $0x810] sm:$0xff] }
  0xf9   :  { %2523 = vmatmul.mubr.bf16.vlgmr.msra.gmra.mrb[4].mxu0 %v3451_v12  ;;  %2646 = vmatmul.mubr.bf16.vlgmr.msra.gmra.mrb[4].mxu1 %v3451_v12  ;;  %v173_v12 = vld [vmem:[%s4390_s1 + $0x4d8] sm:$0xff] }
  0xfa   :  { %2532 = vmatpush1.bf16.msra.mxu0 %v2922_v23  ;;  %2655 = vmatpush1.bf16.msra.mxu1 %v2924_v24  ;;  %v2949_v41 = vcombine.high %v173_v12, %v177_v37  ;;  %v2948_v46 = vcombine.low %v173_v12, %v177_v37  ;;  %v224_v23 = vld [vmem:[%s4390_s1 + $0x670] sm:$0xff]  ;;  %v221_v24 = vld [vmem:[%s4390_s1 + $0x658] sm:$0xff] }
  0xfb   :  { %2533 = vmatprep.subr.bf16.mxu0 %v2931_v26  ;;  %2656 = vmatprep.subr.bf16.mxu1 %v2933_v27  ;;  %v225_v26 = vld [vmem:[%s4390_s1 + $0x678] sm:$0xff]  ;;  %v2986_v27 = vcombine.low %v212_v13, %v216_v14  ;;  %v2995_v28 = vcombine.high %v220_v20, %v224_v23  ;;  %v236_v37 = vld [vmem:[%s4390_s1 + $0x6d0] sm:$0xff] }
  0xfc   :  { %2563 = vmatprep.mubr.bf16.mxu0 %v3472_v21  ;;  %2686 = vmatprep.mubr.bf16.mxu1 %v3472_v21  ;;  %v181_v21 = vld [vmem:[%s4390_s1 + $0x518] sm:$0xff]  ;;  %v2997_v29 = vcombine.high %v221_v24, %v225_v26  ;;  %v2996_v57 = vcombine.low %v221_v24, %v225_v26  ;;  %v284_v26 = vld [vmem:[%s4390_s1 + $0x850] sm:$0xff] }
  0xfd   :  { %v2957_v48 = vcombine.high %v181_v21, %v185_v44  ;;  %v2956_v55 = vcombine.low %v181_v21, %v185_v44  ;;  %v244_v44 = vld [vmem:[%s4390_s1 + $0x710] sm:$0xff] }
  0xfe   :  { %2534 = vmatpush1.bf16.msra.mxu0 %v2930_v32  ;;  %2657 = vmatpush1.bf16.msra.mxu1 %v2932_v33  ;;  %v232_v32 = vld [vmem:[%s4390_s1 + $0x6b0] sm:$0xff]  ;;  %v229_v33 = vld [vmem:[%s4390_s1 + $0x698] sm:$0xff] }
  0xff   :  { %2535 = vmatprep.subr.bf16.mxu0 %v2939_v34  ;;  %2658 = vmatprep.subr.bf16.mxu1 %v2941_v35  ;;  %v233_v34 = vld [vmem:[%s4390_s1 + $0x6b8] sm:$0xff]  ;;  %v2994_v35 = vcombine.low %v220_v20, %v224_v23  ;;  %v3003_v36 = vcombine.high %v228_v30, %v232_v32 }
 0x100   :  { %v3005_v12 = vcombine.high %v229_v33, %v233_v34  ;;  %v3004_v42 = vcombine.low %v229_v33, %v233_v34  ;;  %v292_v34 = vld [vmem:[%s4390_s1 + $0x890] sm:$0xff] }
 0x102   :  { %2536 = vmatpush1.bf16.msra.mxu0 %v2938_v38  ;;  %2659 = vmatpush1.bf16.msra.mxu1 %v2940_v39  ;;  %v240_v38 = vld [vmem:[%s4390_s1 + $0x6f0] sm:$0xff]  ;;  %v237_v39 = vld [vmem:[%s4390_s1 + $0x6d8] sm:$0xff] }
 0x103   :  { %2537 = vmatprep.subr.bf16.mxu0 %v2947_v40  ;;  %2660 = vmatprep.subr.bf16.mxu1 %v2949_v41  ;;  %v241_v40 = vld [vmem:[%s4390_s1 + $0x6f8] sm:$0xff]  ;;  %v3002_v41 = vcombine.low %v228_v30, %v232_v32  ;;  %v3011_v43 = vcombine.high %v236_v37, %v240_v38 }
 0x104   :  { %v3013_v21 = vcombine.high %v237_v39, %v241_v40  ;;  %v3012_v49 = vcombine.low %v237_v39, %v241_v40  ;;  %v300_v40 = vld [vmem:[%s4390_s1 + $0x8d0] sm:$0xff] }
 0x106   :  { %2538 = vmatpush1.bf16.msra.mxu0 %v2946_v45  ;;  %2661 = vmatpush1.bf16.msra.mxu1 %v2948_v46  ;;  %v248_v45 = vld [vmem:[%s4390_s1 + $0x730] sm:$0xff]  ;;  %v245_v46 = vld [vmem:[%s4390_s1 + $0x718] sm:$0xff] }
 0x107   :  { %2539 = vmatprep.subr.bf16.mxu0 %v2955_v47  ;;  %2662 = vmatprep.subr.bf16.mxu1 %v2957_v48  ;;  %v249_v47 = vld [vmem:[%s4390_s1 + $0x738] sm:$0xff]  ;;  %v3010_v48 = vcombine.low %v236_v37, %v240_v38  ;;  %v3019_v50 = vcombine.high %v244_v44, %v248_v45 }
 0x108   :  { %v3021_v51 = vcombine.high %v245_v46, %v249_v47  ;;  %v3020_v59 = vcombine.low %v245_v46, %v249_v47  ;;  %v308_v46 = vld [vmem:[%s4390_s1 + $0x910] sm:$0xff] }
 0x109   :  { %v312_v47 = vld [vmem:[%s4390_s1 + $0x930] sm:$0xff] }
 0x10a   :  { %2540 = vmatpush1.bf16.msra.mxu0 %v2954_v54  ;;  %2663 = vmatpush1.bf16.msra.mxu1 %v2956_v55  ;;  %v256_v54 = vld [vmem:[%s4390_s1 + $0x770] sm:$0xff]  ;;  %v253_v55 = vld [vmem:[%s4390_s1 + $0x758] sm:$0xff] }
 0x10b   :  { %2541 = vmatprep.subr.bf16.mxu0 %v2963_v56  ;;  %2664 = vmatprep.subr.bf16.mxu1 %v2965_v58  ;;  %v257_v56 = vld [vmem:[%s4390_s1 + $0x778] sm:$0xff]  ;;  %v3018_v58 = vcombine.low %v244_v44, %v248_v45  ;;  %v3027_v60 = vcombine.high %v252_v52, %v256_v54 }
 0x10c   :  { %v3029_v61 = vcombine.high %v253_v55, %v257_v56  ;;  %v3028_v3 = vcombine.low %v253_v55, %v257_v56  ;;  %v320_v55 = vld [vmem:[%s4390_s1 + $0x970] sm:$0xff]  ;;  %v317_v56 = vld [vmem:[%s4390_s1 + $0x958] sm:$0xff] }
 0x10e   :  { %2542 = vmatpush1.bf16.msra.mxu0 %v2962_v63  ;;  %2665 = vmatpush1.bf16.msra.mxu1 %v2964_v0  ;;  %v264_v63 = vld [vmem:[%s4390_s1 + $0x7b0] sm:$0xff]  ;;  %v261_v0 = vld [vmem:[%s4390_s1 + $0x798] sm:$0xff] }
 0x10f   :  { %2543 = vmatprep.subr.bf16.mxu0 %v2971_v1  ;;  %2666 = vmatprep.subr.bf16.mxu1 %v2973_v2  ;;  %v265_v1 = vld [vmem:[%s4390_s1 + $0x7b8] sm:$0xff]  ;;  %v3026_v2 = vcombine.low %v252_v52, %v256_v54  ;;  %v3035_v4 = vcombine.high %v260_v62, %v264_v63  ;;  %v316_v54 = vld [vmem:[%s4390_s1 + $0x950] sm:$0xff] }
 0x110   :  { %v3037_v5 = vcombine.high %v261_v0, %v265_v1  ;;  %v3036_v13 = vcombine.low %v261_v0, %v265_v1  ;;  %v328_v0 = vld [vmem:[%s4390_s1 + $0x9b0] sm:$0xff]  ;;  %v325_v1 = vld [vmem:[%s4390_s1 + $0x998] sm:$0xff] }
 0x112   :  { %2544 = vmatpush1.bf16.msra.mxu0 %v2970_v7  ;;  %2667 = vmatpush1.bf16.msra.mxu1 %v2972_v9  ;;  %v272_v7 = vld [vmem:[%s4390_s1 + $0x7f0] sm:$0xff]  ;;  %v269_v9 = vld [vmem:[%s4390_s1 + $0x7d8] sm:$0xff] }
 0x113   :  { %2545 = vmatprep.subr.bf16.mxu0 %v2979_v10  ;;  %2668 = vmatprep.subr.bf16.mxu1 %v2981_v11  ;;  %v273_v10 = vld [vmem:[%s4390_s1 + $0x7f8] sm:$0xff]  ;;  %v3034_v11 = vcombine.low %v260_v62, %v264_v63  ;;  %v3043_v14 = vcombine.high %v268_v6, %v272_v7  ;;  %v324_v63 = vld [vmem:[%s4390_s1 + $0x990] sm:$0xff] }
 0x114   :  { %v3045_v16 = vcombine.high %v269_v9, %v273_v10  ;;  %v3044_v20 = vcombine.low %v269_v9, %v273_v10  ;;  %v336_v9 = vld [vmem:[%s4390_s1 + $0x9f0] sm:$0xff]  ;;  %v333_v10 = vld [vmem:[%s4390_s1 + $0x9d8] sm:$0xff] }
 0x116   :  { %2546 = vmatpush1.bf16.msra.mxu0 %v2978_v17  ;;  %2669 = vmatpush1.bf16.msra.mxu1 %v2980_v53  ;;  %v280_v17 = vld [vmem:[%s4390_s1 + $0x830] sm:$0xff]  ;;  %v277_v53 = vld [vmem:[%s4390_s1 + $0x818] sm:$0xff] }
 0x117   :  { %2547 = vmatprep.subr.bf16.mxu0 %v2987_v18  ;;  %2670 = vmatprep.subr.bf16.mxu1 %v2989_v19  ;;  %v281_v18 = vld [vmem:[%s4390_s1 + $0x838] sm:$0xff]  ;;  %v3042_v19 = vcombine.low %v268_v6, %v272_v7  ;;  %v3051_v23 = vcombine.high %v276_v25, %v280_v17  ;;  %v332_v7 = vld [vmem:[%s4390_s1 + $0x9d0] sm:$0xff] }
 0x118   :  { %v3053_v24 = vcombine.high %v277_v53, %v281_v18  ;;  %v3052_v30 = vcombine.low %v277_v53, %v281_v18  ;;  %v344_v53 = vld [vmem:[%s4390_s1 + $0xa30] sm:$0xff]  ;;  %v341_v18 = vld [vmem:[%s4390_s1 + $0xa18] sm:$0xff] }
 0x11a   :  { %2548 = vmatpush1.bf16.msra.mxu0 %v2986_v27  ;;  %2671 = vmatpush1.bf16.msra.mxu1 %v2988_v15  ;;  %v288_v27 = vld [vmem:[%s4390_s1 + $0x870] sm:$0xff]  ;;  %v285_v15 = vld [vmem:[%s4390_s1 + $0x858] sm:$0xff] }
 0x11b   :  { %2549 = vmatprep.subr.bf16.mxu0 %v2995_v28  ;;  %2672 = vmatprep.subr.bf16.mxu1 %v2997_v29  ;;  %v289_v28 = vld [vmem:[%s4390_s1 + $0x878] sm:$0xff]  ;;  %v3050_v29 = vcombine.low %v276_v25, %v280_v17  ;;  %v3059_v32 = vcombine.high %v284_v26, %v288_v27  ;;  %v340_v17 = vld [vmem:[%s4390_s1 + $0xa10] sm:$0xff] }
 0x11c   :  { %v3061_v33 = vcombine.high %v285_v15, %v289_v28  ;;  %v3060_v37 = vcombine.low %v285_v15, %v289_v28  ;;  %v352_v15 = vld [vmem:[%s4390_s1 + $0xa70] sm:$0xff]  ;;  %v349_v28 = vld [vmem:[%s4390_s1 + $0xa58] sm:$0xff] }
 0x11e   :  { %2550 = vmatpush1.bf16.msra.mxu0 %v2994_v35  ;;  %2673 = vmatpush1.bf16.msra.mxu1 %v2996_v57  ;;  %v296_v35 = vld [vmem:[%s4390_s1 + $0x8b0] sm:$0xff]  ;;  %v293_v57 = vld [vmem:[%s4390_s1 + $0x898] sm:$0xff] }
 0x11f   :  { %2551 = vmatprep.subr.bf16.mxu0 %v3003_v36  ;;  %2674 = vmatprep.subr.bf16.mxu1 %v3005_v12  ;;  %v297_v36 = vld [vmem:[%s4390_s1 + $0x8b8] sm:$0xff]  ;;  %v3058_v12 = vcombine.low %v284_v26, %v288_v27  ;;  %v3067_v38 = vcombine.high %v292_v34, %v296_v35  ;;  %v348_v27 = vld [vmem:[%s4390_s1 + $0xa50] sm:$0xff] }
 0x120   :  { %v3069_v39 = vcombine.high %v293_v57, %v297_v36 }
 0x122   :  { %2552 = vmatpush1.bf16.msra.mxu0 %v3002_v41  ;;  %2675 = vmatpush1.bf16.msra.mxu1 %v3004_v42  ;;  %v304_v41 = vld [vmem:[%s4390_s1 + $0x8f0] sm:$0xff]  ;;  %v305_v42 = vld [vmem:[%s4390_s1 + $0x8f8] sm:$0xff] }
 0x123   :  { %2553 = vmatprep.subr.bf16.mxu0 %v3011_v43  ;;  %2676 = vmatprep.subr.bf16.mxu1 %v3013_v21  ;;  %v3066_v43 = vcombine.low %v292_v34, %v296_v35  ;;  %v3068_v21 = vcombine.low %v293_v57, %v297_v36  ;;  %v3075_v44 = vcombine.high %v300_v40, %v304_v41  ;;  %v356_v35 = vld [vmem:[%s4390_s1 + $0xa90] sm:$0xff]  ;;  %v357_v36 = vld [vmem:[%s4390_s1 + $0xa98] sm:$0xff] }
 0x124   :  { %v360_v57 = vld [vmem:[%s4390_s1 + $0xab0] sm:$0xff] }
 0x126   :  { %2554 = vmatpush1.bf16.msra.mxu0 %v3010_v48  ;;  %2677 = vmatpush1.bf16.msra.mxu1 %v3012_v49  ;;  %v313_v48 = vld [vmem:[%s4390_s1 + $0x938] sm:$0xff]  ;;  %v3074_v49 = vcombine.low %v300_v40, %v304_v41  ;;  %v364_v41 = vld [vmem:[%s4390_s1 + $0xad0] sm:$0xff] }
 0x127   :  { %2555 = vmatprep.subr.bf16.mxu0 %v3019_v50  ;;  %2678 = vmatprep.subr.bf16.mxu1 %v3021_v51  ;;  %v3083_v51 = vcombine.high %v308_v46, %v312_v47 }
 0x12a   :  { %2556 = vmatpush1.bf16.msra.mxu0 %v3018_v58  ;;  %2679 = vmatpush1.bf16.msra.mxu1 %v3020_v59  ;;  %v321_v58 = vld [vmem:[%s4390_s1 + $0x978] sm:$0xff]  ;;  %v3082_v59 = vcombine.low %v308_v46, %v312_v47  ;;  %v372_v47 = vld [vmem:[%s4390_s1 + $0xb10] sm:$0xff] }
 0x12b   :  { %2557 = vmatprep.subr.bf16.mxu0 %v3027_v60  ;;  %2680 = vmatprep.subr.bf16.mxu1 %v3029_v61  ;;  %v3091_v61 = vcombine.high %v316_v54, %v320_v55  ;;  %v3093_v62 = vcombine.high %v317_v56, %v321_v58 }
 0x12e   :  { %2558 = vmatpush1.bf16.msra.mxu0 %v3026_v2  ;;  %2681 = vmatpush1.bf16.msra.mxu1 %v3028_v3  ;;  %v329_v2 = vld [vmem:[%s4390_s1 + $0x9b8] sm:$0xff]  ;;  %v3090_v3 = vcombine.low %v316_v54, %v320_v55 }
 0x12f   :  { %2559 = vmatprep.subr.bf16.mxu0 %v3035_v4  ;;  %2682 = vmatprep.subr.bf16.mxu1 %v3037_v5  ;;  %v3092_v4 = vcombine.low %v317_v56, %v321_v58  ;;  %v3099_v5 = vcombine.high %v324_v63, %v328_v0  ;;  %v3101_v6 = vcombine.high %v325_v1, %v329_v2  ;;  %v380_v58 = vlaneseq }
 0x132   :  { %2560 = vmatpush1.bf16.msra.mxu0 %v3034_v11  ;;  %2683 = vmatpush1.bf16.msra.mxu1 %v3036_v13  ;;  %v337_v11 = vld [vmem:[%s4390_s1 + $0x9f8] sm:$0xff]  ;;  %v3098_v13 = vcombine.low %v324_v63, %v328_v0 }
 0x133   :  { %2561 = vmatprep.subr.bf16.mxu0 %v3043_v14  ;;  %2684 = vmatprep.subr.bf16.mxu1 %v3045_v16  ;;  %v3100_v14 = vcombine.low %v325_v1, %v329_v2  ;;  %v3107_v16 = vcombine.high %v332_v7, %v336_v9  ;;  %v3109_v25 = vcombine.high %v333_v10, %v337_v11 }
 0x136   :  { %2562 = vmatpush1.bf16.msra.mxu0 %v3042_v19  ;;  %2685 = vmatpush1.bf16.msra.mxu1 %v3044_v20  ;;  %v345_v19 = vld [vmem:[%s4390_s1 + $0xa38] sm:$0xff]  ;;  %v3106_v20 = vcombine.low %v332_v7, %v336_v9 }
 0x137   :  { %2572 = vmatprep.subr.bf16.mxu0 %v3051_v23  ;;  %2695 = vmatprep.subr.bf16.mxu1 %v3053_v24  ;;  %v3108_v23 = vcombine.low %v333_v10, %v337_v11  ;;  %v3115_v24 = vcombine.high %v340_v17, %v344_v53  ;;  %v3117_v26 = vcombine.high %v341_v18, %v345_v19 }
 0x139   :  { %2564 = vmatmul.mubr.bf16.vlgmr.msra.gmra.mrb[4].mxu0 %v3660_v22  ;;  %2687 = vmatmul.mubr.bf16.vlgmr.msra.gmra.mrb[4].mxu1 %v3660_v22  ;;  %v301_v22 = vld [vmem:[%s4390_s1 + $0x8d8] sm:$0xff] }
 0x13a   :  { %2573 = vmatpush1.bf16.msra.mxu0 %v3050_v29  ;;  %2696 = vmatpush1.bf16.msra.mxu1 %v3052_v30  ;;  %v3077_v45 = vcombine.high %v301_v22, %v305_v42  ;;  %v3076_v50 = vcombine.low %v301_v22, %v305_v42  ;;  %v353_v29 = vld [vmem:[%s4390_s1 + $0xa78] sm:$0xff]  ;;  %v3114_v30 = vcombine.low %v340_v17, %v344_v53  ;;  %v368_v22 = vld [vmem:[%s4390_s1 + $0xaf0] sm:$0xff] }
 0x13b   :  { %2574 = vmatprep.subr.bf16.mxu0 %v3059_v32  ;;  %2697 = vmatprep.subr.bf16.mxu1 %v3061_v33  ;;  %v3116_v32 = vcombine.low %v341_v18, %v345_v19  ;;  %v3123_v33 = vcombine.high %v348_v27, %v352_v15  ;;  %v3125_v34 = vcombine.high %v349_v28, %v353_v29  ;;  %v365_v42 = vld [vmem:[%s4390_s1 + $0xad8] sm:$0xff] }
 0x13c   :  { %3152 = vmatprep.mubr.msk.bf16.mxu0 %vm2240_vm0, %v3681_v31  ;;  %3153 = vmatprep.mubr.msk.bf16.mxu1 %vm2240_vm0, %v3681_v31  ;;  %v309_v31 = vld [vmem:[%s4390_s1 + $0x918] sm:$0xff] }
 0x13d   :  { %v3085_v52 = vcombine.high %v309_v31, %v313_v48  ;;  %v3084_v60 = vcombine.low %v309_v31, %v313_v48  ;;  %v376_v31 = vld [vmem:[%s4390_s1 + $0xb30] sm:$0xff]  ;;  %v373_v48 = vld [vmem:[%s4390_s1 + $0xb18] sm:$0xff] }
 0x13e   :  { %2575 = vmatpush1.bf16.msra.mxu0 %v3058_v12  ;;  %2698 = vmatpush1.bf16.msra.mxu1 %v3060_v37  ;;  %v361_v12 = vld [vmem:[%s4390_s1 + $0xab8] sm:$0xff]  ;;  %v3122_v37 = vcombine.low %v348_v27, %v352_v15  ;;  %v3146_v55 = vcombine.low %v372_v47, %v376_v31 }
 0x13f   :  { %2576 = vmatprep.subr.bf16.mxu0 %v3067_v38  ;;  %2699 = vmatprep.subr.bf16.mxu1 %v3069_v39  ;;  %v3124_v38 = vcombine.low %v349_v28, %v353_v29  ;;  %v3131_v39 = vcombine.high %v356_v35, %v360_v57  ;;  %v3133_v40 = vcombine.high %v357_v36, %v361_v12 }
 0x142   :  { %2577 = vmatpush1.bf16.msra.mxu0 %v3066_v43  ;;  %2700 = vmatpush1.bf16.msra.mxu1 %v3068_v21  ;;  %v369_v43 = vld [vmem:[%s4390_s1 + $0xaf8] sm:$0xff]  ;;  %v3130_v21 = vcombine.low %v356_v35, %v360_v57 }
 0x143   :  { %2578 = vmatprep.subr.bf16.mxu0 %v3075_v44  ;;  %2701 = vmatprep.subr.bf16.mxu1 %v3077_v45  ;;  %v3132_v44 = vcombine.low %v357_v36, %v361_v12  ;;  %v3139_v45 = vcombine.high %v364_v41, %v368_v22  ;;  %v3141_v46 = vcombine.high %v365_v42, %v369_v43 }
 0x146   :  { %2579 = vmatpush1.bf16.msra.mxu0 %v3074_v49  ;;  %2702 = vmatpush1.bf16.msra.mxu1 %v3076_v50  ;;  %v377_v49 = vld [vmem:[%s4390_s1 + $0xb38] sm:$0xff]  ;;  %v3138_v50 = vcombine.low %v364_v41, %v368_v22 }
 0x147   :  { %2580 = vmatprep.subr.bf16.mxu0 %v3083_v51  ;;  %2703 = vmatprep.subr.bf16.mxu1 %v3085_v52  ;;  %v3140_v51 = vcombine.low %v365_v42, %v369_v43  ;;  %v3147_v52 = vcombine.high %v372_v47, %v376_v31  ;;  %v3149_v54 = vcombine.high %v373_v48, %v377_v49 }
 0x148   :  { %v3148_v56 = vcombine.low %v373_v48, %v377_v49 }
 0x14a   :  { %2581 = vmatpush1.bf16.msra.mxu0 %v3082_v59  ;;  %2704 = vmatpush1.bf16.msra.mxu1 %v3084_v60  ;;  %v381_v59 = vshrl.u32 %v380_v58, 7 }
 0x14b   :  { %2582 = vmatprep.subr.bf16.mxu0 %v3091_v61  ;;  %2705 = vmatprep.subr.bf16.mxu1 %v3093_v62  ;;  %v378_v61 = vld [vmem:[%s4392_s2] sm:$0xff] }
 0x14c   :  { %v382_v60 = vsub.s32 0, %v381_v59  ;;  %v390_v62 = vsub.s32 2, %v381_v59  ;;  %v386_v63 = vsub.s32 1, %v381_v59  ;;  %v394_v0 = vsub.s32 3, %v381_v59 }
 0x14d   :  { %v406_v27 = vsub.s32 6, %v381_v59  ;;  %v402_v15 = vsub.s32 5, %v381_v59  ;;  %v410_v28 = vsub.s32 7, %v381_v59 }
 0x14e   :  { %2583 = vmatpush1.bf16.msra.mxu0 %v3090_v3  ;;  %2706 = vmatpush1.bf16.msra.mxu1 %v3092_v4  ;;  %v383_v1 = vrot.slane %v378_v61, %v382_v60  ;;  %v391_v2 = vrot.slane %v378_v61, %v390_v62  ;;  %v387_v3 = vrot.slane %v378_v61, %v386_v63 }
 0x14f   :  { %2584 = vmatprep.subr.bf16.mxu0 %v3099_v5  ;;  %2707 = vmatprep.subr.bf16.mxu1 %v3101_v6  ;;  %v395_v4 = vrot.slane %v378_v61, %v394_v0 }
 0x152   :  { %2585 = vmatpush1.bf16.msra.mxu0 %v3098_v13  ;;  %2708 = vmatpush1.bf16.msra.mxu1 %v3100_v14 }
 0x153   :  { %2586 = vmatprep.subr.bf16.mxu0 %v3107_v16  ;;  %2709 = vmatprep.subr.bf16.mxu1 %v3109_v25 }
 0x156   :  { %2587 = vmatpush1.bf16.msra.mxu0 %v3106_v20  ;;  %2710 = vmatpush1.bf16.msra.mxu1 %v3108_v23 }
 0x157   :  { %2588 = vmatprep.subr.bf16.mxu0 %v3115_v24  ;;  %2711 = vmatprep.subr.bf16.mxu1 %v3117_v26  ;;  %v398_v26 = vsub.s32 4, %v381_v59 }
 0x159   :  { %v399_v29 = vrot.slane %v378_v61, %v398_v26 }
 0x15a   :  { %2589 = vmatpush1.bf16.msra.mxu0 %v3114_v30  ;;  %2712 = vmatpush1.bf16.msra.mxu1 %v3116_v32  ;;  %v407_v30 = vrot.slane %v378_v61, %v406_v27  ;;  %v403_v32 = vrot.slane %v378_v61, %v402_v15 }
 0x15b   :  { %2590 = vmatprep.subr.bf16.mxu0 %v3123_v33  ;;  %2713 = vmatprep.subr.bf16.mxu1 %v3125_v34  ;;  %v411_v33 = vrot.slane %v378_v61, %v410_v28 }
 0x15e   :  { %2591 = vmatpush1.bf16.msra.mxu0 %v3122_v37  ;;  %2714 = vmatpush1.bf16.msra.mxu1 %v3124_v38 }
 0x15f   :  { %2592 = vmatprep.subr.bf16.mxu0 %v3131_v39  ;;  %2715 = vmatprep.subr.bf16.mxu1 %v3133_v40 }
 0x162   :  { %2593 = vmatpush1.bf16.msra.mxu0 %v3130_v21  ;;  %2716 = vmatpush1.bf16.msra.mxu1 %v3132_v44 }
 0x163   :  { %2594 = vmatprep.subr.bf16.mxu0 %v3139_v45  ;;  %2717 = vmatprep.subr.bf16.mxu1 %v3141_v46 }
 0x166   :  { %2595 = vmatpush1.bf16.msra.mxu0 %v3138_v50  ;;  %2718 = vmatpush1.bf16.msra.mxu1 %v3140_v51 }
 0x167   :  { %2596 = vmatprep.subr.bf16.mxu0 %v3147_v52  ;;  %2719 = vmatprep.subr.bf16.mxu1 %v3149_v54 }
 0x16a   :  { %2597 = vmatpush1.bf16.msra.mxu0 %v3146_v55  ;;  %2720 = vmatpush1.bf16.msra.mxu1 %v3148_v56 }
 0x16d   :  { %2605 = vmatmul.mubr.bf16.vlgmr.msra.gmra.mrb[4].mxu0 %v3835_v8  ;;  %2728 = vmatmul.mubr.bf16.vlgmr.msra.gmra.mrb[4].mxu1 %v3835_v8 }
 0x18c   :  { %v2360_v5 = vpop.f32.mrb[0].mxu0  ;;  %v2483_v7 = vpop.f32.mrb[0].mxu1 }
 0x18d   :  { %v3162_v6 = vadd.f32 %v2360_v5, %v383_v1  ;;  %v2362_v9 = vpop.f32.mrb[1].mxu0  ;;  %v3164_v10 = vadd.f32 %v2483_v7, %v391_v2  ;;  %v2485_v11 = vpop.f32.mrb[1].mxu1 }
 0x18e   :  { %v3163_v8 = vadd.f32 %v2362_v9, %v387_v3  ;;  %v2364_v13 = vpop.f32.mrb[2].mxu0  ;;  %v3165_v16 = vadd.f32 %v2485_v11, %v395_v4  ;;  %v2487_v25 = vpop.f32.mrb[2].mxu1 }
 0x18f   :  { %v2736_v14 = vmax.f32 %v3162_v6, 0.0  ;;  %v2365_v17 = vpop.f32.mrb[3].mxu0  ;;  %v2738_v53 = vmax.f32 %v3164_v10, 0.0  ;;  %v2488_v19 = vpop.f32.mrb[3].mxu1 }
 0x190   :  { %v2737_v18 = vmax.f32 %v3163_v8, 0.0  ;;  %v2739_v20 = vmax.f32 %v3165_v16, 0.0 }
 0x192   :  { %v3158_v23 = vpack.c.bf16 %v2737_v18, %v2736_v14  ;;  %v3159_v24 = vpack.c.bf16 %v2739_v20, %v2738_v53 }
 0x194   :  { %2776 = vst [vmem:[%s4393_s3] sm:$0xff] %v3158_v23  ;;  %2777 = vst [vmem:[%s4393_s3 + $0x8] sm:$0xff] %v3159_v24 }
 0x240   :  { %v2606_v34 = vpop.f32.mrb[4].mxu0  ;;  %v2729_v57 = vpop.f32.mrb[4].mxu1 }
 0x241   :  { %v3166_v35 = vadd.f32 %v2606_v34, %v399_v29  ;;  %v2608_v36 = vpop.f32.mrb[5].mxu0  ;;  %v3168_v12 = vadd.f32 %v2729_v57, %v407_v30  ;;  %v2731_v38 = vpop.f32.mrb[5].mxu1 }
 0x242   :  { %v3167_v37 = vadd.f32 %v2608_v36, %v403_v32  ;;  %v2610_v39 = vpop.f32.mrb[6].mxu0  ;;  %v3169_v41 = vadd.f32 %v2731_v38, %v411_v33  ;;  %v2733_v22 = vpop.f32.mrb[6].mxu1 }
 0x243   :  { %v2740_v40 = vmax.f32 %v3166_v35, 0.0  ;;  %v2611_v42 = vpop.f32.mrb[7].mxu0  ;;  %v2742_v43 = vmax.f32 %v3168_v12, 0.0  ;;  %v2734_v44 = vpop.f32.mrb[7].mxu1 }
 0x244   :  { %v2741_v21 = vmax.f32 %v3167_v37, 0.0  ;;  %v2743_v45 = vmax.f32 %v3169_v41, 0.0 }
 0x246   :  { %v3160_v46 = vpack.c.bf16 %v2741_v21, %v2740_v40  ;;  %v3161_v47 = vpack.c.bf16 %v2743_v45, %v2742_v43 }
 0x248   :  { %2778 = vst [vmem:[%s4393_s3 + $0x10] sm:$0xff] %v3160_v46  ;;  %2779 = vst [vmem:[%s4393_s3 + $0x18] sm:$0xff] %v3161_v47 }

</bundles_post_ra>
